<compile_context>
chip_gen: v6e
topology: v6e:2x2x1
jax: 0.10.0
libtpu: 0.0.40
codegen_flags: <defaults>
</compile_context>

<pallas_src>
import functools

import jax
import jax.numpy as jnp
from jax.experimental import pallas as pl
from jax.experimental.pallas import tpu as pltpu


def _shift_masks(H, W):
    """Zero-halo validity masks for every (dy, dx) in {-1,0,1}^2 (None == all valid)."""
    rows = jax.lax.broadcasted_iota(jnp.int32, (H, W), 0)
    cols = jax.lax.broadcasted_iota(jnp.int32, (H, W), 1)
    row_ok = {-1: rows >= 1, 0: None, 1: rows < H - 1}
    col_ok = {-1: cols >= 1, 0: None, 1: cols < W - 1}
    masks = {}
    for dy in (-1, 0, 1):
        for dx in (-1, 0, 1):
            m = row_ok[dy]
            c = col_ok[dx]
            if c is not None:
                m = c if m is None else (m & c)
            masks[(dy, dx)] = m
    return masks


def _conv3x3_same(chans, w_ref, masks, *, Cin, Cout, H, W):
    """3x3 stride-1 'same' conv on register-resident channel planes.

    chans: list of Cin (H, W) f32 arrays.  w_ref: flat OIHW scalars in SMEM.
    Each shifted/masked window is computed once and re-used for all Cout
    accumulators (Cout x (H, W) f32 live values -- well under the vreg budget).
    """
    acc = [jnp.zeros((H, W), jnp.float32) for _ in range(Cout)]
    for ci in range(Cin):
        c = chans[ci]
        for dy in (-1, 0, 1):
            r0 = c if dy == 0 else pltpu.roll(c, shift=(-dy) % H, axis=0)
            for dx in (-1, 0, 1):
                r = r0 if dx == 0 else pltpu.roll(r0, shift=(-dx) % W, axis=1)
                m = masks[(dy, dx)]
                win = r if m is None else jnp.where(m, r, 0.0)
                for co in range(Cout):
                    widx = ((co * Cin + ci) * 3 + (dy + 1)) * 3 + (dx + 1)
                    acc[co] = acc[co] + win * w_ref[widx]
    return acc


def _basic_block_kernel(x_ref, w1_ref, w2_ref, s1_ref, b1_ref, s2_ref, b2_ref,
                        out_ref, *, H, W, Cin, Cout, n_img):
    """Fused conv3x3 -> bn1 -> relu -> conv3x3 -> bn2 -> +residual -> relu."""
    masks = _shift_masks(H, W)            # built once per grid step, reused everywhere
    for img in range(n_img):
        # Load the Cin input planes once; they also serve as the identity residual.
        xin = [x_ref[img, ci] for ci in range(Cin)]

        # ---- conv1 + bn1 + relu (register resident, no VMEM scratch) ----
        acc1 = _conv3x3_same(xin, w1_ref, masks, Cin=Cin, Cout=Cout, H=H, W=W)
        h = [jnp.maximum(acc1[co] * s1_ref[co] + b1_ref[co], 0.0) for co in range(Cout)]

        # ---- conv2 + bn2 + residual + relu ----
        acc2 = _conv3x3_same(h, w2_ref, masks, Cin=Cout, Cout=Cout, H=H, W=W)
        for co in range(Cout):
            out_ref[img, co] = jnp.maximum(
                acc2[co] * s2_ref[co] + b2_ref[co] + xin[co], 0.0)


def basic_block_forward(x, w1, w2, bn1, bn2, eps=1e-5):
    """x: (N, C, H, W) f32; w1/w2: (Cout, Cin, 3, 3) OIHW; bn = (gamma, beta, mean, var)."""
    # Covers the BasicBlock default configuration: stride=1, downsample=None,
    # inplanes == planes (identity residual).
    # TODO(synk): stride > 1 / downsample branch not implemented (default config only).
    N, Cin, H, W = x.shape
    Cout = w1.shape[0]
    assert Cin == Cout and w1.shape == (Cout, Cin, 3, 3) and w2.shape == (Cout, Cout, 3, 3)

    # Fold BatchNorm into per-channel scale/bias (inference semantics).
    # TODO(synk): BatchNorm2d uses running stats (eval semantics); training-mode
    # batch statistics are not computed in-kernel.
    def fold(p):
        g, b, m, v = p
        s = g / jnp.sqrt(v + eps)
        return s.astype(jnp.float32), (b - m * s).astype(jnp.float32)

    s1, b1 = fold(bn1)
    s2, b2 = fold(bn2)

    # Row-major flatten of OIHW weights: index ((co*Cin + ci)*3 + ky)*3 + kx.
    w1f = w1.reshape(-1).astype(jnp.float32)
    w2f = w2.reshape(-1).astype(jnp.float32)

    # Grid: at most 2 steps.  Keeps a "parallel" axis so v7x can shard the work
    # across its 2 TensorCores, while capping serial grid-step overhead on the
    # single-TC v5e/v6e to a single extra ~0.35us step.
    n_steps = 2 if N >= 2 else 1
    imgs_per_step = pl.cdiv(N, n_steps)
    n_pad = n_steps * imgs_per_step
    xin = x.astype(jnp.float32)
    if n_pad != N:
        xin = jnp.pad(xin, ((0, n_pad - N), (0, 0), (0, 0), (0, 0)))

    kernel = functools.partial(_basic_block_kernel, H=H, W=W, Cin=Cin, Cout=Cout,
                               n_img=imgs_per_step)
    smem = pl.BlockSpec(memory_space=pltpu.MemorySpace.SMEM)

    out = pl.pallas_call(
        kernel,
        out_shape=jax.ShapeDtypeStruct((n_pad, Cout, H, W), jnp.float32),
        grid_spec=pltpu.PrefetchScalarGridSpec(
            num_scalar_prefetch=0,
            grid=(n_steps,),
            in_specs=[
                pl.BlockSpec((imgs_per_step, Cin, H, W), lambda i: (i, 0, 0, 0)),
                smem,  # w1 (flattened OIHW scalars)
                smem,  # w2
                smem,  # bn1 scale
                smem,  # bn1 bias
                smem,  # bn2 scale
                smem,  # bn2 bias
            ],
            out_specs=pl.BlockSpec((imgs_per_step, Cout, H, W), lambda i: (i, 0, 0, 0)),
        ),
        compiler_params=pltpu.CompilerParams(dimension_semantics=("parallel",)),
    )(xin, w1f, w2f, s1, b1, s2, b2)
    return out[:N] if n_pad != N else out


def _reference_forward(x, w1, w2, bn1, bn2, eps=1e-5):
    """Pure-JAX reference (XLA conv) of the same eval-mode BasicBlock."""
    def conv(y, w):
        return jax.lax.conv_general_dilated(
            y, w, window_strides=(1, 1), padding=((1, 1), (1, 1)),
            dimension_numbers=("NCHW", "OIHW", "NCHW"))

    def bn(y, p):
        g, b, m, v = (t[None, :, None, None] for t in p)
        return (y - m) / jnp.sqrt(v + eps) * g + b

    out = jax.nn.relu(bn(conv(x, w1), bn1))
    out = bn(conv(out, w2), bn2)
    return jax.nn.relu(out + x)


if __name__ == "__main__":
    key = jax.random.PRNGKey(0)
    ks = jax.random.split(key, 11)
    N, C, H, W = 2, 4, 16, 16          # inplanes = planes = 4, stride = 1

    x = jax.random.normal(ks[0], (N, C, H, W), jnp.float32)
    w1 = 0.1 * jax.random.normal(ks[1], (C, C, 3, 3), jnp.float32)
    w2 = 0.1 * jax.random.normal(ks[2], (C, C, 3, 3), jnp.float32)
    bn1 = (1.0 + 0.1 * jax.random.normal(ks[3], (C,), jnp.float32),    # gamma
           0.1 * jax.random.normal(ks[4], (C,), jnp.float32),          # beta
           0.1 * jax.random.normal(ks[5], (C,), jnp.float32),          # running_mean
           0.5 + jnp.abs(jax.random.normal(ks[6], (C,), jnp.float32))) # running_var
    bn2 = (1.0 + 0.1 * jax.random.normal(ks[7], (C,), jnp.float32),
           0.1 * jax.random.normal(ks[8], (C,), jnp.float32),
           0.1 * jax.random.normal(ks[9], (C,), jnp.float32),
           0.5 + jnp.abs(jax.random.normal(ks[10], (C,), jnp.float32)))

    out = basic_block_forward(x, w1, w2, bn1, bn2)
    out = jax.block_until_ready(out)

    ref = jax.block_until_ready(_reference_forward(x, w1, w2, bn1, bn2))
    assert out.shape == (N, C, H, W) and out.dtype == jnp.float32
    assert jnp.allclose(out, ref, rtol=1e-4, atol=1e-4), "Pallas kernel mismatch vs reference"

    print("KERNEL_OK")
</pallas_src>

<mosaic_0001>
module attributes {stable_mosaic.version = 11 : i64} {
  func.func @_basic_block_kernel(%arg0: i32, %arg1: memref<1x4x16x16xf32, #tpu.memory_space<vmem>>, %arg2: memref<144xf32, #tpu.memory_space<smem>>, %arg3: memref<144xf32, #tpu.memory_space<smem>>, %arg4: memref<4xf32, #tpu.memory_space<smem>>, %arg5: memref<4xf32, #tpu.memory_space<smem>>, %arg6: memref<4xf32, #tpu.memory_space<smem>>, %arg7: memref<4xf32, #tpu.memory_space<smem>>, %arg8: memref<1x4x16x16xf32, #tpu.memory_space<vmem>>) attributes {dimension_semantics = [#tpu.dimension_semantics<parallel>], iteration_bounds = array<i64: 2>, scalar_prefetch = 0 : i64, scratch_operands = 0 : i64, tpu.core_type = #tpu.core_type<tc>, window_params = [{transform_indices = @transform_0, window_bounds = array<i64: 1, 4, 16, 16>}, {transform_indices = @transform_1, window_bounds = array<i64: 144>}, {transform_indices = @transform_2, window_bounds = array<i64: 144>}, {transform_indices = @transform_3, window_bounds = array<i64: 4>}, {transform_indices = @transform_4, window_bounds = array<i64: 4>}, {transform_indices = @transform_5, window_bounds = array<i64: 4>}, {transform_indices = @transform_6, window_bounds = array<i64: 4>}, {transform_indices = @transform_7, window_bounds = array<i64: 1, 4, 16, 16>}]} {
    %0 = tpu.iota {dimensions = array<i32: 0>} : vector<16x16xi32>
    %1 = tpu.iota {dimensions = array<i32: 1>} : vector<16x16xi32>
    %c1_i32 = arith.constant 1 : i32
    %2 = vector.broadcast %c1_i32 : i32 to vector<16x16xi32>
    %3 = arith.cmpi sge, %0, %2 : vector<16x16xi32>
    %c15_i32 = arith.constant 15 : i32
    %4 = vector.broadcast %c15_i32 : i32 to vector<16x16xi32>
    %5 = arith.cmpi slt, %0, %4 : vector<16x16xi32>
    %c1_i32_0 = arith.constant 1 : i32
    %6 = vector.broadcast %c1_i32_0 : i32 to vector<16x16xi32>
    %7 = arith.cmpi sge, %1, %6 : vector<16x16xi32>
    %c15_i32_1 = arith.constant 15 : i32
    %8 = vector.broadcast %c15_i32_1 : i32 to vector<16x16xi32>
    %9 = arith.cmpi slt, %1, %8 : vector<16x16xi32>
    %10 = arith.andi %3, %7 : vector<16x16xi1>
    %11 = arith.andi %3, %9 : vector<16x16xi1>
    %12 = arith.andi %5, %7 : vector<16x16xi1>
    %13 = arith.andi %5, %9 : vector<16x16xi1>
    %c0 = arith.constant 0 : index
    %c0_2 = arith.constant 0 : index
    %c0_3 = arith.constant 0 : index
    %c0_4 = arith.constant 0 : index
    %14 = vector.load %arg1[%c0, %c0_2, %c0_3, %c0_4] : memref<1x4x16x16xf32, #tpu.memory_space<vmem>>, vector<1x1x16x16xf32>
    %15 = vector.shape_cast %14 : vector<1x1x16x16xf32> to vector<16x16xf32>
    %c0_5 = arith.constant 0 : index
    %c1 = arith.constant 1 : index
    %c0_6 = arith.constant 0 : index
    %c0_7 = arith.constant 0 : index
    %16 = vector.load %arg1[%c0_5, %c1, %c0_6, %c0_7] : memref<1x4x16x16xf32, #tpu.memory_space<vmem>>, vector<1x1x16x16xf32>
    %17 = vector.shape_cast %16 : vector<1x1x16x16xf32> to vector<16x16xf32>
    %c0_8 = arith.constant 0 : index
    %c2 = arith.constant 2 : index
    %c0_9 = arith.constant 0 : index
    %c0_10 = arith.constant 0 : index
    %18 = vector.load %arg1[%c0_8, %c2, %c0_9, %c0_10] : memref<1x4x16x16xf32, #tpu.memory_space<vmem>>, vector<1x1x16x16xf32>
    %19 = vector.shape_cast %18 : vector<1x1x16x16xf32> to vector<16x16xf32>
    %c0_11 = arith.constant 0 : index
    %c3 = arith.constant 3 : index
    %c0_12 = arith.constant 0 : index
    %c0_13 = arith.constant 0 : index
    %20 = vector.load %arg1[%c0_11, %c3, %c0_12, %c0_13] : memref<1x4x16x16xf32, #tpu.memory_space<vmem>>, vector<1x1x16x16xf32>
    %21 = vector.shape_cast %20 : vector<1x1x16x16xf32> to vector<16x16xf32>
    %cst = arith.constant 0.000000e+00 : f32
    %22 = vector.broadcast %cst : f32 to vector<16x16xf32>
    %cst_14 = arith.constant 0.000000e+00 : f32
    %23 = vector.broadcast %cst_14 : f32 to vector<16x16xf32>
    %cst_15 = arith.constant 0.000000e+00 : f32
    %24 = vector.broadcast %cst_15 : f32 to vector<16x16xf32>
    %cst_16 = arith.constant 0.000000e+00 : f32
    %25 = vector.broadcast %cst_16 : f32 to vector<16x16xf32>
    %c1_i32_17 = arith.constant 1 : i32
    %26 = tpu.dynamic_rotate %15 by %c1_i32_17 dim 0 : vector<16x16xf32>, i32 -> vector<16x16xf32>
    %c1_i32_18 = arith.constant 1 : i32
    %27 = tpu.dynamic_rotate %26 by %c1_i32_18 dim 1 : vector<16x16xf32>, i32 -> vector<16x16xf32>
    %cst_19 = arith.constant 0.000000e+00 : f32
    %28 = vector.broadcast %cst_19 : f32 to vector<16x16xf32>
    %29 = arith.select %10, %27, %28 : vector<16x16xi1>, vector<16x16xf32>
    %c0_20 = arith.constant 0 : index
    %30 = memref.load %arg2[%c0_20] : memref<144xf32, #tpu.memory_space<smem>>
    %31 = vector.broadcast %30 : f32 to vector<16x16xf32>
    %32 = arith.mulf %29, %31 : vector<16x16xf32>
    %33 = arith.addf %22, %32 : vector<16x16xf32>
    %c36 = arith.constant 36 : index
    %34 = memref.load %arg2[%c36] : memref<144xf32, #tpu.memory_space<smem>>
    %35 = vector.broadcast %34 : f32 to vector<16x16xf32>
    %36 = arith.mulf %29, %35 : vector<16x16xf32>
    %37 = arith.addf %23, %36 : vector<16x16xf32>
    %c72 = arith.constant 72 : index
    %38 = memref.load %arg2[%c72] : memref<144xf32, #tpu.memory_space<smem>>
    %39 = vector.broadcast %38 : f32 to vector<16x16xf32>
    %40 = arith.mulf %29, %39 : vector<16x16xf32>
    %41 = arith.addf %24, %40 : vector<16x16xf32>
    %c108 = arith.constant 108 : index
    %42 = memref.load %arg2[%c108] : memref<144xf32, #tpu.memory_space<smem>>
    %43 = vector.broadcast %42 : f32 to vector<16x16xf32>
    %44 = arith.mulf %29, %43 : vector<16x16xf32>
    %45 = arith.addf %25, %44 : vector<16x16xf32>
    %cst_21 = arith.constant 0.000000e+00 : f32
    %46 = vector.broadcast %cst_21 : f32 to vector<16x16xf32>
    %47 = arith.select %3, %26, %46 : vector<16x16xi1>, vector<16x16xf32>
    %c1_22 = arith.constant 1 : index
    %48 = memref.load %arg2[%c1_22] : memref<144xf32, #tpu.memory_space<smem>>
    %49 = vector.broadcast %48 : f32 to vector<16x16xf32>
    %50 = arith.mulf %47, %49 : vector<16x16xf32>
    %51 = arith.addf %33, %50 : vector<16x16xf32>
    %c37 = arith.constant 37 : index
    %52 = memref.load %arg2[%c37] : memref<144xf32, #tpu.memory_space<smem>>
    %53 = vector.broadcast %52 : f32 to vector<16x16xf32>
    %54 = arith.mulf %47, %53 : vector<16x16xf32>
    %55 = arith.addf %37, %54 : vector<16x16xf32>
    %c73 = arith.constant 73 : index
    %56 = memref.load %arg2[%c73] : memref<144xf32, #tpu.memory_space<smem>>
    %57 = vector.broadcast %56 : f32 to vector<16x16xf32>
    %58 = arith.mulf %47, %57 : vector<16x16xf32>
    %59 = arith.addf %41, %58 : vector<16x16xf32>
    %c109 = arith.constant 109 : index
    %60 = memref.load %arg2[%c109] : memref<144xf32, #tpu.memory_space<smem>>
    %61 = vector.broadcast %60 : f32 to vector<16x16xf32>
    %62 = arith.mulf %47, %61 : vector<16x16xf32>
    %63 = arith.addf %45, %62 : vector<16x16xf32>
    %c15_i32_23 = arith.constant 15 : i32
    %64 = tpu.dynamic_rotate %26 by %c15_i32_23 dim 1 : vector<16x16xf32>, i32 -> vector<16x16xf32>
    %cst_24 = arith.constant 0.000000e+00 : f32
    %65 = vector.broadcast %cst_24 : f32 to vector<16x16xf32>
    %66 = arith.select %11, %64, %65 : vector<16x16xi1>, vector<16x16xf32>
    %c2_25 = arith.constant 2 : index
    %67 = memref.load %arg2[%c2_25] : memref<144xf32, #tpu.memory_space<smem>>
    %68 = vector.broadcast %67 : f32 to vector<16x16xf32>
    %69 = arith.mulf %66, %68 : vector<16x16xf32>
    %70 = arith.addf %51, %69 : vector<16x16xf32>
    %c38 = arith.constant 38 : index
    %71 = memref.load %arg2[%c38] : memref<144xf32, #tpu.memory_space<smem>>
    %72 = vector.broadcast %71 : f32 to vector<16x16xf32>
    %73 = arith.mulf %66, %72 : vector<16x16xf32>
    %74 = arith.addf %55, %73 : vector<16x16xf32>
    %c74 = arith.constant 74 : index
    %75 = memref.load %arg2[%c74] : memref<144xf32, #tpu.memory_space<smem>>
    %76 = vector.broadcast %75 : f32 to vector<16x16xf32>
    %77 = arith.mulf %66, %76 : vector<16x16xf32>
    %78 = arith.addf %59, %77 : vector<16x16xf32>
    %c110 = arith.constant 110 : index
    %79 = memref.load %arg2[%c110] : memref<144xf32, #tpu.memory_space<smem>>
    %80 = vector.broadcast %79 : f32 to vector<16x16xf32>
    %81 = arith.mulf %66, %80 : vector<16x16xf32>
    %82 = arith.addf %63, %81 : vector<16x16xf32>
    %c1_i32_26 = arith.constant 1 : i32
    %83 = tpu.dynamic_rotate %15 by %c1_i32_26 dim 1 : vector<16x16xf32>, i32 -> vector<16x16xf32>
    %cst_27 = arith.constant 0.000000e+00 : f32
    %84 = vector.broadcast %cst_27 : f32 to vector<16x16xf32>
    %85 = arith.select %7, %83, %84 : vector<16x16xi1>, vector<16x16xf32>
    %c3_28 = arith.constant 3 : index
    %86 = memref.load %arg2[%c3_28] : memref<144xf32, #tpu.memory_space<smem>>
    %87 = vector.broadcast %86 : f32 to vector<16x16xf32>
    %88 = arith.mulf %85, %87 : vector<16x16xf32>
    %89 = arith.addf %70, %88 : vector<16x16xf32>
    %c39 = arith.constant 39 : index
    %90 = memref.load %arg2[%c39] : memref<144xf32, #tpu.memory_space<smem>>
    %91 = vector.broadcast %90 : f32 to vector<16x16xf32>
    %92 = arith.mulf %85, %91 : vector<16x16xf32>
    %93 = arith.addf %74, %92 : vector<16x16xf32>
    %c75 = arith.constant 75 : index
    %94 = memref.load %arg2[%c75] : memref<144xf32, #tpu.memory_space<smem>>
    %95 = vector.broadcast %94 : f32 to vector<16x16xf32>
    %96 = arith.mulf %85, %95 : vector<16x16xf32>
    %97 = arith.addf %78, %96 : vector<16x16xf32>
    %c111 = arith.constant 111 : index
    %98 = memref.load %arg2[%c111] : memref<144xf32, #tpu.memory_space<smem>>
    %99 = vector.broadcast %98 : f32 to vector<16x16xf32>
    %100 = arith.mulf %85, %99 : vector<16x16xf32>
    %101 = arith.addf %82, %100 : vector<16x16xf32>
    %c4 = arith.constant 4 : index
    %102 = memref.load %arg2[%c4] : memref<144xf32, #tpu.memory_space<smem>>
    %103 = vector.broadcast %102 : f32 to vector<16x16xf32>
    %104 = arith.mulf %15, %103 : vector<16x16xf32>
    %105 = arith.addf %89, %104 : vector<16x16xf32>
    %c40 = arith.constant 40 : index
    %106 = memref.load %arg2[%c40] : memref<144xf32, #tpu.memory_space<smem>>
    %107 = vector.broadcast %106 : f32 to vector<16x16xf32>
    %108 = arith.mulf %15, %107 : vector<16x16xf32>
    %109 = arith.addf %93, %108 : vector<16x16xf32>
    %c76 = arith.constant 76 : index
    %110 = memref.load %arg2[%c76] : memref<144xf32, #tpu.memory_space<smem>>
    %111 = vector.broadcast %110 : f32 to vector<16x16xf32>
    %112 = arith.mulf %15, %111 : vector<16x16xf32>
    %113 = arith.addf %97, %112 : vector<16x16xf32>
    %c112 = arith.constant 112 : index
    %114 = memref.load %arg2[%c112] : memref<144xf32, #tpu.memory_space<smem>>
    %115 = vector.broadcast %114 : f32 to vector<16x16xf32>
    %116 = arith.mulf %15, %115 : vector<16x16xf32>
    %117 = arith.addf %101, %116 : vector<16x16xf32>
    %c15_i32_29 = arith.constant 15 : i32
    %118 = tpu.dynamic_rotate %15 by %c15_i32_29 dim 1 : vector<16x16xf32>, i32 -> vector<16x16xf32>
    %cst_30 = arith.constant 0.000000e+00 : f32
    %119 = vector.broadcast %cst_30 : f32 to vector<16x16xf32>
    %120 = arith.select %9, %118, %119 : vector<16x16xi1>, vector<16x16xf32>
    %c5 = arith.constant 5 : index
    %121 = memref.load %arg2[%c5] : memref<144xf32, #tpu.memory_space<smem>>
    %122 = vector.broadcast %121 : f32 to vector<16x16xf32>
    %123 = arith.mulf %120, %122 : vector<16x16xf32>
    %124 = arith.addf %105, %123 : vector<16x16xf32>
    %c41 = arith.constant 41 : index
    %125 = memref.load %arg2[%c41] : memref<144xf32, #tpu.memory_space<smem>>
    %126 = vector.broadcast %125 : f32 to vector<16x16xf32>
    %127 = arith.mulf %120, %126 : vector<16x16xf32>
    %128 = arith.addf %109, %127 : vector<16x16xf32>
    %c77 = arith.constant 77 : index
    %129 = memref.load %arg2[%c77] : memref<144xf32, #tpu.memory_space<smem>>
    %130 = vector.broadcast %129 : f32 to vector<16x16xf32>
    %131 = arith.mulf %120, %130 : vector<16x16xf32>
    %132 = arith.addf %113, %131 : vector<16x16xf32>
    %c113 = arith.constant 113 : index
    %133 = memref.load %arg2[%c113] : memref<144xf32, #tpu.memory_space<smem>>
    %134 = vector.broadcast %133 : f32 to vector<16x16xf32>
    %135 = arith.mulf %120, %134 : vector<16x16xf32>
    %136 = arith.addf %117, %135 : vector<16x16xf32>
    %c15_i32_31 = arith.constant 15 : i32
    %137 = tpu.dynamic_rotate %15 by %c15_i32_31 dim 0 : vector<16x16xf32>, i32 -> vector<16x16xf32>
    %c1_i32_32 = arith.constant 1 : i32
    %138 = tpu.dynamic_rotate %137 by %c1_i32_32 dim 1 : vector<16x16xf32>, i32 -> vector<16x16xf32>
    %cst_33 = arith.constant 0.000000e+00 : f32
    %139 = vector.broadcast %cst_33 : f32 to vector<16x16xf32>
    %140 = arith.select %12, %138, %139 : vector<16x16xi1>, vector<16x16xf32>
    %c6 = arith.constant 6 : index
    %141 = memref.load %arg2[%c6] : memref<144xf32, #tpu.memory_space<smem>>
    %142 = vector.broadcast %141 : f32 to vector<16x16xf32>
    %143 = arith.mulf %140, %142 : vector<16x16xf32>
    %144 = arith.addf %124, %143 : vector<16x16xf32>
    %c42 = arith.constant 42 : index
    %145 = memref.load %arg2[%c42] : memref<144xf32, #tpu.memory_space<smem>>
    %146 = vector.broadcast %145 : f32 to vector<16x16xf32>
    %147 = arith.mulf %140, %146 : vector<16x16xf32>
    %148 = arith.addf %128, %147 : vector<16x16xf32>
    %c78 = arith.constant 78 : index
    %149 = memref.load %arg2[%c78] : memref<144xf32, #tpu.memory_space<smem>>
    %150 = vector.broadcast %149 : f32 to vector<16x16xf32>
    %151 = arith.mulf %140, %150 : vector<16x16xf32>
    %152 = arith.addf %132, %151 : vector<16x16xf32>
    %c114 = arith.constant 114 : index
    %153 = memref.load %arg2[%c114] : memref<144xf32, #tpu.memory_space<smem>>
    %154 = vector.broadcast %153 : f32 to vector<16x16xf32>
    %155 = arith.mulf %140, %154 : vector<16x16xf32>
    %156 = arith.addf %136, %155 : vector<16x16xf32>
    %cst_34 = arith.constant 0.000000e+00 : f32
    %157 = vector.broadcast %cst_34 : f32 to vector<16x16xf32>
    %158 = arith.select %5, %137, %157 : vector<16x16xi1>, vector<16x16xf32>
    %c7 = arith.constant 7 : index
    %159 = memref.load %arg2[%c7] : memref<144xf32, #tpu.memory_space<smem>>
    %160 = vector.broadcast %159 : f32 to vector<16x16xf32>
    %161 = arith.mulf %158, %160 : vector<16x16xf32>
    %162 = arith.addf %144, %161 : vector<16x16xf32>
    %c43 = arith.constant 43 : index
    %163 = memref.load %arg2[%c43] : memref<144xf32, #tpu.memory_space<smem>>
    %164 = vector.broadcast %163 : f32 to vector<16x16xf32>
    %165 = arith.mulf %158, %164 : vector<16x16xf32>
    %166 = arith.addf %148, %165 : vector<16x16xf32>
    %c79 = arith.constant 79 : index
    %167 = memref.load %arg2[%c79] : memref<144xf32, #tpu.memory_space<smem>>
    %168 = vector.broadcast %167 : f32 to vector<16x16xf32>
    %169 = arith.mulf %158, %168 : vector<16x16xf32>
    %170 = arith.addf %152, %169 : vector<16x16xf32>
    %c115 = arith.constant 115 : index
    %171 = memref.load %arg2[%c115] : memref<144xf32, #tpu.memory_space<smem>>
    %172 = vector.broadcast %171 : f32 to vector<16x16xf32>
    %173 = arith.mulf %158, %172 : vector<16x16xf32>
    %174 = arith.addf %156, %173 : vector<16x16xf32>
    %c15_i32_35 = arith.constant 15 : i32
    %175 = tpu.dynamic_rotate %137 by %c15_i32_35 dim 1 : vector<16x16xf32>, i32 -> vector<16x16xf32>
    %cst_36 = arith.constant 0.000000e+00 : f32
    %176 = vector.broadcast %cst_36 : f32 to vector<16x16xf32>
    %177 = arith.select %13, %175, %176 : vector<16x16xi1>, vector<16x16xf32>
    %c8 = arith.constant 8 : index
    %178 = memref.load %arg2[%c8] : memref<144xf32, #tpu.memory_space<smem>>
    %179 = vector.broadcast %178 : f32 to vector<16x16xf32>
    %180 = arith.mulf %177, %179 : vector<16x16xf32>
    %181 = arith.addf %162, %180 : vector<16x16xf32>
    %c44 = arith.constant 44 : index
    %182 = memref.load %arg2[%c44] : memref<144xf32, #tpu.memory_space<smem>>
    %183 = vector.broadcast %182 : f32 to vector<16x16xf32>
    %184 = arith.mulf %177, %183 : vector<16x16xf32>
    %185 = arith.addf %166, %184 : vector<16x16xf32>
    %c80 = arith.constant 80 : index
    %186 = memref.load %arg2[%c80] : memref<144xf32, #tpu.memory_space<smem>>
    %187 = vector.broadcast %186 : f32 to vector<16x16xf32>
    %188 = arith.mulf %177, %187 : vector<16x16xf32>
    %189 = arith.addf %170, %188 : vector<16x16xf32>
    %c116 = arith.constant 116 : index
    %190 = memref.load %arg2[%c116] : memref<144xf32, #tpu.memory_space<smem>>
    %191 = vector.broadcast %190 : f32 to vector<16x16xf32>
    %192 = arith.mulf %177, %191 : vector<16x16xf32>
    %193 = arith.addf %174, %192 : vector<16x16xf32>
    %c1_i32_37 = arith.constant 1 : i32
    %194 = tpu.dynamic_rotate %17 by %c1_i32_37 dim 0 : vector<16x16xf32>, i32 -> vector<16x16xf32>
    %c1_i32_38 = arith.constant 1 : i32
    %195 = tpu.dynamic_rotate %194 by %c1_i32_38 dim 1 : vector<16x16xf32>, i32 -> vector<16x16xf32>
    %cst_39 = arith.constant 0.000000e+00 : f32
    %196 = vector.broadcast %cst_39 : f32 to vector<16x16xf32>
    %197 = arith.select %10, %195, %196 : vector<16x16xi1>, vector<16x16xf32>
    %c9 = arith.constant 9 : index
    %198 = memref.load %arg2[%c9] : memref<144xf32, #tpu.memory_space<smem>>
    %199 = vector.broadcast %198 : f32 to vector<16x16xf32>
    %200 = arith.mulf %197, %199 : vector<16x16xf32>
    %201 = arith.addf %181, %200 : vector<16x16xf32>
    %c45 = arith.constant 45 : index
    %202 = memref.load %arg2[%c45] : memref<144xf32, #tpu.memory_space<smem>>
    %203 = vector.broadcast %202 : f32 to vector<16x16xf32>
    %204 = arith.mulf %197, %203 : vector<16x16xf32>
    %205 = arith.addf %185, %204 : vector<16x16xf32>
    %c81 = arith.constant 81 : index
    %206 = memref.load %arg2[%c81] : memref<144xf32, #tpu.memory_space<smem>>
    %207 = vector.broadcast %206 : f32 to vector<16x16xf32>
    %208 = arith.mulf %197, %207 : vector<16x16xf32>
    %209 = arith.addf %189, %208 : vector<16x16xf32>
    %c117 = arith.constant 117 : index
    %210 = memref.load %arg2[%c117] : memref<144xf32, #tpu.memory_space<smem>>
    %211 = vector.broadcast %210 : f32 to vector<16x16xf32>
    %212 = arith.mulf %197, %211 : vector<16x16xf32>
    %213 = arith.addf %193, %212 : vector<16x16xf32>
    %cst_40 = arith.constant 0.000000e+00 : f32
    %214 = vector.broadcast %cst_40 : f32 to vector<16x16xf32>
    %215 = arith.select %3, %194, %214 : vector<16x16xi1>, vector<16x16xf32>
    %c10 = arith.constant 10 : index
    %216 = memref.load %arg2[%c10] : memref<144xf32, #tpu.memory_space<smem>>
    %217 = vector.broadcast %216 : f32 to vector<16x16xf32>
    %218 = arith.mulf %215, %217 : vector<16x16xf32>
    %219 = arith.addf %201, %218 : vector<16x16xf32>
    %c46 = arith.constant 46 : index
    %220 = memref.load %arg2[%c46] : memref<144xf32, #tpu.memory_space<smem>>
    %221 = vector.broadcast %220 : f32 to vector<16x16xf32>
    %222 = arith.mulf %215, %221 : vector<16x16xf32>
    %223 = arith.addf %205, %222 : vector<16x16xf32>
    %c82 = arith.constant 82 : index
    %224 = memref.load %arg2[%c82] : memref<144xf32, #tpu.memory_space<smem>>
    %225 = vector.broadcast %224 : f32 to vector<16x16xf32>
    %226 = arith.mulf %215, %225 : vector<16x16xf32>
    %227 = arith.addf %209, %226 : vector<16x16xf32>
    %c118 = arith.constant 118 : index
    %228 = memref.load %arg2[%c118] : memref<144xf32, #tpu.memory_space<smem>>
    %229 = vector.broadcast %228 : f32 to vector<16x16xf32>
    %230 = arith.mulf %215, %229 : vector<16x16xf32>
    %231 = arith.addf %213, %230 : vector<16x16xf32>
    %c15_i32_41 = arith.constant 15 : i32
    %232 = tpu.dynamic_rotate %194 by %c15_i32_41 dim 1 : vector<16x16xf32>, i32 -> vector<16x16xf32>
    %cst_42 = arith.constant 0.000000e+00 : f32
    %233 = vector.broadcast %cst_42 : f32 to vector<16x16xf32>
    %234 = arith.select %11, %232, %233 : vector<16x16xi1>, vector<16x16xf32>
    %c11 = arith.constant 11 : index
    %235 = memref.load %arg2[%c11] : memref<144xf32, #tpu.memory_space<smem>>
    %236 = vector.broadcast %235 : f32 to vector<16x16xf32>
    %237 = arith.mulf %234, %236 : vector<16x16xf32>
    %238 = arith.addf %219, %237 : vector<16x16xf32>
    %c47 = arith.constant 47 : index
    %239 = memref.load %arg2[%c47] : memref<144xf32, #tpu.memory_space<smem>>
    %240 = vector.broadcast %239 : f32 to vector<16x16xf32>
    %241 = arith.mulf %234, %240 : vector<16x16xf32>
    %242 = arith.addf %223, %241 : vector<16x16xf32>
    %c83 = arith.constant 83 : index
    %243 = memref.load %arg2[%c83] : memref<144xf32, #tpu.memory_space<smem>>
    %244 = vector.broadcast %243 : f32 to vector<16x16xf32>
    %245 = arith.mulf %234, %244 : vector<16x16xf32>
    %246 = arith.addf %227, %245 : vector<16x16xf32>
    %c119 = arith.constant 119 : index
    %247 = memref.load %arg2[%c119] : memref<144xf32, #tpu.memory_space<smem>>
    %248 = vector.broadcast %247 : f32 to vector<16x16xf32>
    %249 = arith.mulf %234, %248 : vector<16x16xf32>
    %250 = arith.addf %231, %249 : vector<16x16xf32>
    %c1_i32_43 = arith.constant 1 : i32
    %251 = tpu.dynamic_rotate %17 by %c1_i32_43 dim 1 : vector<16x16xf32>, i32 -> vector<16x16xf32>
    %cst_44 = arith.constant 0.000000e+00 : f32
    %252 = vector.broadcast %cst_44 : f32 to vector<16x16xf32>
    %253 = arith.select %7, %251, %252 : vector<16x16xi1>, vector<16x16xf32>
    %c12 = arith.constant 12 : index
    %254 = memref.load %arg2[%c12] : memref<144xf32, #tpu.memory_space<smem>>
    %255 = vector.broadcast %254 : f32 to vector<16x16xf32>
    %256 = arith.mulf %253, %255 : vector<16x16xf32>
    %257 = arith.addf %238, %256 : vector<16x16xf32>
    %c48 = arith.constant 48 : index
    %258 = memref.load %arg2[%c48] : memref<144xf32, #tpu.memory_space<smem>>
    %259 = vector.broadcast %258 : f32 to vector<16x16xf32>
    %260 = arith.mulf %253, %259 : vector<16x16xf32>
    %261 = arith.addf %242, %260 : vector<16x16xf32>
    %c84 = arith.constant 84 : index
    %262 = memref.load %arg2[%c84] : memref<144xf32, #tpu.memory_space<smem>>
    %263 = vector.broadcast %262 : f32 to vector<16x16xf32>
    %264 = arith.mulf %253, %263 : vector<16x16xf32>
    %265 = arith.addf %246, %264 : vector<16x16xf32>
    %c120 = arith.constant 120 : index
    %266 = memref.load %arg2[%c120] : memref<144xf32, #tpu.memory_space<smem>>
    %267 = vector.broadcast %266 : f32 to vector<16x16xf32>
    %268 = arith.mulf %253, %267 : vector<16x16xf32>
    %269 = arith.addf %250, %268 : vector<16x16xf32>
    %c13 = arith.constant 13 : index
    %270 = memref.load %arg2[%c13] : memref<144xf32, #tpu.memory_space<smem>>
    %271 = vector.broadcast %270 : f32 to vector<16x16xf32>
    %272 = arith.mulf %17, %271 : vector<16x16xf32>
    %273 = arith.addf %257, %272 : vector<16x16xf32>
    %c49 = arith.constant 49 : index
    %274 = memref.load %arg2[%c49] : memref<144xf32, #tpu.memory_space<smem>>
    %275 = vector.broadcast %274 : f32 to vector<16x16xf32>
    %276 = arith.mulf %17, %275 : vector<16x16xf32>
    %277 = arith.addf %261, %276 : vector<16x16xf32>
    %c85 = arith.constant 85 : index
    %278 = memref.load %arg2[%c85] : memref<144xf32, #tpu.memory_space<smem>>
    %279 = vector.broadcast %278 : f32 to vector<16x16xf32>
    %280 = arith.mulf %17, %279 : vector<16x16xf32>
    %281 = arith.addf %265, %280 : vector<16x16xf32>
    %c121 = arith.constant 121 : index
    %282 = memref.load %arg2[%c121] : memref<144xf32, #tpu.memory_space<smem>>
    %283 = vector.broadcast %282 : f32 to vector<16x16xf32>
    %284 = arith.mulf %17, %283 : vector<16x16xf32>
    %285 = arith.addf %269, %284 : vector<16x16xf32>
    %c15_i32_45 = arith.constant 15 : i32
    %286 = tpu.dynamic_rotate %17 by %c15_i32_45 dim 1 : vector<16x16xf32>, i32 -> vector<16x16xf32>
    %cst_46 = arith.constant 0.000000e+00 : f32
    %287 = vector.broadcast %cst_46 : f32 to vector<16x16xf32>
    %288 = arith.select %9, %286, %287 : vector<16x16xi1>, vector<16x16xf32>
    %c14 = arith.constant 14 : index
    %289 = memref.load %arg2[%c14] : memref<144xf32, #tpu.memory_space<smem>>
    %290 = vector.broadcast %289 : f32 to vector<16x16xf32>
    %291 = arith.mulf %288, %290 : vector<16x16xf32>
    %292 = arith.addf %273, %291 : vector<16x16xf32>
    %c50 = arith.constant 50 : index
    %293 = memref.load %arg2[%c50] : memref<144xf32, #tpu.memory_space<smem>>
    %294 = vector.broadcast %293 : f32 to vector<16x16xf32>
    %295 = arith.mulf %288, %294 : vector<16x16xf32>
    %296 = arith.addf %277, %295 : vector<16x16xf32>
    %c86 = arith.constant 86 : index
    %297 = memref.load %arg2[%c86] : memref<144xf32, #tpu.memory_space<smem>>
    %298 = vector.broadcast %297 : f32 to vector<16x16xf32>
    %299 = arith.mulf %288, %298 : vector<16x16xf32>
    %300 = arith.addf %281, %299 : vector<16x16xf32>
    %c122 = arith.constant 122 : index
    %301 = memref.load %arg2[%c122] : memref<144xf32, #tpu.memory_space<smem>>
    %302 = vector.broadcast %301 : f32 to vector<16x16xf32>
    %303 = arith.mulf %288, %302 : vector<16x16xf32>
    %304 = arith.addf %285, %303 : vector<16x16xf32>
    %c15_i32_47 = arith.constant 15 : i32
    %305 = tpu.dynamic_rotate %17 by %c15_i32_47 dim 0 : vector<16x16xf32>, i32 -> vector<16x16xf32>
    %c1_i32_48 = arith.constant 1 : i32
    %306 = tpu.dynamic_rotate %305 by %c1_i32_48 dim 1 : vector<16x16xf32>, i32 -> vector<16x16xf32>
    %cst_49 = arith.constant 0.000000e+00 : f32
    %307 = vector.broadcast %cst_49 : f32 to vector<16x16xf32>
    %308 = arith.select %12, %306, %307 : vector<16x16xi1>, vector<16x16xf32>
    %c15 = arith.constant 15 : index
    %309 = memref.load %arg2[%c15] : memref<144xf32, #tpu.memory_space<smem>>
    %310 = vector.broadcast %309 : f32 to vector<16x16xf32>
    %311 = arith.mulf %308, %310 : vector<16x16xf32>
    %312 = arith.addf %292, %311 : vector<16x16xf32>
    %c51 = arith.constant 51 : index
    %313 = memref.load %arg2[%c51] : memref<144xf32, #tpu.memory_space<smem>>
    %314 = vector.broadcast %313 : f32 to vector<16x16xf32>
    %315 = arith.mulf %308, %314 : vector<16x16xf32>
    %316 = arith.addf %296, %315 : vector<16x16xf32>
    %c87 = arith.constant 87 : index
    %317 = memref.load %arg2[%c87] : memref<144xf32, #tpu.memory_space<smem>>
    %318 = vector.broadcast %317 : f32 to vector<16x16xf32>
    %319 = arith.mulf %308, %318 : vector<16x16xf32>
    %320 = arith.addf %300, %319 : vector<16x16xf32>
    %c123 = arith.constant 123 : index
    %321 = memref.load %arg2[%c123] : memref<144xf32, #tpu.memory_space<smem>>
    %322 = vector.broadcast %321 : f32 to vector<16x16xf32>
    %323 = arith.mulf %308, %322 : vector<16x16xf32>
    %324 = arith.addf %304, %323 : vector<16x16xf32>
    %cst_50 = arith.constant 0.000000e+00 : f32
    %325 = vector.broadcast %cst_50 : f32 to vector<16x16xf32>
    %326 = arith.select %5, %305, %325 : vector<16x16xi1>, vector<16x16xf32>
    %c16 = arith.constant 16 : index
    %327 = memref.load %arg2[%c16] : memref<144xf32, #tpu.memory_space<smem>>
    %328 = vector.broadcast %327 : f32 to vector<16x16xf32>
    %329 = arith.mulf %326, %328 : vector<16x16xf32>
    %330 = arith.addf %312, %329 : vector<16x16xf32>
    %c52 = arith.constant 52 : index
    %331 = memref.load %arg2[%c52] : memref<144xf32, #tpu.memory_space<smem>>
    %332 = vector.broadcast %331 : f32 to vector<16x16xf32>
    %333 = arith.mulf %326, %332 : vector<16x16xf32>
    %334 = arith.addf %316, %333 : vector<16x16xf32>
    %c88 = arith.constant 88 : index
    %335 = memref.load %arg2[%c88] : memref<144xf32, #tpu.memory_space<smem>>
    %336 = vector.broadcast %335 : f32 to vector<16x16xf32>
    %337 = arith.mulf %326, %336 : vector<16x16xf32>
    %338 = arith.addf %320, %337 : vector<16x16xf32>
    %c124 = arith.constant 124 : index
    %339 = memref.load %arg2[%c124] : memref<144xf32, #tpu.memory_space<smem>>
    %340 = vector.broadcast %339 : f32 to vector<16x16xf32>
    %341 = arith.mulf %326, %340 : vector<16x16xf32>
    %342 = arith.addf %324, %341 : vector<16x16xf32>
    %c15_i32_51 = arith.constant 15 : i32
    %343 = tpu.dynamic_rotate %305 by %c15_i32_51 dim 1 : vector<16x16xf32>, i32 -> vector<16x16xf32>
    %cst_52 = arith.constant 0.000000e+00 : f32
    %344 = vector.broadcast %cst_52 : f32 to vector<16x16xf32>
    %345 = arith.select %13, %343, %344 : vector<16x16xi1>, vector<16x16xf32>
    %c17 = arith.constant 17 : index
    %346 = memref.load %arg2[%c17] : memref<144xf32, #tpu.memory_space<smem>>
    %347 = vector.broadcast %346 : f32 to vector<16x16xf32>
    %348 = arith.mulf %345, %347 : vector<16x16xf32>
    %349 = arith.addf %330, %348 : vector<16x16xf32>
    %c53 = arith.constant 53 : index
    %350 = memref.load %arg2[%c53] : memref<144xf32, #tpu.memory_space<smem>>
    %351 = vector.broadcast %350 : f32 to vector<16x16xf32>
    %352 = arith.mulf %345, %351 : vector<16x16xf32>
    %353 = arith.addf %334, %352 : vector<16x16xf32>
    %c89 = arith.constant 89 : index
    %354 = memref.load %arg2[%c89] : memref<144xf32, #tpu.memory_space<smem>>
    %355 = vector.broadcast %354 : f32 to vector<16x16xf32>
    %356 = arith.mulf %345, %355 : vector<16x16xf32>
    %357 = arith.addf %338, %356 : vector<16x16xf32>
    %c125 = arith.constant 125 : index
    %358 = memref.load %arg2[%c125] : memref<144xf32, #tpu.memory_space<smem>>
    %359 = vector.broadcast %358 : f32 to vector<16x16xf32>
    %360 = arith.mulf %345, %359 : vector<16x16xf32>
    %361 = arith.addf %342, %360 : vector<16x16xf32>
    %c1_i32_53 = arith.constant 1 : i32
    %362 = tpu.dynamic_rotate %19 by %c1_i32_53 dim 0 : vector<16x16xf32>, i32 -> vector<16x16xf32>
    %c1_i32_54 = arith.constant 1 : i32
    %363 = tpu.dynamic_rotate %362 by %c1_i32_54 dim 1 : vector<16x16xf32>, i32 -> vector<16x16xf32>
    %cst_55 = arith.constant 0.000000e+00 : f32
    %364 = vector.broadcast %cst_55 : f32 to vector<16x16xf32>
    %365 = arith.select %10, %363, %364 : vector<16x16xi1>, vector<16x16xf32>
    %c18 = arith.constant 18 : index
    %366 = memref.load %arg2[%c18] : memref<144xf32, #tpu.memory_space<smem>>
    %367 = vector.broadcast %366 : f32 to vector<16x16xf32>
    %368 = arith.mulf %365, %367 : vector<16x16xf32>
    %369 = arith.addf %349, %368 : vector<16x16xf32>
    %c54 = arith.constant 54 : index
    %370 = memref.load %arg2[%c54] : memref<144xf32, #tpu.memory_space<smem>>
    %371 = vector.broadcast %370 : f32 to vector<16x16xf32>
    %372 = arith.mulf %365, %371 : vector<16x16xf32>
    %373 = arith.addf %353, %372 : vector<16x16xf32>
    %c90 = arith.constant 90 : index
    %374 = memref.load %arg2[%c90] : memref<144xf32, #tpu.memory_space<smem>>
    %375 = vector.broadcast %374 : f32 to vector<16x16xf32>
    %376 = arith.mulf %365, %375 : vector<16x16xf32>
    %377 = arith.addf %357, %376 : vector<16x16xf32>
    %c126 = arith.constant 126 : index
    %378 = memref.load %arg2[%c126] : memref<144xf32, #tpu.memory_space<smem>>
    %379 = vector.broadcast %378 : f32 to vector<16x16xf32>
    %380 = arith.mulf %365, %379 : vector<16x16xf32>
    %381 = arith.addf %361, %380 : vector<16x16xf32>
    %cst_56 = arith.constant 0.000000e+00 : f32
    %382 = vector.broadcast %cst_56 : f32 to vector<16x16xf32>
    %383 = arith.select %3, %362, %382 : vector<16x16xi1>, vector<16x16xf32>
    %c19 = arith.constant 19 : index
    %384 = memref.load %arg2[%c19] : memref<144xf32, #tpu.memory_space<smem>>
    %385 = vector.broadcast %384 : f32 to vector<16x16xf32>
    %386 = arith.mulf %383, %385 : vector<16x16xf32>
    %387 = arith.addf %369, %386 : vector<16x16xf32>
    %c55 = arith.constant 55 : index
    %388 = memref.load %arg2[%c55] : memref<144xf32, #tpu.memory_space<smem>>
    %389 = vector.broadcast %388 : f32 to vector<16x16xf32>
    %390 = arith.mulf %383, %389 : vector<16x16xf32>
    %391 = arith.addf %373, %390 : vector<16x16xf32>
    %c91 = arith.constant 91 : index
    %392 = memref.load %arg2[%c91] : memref<144xf32, #tpu.memory_space<smem>>
    %393 = vector.broadcast %392 : f32 to vector<16x16xf32>
    %394 = arith.mulf %383, %393 : vector<16x16xf32>
    %395 = arith.addf %377, %394 : vector<16x16xf32>
    %c127 = arith.constant 127 : index
    %396 = memref.load %arg2[%c127] : memref<144xf32, #tpu.memory_space<smem>>
    %397 = vector.broadcast %396 : f32 to vector<16x16xf32>
    %398 = arith.mulf %383, %397 : vector<16x16xf32>
    %399 = arith.addf %381, %398 : vector<16x16xf32>
    %c15_i32_57 = arith.constant 15 : i32
    %400 = tpu.dynamic_rotate %362 by %c15_i32_57 dim 1 : vector<16x16xf32>, i32 -> vector<16x16xf32>
    %cst_58 = arith.constant 0.000000e+00 : f32
    %401 = vector.broadcast %cst_58 : f32 to vector<16x16xf32>
    %402 = arith.select %11, %400, %401 : vector<16x16xi1>, vector<16x16xf32>
    %c20 = arith.constant 20 : index
    %403 = memref.load %arg2[%c20] : memref<144xf32, #tpu.memory_space<smem>>
    %404 = vector.broadcast %403 : f32 to vector<16x16xf32>
    %405 = arith.mulf %402, %404 : vector<16x16xf32>
    %406 = arith.addf %387, %405 : vector<16x16xf32>
    %c56 = arith.constant 56 : index
    %407 = memref.load %arg2[%c56] : memref<144xf32, #tpu.memory_space<smem>>
    %408 = vector.broadcast %407 : f32 to vector<16x16xf32>
    %409 = arith.mulf %402, %408 : vector<16x16xf32>
    %410 = arith.addf %391, %409 : vector<16x16xf32>
    %c92 = arith.constant 92 : index
    %411 = memref.load %arg2[%c92] : memref<144xf32, #tpu.memory_space<smem>>
    %412 = vector.broadcast %411 : f32 to vector<16x16xf32>
    %413 = arith.mulf %402, %412 : vector<16x16xf32>
    %414 = arith.addf %395, %413 : vector<16x16xf32>
    %c128 = arith.constant 128 : index
    %415 = memref.load %arg2[%c128] : memref<144xf32, #tpu.memory_space<smem>>
    %416 = vector.broadcast %415 : f32 to vector<16x16xf32>
    %417 = arith.mulf %402, %416 : vector<16x16xf32>
    %418 = arith.addf %399, %417 : vector<16x16xf32>
    %c1_i32_59 = arith.constant 1 : i32
    %419 = tpu.dynamic_rotate %19 by %c1_i32_59 dim 1 : vector<16x16xf32>, i32 -> vector<16x16xf32>
    %cst_60 = arith.constant 0.000000e+00 : f32
    %420 = vector.broadcast %cst_60 : f32 to vector<16x16xf32>
    %421 = arith.select %7, %419, %420 : vector<16x16xi1>, vector<16x16xf32>
    %c21 = arith.constant 21 : index
    %422 = memref.load %arg2[%c21] : memref<144xf32, #tpu.memory_space<smem>>
    %423 = vector.broadcast %422 : f32 to vector<16x16xf32>
    %424 = arith.mulf %421, %423 : vector<16x16xf32>
    %425 = arith.addf %406, %424 : vector<16x16xf32>
    %c57 = arith.constant 57 : index
    %426 = memref.load %arg2[%c57] : memref<144xf32, #tpu.memory_space<smem>>
    %427 = vector.broadcast %426 : f32 to vector<16x16xf32>
    %428 = arith.mulf %421, %427 : vector<16x16xf32>
    %429 = arith.addf %410, %428 : vector<16x16xf32>
    %c93 = arith.constant 93 : index
    %430 = memref.load %arg2[%c93] : memref<144xf32, #tpu.memory_space<smem>>
    %431 = vector.broadcast %430 : f32 to vector<16x16xf32>
    %432 = arith.mulf %421, %431 : vector<16x16xf32>
    %433 = arith.addf %414, %432 : vector<16x16xf32>
    %c129 = arith.constant 129 : index
    %434 = memref.load %arg2[%c129] : memref<144xf32, #tpu.memory_space<smem>>
    %435 = vector.broadcast %434 : f32 to vector<16x16xf32>
    %436 = arith.mulf %421, %435 : vector<16x16xf32>
    %437 = arith.addf %418, %436 : vector<16x16xf32>
    %c22 = arith.constant 22 : index
    %438 = memref.load %arg2[%c22] : memref<144xf32, #tpu.memory_space<smem>>
    %439 = vector.broadcast %438 : f32 to vector<16x16xf32>
    %440 = arith.mulf %19, %439 : vector<16x16xf32>
    %441 = arith.addf %425, %440 : vector<16x16xf32>
    %c58 = arith.constant 58 : index
    %442 = memref.load %arg2[%c58] : memref<144xf32, #tpu.memory_space<smem>>
    %443 = vector.broadcast %442 : f32 to vector<16x16xf32>
    %444 = arith.mulf %19, %443 : vector<16x16xf32>
    %445 = arith.addf %429, %444 : vector<16x16xf32>
    %c94 = arith.constant 94 : index
    %446 = memref.load %arg2[%c94] : memref<144xf32, #tpu.memory_space<smem>>
    %447 = vector.broadcast %446 : f32 to vector<16x16xf32>
    %448 = arith.mulf %19, %447 : vector<16x16xf32>
    %449 = arith.addf %433, %448 : vector<16x16xf32>
    %c130 = arith.constant 130 : index
    %450 = memref.load %arg2[%c130] : memref<144xf32, #tpu.memory_space<smem>>
    %451 = vector.broadcast %450 : f32 to vector<16x16xf32>
    %452 = arith.mulf %19, %451 : vector<16x16xf32>
    %453 = arith.addf %437, %452 : vector<16x16xf32>
    %c15_i32_61 = arith.constant 15 : i32
    %454 = tpu.dynamic_rotate %19 by %c15_i32_61 dim 1 : vector<16x16xf32>, i32 -> vector<16x16xf32>
    %cst_62 = arith.constant 0.000000e+00 : f32
    %455 = vector.broadcast %cst_62 : f32 to vector<16x16xf32>
    %456 = arith.select %9, %454, %455 : vector<16x16xi1>, vector<16x16xf32>
    %c23 = arith.constant 23 : index
    %457 = memref.load %arg2[%c23] : memref<144xf32, #tpu.memory_space<smem>>
    %458 = vector.broadcast %457 : f32 to vector<16x16xf32>
    %459 = arith.mulf %456, %458 : vector<16x16xf32>
    %460 = arith.addf %441, %459 : vector<16x16xf32>
    %c59 = arith.constant 59 : index
    %461 = memref.load %arg2[%c59] : memref<144xf32, #tpu.memory_space<smem>>
    %462 = vector.broadcast %461 : f32 to vector<16x16xf32>
    %463 = arith.mulf %456, %462 : vector<16x16xf32>
    %464 = arith.addf %445, %463 : vector<16x16xf32>
    %c95 = arith.constant 95 : index
    %465 = memref.load %arg2[%c95] : memref<144xf32, #tpu.memory_space<smem>>
    %466 = vector.broadcast %465 : f32 to vector<16x16xf32>
    %467 = arith.mulf %456, %466 : vector<16x16xf32>
    %468 = arith.addf %449, %467 : vector<16x16xf32>
    %c131 = arith.constant 131 : index
    %469 = memref.load %arg2[%c131] : memref<144xf32, #tpu.memory_space<smem>>
    %470 = vector.broadcast %469 : f32 to vector<16x16xf32>
    %471 = arith.mulf %456, %470 : vector<16x16xf32>
    %472 = arith.addf %453, %471 : vector<16x16xf32>
    %c15_i32_63 = arith.constant 15 : i32
    %473 = tpu.dynamic_rotate %19 by %c15_i32_63 dim 0 : vector<16x16xf32>, i32 -> vector<16x16xf32>
    %c1_i32_64 = arith.constant 1 : i32
    %474 = tpu.dynamic_rotate %473 by %c1_i32_64 dim 1 : vector<16x16xf32>, i32 -> vector<16x16xf32>
    %cst_65 = arith.constant 0.000000e+00 : f32
    %475 = vector.broadcast %cst_65 : f32 to vector<16x16xf32>
    %476 = arith.select %12, %474, %475 : vector<16x16xi1>, vector<16x16xf32>
    %c24 = arith.constant 24 : index
    %477 = memref.load %arg2[%c24] : memref<144xf32, #tpu.memory_space<smem>>
    %478 = vector.broadcast %477 : f32 to vector<16x16xf32>
    %479 = arith.mulf %476, %478 : vector<16x16xf32>
    %480 = arith.addf %460, %479 : vector<16x16xf32>
    %c60 = arith.constant 60 : index
    %481 = memref.load %arg2[%c60] : memref<144xf32, #tpu.memory_space<smem>>
    %482 = vector.broadcast %481 : f32 to vector<16x16xf32>
    %483 = arith.mulf %476, %482 : vector<16x16xf32>
    %484 = arith.addf %464, %483 : vector<16x16xf32>
    %c96 = arith.constant 96 : index
    %485 = memref.load %arg2[%c96] : memref<144xf32, #tpu.memory_space<smem>>
    %486 = vector.broadcast %485 : f32 to vector<16x16xf32>
    %487 = arith.mulf %476, %486 : vector<16x16xf32>
    %488 = arith.addf %468, %487 : vector<16x16xf32>
    %c132 = arith.constant 132 : index
    %489 = memref.load %arg2[%c132] : memref<144xf32, #tpu.memory_space<smem>>
    %490 = vector.broadcast %489 : f32 to vector<16x16xf32>
    %491 = arith.mulf %476, %490 : vector<16x16xf32>
    %492 = arith.addf %472, %491 : vector<16x16xf32>
    %cst_66 = arith.constant 0.000000e+00 : f32
    %493 = vector.broadcast %cst_66 : f32 to vector<16x16xf32>
    %494 = arith.select %5, %473, %493 : vector<16x16xi1>, vector<16x16xf32>
    %c25 = arith.constant 25 : index
    %495 = memref.load %arg2[%c25] : memref<144xf32, #tpu.memory_space<smem>>
    %496 = vector.broadcast %495 : f32 to vector<16x16xf32>
    %497 = arith.mulf %494, %496 : vector<16x16xf32>
    %498 = arith.addf %480, %497 : vector<16x16xf32>
    %c61 = arith.constant 61 : index
    %499 = memref.load %arg2[%c61] : memref<144xf32, #tpu.memory_space<smem>>
    %500 = vector.broadcast %499 : f32 to vector<16x16xf32>
    %501 = arith.mulf %494, %500 : vector<16x16xf32>
    %502 = arith.addf %484, %501 : vector<16x16xf32>
    %c97 = arith.constant 97 : index
    %503 = memref.load %arg2[%c97] : memref<144xf32, #tpu.memory_space<smem>>
    %504 = vector.broadcast %503 : f32 to vector<16x16xf32>
    %505 = arith.mulf %494, %504 : vector<16x16xf32>
    %506 = arith.addf %488, %505 : vector<16x16xf32>
    %c133 = arith.constant 133 : index
    %507 = memref.load %arg2[%c133] : memref<144xf32, #tpu.memory_space<smem>>
    %508 = vector.broadcast %507 : f32 to vector<16x16xf32>
    %509 = arith.mulf %494, %508 : vector<16x16xf32>
    %510 = arith.addf %492, %509 : vector<16x16xf32>
    %c15_i32_67 = arith.constant 15 : i32
    %511 = tpu.dynamic_rotate %473 by %c15_i32_67 dim 1 : vector<16x16xf32>, i32 -> vector<16x16xf32>
    %cst_68 = arith.constant 0.000000e+00 : f32
    %512 = vector.broadcast %cst_68 : f32 to vector<16x16xf32>
    %513 = arith.select %13, %511, %512 : vector<16x16xi1>, vector<16x16xf32>
    %c26 = arith.constant 26 : index
    %514 = memref.load %arg2[%c26] : memref<144xf32, #tpu.memory_space<smem>>
    %515 = vector.broadcast %514 : f32 to vector<16x16xf32>
    %516 = arith.mulf %513, %515 : vector<16x16xf32>
    %517 = arith.addf %498, %516 : vector<16x16xf32>
    %c62 = arith.constant 62 : index
    %518 = memref.load %arg2[%c62] : memref<144xf32, #tpu.memory_space<smem>>
    %519 = vector.broadcast %518 : f32 to vector<16x16xf32>
    %520 = arith.mulf %513, %519 : vector<16x16xf32>
    %521 = arith.addf %502, %520 : vector<16x16xf32>
    %c98 = arith.constant 98 : index
    %522 = memref.load %arg2[%c98] : memref<144xf32, #tpu.memory_space<smem>>
    %523 = vector.broadcast %522 : f32 to vector<16x16xf32>
    %524 = arith.mulf %513, %523 : vector<16x16xf32>
    %525 = arith.addf %506, %524 : vector<16x16xf32>
    %c134 = arith.constant 134 : index
    %526 = memref.load %arg2[%c134] : memref<144xf32, #tpu.memory_space<smem>>
    %527 = vector.broadcast %526 : f32 to vector<16x16xf32>
    %528 = arith.mulf %513, %527 : vector<16x16xf32>
    %529 = arith.addf %510, %528 : vector<16x16xf32>
    %c1_i32_69 = arith.constant 1 : i32
    %530 = tpu.dynamic_rotate %21 by %c1_i32_69 dim 0 : vector<16x16xf32>, i32 -> vector<16x16xf32>
    %c1_i32_70 = arith.constant 1 : i32
    %531 = tpu.dynamic_rotate %530 by %c1_i32_70 dim 1 : vector<16x16xf32>, i32 -> vector<16x16xf32>
    %cst_71 = arith.constant 0.000000e+00 : f32
    %532 = vector.broadcast %cst_71 : f32 to vector<16x16xf32>
    %533 = arith.select %10, %531, %532 : vector<16x16xi1>, vector<16x16xf32>
    %c27 = arith.constant 27 : index
    %534 = memref.load %arg2[%c27] : memref<144xf32, #tpu.memory_space<smem>>
    %535 = vector.broadcast %534 : f32 to vector<16x16xf32>
    %536 = arith.mulf %533, %535 : vector<16x16xf32>
    %537 = arith.addf %517, %536 : vector<16x16xf32>
    %c63 = arith.constant 63 : index
    %538 = memref.load %arg2[%c63] : memref<144xf32, #tpu.memory_space<smem>>
    %539 = vector.broadcast %538 : f32 to vector<16x16xf32>
    %540 = arith.mulf %533, %539 : vector<16x16xf32>
    %541 = arith.addf %521, %540 : vector<16x16xf32>
    %c99 = arith.constant 99 : index
    %542 = memref.load %arg2[%c99] : memref<144xf32, #tpu.memory_space<smem>>
    %543 = vector.broadcast %542 : f32 to vector<16x16xf32>
    %544 = arith.mulf %533, %543 : vector<16x16xf32>
    %545 = arith.addf %525, %544 : vector<16x16xf32>
    %c135 = arith.constant 135 : index
    %546 = memref.load %arg2[%c135] : memref<144xf32, #tpu.memory_space<smem>>
    %547 = vector.broadcast %546 : f32 to vector<16x16xf32>
    %548 = arith.mulf %533, %547 : vector<16x16xf32>
    %549 = arith.addf %529, %548 : vector<16x16xf32>
    %cst_72 = arith.constant 0.000000e+00 : f32
    %550 = vector.broadcast %cst_72 : f32 to vector<16x16xf32>
    %551 = arith.select %3, %530, %550 : vector<16x16xi1>, vector<16x16xf32>
    %c28 = arith.constant 28 : index
    %552 = memref.load %arg2[%c28] : memref<144xf32, #tpu.memory_space<smem>>
    %553 = vector.broadcast %552 : f32 to vector<16x16xf32>
    %554 = arith.mulf %551, %553 : vector<16x16xf32>
    %555 = arith.addf %537, %554 : vector<16x16xf32>
    %c64 = arith.constant 64 : index
    %556 = memref.load %arg2[%c64] : memref<144xf32, #tpu.memory_space<smem>>
    %557 = vector.broadcast %556 : f32 to vector<16x16xf32>
    %558 = arith.mulf %551, %557 : vector<16x16xf32>
    %559 = arith.addf %541, %558 : vector<16x16xf32>
    %c100 = arith.constant 100 : index
    %560 = memref.load %arg2[%c100] : memref<144xf32, #tpu.memory_space<smem>>
    %561 = vector.broadcast %560 : f32 to vector<16x16xf32>
    %562 = arith.mulf %551, %561 : vector<16x16xf32>
    %563 = arith.addf %545, %562 : vector<16x16xf32>
    %c136 = arith.constant 136 : index
    %564 = memref.load %arg2[%c136] : memref<144xf32, #tpu.memory_space<smem>>
    %565 = vector.broadcast %564 : f32 to vector<16x16xf32>
    %566 = arith.mulf %551, %565 : vector<16x16xf32>
    %567 = arith.addf %549, %566 : vector<16x16xf32>
    %c15_i32_73 = arith.constant 15 : i32
    %568 = tpu.dynamic_rotate %530 by %c15_i32_73 dim 1 : vector<16x16xf32>, i32 -> vector<16x16xf32>
    %cst_74 = arith.constant 0.000000e+00 : f32
    %569 = vector.broadcast %cst_74 : f32 to vector<16x16xf32>
    %570 = arith.select %11, %568, %569 : vector<16x16xi1>, vector<16x16xf32>
    %c29 = arith.constant 29 : index
    %571 = memref.load %arg2[%c29] : memref<144xf32, #tpu.memory_space<smem>>
    %572 = vector.broadcast %571 : f32 to vector<16x16xf32>
    %573 = arith.mulf %570, %572 : vector<16x16xf32>
    %574 = arith.addf %555, %573 : vector<16x16xf32>
    %c65 = arith.constant 65 : index
    %575 = memref.load %arg2[%c65] : memref<144xf32, #tpu.memory_space<smem>>
    %576 = vector.broadcast %575 : f32 to vector<16x16xf32>
    %577 = arith.mulf %570, %576 : vector<16x16xf32>
    %578 = arith.addf %559, %577 : vector<16x16xf32>
    %c101 = arith.constant 101 : index
    %579 = memref.load %arg2[%c101] : memref<144xf32, #tpu.memory_space<smem>>
    %580 = vector.broadcast %579 : f32 to vector<16x16xf32>
    %581 = arith.mulf %570, %580 : vector<16x16xf32>
    %582 = arith.addf %563, %581 : vector<16x16xf32>
    %c137 = arith.constant 137 : index
    %583 = memref.load %arg2[%c137] : memref<144xf32, #tpu.memory_space<smem>>
    %584 = vector.broadcast %583 : f32 to vector<16x16xf32>
    %585 = arith.mulf %570, %584 : vector<16x16xf32>
    %586 = arith.addf %567, %585 : vector<16x16xf32>
    %c1_i32_75 = arith.constant 1 : i32
    %587 = tpu.dynamic_rotate %21 by %c1_i32_75 dim 1 : vector<16x16xf32>, i32 -> vector<16x16xf32>
    %cst_76 = arith.constant 0.000000e+00 : f32
    %588 = vector.broadcast %cst_76 : f32 to vector<16x16xf32>
    %589 = arith.select %7, %587, %588 : vector<16x16xi1>, vector<16x16xf32>
    %c30 = arith.constant 30 : index
    %590 = memref.load %arg2[%c30] : memref<144xf32, #tpu.memory_space<smem>>
    %591 = vector.broadcast %590 : f32 to vector<16x16xf32>
    %592 = arith.mulf %589, %591 : vector<16x16xf32>
    %593 = arith.addf %574, %592 : vector<16x16xf32>
    %c66 = arith.constant 66 : index
    %594 = memref.load %arg2[%c66] : memref<144xf32, #tpu.memory_space<smem>>
    %595 = vector.broadcast %594 : f32 to vector<16x16xf32>
    %596 = arith.mulf %589, %595 : vector<16x16xf32>
    %597 = arith.addf %578, %596 : vector<16x16xf32>
    %c102 = arith.constant 102 : index
    %598 = memref.load %arg2[%c102] : memref<144xf32, #tpu.memory_space<smem>>
    %599 = vector.broadcast %598 : f32 to vector<16x16xf32>
    %600 = arith.mulf %589, %599 : vector<16x16xf32>
    %601 = arith.addf %582, %600 : vector<16x16xf32>
    %c138 = arith.constant 138 : index
    %602 = memref.load %arg2[%c138] : memref<144xf32, #tpu.memory_space<smem>>
    %603 = vector.broadcast %602 : f32 to vector<16x16xf32>
    %604 = arith.mulf %589, %603 : vector<16x16xf32>
    %605 = arith.addf %586, %604 : vector<16x16xf32>
    %c31 = arith.constant 31 : index
    %606 = memref.load %arg2[%c31] : memref<144xf32, #tpu.memory_space<smem>>
    %607 = vector.broadcast %606 : f32 to vector<16x16xf32>
    %608 = arith.mulf %21, %607 : vector<16x16xf32>
    %609 = arith.addf %593, %608 : vector<16x16xf32>
    %c67 = arith.constant 67 : index
    %610 = memref.load %arg2[%c67] : memref<144xf32, #tpu.memory_space<smem>>
    %611 = vector.broadcast %610 : f32 to vector<16x16xf32>
    %612 = arith.mulf %21, %611 : vector<16x16xf32>
    %613 = arith.addf %597, %612 : vector<16x16xf32>
    %c103 = arith.constant 103 : index
    %614 = memref.load %arg2[%c103] : memref<144xf32, #tpu.memory_space<smem>>
    %615 = vector.broadcast %614 : f32 to vector<16x16xf32>
    %616 = arith.mulf %21, %615 : vector<16x16xf32>
    %617 = arith.addf %601, %616 : vector<16x16xf32>
    %c139 = arith.constant 139 : index
    %618 = memref.load %arg2[%c139] : memref<144xf32, #tpu.memory_space<smem>>
    %619 = vector.broadcast %618 : f32 to vector<16x16xf32>
    %620 = arith.mulf %21, %619 : vector<16x16xf32>
    %621 = arith.addf %605, %620 : vector<16x16xf32>
    %c15_i32_77 = arith.constant 15 : i32
    %622 = tpu.dynamic_rotate %21 by %c15_i32_77 dim 1 : vector<16x16xf32>, i32 -> vector<16x16xf32>
    %cst_78 = arith.constant 0.000000e+00 : f32
    %623 = vector.broadcast %cst_78 : f32 to vector<16x16xf32>
    %624 = arith.select %9, %622, %623 : vector<16x16xi1>, vector<16x16xf32>
    %c32 = arith.constant 32 : index
    %625 = memref.load %arg2[%c32] : memref<144xf32, #tpu.memory_space<smem>>
    %626 = vector.broadcast %625 : f32 to vector<16x16xf32>
    %627 = arith.mulf %624, %626 : vector<16x16xf32>
    %628 = arith.addf %609, %627 : vector<16x16xf32>
    %c68 = arith.constant 68 : index
    %629 = memref.load %arg2[%c68] : memref<144xf32, #tpu.memory_space<smem>>
    %630 = vector.broadcast %629 : f32 to vector<16x16xf32>
    %631 = arith.mulf %624, %630 : vector<16x16xf32>
    %632 = arith.addf %613, %631 : vector<16x16xf32>
    %c104 = arith.constant 104 : index
    %633 = memref.load %arg2[%c104] : memref<144xf32, #tpu.memory_space<smem>>
    %634 = vector.broadcast %633 : f32 to vector<16x16xf32>
    %635 = arith.mulf %624, %634 : vector<16x16xf32>
    %636 = arith.addf %617, %635 : vector<16x16xf32>
    %c140 = arith.constant 140 : index
    %637 = memref.load %arg2[%c140] : memref<144xf32, #tpu.memory_space<smem>>
    %638 = vector.broadcast %637 : f32 to vector<16x16xf32>
    %639 = arith.mulf %624, %638 : vector<16x16xf32>
    %640 = arith.addf %621, %639 : vector<16x16xf32>
    %c15_i32_79 = arith.constant 15 : i32
    %641 = tpu.dynamic_rotate %21 by %c15_i32_79 dim 0 : vector<16x16xf32>, i32 -> vector<16x16xf32>
    %c1_i32_80 = arith.constant 1 : i32
    %642 = tpu.dynamic_rotate %641 by %c1_i32_80 dim 1 : vector<16x16xf32>, i32 -> vector<16x16xf32>
    %cst_81 = arith.constant 0.000000e+00 : f32
    %643 = vector.broadcast %cst_81 : f32 to vector<16x16xf32>
    %644 = arith.select %12, %642, %643 : vector<16x16xi1>, vector<16x16xf32>
    %c33 = arith.constant 33 : index
    %645 = memref.load %arg2[%c33] : memref<144xf32, #tpu.memory_space<smem>>
    %646 = vector.broadcast %645 : f32 to vector<16x16xf32>
    %647 = arith.mulf %644, %646 : vector<16x16xf32>
    %648 = arith.addf %628, %647 : vector<16x16xf32>
    %c69 = arith.constant 69 : index
    %649 = memref.load %arg2[%c69] : memref<144xf32, #tpu.memory_space<smem>>
    %650 = vector.broadcast %649 : f32 to vector<16x16xf32>
    %651 = arith.mulf %644, %650 : vector<16x16xf32>
    %652 = arith.addf %632, %651 : vector<16x16xf32>
    %c105 = arith.constant 105 : index
    %653 = memref.load %arg2[%c105] : memref<144xf32, #tpu.memory_space<smem>>
    %654 = vector.broadcast %653 : f32 to vector<16x16xf32>
    %655 = arith.mulf %644, %654 : vector<16x16xf32>
    %656 = arith.addf %636, %655 : vector<16x16xf32>
    %c141 = arith.constant 141 : index
    %657 = memref.load %arg2[%c141] : memref<144xf32, #tpu.memory_space<smem>>
    %658 = vector.broadcast %657 : f32 to vector<16x16xf32>
    %659 = arith.mulf %644, %658 : vector<16x16xf32>
    %660 = arith.addf %640, %659 : vector<16x16xf32>
    %cst_82 = arith.constant 0.000000e+00 : f32
    %661 = vector.broadcast %cst_82 : f32 to vector<16x16xf32>
    %662 = arith.select %5, %641, %661 : vector<16x16xi1>, vector<16x16xf32>
    %c34 = arith.constant 34 : index
    %663 = memref.load %arg2[%c34] : memref<144xf32, #tpu.memory_space<smem>>
    %664 = vector.broadcast %663 : f32 to vector<16x16xf32>
    %665 = arith.mulf %662, %664 : vector<16x16xf32>
    %666 = arith.addf %648, %665 : vector<16x16xf32>
    %c70 = arith.constant 70 : index
    %667 = memref.load %arg2[%c70] : memref<144xf32, #tpu.memory_space<smem>>
    %668 = vector.broadcast %667 : f32 to vector<16x16xf32>
    %669 = arith.mulf %662, %668 : vector<16x16xf32>
    %670 = arith.addf %652, %669 : vector<16x16xf32>
    %c106 = arith.constant 106 : index
    %671 = memref.load %arg2[%c106] : memref<144xf32, #tpu.memory_space<smem>>
    %672 = vector.broadcast %671 : f32 to vector<16x16xf32>
    %673 = arith.mulf %662, %672 : vector<16x16xf32>
    %674 = arith.addf %656, %673 : vector<16x16xf32>
    %c142 = arith.constant 142 : index
    %675 = memref.load %arg2[%c142] : memref<144xf32, #tpu.memory_space<smem>>
    %676 = vector.broadcast %675 : f32 to vector<16x16xf32>
    %677 = arith.mulf %662, %676 : vector<16x16xf32>
    %678 = arith.addf %660, %677 : vector<16x16xf32>
    %c15_i32_83 = arith.constant 15 : i32
    %679 = tpu.dynamic_rotate %641 by %c15_i32_83 dim 1 : vector<16x16xf32>, i32 -> vector<16x16xf32>
    %cst_84 = arith.constant 0.000000e+00 : f32
    %680 = vector.broadcast %cst_84 : f32 to vector<16x16xf32>
    %681 = arith.select %13, %679, %680 : vector<16x16xi1>, vector<16x16xf32>
    %c35 = arith.constant 35 : index
    %682 = memref.load %arg2[%c35] : memref<144xf32, #tpu.memory_space<smem>>
    %683 = vector.broadcast %682 : f32 to vector<16x16xf32>
    %684 = arith.mulf %681, %683 : vector<16x16xf32>
    %685 = arith.addf %666, %684 : vector<16x16xf32>
    %c71 = arith.constant 71 : index
    %686 = memref.load %arg2[%c71] : memref<144xf32, #tpu.memory_space<smem>>
    %687 = vector.broadcast %686 : f32 to vector<16x16xf32>
    %688 = arith.mulf %681, %687 : vector<16x16xf32>
    %689 = arith.addf %670, %688 : vector<16x16xf32>
    %c107 = arith.constant 107 : index
    %690 = memref.load %arg2[%c107] : memref<144xf32, #tpu.memory_space<smem>>
    %691 = vector.broadcast %690 : f32 to vector<16x16xf32>
    %692 = arith.mulf %681, %691 : vector<16x16xf32>
    %693 = arith.addf %674, %692 : vector<16x16xf32>
    %c143 = arith.constant 143 : index
    %694 = memref.load %arg2[%c143] : memref<144xf32, #tpu.memory_space<smem>>
    %695 = vector.broadcast %694 : f32 to vector<16x16xf32>
    %696 = arith.mulf %681, %695 : vector<16x16xf32>
    %697 = arith.addf %678, %696 : vector<16x16xf32>
    %c0_85 = arith.constant 0 : index
    %698 = memref.load %arg4[%c0_85] : memref<4xf32, #tpu.memory_space<smem>>
    %699 = vector.broadcast %698 : f32 to vector<16x16xf32>
    %700 = arith.mulf %685, %699 : vector<16x16xf32>
    %c0_86 = arith.constant 0 : index
    %701 = memref.load %arg5[%c0_86] : memref<4xf32, #tpu.memory_space<smem>>
    %702 = vector.broadcast %701 : f32 to vector<16x16xf32>
    %703 = arith.addf %700, %702 : vector<16x16xf32>
    %cst_87 = arith.constant 0.000000e+00 : f32
    %704 = vector.broadcast %cst_87 : f32 to vector<16x16xf32>
    %705 = arith.maximumf %703, %704 : vector<16x16xf32>
    %c1_88 = arith.constant 1 : index
    %706 = memref.load %arg4[%c1_88] : memref<4xf32, #tpu.memory_space<smem>>
    %707 = vector.broadcast %706 : f32 to vector<16x16xf32>
    %708 = arith.mulf %689, %707 : vector<16x16xf32>
    %c1_89 = arith.constant 1 : index
    %709 = memref.load %arg5[%c1_89] : memref<4xf32, #tpu.memory_space<smem>>
    %710 = vector.broadcast %709 : f32 to vector<16x16xf32>
    %711 = arith.addf %708, %710 : vector<16x16xf32>
    %cst_90 = arith.constant 0.000000e+00 : f32
    %712 = vector.broadcast %cst_90 : f32 to vector<16x16xf32>
    %713 = arith.maximumf %711, %712 : vector<16x16xf32>
    %c2_91 = arith.constant 2 : index
    %714 = memref.load %arg4[%c2_91] : memref<4xf32, #tpu.memory_space<smem>>
    %715 = vector.broadcast %714 : f32 to vector<16x16xf32>
    %716 = arith.mulf %693, %715 : vector<16x16xf32>
    %c2_92 = arith.constant 2 : index
    %717 = memref.load %arg5[%c2_92] : memref<4xf32, #tpu.memory_space<smem>>
    %718 = vector.broadcast %717 : f32 to vector<16x16xf32>
    %719 = arith.addf %716, %718 : vector<16x16xf32>
    %cst_93 = arith.constant 0.000000e+00 : f32
    %720 = vector.broadcast %cst_93 : f32 to vector<16x16xf32>
    %721 = arith.maximumf %719, %720 : vector<16x16xf32>
    %c3_94 = arith.constant 3 : index
    %722 = memref.load %arg4[%c3_94] : memref<4xf32, #tpu.memory_space<smem>>
    %723 = vector.broadcast %722 : f32 to vector<16x16xf32>
    %724 = arith.mulf %697, %723 : vector<16x16xf32>
    %c3_95 = arith.constant 3 : index
    %725 = memref.load %arg5[%c3_95] : memref<4xf32, #tpu.memory_space<smem>>
    %726 = vector.broadcast %725 : f32 to vector<16x16xf32>
    %727 = arith.addf %724, %726 : vector<16x16xf32>
    %cst_96 = arith.constant 0.000000e+00 : f32
    %728 = vector.broadcast %cst_96 : f32 to vector<16x16xf32>
    %729 = arith.maximumf %727, %728 : vector<16x16xf32>
    %cst_97 = arith.constant 0.000000e+00 : f32
    %730 = vector.broadcast %cst_97 : f32 to vector<16x16xf32>
    %cst_98 = arith.constant 0.000000e+00 : f32
    %731 = vector.broadcast %cst_98 : f32 to vector<16x16xf32>
    %cst_99 = arith.constant 0.000000e+00 : f32
    %732 = vector.broadcast %cst_99 : f32 to vector<16x16xf32>
    %cst_100 = arith.constant 0.000000e+00 : f32
    %733 = vector.broadcast %cst_100 : f32 to vector<16x16xf32>
    %c1_i32_101 = arith.constant 1 : i32
    %734 = tpu.dynamic_rotate %705 by %c1_i32_101 dim 0 : vector<16x16xf32>, i32 -> vector<16x16xf32>
    %c1_i32_102 = arith.constant 1 : i32
    %735 = tpu.dynamic_rotate %734 by %c1_i32_102 dim 1 : vector<16x16xf32>, i32 -> vector<16x16xf32>
    %cst_103 = arith.constant 0.000000e+00 : f32
    %736 = vector.broadcast %cst_103 : f32 to vector<16x16xf32>
    %737 = arith.select %10, %735, %736 : vector<16x16xi1>, vector<16x16xf32>
    %c0_104 = arith.constant 0 : index
    %738 = memref.load %arg3[%c0_104] : memref<144xf32, #tpu.memory_space<smem>>
    %739 = vector.broadcast %738 : f32 to vector<16x16xf32>
    %740 = arith.mulf %737, %739 : vector<16x16xf32>
    %741 = arith.addf %730, %740 : vector<16x16xf32>
    %c36_105 = arith.constant 36 : index
    %742 = memref.load %arg3[%c36_105] : memref<144xf32, #tpu.memory_space<smem>>
    %743 = vector.broadcast %742 : f32 to vector<16x16xf32>
    %744 = arith.mulf %737, %743 : vector<16x16xf32>
    %745 = arith.addf %731, %744 : vector<16x16xf32>
    %c72_106 = arith.constant 72 : index
    %746 = memref.load %arg3[%c72_106] : memref<144xf32, #tpu.memory_space<smem>>
    %747 = vector.broadcast %746 : f32 to vector<16x16xf32>
    %748 = arith.mulf %737, %747 : vector<16x16xf32>
    %749 = arith.addf %732, %748 : vector<16x16xf32>
    %c108_107 = arith.constant 108 : index
    %750 = memref.load %arg3[%c108_107] : memref<144xf32, #tpu.memory_space<smem>>
    %751 = vector.broadcast %750 : f32 to vector<16x16xf32>
    %752 = arith.mulf %737, %751 : vector<16x16xf32>
    %753 = arith.addf %733, %752 : vector<16x16xf32>
    %cst_108 = arith.constant 0.000000e+00 : f32
    %754 = vector.broadcast %cst_108 : f32 to vector<16x16xf32>
    %755 = arith.select %3, %734, %754 : vector<16x16xi1>, vector<16x16xf32>
    %c1_109 = arith.constant 1 : index
    %756 = memref.load %arg3[%c1_109] : memref<144xf32, #tpu.memory_space<smem>>
    %757 = vector.broadcast %756 : f32 to vector<16x16xf32>
    %758 = arith.mulf %755, %757 : vector<16x16xf32>
    %759 = arith.addf %741, %758 : vector<16x16xf32>
    %c37_110 = arith.constant 37 : index
    %760 = memref.load %arg3[%c37_110] : memref<144xf32, #tpu.memory_space<smem>>
    %761 = vector.broadcast %760 : f32 to vector<16x16xf32>
    %762 = arith.mulf %755, %761 : vector<16x16xf32>
    %763 = arith.addf %745, %762 : vector<16x16xf32>
    %c73_111 = arith.constant 73 : index
    %764 = memref.load %arg3[%c73_111] : memref<144xf32, #tpu.memory_space<smem>>
    %765 = vector.broadcast %764 : f32 to vector<16x16xf32>
    %766 = arith.mulf %755, %765 : vector<16x16xf32>
    %767 = arith.addf %749, %766 : vector<16x16xf32>
    %c109_112 = arith.constant 109 : index
    %768 = memref.load %arg3[%c109_112] : memref<144xf32, #tpu.memory_space<smem>>
    %769 = vector.broadcast %768 : f32 to vector<16x16xf32>
    %770 = arith.mulf %755, %769 : vector<16x16xf32>
    %771 = arith.addf %753, %770 : vector<16x16xf32>
    %c15_i32_113 = arith.constant 15 : i32
    %772 = tpu.dynamic_rotate %734 by %c15_i32_113 dim 1 : vector<16x16xf32>, i32 -> vector<16x16xf32>
    %cst_114 = arith.constant 0.000000e+00 : f32
    %773 = vector.broadcast %cst_114 : f32 to vector<16x16xf32>
    %774 = arith.select %11, %772, %773 : vector<16x16xi1>, vector<16x16xf32>
    %c2_115 = arith.constant 2 : index
    %775 = memref.load %arg3[%c2_115] : memref<144xf32, #tpu.memory_space<smem>>
    %776 = vector.broadcast %775 : f32 to vector<16x16xf32>
    %777 = arith.mulf %774, %776 : vector<16x16xf32>
    %778 = arith.addf %759, %777 : vector<16x16xf32>
    %c38_116 = arith.constant 38 : index
    %779 = memref.load %arg3[%c38_116] : memref<144xf32, #tpu.memory_space<smem>>
    %780 = vector.broadcast %779 : f32 to vector<16x16xf32>
    %781 = arith.mulf %774, %780 : vector<16x16xf32>
    %782 = arith.addf %763, %781 : vector<16x16xf32>
    %c74_117 = arith.constant 74 : index
    %783 = memref.load %arg3[%c74_117] : memref<144xf32, #tpu.memory_space<smem>>
    %784 = vector.broadcast %783 : f32 to vector<16x16xf32>
    %785 = arith.mulf %774, %784 : vector<16x16xf32>
    %786 = arith.addf %767, %785 : vector<16x16xf32>
    %c110_118 = arith.constant 110 : index
    %787 = memref.load %arg3[%c110_118] : memref<144xf32, #tpu.memory_space<smem>>
    %788 = vector.broadcast %787 : f32 to vector<16x16xf32>
    %789 = arith.mulf %774, %788 : vector<16x16xf32>
    %790 = arith.addf %771, %789 : vector<16x16xf32>
    %c1_i32_119 = arith.constant 1 : i32
    %791 = tpu.dynamic_rotate %705 by %c1_i32_119 dim 1 : vector<16x16xf32>, i32 -> vector<16x16xf32>
    %cst_120 = arith.constant 0.000000e+00 : f32
    %792 = vector.broadcast %cst_120 : f32 to vector<16x16xf32>
    %793 = arith.select %7, %791, %792 : vector<16x16xi1>, vector<16x16xf32>
    %c3_121 = arith.constant 3 : index
    %794 = memref.load %arg3[%c3_121] : memref<144xf32, #tpu.memory_space<smem>>
    %795 = vector.broadcast %794 : f32 to vector<16x16xf32>
    %796 = arith.mulf %793, %795 : vector<16x16xf32>
    %797 = arith.addf %778, %796 : vector<16x16xf32>
    %c39_122 = arith.constant 39 : index
    %798 = memref.load %arg3[%c39_122] : memref<144xf32, #tpu.memory_space<smem>>
    %799 = vector.broadcast %798 : f32 to vector<16x16xf32>
    %800 = arith.mulf %793, %799 : vector<16x16xf32>
    %801 = arith.addf %782, %800 : vector<16x16xf32>
    %c75_123 = arith.constant 75 : index
    %802 = memref.load %arg3[%c75_123] : memref<144xf32, #tpu.memory_space<smem>>
    %803 = vector.broadcast %802 : f32 to vector<16x16xf32>
    %804 = arith.mulf %793, %803 : vector<16x16xf32>
    %805 = arith.addf %786, %804 : vector<16x16xf32>
    %c111_124 = arith.constant 111 : index
    %806 = memref.load %arg3[%c111_124] : memref<144xf32, #tpu.memory_space<smem>>
    %807 = vector.broadcast %806 : f32 to vector<16x16xf32>
    %808 = arith.mulf %793, %807 : vector<16x16xf32>
    %809 = arith.addf %790, %808 : vector<16x16xf32>
    %c4_125 = arith.constant 4 : index
    %810 = memref.load %arg3[%c4_125] : memref<144xf32, #tpu.memory_space<smem>>
    %811 = vector.broadcast %810 : f32 to vector<16x16xf32>
    %812 = arith.mulf %705, %811 : vector<16x16xf32>
    %813 = arith.addf %797, %812 : vector<16x16xf32>
    %c40_126 = arith.constant 40 : index
    %814 = memref.load %arg3[%c40_126] : memref<144xf32, #tpu.memory_space<smem>>
    %815 = vector.broadcast %814 : f32 to vector<16x16xf32>
    %816 = arith.mulf %705, %815 : vector<16x16xf32>
    %817 = arith.addf %801, %816 : vector<16x16xf32>
    %c76_127 = arith.constant 76 : index
    %818 = memref.load %arg3[%c76_127] : memref<144xf32, #tpu.memory_space<smem>>
    %819 = vector.broadcast %818 : f32 to vector<16x16xf32>
    %820 = arith.mulf %705, %819 : vector<16x16xf32>
    %821 = arith.addf %805, %820 : vector<16x16xf32>
    %c112_128 = arith.constant 112 : index
    %822 = memref.load %arg3[%c112_128] : memref<144xf32, #tpu.memory_space<smem>>
    %823 = vector.broadcast %822 : f32 to vector<16x16xf32>
    %824 = arith.mulf %705, %823 : vector<16x16xf32>
    %825 = arith.addf %809, %824 : vector<16x16xf32>
    %c15_i32_129 = arith.constant 15 : i32
    %826 = tpu.dynamic_rotate %705 by %c15_i32_129 dim 1 : vector<16x16xf32>, i32 -> vector<16x16xf32>
    %cst_130 = arith.constant 0.000000e+00 : f32
    %827 = vector.broadcast %cst_130 : f32 to vector<16x16xf32>
    %828 = arith.select %9, %826, %827 : vector<16x16xi1>, vector<16x16xf32>
    %c5_131 = arith.constant 5 : index
    %829 = memref.load %arg3[%c5_131] : memref<144xf32, #tpu.memory_space<smem>>
    %830 = vector.broadcast %829 : f32 to vector<16x16xf32>
    %831 = arith.mulf %828, %830 : vector<16x16xf32>
    %832 = arith.addf %813, %831 : vector<16x16xf32>
    %c41_132 = arith.constant 41 : index
    %833 = memref.load %arg3[%c41_132] : memref<144xf32, #tpu.memory_space<smem>>
    %834 = vector.broadcast %833 : f32 to vector<16x16xf32>
    %835 = arith.mulf %828, %834 : vector<16x16xf32>
    %836 = arith.addf %817, %835 : vector<16x16xf32>
    %c77_133 = arith.constant 77 : index
    %837 = memref.load %arg3[%c77_133] : memref<144xf32, #tpu.memory_space<smem>>
    %838 = vector.broadcast %837 : f32 to vector<16x16xf32>
    %839 = arith.mulf %828, %838 : vector<16x16xf32>
    %840 = arith.addf %821, %839 : vector<16x16xf32>
    %c113_134 = arith.constant 113 : index
    %841 = memref.load %arg3[%c113_134] : memref<144xf32, #tpu.memory_space<smem>>
    %842 = vector.broadcast %841 : f32 to vector<16x16xf32>
    %843 = arith.mulf %828, %842 : vector<16x16xf32>
    %844 = arith.addf %825, %843 : vector<16x16xf32>
    %c15_i32_135 = arith.constant 15 : i32
    %845 = tpu.dynamic_rotate %705 by %c15_i32_135 dim 0 : vector<16x16xf32>, i32 -> vector<16x16xf32>
    %c1_i32_136 = arith.constant 1 : i32
    %846 = tpu.dynamic_rotate %845 by %c1_i32_136 dim 1 : vector<16x16xf32>, i32 -> vector<16x16xf32>
    %cst_137 = arith.constant 0.000000e+00 : f32
    %847 = vector.broadcast %cst_137 : f32 to vector<16x16xf32>
    %848 = arith.select %12, %846, %847 : vector<16x16xi1>, vector<16x16xf32>
    %c6_138 = arith.constant 6 : index
    %849 = memref.load %arg3[%c6_138] : memref<144xf32, #tpu.memory_space<smem>>
    %850 = vector.broadcast %849 : f32 to vector<16x16xf32>
    %851 = arith.mulf %848, %850 : vector<16x16xf32>
    %852 = arith.addf %832, %851 : vector<16x16xf32>
    %c42_139 = arith.constant 42 : index
    %853 = memref.load %arg3[%c42_139] : memref<144xf32, #tpu.memory_space<smem>>
    %854 = vector.broadcast %853 : f32 to vector<16x16xf32>
    %855 = arith.mulf %848, %854 : vector<16x16xf32>
    %856 = arith.addf %836, %855 : vector<16x16xf32>
    %c78_140 = arith.constant 78 : index
    %857 = memref.load %arg3[%c78_140] : memref<144xf32, #tpu.memory_space<smem>>
    %858 = vector.broadcast %857 : f32 to vector<16x16xf32>
    %859 = arith.mulf %848, %858 : vector<16x16xf32>
    %860 = arith.addf %840, %859 : vector<16x16xf32>
    %c114_141 = arith.constant 114 : index
    %861 = memref.load %arg3[%c114_141] : memref<144xf32, #tpu.memory_space<smem>>
    %862 = vector.broadcast %861 : f32 to vector<16x16xf32>
    %863 = arith.mulf %848, %862 : vector<16x16xf32>
    %864 = arith.addf %844, %863 : vector<16x16xf32>
    %cst_142 = arith.constant 0.000000e+00 : f32
    %865 = vector.broadcast %cst_142 : f32 to vector<16x16xf32>
    %866 = arith.select %5, %845, %865 : vector<16x16xi1>, vector<16x16xf32>
    %c7_143 = arith.constant 7 : index
    %867 = memref.load %arg3[%c7_143] : memref<144xf32, #tpu.memory_space<smem>>
    %868 = vector.broadcast %867 : f32 to vector<16x16xf32>
    %869 = arith.mulf %866, %868 : vector<16x16xf32>
    %870 = arith.addf %852, %869 : vector<16x16xf32>
    %c43_144 = arith.constant 43 : index
    %871 = memref.load %arg3[%c43_144] : memref<144xf32, #tpu.memory_space<smem>>
    %872 = vector.broadcast %871 : f32 to vector<16x16xf32>
    %873 = arith.mulf %866, %872 : vector<16x16xf32>
    %874 = arith.addf %856, %873 : vector<16x16xf32>
    %c79_145 = arith.constant 79 : index
    %875 = memref.load %arg3[%c79_145] : memref<144xf32, #tpu.memory_space<smem>>
    %876 = vector.broadcast %875 : f32 to vector<16x16xf32>
    %877 = arith.mulf %866, %876 : vector<16x16xf32>
    %878 = arith.addf %860, %877 : vector<16x16xf32>
    %c115_146 = arith.constant 115 : index
    %879 = memref.load %arg3[%c115_146] : memref<144xf32, #tpu.memory_space<smem>>
    %880 = vector.broadcast %879 : f32 to vector<16x16xf32>
    %881 = arith.mulf %866, %880 : vector<16x16xf32>
    %882 = arith.addf %864, %881 : vector<16x16xf32>
    %c15_i32_147 = arith.constant 15 : i32
    %883 = tpu.dynamic_rotate %845 by %c15_i32_147 dim 1 : vector<16x16xf32>, i32 -> vector<16x16xf32>
    %cst_148 = arith.constant 0.000000e+00 : f32
    %884 = vector.broadcast %cst_148 : f32 to vector<16x16xf32>
    %885 = arith.select %13, %883, %884 : vector<16x16xi1>, vector<16x16xf32>
    %c8_149 = arith.constant 8 : index
    %886 = memref.load %arg3[%c8_149] : memref<144xf32, #tpu.memory_space<smem>>
    %887 = vector.broadcast %886 : f32 to vector<16x16xf32>
    %888 = arith.mulf %885, %887 : vector<16x16xf32>
    %889 = arith.addf %870, %888 : vector<16x16xf32>
    %c44_150 = arith.constant 44 : index
    %890 = memref.load %arg3[%c44_150] : memref<144xf32, #tpu.memory_space<smem>>
    %891 = vector.broadcast %890 : f32 to vector<16x16xf32>
    %892 = arith.mulf %885, %891 : vector<16x16xf32>
    %893 = arith.addf %874, %892 : vector<16x16xf32>
    %c80_151 = arith.constant 80 : index
    %894 = memref.load %arg3[%c80_151] : memref<144xf32, #tpu.memory_space<smem>>
    %895 = vector.broadcast %894 : f32 to vector<16x16xf32>
    %896 = arith.mulf %885, %895 : vector<16x16xf32>
    %897 = arith.addf %878, %896 : vector<16x16xf32>
    %c116_152 = arith.constant 116 : index
    %898 = memref.load %arg3[%c116_152] : memref<144xf32, #tpu.memory_space<smem>>
    %899 = vector.broadcast %898 : f32 to vector<16x16xf32>
    %900 = arith.mulf %885, %899 : vector<16x16xf32>
    %901 = arith.addf %882, %900 : vector<16x16xf32>
    %c1_i32_153 = arith.constant 1 : i32
    %902 = tpu.dynamic_rotate %713 by %c1_i32_153 dim 0 : vector<16x16xf32>, i32 -> vector<16x16xf32>
    %c1_i32_154 = arith.constant 1 : i32
    %903 = tpu.dynamic_rotate %902 by %c1_i32_154 dim 1 : vector<16x16xf32>, i32 -> vector<16x16xf32>
    %cst_155 = arith.constant 0.000000e+00 : f32
    %904 = vector.broadcast %cst_155 : f32 to vector<16x16xf32>
    %905 = arith.select %10, %903, %904 : vector<16x16xi1>, vector<16x16xf32>
    %c9_156 = arith.constant 9 : index
    %906 = memref.load %arg3[%c9_156] : memref<144xf32, #tpu.memory_space<smem>>
    %907 = vector.broadcast %906 : f32 to vector<16x16xf32>
    %908 = arith.mulf %905, %907 : vector<16x16xf32>
    %909 = arith.addf %889, %908 : vector<16x16xf32>
    %c45_157 = arith.constant 45 : index
    %910 = memref.load %arg3[%c45_157] : memref<144xf32, #tpu.memory_space<smem>>
    %911 = vector.broadcast %910 : f32 to vector<16x16xf32>
    %912 = arith.mulf %905, %911 : vector<16x16xf32>
    %913 = arith.addf %893, %912 : vector<16x16xf32>
    %c81_158 = arith.constant 81 : index
    %914 = memref.load %arg3[%c81_158] : memref<144xf32, #tpu.memory_space<smem>>
    %915 = vector.broadcast %914 : f32 to vector<16x16xf32>
    %916 = arith.mulf %905, %915 : vector<16x16xf32>
    %917 = arith.addf %897, %916 : vector<16x16xf32>
    %c117_159 = arith.constant 117 : index
    %918 = memref.load %arg3[%c117_159] : memref<144xf32, #tpu.memory_space<smem>>
    %919 = vector.broadcast %918 : f32 to vector<16x16xf32>
    %920 = arith.mulf %905, %919 : vector<16x16xf32>
    %921 = arith.addf %901, %920 : vector<16x16xf32>
    %cst_160 = arith.constant 0.000000e+00 : f32
    %922 = vector.broadcast %cst_160 : f32 to vector<16x16xf32>
    %923 = arith.select %3, %902, %922 : vector<16x16xi1>, vector<16x16xf32>
    %c10_161 = arith.constant 10 : index
    %924 = memref.load %arg3[%c10_161] : memref<144xf32, #tpu.memory_space<smem>>
    %925 = vector.broadcast %924 : f32 to vector<16x16xf32>
    %926 = arith.mulf %923, %925 : vector<16x16xf32>
    %927 = arith.addf %909, %926 : vector<16x16xf32>
    %c46_162 = arith.constant 46 : index
    %928 = memref.load %arg3[%c46_162] : memref<144xf32, #tpu.memory_space<smem>>
    %929 = vector.broadcast %928 : f32 to vector<16x16xf32>
    %930 = arith.mulf %923, %929 : vector<16x16xf32>
    %931 = arith.addf %913, %930 : vector<16x16xf32>
    %c82_163 = arith.constant 82 : index
    %932 = memref.load %arg3[%c82_163] : memref<144xf32, #tpu.memory_space<smem>>
    %933 = vector.broadcast %932 : f32 to vector<16x16xf32>
    %934 = arith.mulf %923, %933 : vector<16x16xf32>
    %935 = arith.addf %917, %934 : vector<16x16xf32>
    %c118_164 = arith.constant 118 : index
    %936 = memref.load %arg3[%c118_164] : memref<144xf32, #tpu.memory_space<smem>>
    %937 = vector.broadcast %936 : f32 to vector<16x16xf32>
    %938 = arith.mulf %923, %937 : vector<16x16xf32>
    %939 = arith.addf %921, %938 : vector<16x16xf32>
    %c15_i32_165 = arith.constant 15 : i32
    %940 = tpu.dynamic_rotate %902 by %c15_i32_165 dim 1 : vector<16x16xf32>, i32 -> vector<16x16xf32>
    %cst_166 = arith.constant 0.000000e+00 : f32
    %941 = vector.broadcast %cst_166 : f32 to vector<16x16xf32>
    %942 = arith.select %11, %940, %941 : vector<16x16xi1>, vector<16x16xf32>
    %c11_167 = arith.constant 11 : index
    %943 = memref.load %arg3[%c11_167] : memref<144xf32, #tpu.memory_space<smem>>
    %944 = vector.broadcast %943 : f32 to vector<16x16xf32>
    %945 = arith.mulf %942, %944 : vector<16x16xf32>
    %946 = arith.addf %927, %945 : vector<16x16xf32>
    %c47_168 = arith.constant 47 : index
    %947 = memref.load %arg3[%c47_168] : memref<144xf32, #tpu.memory_space<smem>>
    %948 = vector.broadcast %947 : f32 to vector<16x16xf32>
    %949 = arith.mulf %942, %948 : vector<16x16xf32>
    %950 = arith.addf %931, %949 : vector<16x16xf32>
    %c83_169 = arith.constant 83 : index
    %951 = memref.load %arg3[%c83_169] : memref<144xf32, #tpu.memory_space<smem>>
    %952 = vector.broadcast %951 : f32 to vector<16x16xf32>
    %953 = arith.mulf %942, %952 : vector<16x16xf32>
    %954 = arith.addf %935, %953 : vector<16x16xf32>
    %c119_170 = arith.constant 119 : index
    %955 = memref.load %arg3[%c119_170] : memref<144xf32, #tpu.memory_space<smem>>
    %956 = vector.broadcast %955 : f32 to vector<16x16xf32>
    %957 = arith.mulf %942, %956 : vector<16x16xf32>
    %958 = arith.addf %939, %957 : vector<16x16xf32>
    %c1_i32_171 = arith.constant 1 : i32
    %959 = tpu.dynamic_rotate %713 by %c1_i32_171 dim 1 : vector<16x16xf32>, i32 -> vector<16x16xf32>
    %cst_172 = arith.constant 0.000000e+00 : f32
    %960 = vector.broadcast %cst_172 : f32 to vector<16x16xf32>
    %961 = arith.select %7, %959, %960 : vector<16x16xi1>, vector<16x16xf32>
    %c12_173 = arith.constant 12 : index
    %962 = memref.load %arg3[%c12_173] : memref<144xf32, #tpu.memory_space<smem>>
    %963 = vector.broadcast %962 : f32 to vector<16x16xf32>
    %964 = arith.mulf %961, %963 : vector<16x16xf32>
    %965 = arith.addf %946, %964 : vector<16x16xf32>
    %c48_174 = arith.constant 48 : index
    %966 = memref.load %arg3[%c48_174] : memref<144xf32, #tpu.memory_space<smem>>
    %967 = vector.broadcast %966 : f32 to vector<16x16xf32>
    %968 = arith.mulf %961, %967 : vector<16x16xf32>
    %969 = arith.addf %950, %968 : vector<16x16xf32>
    %c84_175 = arith.constant 84 : index
    %970 = memref.load %arg3[%c84_175] : memref<144xf32, #tpu.memory_space<smem>>
    %971 = vector.broadcast %970 : f32 to vector<16x16xf32>
    %972 = arith.mulf %961, %971 : vector<16x16xf32>
    %973 = arith.addf %954, %972 : vector<16x16xf32>
    %c120_176 = arith.constant 120 : index
    %974 = memref.load %arg3[%c120_176] : memref<144xf32, #tpu.memory_space<smem>>
    %975 = vector.broadcast %974 : f32 to vector<16x16xf32>
    %976 = arith.mulf %961, %975 : vector<16x16xf32>
    %977 = arith.addf %958, %976 : vector<16x16xf32>
    %c13_177 = arith.constant 13 : index
    %978 = memref.load %arg3[%c13_177] : memref<144xf32, #tpu.memory_space<smem>>
    %979 = vector.broadcast %978 : f32 to vector<16x16xf32>
    %980 = arith.mulf %713, %979 : vector<16x16xf32>
    %981 = arith.addf %965, %980 : vector<16x16xf32>
    %c49_178 = arith.constant 49 : index
    %982 = memref.load %arg3[%c49_178] : memref<144xf32, #tpu.memory_space<smem>>
    %983 = vector.broadcast %982 : f32 to vector<16x16xf32>
    %984 = arith.mulf %713, %983 : vector<16x16xf32>
    %985 = arith.addf %969, %984 : vector<16x16xf32>
    %c85_179 = arith.constant 85 : index
    %986 = memref.load %arg3[%c85_179] : memref<144xf32, #tpu.memory_space<smem>>
    %987 = vector.broadcast %986 : f32 to vector<16x16xf32>
    %988 = arith.mulf %713, %987 : vector<16x16xf32>
    %989 = arith.addf %973, %988 : vector<16x16xf32>
    %c121_180 = arith.constant 121 : index
    %990 = memref.load %arg3[%c121_180] : memref<144xf32, #tpu.memory_space<smem>>
    %991 = vector.broadcast %990 : f32 to vector<16x16xf32>
    %992 = arith.mulf %713, %991 : vector<16x16xf32>
    %993 = arith.addf %977, %992 : vector<16x16xf32>
    %c15_i32_181 = arith.constant 15 : i32
    %994 = tpu.dynamic_rotate %713 by %c15_i32_181 dim 1 : vector<16x16xf32>, i32 -> vector<16x16xf32>
    %cst_182 = arith.constant 0.000000e+00 : f32
    %995 = vector.broadcast %cst_182 : f32 to vector<16x16xf32>
    %996 = arith.select %9, %994, %995 : vector<16x16xi1>, vector<16x16xf32>
    %c14_183 = arith.constant 14 : index
    %997 = memref.load %arg3[%c14_183] : memref<144xf32, #tpu.memory_space<smem>>
    %998 = vector.broadcast %997 : f32 to vector<16x16xf32>
    %999 = arith.mulf %996, %998 : vector<16x16xf32>
    %1000 = arith.addf %981, %999 : vector<16x16xf32>
    %c50_184 = arith.constant 50 : index
    %1001 = memref.load %arg3[%c50_184] : memref<144xf32, #tpu.memory_space<smem>>
    %1002 = vector.broadcast %1001 : f32 to vector<16x16xf32>
    %1003 = arith.mulf %996, %1002 : vector<16x16xf32>
    %1004 = arith.addf %985, %1003 : vector<16x16xf32>
    %c86_185 = arith.constant 86 : index
    %1005 = memref.load %arg3[%c86_185] : memref<144xf32, #tpu.memory_space<smem>>
    %1006 = vector.broadcast %1005 : f32 to vector<16x16xf32>
    %1007 = arith.mulf %996, %1006 : vector<16x16xf32>
    %1008 = arith.addf %989, %1007 : vector<16x16xf32>
    %c122_186 = arith.constant 122 : index
    %1009 = memref.load %arg3[%c122_186] : memref<144xf32, #tpu.memory_space<smem>>
    %1010 = vector.broadcast %1009 : f32 to vector<16x16xf32>
    %1011 = arith.mulf %996, %1010 : vector<16x16xf32>
    %1012 = arith.addf %993, %1011 : vector<16x16xf32>
    %c15_i32_187 = arith.constant 15 : i32
    %1013 = tpu.dynamic_rotate %713 by %c15_i32_187 dim 0 : vector<16x16xf32>, i32 -> vector<16x16xf32>
    %c1_i32_188 = arith.constant 1 : i32
    %1014 = tpu.dynamic_rotate %1013 by %c1_i32_188 dim 1 : vector<16x16xf32>, i32 -> vector<16x16xf32>
    %cst_189 = arith.constant 0.000000e+00 : f32
    %1015 = vector.broadcast %cst_189 : f32 to vector<16x16xf32>
    %1016 = arith.select %12, %1014, %1015 : vector<16x16xi1>, vector<16x16xf32>
    %c15_190 = arith.constant 15 : index
    %1017 = memref.load %arg3[%c15_190] : memref<144xf32, #tpu.memory_space<smem>>
    %1018 = vector.broadcast %1017 : f32 to vector<16x16xf32>
    %1019 = arith.mulf %1016, %1018 : vector<16x16xf32>
    %1020 = arith.addf %1000, %1019 : vector<16x16xf32>
    %c51_191 = arith.constant 51 : index
    %1021 = memref.load %arg3[%c51_191] : memref<144xf32, #tpu.memory_space<smem>>
    %1022 = vector.broadcast %1021 : f32 to vector<16x16xf32>
    %1023 = arith.mulf %1016, %1022 : vector<16x16xf32>
    %1024 = arith.addf %1004, %1023 : vector<16x16xf32>
    %c87_192 = arith.constant 87 : index
    %1025 = memref.load %arg3[%c87_192] : memref<144xf32, #tpu.memory_space<smem>>
    %1026 = vector.broadcast %1025 : f32 to vector<16x16xf32>
    %1027 = arith.mulf %1016, %1026 : vector<16x16xf32>
    %1028 = arith.addf %1008, %1027 : vector<16x16xf32>
    %c123_193 = arith.constant 123 : index
    %1029 = memref.load %arg3[%c123_193] : memref<144xf32, #tpu.memory_space<smem>>
    %1030 = vector.broadcast %1029 : f32 to vector<16x16xf32>
    %1031 = arith.mulf %1016, %1030 : vector<16x16xf32>
    %1032 = arith.addf %1012, %1031 : vector<16x16xf32>
    %cst_194 = arith.constant 0.000000e+00 : f32
    %1033 = vector.broadcast %cst_194 : f32 to vector<16x16xf32>
    %1034 = arith.select %5, %1013, %1033 : vector<16x16xi1>, vector<16x16xf32>
    %c16_195 = arith.constant 16 : index
    %1035 = memref.load %arg3[%c16_195] : memref<144xf32, #tpu.memory_space<smem>>
    %1036 = vector.broadcast %1035 : f32 to vector<16x16xf32>
    %1037 = arith.mulf %1034, %1036 : vector<16x16xf32>
    %1038 = arith.addf %1020, %1037 : vector<16x16xf32>
    %c52_196 = arith.constant 52 : index
    %1039 = memref.load %arg3[%c52_196] : memref<144xf32, #tpu.memory_space<smem>>
    %1040 = vector.broadcast %1039 : f32 to vector<16x16xf32>
    %1041 = arith.mulf %1034, %1040 : vector<16x16xf32>
    %1042 = arith.addf %1024, %1041 : vector<16x16xf32>
    %c88_197 = arith.constant 88 : index
    %1043 = memref.load %arg3[%c88_197] : memref<144xf32, #tpu.memory_space<smem>>
    %1044 = vector.broadcast %1043 : f32 to vector<16x16xf32>
    %1045 = arith.mulf %1034, %1044 : vector<16x16xf32>
    %1046 = arith.addf %1028, %1045 : vector<16x16xf32>
    %c124_198 = arith.constant 124 : index
    %1047 = memref.load %arg3[%c124_198] : memref<144xf32, #tpu.memory_space<smem>>
    %1048 = vector.broadcast %1047 : f32 to vector<16x16xf32>
    %1049 = arith.mulf %1034, %1048 : vector<16x16xf32>
    %1050 = arith.addf %1032, %1049 : vector<16x16xf32>
    %c15_i32_199 = arith.constant 15 : i32
    %1051 = tpu.dynamic_rotate %1013 by %c15_i32_199 dim 1 : vector<16x16xf32>, i32 -> vector<16x16xf32>
    %cst_200 = arith.constant 0.000000e+00 : f32
    %1052 = vector.broadcast %cst_200 : f32 to vector<16x16xf32>
    %1053 = arith.select %13, %1051, %1052 : vector<16x16xi1>, vector<16x16xf32>
    %c17_201 = arith.constant 17 : index
    %1054 = memref.load %arg3[%c17_201] : memref<144xf32, #tpu.memory_space<smem>>
    %1055 = vector.broadcast %1054 : f32 to vector<16x16xf32>
    %1056 = arith.mulf %1053, %1055 : vector<16x16xf32>
    %1057 = arith.addf %1038, %1056 : vector<16x16xf32>
    %c53_202 = arith.constant 53 : index
    %1058 = memref.load %arg3[%c53_202] : memref<144xf32, #tpu.memory_space<smem>>
    %1059 = vector.broadcast %1058 : f32 to vector<16x16xf32>
    %1060 = arith.mulf %1053, %1059 : vector<16x16xf32>
    %1061 = arith.addf %1042, %1060 : vector<16x16xf32>
    %c89_203 = arith.constant 89 : index
    %1062 = memref.load %arg3[%c89_203] : memref<144xf32, #tpu.memory_space<smem>>
    %1063 = vector.broadcast %1062 : f32 to vector<16x16xf32>
    %1064 = arith.mulf %1053, %1063 : vector<16x16xf32>
    %1065 = arith.addf %1046, %1064 : vector<16x16xf32>
    %c125_204 = arith.constant 125 : index
    %1066 = memref.load %arg3[%c125_204] : memref<144xf32, #tpu.memory_space<smem>>
    %1067 = vector.broadcast %1066 : f32 to vector<16x16xf32>
    %1068 = arith.mulf %1053, %1067 : vector<16x16xf32>
    %1069 = arith.addf %1050, %1068 : vector<16x16xf32>
    %c1_i32_205 = arith.constant 1 : i32
    %1070 = tpu.dynamic_rotate %721 by %c1_i32_205 dim 0 : vector<16x16xf32>, i32 -> vector<16x16xf32>
    %c1_i32_206 = arith.constant 1 : i32
    %1071 = tpu.dynamic_rotate %1070 by %c1_i32_206 dim 1 : vector<16x16xf32>, i32 -> vector<16x16xf32>
    %cst_207 = arith.constant 0.000000e+00 : f32
    %1072 = vector.broadcast %cst_207 : f32 to vector<16x16xf32>
    %1073 = arith.select %10, %1071, %1072 : vector<16x16xi1>, vector<16x16xf32>
    %c18_208 = arith.constant 18 : index
    %1074 = memref.load %arg3[%c18_208] : memref<144xf32, #tpu.memory_space<smem>>
    %1075 = vector.broadcast %1074 : f32 to vector<16x16xf32>
    %1076 = arith.mulf %1073, %1075 : vector<16x16xf32>
    %1077 = arith.addf %1057, %1076 : vector<16x16xf32>
    %c54_209 = arith.constant 54 : index
    %1078 = memref.load %arg3[%c54_209] : memref<144xf32, #tpu.memory_space<smem>>
    %1079 = vector.broadcast %1078 : f32 to vector<16x16xf32>
    %1080 = arith.mulf %1073, %1079 : vector<16x16xf32>
    %1081 = arith.addf %1061, %1080 : vector<16x16xf32>
    %c90_210 = arith.constant 90 : index
    %1082 = memref.load %arg3[%c90_210] : memref<144xf32, #tpu.memory_space<smem>>
    %1083 = vector.broadcast %1082 : f32 to vector<16x16xf32>
    %1084 = arith.mulf %1073, %1083 : vector<16x16xf32>
    %1085 = arith.addf %1065, %1084 : vector<16x16xf32>
    %c126_211 = arith.constant 126 : index
    %1086 = memref.load %arg3[%c126_211] : memref<144xf32, #tpu.memory_space<smem>>
    %1087 = vector.broadcast %1086 : f32 to vector<16x16xf32>
    %1088 = arith.mulf %1073, %1087 : vector<16x16xf32>
    %1089 = arith.addf %1069, %1088 : vector<16x16xf32>
    %cst_212 = arith.constant 0.000000e+00 : f32
    %1090 = vector.broadcast %cst_212 : f32 to vector<16x16xf32>
    %1091 = arith.select %3, %1070, %1090 : vector<16x16xi1>, vector<16x16xf32>
    %c19_213 = arith.constant 19 : index
    %1092 = memref.load %arg3[%c19_213] : memref<144xf32, #tpu.memory_space<smem>>
    %1093 = vector.broadcast %1092 : f32 to vector<16x16xf32>
    %1094 = arith.mulf %1091, %1093 : vector<16x16xf32>
    %1095 = arith.addf %1077, %1094 : vector<16x16xf32>
    %c55_214 = arith.constant 55 : index
    %1096 = memref.load %arg3[%c55_214] : memref<144xf32, #tpu.memory_space<smem>>
    %1097 = vector.broadcast %1096 : f32 to vector<16x16xf32>
    %1098 = arith.mulf %1091, %1097 : vector<16x16xf32>
    %1099 = arith.addf %1081, %1098 : vector<16x16xf32>
    %c91_215 = arith.constant 91 : index
    %1100 = memref.load %arg3[%c91_215] : memref<144xf32, #tpu.memory_space<smem>>
    %1101 = vector.broadcast %1100 : f32 to vector<16x16xf32>
    %1102 = arith.mulf %1091, %1101 : vector<16x16xf32>
    %1103 = arith.addf %1085, %1102 : vector<16x16xf32>
    %c127_216 = arith.constant 127 : index
    %1104 = memref.load %arg3[%c127_216] : memref<144xf32, #tpu.memory_space<smem>>
    %1105 = vector.broadcast %1104 : f32 to vector<16x16xf32>
    %1106 = arith.mulf %1091, %1105 : vector<16x16xf32>
    %1107 = arith.addf %1089, %1106 : vector<16x16xf32>
    %c15_i32_217 = arith.constant 15 : i32
    %1108 = tpu.dynamic_rotate %1070 by %c15_i32_217 dim 1 : vector<16x16xf32>, i32 -> vector<16x16xf32>
    %cst_218 = arith.constant 0.000000e+00 : f32
    %1109 = vector.broadcast %cst_218 : f32 to vector<16x16xf32>
    %1110 = arith.select %11, %1108, %1109 : vector<16x16xi1>, vector<16x16xf32>
    %c20_219 = arith.constant 20 : index
    %1111 = memref.load %arg3[%c20_219] : memref<144xf32, #tpu.memory_space<smem>>
    %1112 = vector.broadcast %1111 : f32 to vector<16x16xf32>
    %1113 = arith.mulf %1110, %1112 : vector<16x16xf32>
    %1114 = arith.addf %1095, %1113 : vector<16x16xf32>
    %c56_220 = arith.constant 56 : index
    %1115 = memref.load %arg3[%c56_220] : memref<144xf32, #tpu.memory_space<smem>>
    %1116 = vector.broadcast %1115 : f32 to vector<16x16xf32>
    %1117 = arith.mulf %1110, %1116 : vector<16x16xf32>
    %1118 = arith.addf %1099, %1117 : vector<16x16xf32>
    %c92_221 = arith.constant 92 : index
    %1119 = memref.load %arg3[%c92_221] : memref<144xf32, #tpu.memory_space<smem>>
    %1120 = vector.broadcast %1119 : f32 to vector<16x16xf32>
    %1121 = arith.mulf %1110, %1120 : vector<16x16xf32>
    %1122 = arith.addf %1103, %1121 : vector<16x16xf32>
    %c128_222 = arith.constant 128 : index
    %1123 = memref.load %arg3[%c128_222] : memref<144xf32, #tpu.memory_space<smem>>
    %1124 = vector.broadcast %1123 : f32 to vector<16x16xf32>
    %1125 = arith.mulf %1110, %1124 : vector<16x16xf32>
    %1126 = arith.addf %1107, %1125 : vector<16x16xf32>
    %c1_i32_223 = arith.constant 1 : i32
    %1127 = tpu.dynamic_rotate %721 by %c1_i32_223 dim 1 : vector<16x16xf32>, i32 -> vector<16x16xf32>
    %cst_224 = arith.constant 0.000000e+00 : f32
    %1128 = vector.broadcast %cst_224 : f32 to vector<16x16xf32>
    %1129 = arith.select %7, %1127, %1128 : vector<16x16xi1>, vector<16x16xf32>
    %c21_225 = arith.constant 21 : index
    %1130 = memref.load %arg3[%c21_225] : memref<144xf32, #tpu.memory_space<smem>>
    %1131 = vector.broadcast %1130 : f32 to vector<16x16xf32>
    %1132 = arith.mulf %1129, %1131 : vector<16x16xf32>
    %1133 = arith.addf %1114, %1132 : vector<16x16xf32>
    %c57_226 = arith.constant 57 : index
    %1134 = memref.load %arg3[%c57_226] : memref<144xf32, #tpu.memory_space<smem>>
    %1135 = vector.broadcast %1134 : f32 to vector<16x16xf32>
    %1136 = arith.mulf %1129, %1135 : vector<16x16xf32>
    %1137 = arith.addf %1118, %1136 : vector<16x16xf32>
    %c93_227 = arith.constant 93 : index
    %1138 = memref.load %arg3[%c93_227] : memref<144xf32, #tpu.memory_space<smem>>
    %1139 = vector.broadcast %1138 : f32 to vector<16x16xf32>
    %1140 = arith.mulf %1129, %1139 : vector<16x16xf32>
    %1141 = arith.addf %1122, %1140 : vector<16x16xf32>
    %c129_228 = arith.constant 129 : index
    %1142 = memref.load %arg3[%c129_228] : memref<144xf32, #tpu.memory_space<smem>>
    %1143 = vector.broadcast %1142 : f32 to vector<16x16xf32>
    %1144 = arith.mulf %1129, %1143 : vector<16x16xf32>
    %1145 = arith.addf %1126, %1144 : vector<16x16xf32>
    %c22_229 = arith.constant 22 : index
    %1146 = memref.load %arg3[%c22_229] : memref<144xf32, #tpu.memory_space<smem>>
    %1147 = vector.broadcast %1146 : f32 to vector<16x16xf32>
    %1148 = arith.mulf %721, %1147 : vector<16x16xf32>
    %1149 = arith.addf %1133, %1148 : vector<16x16xf32>
    %c58_230 = arith.constant 58 : index
    %1150 = memref.load %arg3[%c58_230] : memref<144xf32, #tpu.memory_space<smem>>
    %1151 = vector.broadcast %1150 : f32 to vector<16x16xf32>
    %1152 = arith.mulf %721, %1151 : vector<16x16xf32>
    %1153 = arith.addf %1137, %1152 : vector<16x16xf32>
    %c94_231 = arith.constant 94 : index
    %1154 = memref.load %arg3[%c94_231] : memref<144xf32, #tpu.memory_space<smem>>
    %1155 = vector.broadcast %1154 : f32 to vector<16x16xf32>
    %1156 = arith.mulf %721, %1155 : vector<16x16xf32>
    %1157 = arith.addf %1141, %1156 : vector<16x16xf32>
    %c130_232 = arith.constant 130 : index
    %1158 = memref.load %arg3[%c130_232] : memref<144xf32, #tpu.memory_space<smem>>
    %1159 = vector.broadcast %1158 : f32 to vector<16x16xf32>
    %1160 = arith.mulf %721, %1159 : vector<16x16xf32>
    %1161 = arith.addf %1145, %1160 : vector<16x16xf32>
    %c15_i32_233 = arith.constant 15 : i32
    %1162 = tpu.dynamic_rotate %721 by %c15_i32_233 dim 1 : vector<16x16xf32>, i32 -> vector<16x16xf32>
    %cst_234 = arith.constant 0.000000e+00 : f32
    %1163 = vector.broadcast %cst_234 : f32 to vector<16x16xf32>
    %1164 = arith.select %9, %1162, %1163 : vector<16x16xi1>, vector<16x16xf32>
    %c23_235 = arith.constant 23 : index
    %1165 = memref.load %arg3[%c23_235] : memref<144xf32, #tpu.memory_space<smem>>
    %1166 = vector.broadcast %1165 : f32 to vector<16x16xf32>
    %1167 = arith.mulf %1164, %1166 : vector<16x16xf32>
    %1168 = arith.addf %1149, %1167 : vector<16x16xf32>
    %c59_236 = arith.constant 59 : index
    %1169 = memref.load %arg3[%c59_236] : memref<144xf32, #tpu.memory_space<smem>>
    %1170 = vector.broadcast %1169 : f32 to vector<16x16xf32>
    %1171 = arith.mulf %1164, %1170 : vector<16x16xf32>
    %1172 = arith.addf %1153, %1171 : vector<16x16xf32>
    %c95_237 = arith.constant 95 : index
    %1173 = memref.load %arg3[%c95_237] : memref<144xf32, #tpu.memory_space<smem>>
    %1174 = vector.broadcast %1173 : f32 to vector<16x16xf32>
    %1175 = arith.mulf %1164, %1174 : vector<16x16xf32>
    %1176 = arith.addf %1157, %1175 : vector<16x16xf32>
    %c131_238 = arith.constant 131 : index
    %1177 = memref.load %arg3[%c131_238] : memref<144xf32, #tpu.memory_space<smem>>
    %1178 = vector.broadcast %1177 : f32 to vector<16x16xf32>
    %1179 = arith.mulf %1164, %1178 : vector<16x16xf32>
    %1180 = arith.addf %1161, %1179 : vector<16x16xf32>
    %c15_i32_239 = arith.constant 15 : i32
    %1181 = tpu.dynamic_rotate %721 by %c15_i32_239 dim 0 : vector<16x16xf32>, i32 -> vector<16x16xf32>
    %c1_i32_240 = arith.constant 1 : i32
    %1182 = tpu.dynamic_rotate %1181 by %c1_i32_240 dim 1 : vector<16x16xf32>, i32 -> vector<16x16xf32>
    %cst_241 = arith.constant 0.000000e+00 : f32
    %1183 = vector.broadcast %cst_241 : f32 to vector<16x16xf32>
    %1184 = arith.select %12, %1182, %1183 : vector<16x16xi1>, vector<16x16xf32>
    %c24_242 = arith.constant 24 : index
    %1185 = memref.load %arg3[%c24_242] : memref<144xf32, #tpu.memory_space<smem>>
    %1186 = vector.broadcast %1185 : f32 to vector<16x16xf32>
    %1187 = arith.mulf %1184, %1186 : vector<16x16xf32>
    %1188 = arith.addf %1168, %1187 : vector<16x16xf32>
    %c60_243 = arith.constant 60 : index
    %1189 = memref.load %arg3[%c60_243] : memref<144xf32, #tpu.memory_space<smem>>
    %1190 = vector.broadcast %1189 : f32 to vector<16x16xf32>
    %1191 = arith.mulf %1184, %1190 : vector<16x16xf32>
    %1192 = arith.addf %1172, %1191 : vector<16x16xf32>
    %c96_244 = arith.constant 96 : index
    %1193 = memref.load %arg3[%c96_244] : memref<144xf32, #tpu.memory_space<smem>>
    %1194 = vector.broadcast %1193 : f32 to vector<16x16xf32>
    %1195 = arith.mulf %1184, %1194 : vector<16x16xf32>
    %1196 = arith.addf %1176, %1195 : vector<16x16xf32>
    %c132_245 = arith.constant 132 : index
    %1197 = memref.load %arg3[%c132_245] : memref<144xf32, #tpu.memory_space<smem>>
    %1198 = vector.broadcast %1197 : f32 to vector<16x16xf32>
    %1199 = arith.mulf %1184, %1198 : vector<16x16xf32>
    %1200 = arith.addf %1180, %1199 : vector<16x16xf32>
    %cst_246 = arith.constant 0.000000e+00 : f32
    %1201 = vector.broadcast %cst_246 : f32 to vector<16x16xf32>
    %1202 = arith.select %5, %1181, %1201 : vector<16x16xi1>, vector<16x16xf32>
    %c25_247 = arith.constant 25 : index
    %1203 = memref.load %arg3[%c25_247] : memref<144xf32, #tpu.memory_space<smem>>
    %1204 = vector.broadcast %1203 : f32 to vector<16x16xf32>
    %1205 = arith.mulf %1202, %1204 : vector<16x16xf32>
    %1206 = arith.addf %1188, %1205 : vector<16x16xf32>
    %c61_248 = arith.constant 61 : index
    %1207 = memref.load %arg3[%c61_248] : memref<144xf32, #tpu.memory_space<smem>>
    %1208 = vector.broadcast %1207 : f32 to vector<16x16xf32>
    %1209 = arith.mulf %1202, %1208 : vector<16x16xf32>
    %1210 = arith.addf %1192, %1209 : vector<16x16xf32>
    %c97_249 = arith.constant 97 : index
    %1211 = memref.load %arg3[%c97_249] : memref<144xf32, #tpu.memory_space<smem>>
    %1212 = vector.broadcast %1211 : f32 to vector<16x16xf32>
    %1213 = arith.mulf %1202, %1212 : vector<16x16xf32>
    %1214 = arith.addf %1196, %1213 : vector<16x16xf32>
    %c133_250 = arith.constant 133 : index
    %1215 = memref.load %arg3[%c133_250] : memref<144xf32, #tpu.memory_space<smem>>
    %1216 = vector.broadcast %1215 : f32 to vector<16x16xf32>
    %1217 = arith.mulf %1202, %1216 : vector<16x16xf32>
    %1218 = arith.addf %1200, %1217 : vector<16x16xf32>
    %c15_i32_251 = arith.constant 15 : i32
    %1219 = tpu.dynamic_rotate %1181 by %c15_i32_251 dim 1 : vector<16x16xf32>, i32 -> vector<16x16xf32>
    %cst_252 = arith.constant 0.000000e+00 : f32
    %1220 = vector.broadcast %cst_252 : f32 to vector<16x16xf32>
    %1221 = arith.select %13, %1219, %1220 : vector<16x16xi1>, vector<16x16xf32>
    %c26_253 = arith.constant 26 : index
    %1222 = memref.load %arg3[%c26_253] : memref<144xf32, #tpu.memory_space<smem>>
    %1223 = vector.broadcast %1222 : f32 to vector<16x16xf32>
    %1224 = arith.mulf %1221, %1223 : vector<16x16xf32>
    %1225 = arith.addf %1206, %1224 : vector<16x16xf32>
    %c62_254 = arith.constant 62 : index
    %1226 = memref.load %arg3[%c62_254] : memref<144xf32, #tpu.memory_space<smem>>
    %1227 = vector.broadcast %1226 : f32 to vector<16x16xf32>
    %1228 = arith.mulf %1221, %1227 : vector<16x16xf32>
    %1229 = arith.addf %1210, %1228 : vector<16x16xf32>
    %c98_255 = arith.constant 98 : index
    %1230 = memref.load %arg3[%c98_255] : memref<144xf32, #tpu.memory_space<smem>>
    %1231 = vector.broadcast %1230 : f32 to vector<16x16xf32>
    %1232 = arith.mulf %1221, %1231 : vector<16x16xf32>
    %1233 = arith.addf %1214, %1232 : vector<16x16xf32>
    %c134_256 = arith.constant 134 : index
    %1234 = memref.load %arg3[%c134_256] : memref<144xf32, #tpu.memory_space<smem>>
    %1235 = vector.broadcast %1234 : f32 to vector<16x16xf32>
    %1236 = arith.mulf %1221, %1235 : vector<16x16xf32>
    %1237 = arith.addf %1218, %1236 : vector<16x16xf32>
    %c1_i32_257 = arith.constant 1 : i32
    %1238 = tpu.dynamic_rotate %729 by %c1_i32_257 dim 0 : vector<16x16xf32>, i32 -> vector<16x16xf32>
    %c1_i32_258 = arith.constant 1 : i32
    %1239 = tpu.dynamic_rotate %1238 by %c1_i32_258 dim 1 : vector<16x16xf32>, i32 -> vector<16x16xf32>
    %cst_259 = arith.constant 0.000000e+00 : f32
    %1240 = vector.broadcast %cst_259 : f32 to vector<16x16xf32>
    %1241 = arith.select %10, %1239, %1240 : vector<16x16xi1>, vector<16x16xf32>
    %c27_260 = arith.constant 27 : index
    %1242 = memref.load %arg3[%c27_260] : memref<144xf32, #tpu.memory_space<smem>>
    %1243 = vector.broadcast %1242 : f32 to vector<16x16xf32>
    %1244 = arith.mulf %1241, %1243 : vector<16x16xf32>
    %1245 = arith.addf %1225, %1244 : vector<16x16xf32>
    %c63_261 = arith.constant 63 : index
    %1246 = memref.load %arg3[%c63_261] : memref<144xf32, #tpu.memory_space<smem>>
    %1247 = vector.broadcast %1246 : f32 to vector<16x16xf32>
    %1248 = arith.mulf %1241, %1247 : vector<16x16xf32>
    %1249 = arith.addf %1229, %1248 : vector<16x16xf32>
    %c99_262 = arith.constant 99 : index
    %1250 = memref.load %arg3[%c99_262] : memref<144xf32, #tpu.memory_space<smem>>
    %1251 = vector.broadcast %1250 : f32 to vector<16x16xf32>
    %1252 = arith.mulf %1241, %1251 : vector<16x16xf32>
    %1253 = arith.addf %1233, %1252 : vector<16x16xf32>
    %c135_263 = arith.constant 135 : index
    %1254 = memref.load %arg3[%c135_263] : memref<144xf32, #tpu.memory_space<smem>>
    %1255 = vector.broadcast %1254 : f32 to vector<16x16xf32>
    %1256 = arith.mulf %1241, %1255 : vector<16x16xf32>
    %1257 = arith.addf %1237, %1256 : vector<16x16xf32>
    %cst_264 = arith.constant 0.000000e+00 : f32
    %1258 = vector.broadcast %cst_264 : f32 to vector<16x16xf32>
    %1259 = arith.select %3, %1238, %1258 : vector<16x16xi1>, vector<16x16xf32>
    %c28_265 = arith.constant 28 : index
    %1260 = memref.load %arg3[%c28_265] : memref<144xf32, #tpu.memory_space<smem>>
    %1261 = vector.broadcast %1260 : f32 to vector<16x16xf32>
    %1262 = arith.mulf %1259, %1261 : vector<16x16xf32>
    %1263 = arith.addf %1245, %1262 : vector<16x16xf32>
    %c64_266 = arith.constant 64 : index
    %1264 = memref.load %arg3[%c64_266] : memref<144xf32, #tpu.memory_space<smem>>
    %1265 = vector.broadcast %1264 : f32 to vector<16x16xf32>
    %1266 = arith.mulf %1259, %1265 : vector<16x16xf32>
    %1267 = arith.addf %1249, %1266 : vector<16x16xf32>
    %c100_267 = arith.constant 100 : index
    %1268 = memref.load %arg3[%c100_267] : memref<144xf32, #tpu.memory_space<smem>>
    %1269 = vector.broadcast %1268 : f32 to vector<16x16xf32>
    %1270 = arith.mulf %1259, %1269 : vector<16x16xf32>
    %1271 = arith.addf %1253, %1270 : vector<16x16xf32>
    %c136_268 = arith.constant 136 : index
    %1272 = memref.load %arg3[%c136_268] : memref<144xf32, #tpu.memory_space<smem>>
    %1273 = vector.broadcast %1272 : f32 to vector<16x16xf32>
    %1274 = arith.mulf %1259, %1273 : vector<16x16xf32>
    %1275 = arith.addf %1257, %1274 : vector<16x16xf32>
    %c15_i32_269 = arith.constant 15 : i32
    %1276 = tpu.dynamic_rotate %1238 by %c15_i32_269 dim 1 : vector<16x16xf32>, i32 -> vector<16x16xf32>
    %cst_270 = arith.constant 0.000000e+00 : f32
    %1277 = vector.broadcast %cst_270 : f32 to vector<16x16xf32>
    %1278 = arith.select %11, %1276, %1277 : vector<16x16xi1>, vector<16x16xf32>
    %c29_271 = arith.constant 29 : index
    %1279 = memref.load %arg3[%c29_271] : memref<144xf32, #tpu.memory_space<smem>>
    %1280 = vector.broadcast %1279 : f32 to vector<16x16xf32>
    %1281 = arith.mulf %1278, %1280 : vector<16x16xf32>
    %1282 = arith.addf %1263, %1281 : vector<16x16xf32>
    %c65_272 = arith.constant 65 : index
    %1283 = memref.load %arg3[%c65_272] : memref<144xf32, #tpu.memory_space<smem>>
    %1284 = vector.broadcast %1283 : f32 to vector<16x16xf32>
    %1285 = arith.mulf %1278, %1284 : vector<16x16xf32>
    %1286 = arith.addf %1267, %1285 : vector<16x16xf32>
    %c101_273 = arith.constant 101 : index
    %1287 = memref.load %arg3[%c101_273] : memref<144xf32, #tpu.memory_space<smem>>
    %1288 = vector.broadcast %1287 : f32 to vector<16x16xf32>
    %1289 = arith.mulf %1278, %1288 : vector<16x16xf32>
    %1290 = arith.addf %1271, %1289 : vector<16x16xf32>
    %c137_274 = arith.constant 137 : index
    %1291 = memref.load %arg3[%c137_274] : memref<144xf32, #tpu.memory_space<smem>>
    %1292 = vector.broadcast %1291 : f32 to vector<16x16xf32>
    %1293 = arith.mulf %1278, %1292 : vector<16x16xf32>
    %1294 = arith.addf %1275, %1293 : vector<16x16xf32>
    %c1_i32_275 = arith.constant 1 : i32
    %1295 = tpu.dynamic_rotate %729 by %c1_i32_275 dim 1 : vector<16x16xf32>, i32 -> vector<16x16xf32>
    %cst_276 = arith.constant 0.000000e+00 : f32
    %1296 = vector.broadcast %cst_276 : f32 to vector<16x16xf32>
    %1297 = arith.select %7, %1295, %1296 : vector<16x16xi1>, vector<16x16xf32>
    %c30_277 = arith.constant 30 : index
    %1298 = memref.load %arg3[%c30_277] : memref<144xf32, #tpu.memory_space<smem>>
    %1299 = vector.broadcast %1298 : f32 to vector<16x16xf32>
    %1300 = arith.mulf %1297, %1299 : vector<16x16xf32>
    %1301 = arith.addf %1282, %1300 : vector<16x16xf32>
    %c66_278 = arith.constant 66 : index
    %1302 = memref.load %arg3[%c66_278] : memref<144xf32, #tpu.memory_space<smem>>
    %1303 = vector.broadcast %1302 : f32 to vector<16x16xf32>
    %1304 = arith.mulf %1297, %1303 : vector<16x16xf32>
    %1305 = arith.addf %1286, %1304 : vector<16x16xf32>
    %c102_279 = arith.constant 102 : index
    %1306 = memref.load %arg3[%c102_279] : memref<144xf32, #tpu.memory_space<smem>>
    %1307 = vector.broadcast %1306 : f32 to vector<16x16xf32>
    %1308 = arith.mulf %1297, %1307 : vector<16x16xf32>
    %1309 = arith.addf %1290, %1308 : vector<16x16xf32>
    %c138_280 = arith.constant 138 : index
    %1310 = memref.load %arg3[%c138_280] : memref<144xf32, #tpu.memory_space<smem>>
    %1311 = vector.broadcast %1310 : f32 to vector<16x16xf32>
    %1312 = arith.mulf %1297, %1311 : vector<16x16xf32>
    %1313 = arith.addf %1294, %1312 : vector<16x16xf32>
    %c31_281 = arith.constant 31 : index
    %1314 = memref.load %arg3[%c31_281] : memref<144xf32, #tpu.memory_space<smem>>
    %1315 = vector.broadcast %1314 : f32 to vector<16x16xf32>
    %1316 = arith.mulf %729, %1315 : vector<16x16xf32>
    %1317 = arith.addf %1301, %1316 : vector<16x16xf32>
    %c67_282 = arith.constant 67 : index
    %1318 = memref.load %arg3[%c67_282] : memref<144xf32, #tpu.memory_space<smem>>
    %1319 = vector.broadcast %1318 : f32 to vector<16x16xf32>
    %1320 = arith.mulf %729, %1319 : vector<16x16xf32>
    %1321 = arith.addf %1305, %1320 : vector<16x16xf32>
    %c103_283 = arith.constant 103 : index
    %1322 = memref.load %arg3[%c103_283] : memref<144xf32, #tpu.memory_space<smem>>
    %1323 = vector.broadcast %1322 : f32 to vector<16x16xf32>
    %1324 = arith.mulf %729, %1323 : vector<16x16xf32>
    %1325 = arith.addf %1309, %1324 : vector<16x16xf32>
    %c139_284 = arith.constant 139 : index
    %1326 = memref.load %arg3[%c139_284] : memref<144xf32, #tpu.memory_space<smem>>
    %1327 = vector.broadcast %1326 : f32 to vector<16x16xf32>
    %1328 = arith.mulf %729, %1327 : vector<16x16xf32>
    %1329 = arith.addf %1313, %1328 : vector<16x16xf32>
    %c15_i32_285 = arith.constant 15 : i32
    %1330 = tpu.dynamic_rotate %729 by %c15_i32_285 dim 1 : vector<16x16xf32>, i32 -> vector<16x16xf32>
    %cst_286 = arith.constant 0.000000e+00 : f32
    %1331 = vector.broadcast %cst_286 : f32 to vector<16x16xf32>
    %1332 = arith.select %9, %1330, %1331 : vector<16x16xi1>, vector<16x16xf32>
    %c32_287 = arith.constant 32 : index
    %1333 = memref.load %arg3[%c32_287] : memref<144xf32, #tpu.memory_space<smem>>
    %1334 = vector.broadcast %1333 : f32 to vector<16x16xf32>
    %1335 = arith.mulf %1332, %1334 : vector<16x16xf32>
    %1336 = arith.addf %1317, %1335 : vector<16x16xf32>
    %c68_288 = arith.constant 68 : index
    %1337 = memref.load %arg3[%c68_288] : memref<144xf32, #tpu.memory_space<smem>>
    %1338 = vector.broadcast %1337 : f32 to vector<16x16xf32>
    %1339 = arith.mulf %1332, %1338 : vector<16x16xf32>
    %1340 = arith.addf %1321, %1339 : vector<16x16xf32>
    %c104_289 = arith.constant 104 : index
    %1341 = memref.load %arg3[%c104_289] : memref<144xf32, #tpu.memory_space<smem>>
    %1342 = vector.broadcast %1341 : f32 to vector<16x16xf32>
    %1343 = arith.mulf %1332, %1342 : vector<16x16xf32>
    %1344 = arith.addf %1325, %1343 : vector<16x16xf32>
    %c140_290 = arith.constant 140 : index
    %1345 = memref.load %arg3[%c140_290] : memref<144xf32, #tpu.memory_space<smem>>
    %1346 = vector.broadcast %1345 : f32 to vector<16x16xf32>
    %1347 = arith.mulf %1332, %1346 : vector<16x16xf32>
    %1348 = arith.addf %1329, %1347 : vector<16x16xf32>
    %c15_i32_291 = arith.constant 15 : i32
    %1349 = tpu.dynamic_rotate %729 by %c15_i32_291 dim 0 : vector<16x16xf32>, i32 -> vector<16x16xf32>
    %c1_i32_292 = arith.constant 1 : i32
    %1350 = tpu.dynamic_rotate %1349 by %c1_i32_292 dim 1 : vector<16x16xf32>, i32 -> vector<16x16xf32>
    %cst_293 = arith.constant 0.000000e+00 : f32
    %1351 = vector.broadcast %cst_293 : f32 to vector<16x16xf32>
    %1352 = arith.select %12, %1350, %1351 : vector<16x16xi1>, vector<16x16xf32>
    %c33_294 = arith.constant 33 : index
    %1353 = memref.load %arg3[%c33_294] : memref<144xf32, #tpu.memory_space<smem>>
    %1354 = vector.broadcast %1353 : f32 to vector<16x16xf32>
    %1355 = arith.mulf %1352, %1354 : vector<16x16xf32>
    %1356 = arith.addf %1336, %1355 : vector<16x16xf32>
    %c69_295 = arith.constant 69 : index
    %1357 = memref.load %arg3[%c69_295] : memref<144xf32, #tpu.memory_space<smem>>
    %1358 = vector.broadcast %1357 : f32 to vector<16x16xf32>
    %1359 = arith.mulf %1352, %1358 : vector<16x16xf32>
    %1360 = arith.addf %1340, %1359 : vector<16x16xf32>
    %c105_296 = arith.constant 105 : index
    %1361 = memref.load %arg3[%c105_296] : memref<144xf32, #tpu.memory_space<smem>>
    %1362 = vector.broadcast %1361 : f32 to vector<16x16xf32>
    %1363 = arith.mulf %1352, %1362 : vector<16x16xf32>
    %1364 = arith.addf %1344, %1363 : vector<16x16xf32>
    %c141_297 = arith.constant 141 : index
    %1365 = memref.load %arg3[%c141_297] : memref<144xf32, #tpu.memory_space<smem>>
    %1366 = vector.broadcast %1365 : f32 to vector<16x16xf32>
    %1367 = arith.mulf %1352, %1366 : vector<16x16xf32>
    %1368 = arith.addf %1348, %1367 : vector<16x16xf32>
    %cst_298 = arith.constant 0.000000e+00 : f32
    %1369 = vector.broadcast %cst_298 : f32 to vector<16x16xf32>
    %1370 = arith.select %5, %1349, %1369 : vector<16x16xi1>, vector<16x16xf32>
    %c34_299 = arith.constant 34 : index
    %1371 = memref.load %arg3[%c34_299] : memref<144xf32, #tpu.memory_space<smem>>
    %1372 = vector.broadcast %1371 : f32 to vector<16x16xf32>
    %1373 = arith.mulf %1370, %1372 : vector<16x16xf32>
    %1374 = arith.addf %1356, %1373 : vector<16x16xf32>
    %c70_300 = arith.constant 70 : index
    %1375 = memref.load %arg3[%c70_300] : memref<144xf32, #tpu.memory_space<smem>>
    %1376 = vector.broadcast %1375 : f32 to vector<16x16xf32>
    %1377 = arith.mulf %1370, %1376 : vector<16x16xf32>
    %1378 = arith.addf %1360, %1377 : vector<16x16xf32>
    %c106_301 = arith.constant 106 : index
    %1379 = memref.load %arg3[%c106_301] : memref<144xf32, #tpu.memory_space<smem>>
    %1380 = vector.broadcast %1379 : f32 to vector<16x16xf32>
    %1381 = arith.mulf %1370, %1380 : vector<16x16xf32>
    %1382 = arith.addf %1364, %1381 : vector<16x16xf32>
    %c142_302 = arith.constant 142 : index
    %1383 = memref.load %arg3[%c142_302] : memref<144xf32, #tpu.memory_space<smem>>
    %1384 = vector.broadcast %1383 : f32 to vector<16x16xf32>
    %1385 = arith.mulf %1370, %1384 : vector<16x16xf32>
    %1386 = arith.addf %1368, %1385 : vector<16x16xf32>
    %c15_i32_303 = arith.constant 15 : i32
    %1387 = tpu.dynamic_rotate %1349 by %c15_i32_303 dim 1 : vector<16x16xf32>, i32 -> vector<16x16xf32>
    %cst_304 = arith.constant 0.000000e+00 : f32
    %1388 = vector.broadcast %cst_304 : f32 to vector<16x16xf32>
    %1389 = arith.select %13, %1387, %1388 : vector<16x16xi1>, vector<16x16xf32>
    %c35_305 = arith.constant 35 : index
    %1390 = memref.load %arg3[%c35_305] : memref<144xf32, #tpu.memory_space<smem>>
    %1391 = vector.broadcast %1390 : f32 to vector<16x16xf32>
    %1392 = arith.mulf %1389, %1391 : vector<16x16xf32>
    %1393 = arith.addf %1374, %1392 : vector<16x16xf32>
    %c71_306 = arith.constant 71 : index
    %1394 = memref.load %arg3[%c71_306] : memref<144xf32, #tpu.memory_space<smem>>
    %1395 = vector.broadcast %1394 : f32 to vector<16x16xf32>
    %1396 = arith.mulf %1389, %1395 : vector<16x16xf32>
    %1397 = arith.addf %1378, %1396 : vector<16x16xf32>
    %c107_307 = arith.constant 107 : index
    %1398 = memref.load %arg3[%c107_307] : memref<144xf32, #tpu.memory_space<smem>>
    %1399 = vector.broadcast %1398 : f32 to vector<16x16xf32>
    %1400 = arith.mulf %1389, %1399 : vector<16x16xf32>
    %1401 = arith.addf %1382, %1400 : vector<16x16xf32>
    %c143_308 = arith.constant 143 : index
    %1402 = memref.load %arg3[%c143_308] : memref<144xf32, #tpu.memory_space<smem>>
    %1403 = vector.broadcast %1402 : f32 to vector<16x16xf32>
    %1404 = arith.mulf %1389, %1403 : vector<16x16xf32>
    %1405 = arith.addf %1386, %1404 : vector<16x16xf32>
    %c0_309 = arith.constant 0 : index
    %1406 = memref.load %arg6[%c0_309] : memref<4xf32, #tpu.memory_space<smem>>
    %1407 = vector.broadcast %1406 : f32 to vector<16x16xf32>
    %1408 = arith.mulf %1393, %1407 : vector<16x16xf32>
    %c0_310 = arith.constant 0 : index
    %1409 = memref.load %arg7[%c0_310] : memref<4xf32, #tpu.memory_space<smem>>
    %1410 = vector.broadcast %1409 : f32 to vector<16x16xf32>
    %1411 = arith.addf %1408, %1410 : vector<16x16xf32>
    %1412 = arith.addf %1411, %15 : vector<16x16xf32>
    %cst_311 = arith.constant 0.000000e+00 : f32
    %1413 = vector.broadcast %cst_311 : f32 to vector<16x16xf32>
    %1414 = arith.maximumf %1412, %1413 : vector<16x16xf32>
    %c0_312 = arith.constant 0 : index
    %c0_313 = arith.constant 0 : index
    %c0_314 = arith.constant 0 : index
    %c0_315 = arith.constant 0 : index
    %1415 = vector.load %arg8[%c0_312, %c0_313, %c0_314, %c0_315] : memref<1x4x16x16xf32, #tpu.memory_space<vmem>>, vector<1x1x16x16xf32>
    %1416 = vector.shape_cast %1415 : vector<1x1x16x16xf32> to vector<16x16xf32>
    %1417 = vector.shape_cast %1414 : vector<16x16xf32> to vector<1x1x16x16xf32>
    tpu.vector_store %arg8[%c0_312, %c0_313, %c0_314, %c0_315], %1417 {strides = array<i32>} : memref<1x4x16x16xf32, #tpu.memory_space<vmem>>, vector<1x1x16x16xf32>,
    %c1_316 = arith.constant 1 : index
    %1418 = memref.load %arg6[%c1_316] : memref<4xf32, #tpu.memory_space<smem>>
    %1419 = vector.broadcast %1418 : f32 to vector<16x16xf32>
    %1420 = arith.mulf %1397, %1419 : vector<16x16xf32>
    %c1_317 = arith.constant 1 : index
    %1421 = memref.load %arg7[%c1_317] : memref<4xf32, #tpu.memory_space<smem>>
    %1422 = vector.broadcast %1421 : f32 to vector<16x16xf32>
    %1423 = arith.addf %1420, %1422 : vector<16x16xf32>
    %1424 = arith.addf %1423, %17 : vector<16x16xf32>
    %cst_318 = arith.constant 0.000000e+00 : f32
    %1425 = vector.broadcast %cst_318 : f32 to vector<16x16xf32>
    %1426 = arith.maximumf %1424, %1425 : vector<16x16xf32>
    %c0_319 = arith.constant 0 : index
    %c1_320 = arith.constant 1 : index
    %c0_321 = arith.constant 0 : index
    %c0_322 = arith.constant 0 : index
    %1427 = vector.load %arg8[%c0_319, %c1_320, %c0_321, %c0_322] : memref<1x4x16x16xf32, #tpu.memory_space<vmem>>, vector<1x1x16x16xf32>
    %1428 = vector.shape_cast %1427 : vector<1x1x16x16xf32> to vector<16x16xf32>
    %1429 = vector.shape_cast %1426 : vector<16x16xf32> to vector<1x1x16x16xf32>
    tpu.vector_store %arg8[%c0_319, %c1_320, %c0_321, %c0_322], %1429 {strides = array<i32>} : memref<1x4x16x16xf32, #tpu.memory_space<vmem>>, vector<1x1x16x16xf32>,
    %c2_323 = arith.constant 2 : index
    %1430 = memref.load %arg6[%c2_323] : memref<4xf32, #tpu.memory_space<smem>>
    %1431 = vector.broadcast %1430 : f32 to vector<16x16xf32>
    %1432 = arith.mulf %1401, %1431 : vector<16x16xf32>
    %c2_324 = arith.constant 2 : index
    %1433 = memref.load %arg7[%c2_324] : memref<4xf32, #tpu.memory_space<smem>>
    %1434 = vector.broadcast %1433 : f32 to vector<16x16xf32>
    %1435 = arith.addf %1432, %1434 : vector<16x16xf32>
    %1436 = arith.addf %1435, %19 : vector<16x16xf32>
    %cst_325 = arith.constant 0.000000e+00 : f32
    %1437 = vector.broadcast %cst_325 : f32 to vector<16x16xf32>
    %1438 = arith.maximumf %1436, %1437 : vector<16x16xf32>
    %c0_326 = arith.constant 0 : index
    %c2_327 = arith.constant 2 : index
    %c0_328 = arith.constant 0 : index
    %c0_329 = arith.constant 0 : index
    %1439 = vector.load %arg8[%c0_326, %c2_327, %c0_328, %c0_329] : memref<1x4x16x16xf32, #tpu.memory_space<vmem>>, vector<1x1x16x16xf32>
    %1440 = vector.shape_cast %1439 : vector<1x1x16x16xf32> to vector<16x16xf32>
    %1441 = vector.shape_cast %1438 : vector<16x16xf32> to vector<1x1x16x16xf32>
    tpu.vector_store %arg8[%c0_326, %c2_327, %c0_328, %c0_329], %1441 {strides = array<i32>} : memref<1x4x16x16xf32, #tpu.memory_space<vmem>>, vector<1x1x16x16xf32>,
    %c3_330 = arith.constant 3 : index
    %1442 = memref.load %arg6[%c3_330] : memref<4xf32, #tpu.memory_space<smem>>
    %1443 = vector.broadcast %1442 : f32 to vector<16x16xf32>
    %1444 = arith.mulf %1405, %1443 : vector<16x16xf32>
    %c3_331 = arith.constant 3 : index
    %1445 = memref.load %arg7[%c3_331] : memref<4xf32, #tpu.memory_space<smem>>
    %1446 = vector.broadcast %1445 : f32 to vector<16x16xf32>
    %1447 = arith.addf %1444, %1446 : vector<16x16xf32>
    %1448 = arith.addf %1447, %21 : vector<16x16xf32>
    %cst_332 = arith.constant 0.000000e+00 : f32
    %1449 = vector.broadcast %cst_332 : f32 to vector<16x16xf32>
    %1450 = arith.maximumf %1448, %1449 : vector<16x16xf32>
    %c0_333 = arith.constant 0 : index
    %c3_334 = arith.constant 3 : index
    %c0_335 = arith.constant 0 : index
    %c0_336 = arith.constant 0 : index
    %1451 = vector.load %arg8[%c0_333, %c3_334, %c0_335, %c0_336] : memref<1x4x16x16xf32, #tpu.memory_space<vmem>>, vector<1x1x16x16xf32>
    %1452 = vector.shape_cast %1451 : vector<1x1x16x16xf32> to vector<16x16xf32>
    %1453 = vector.shape_cast %1450 : vector<16x16xf32> to vector<1x1x16x16xf32>
    tpu.vector_store %arg8[%c0_333, %c3_334, %c0_335, %c0_336], %1453 {strides = array<i32>} : memref<1x4x16x16xf32, #tpu.memory_space<vmem>>, vector<1x1x16x16xf32>,
    return
  }
  func.func @transform_0(%arg0: i32) -> (i32, i32, i32, i32) {
    %c0_i32 = arith.constant 0 : i32
    %c0_i32_0 = arith.constant 0 : i32
    %c0_i32_1 = arith.constant 0 : i32
    %c0_i32_2 = arith.constant 0 : i32
    return %arg0, %c0_i32, %c0_i32_0, %c0_i32_1 : i32, i32, i32, i32
  }
  func.func @transform_1(%arg0: i32) -> i32 {
    %c0_i32 = arith.constant 0 : i32
    %c0_i32_0 = arith.constant 0 : i32
    return %c0_i32 : i32
  }
  func.func @transform_2(%arg0: i32) -> i32 {
    %c0_i32 = arith.constant 0 : i32
    %c0_i32_0 = arith.constant 0 : i32
    return %c0_i32 : i32
  }
  func.func @transform_3(%arg0: i32) -> i32 {
    %c0_i32 = arith.constant 0 : i32
    %c0_i32_0 = arith.constant 0 : i32
    return %c0_i32 : i32
  }
  func.func @transform_4(%arg0: i32) -> i32 {
    %c0_i32 = arith.constant 0 : i32
    %c0_i32_0 = arith.constant 0 : i32
    return %c0_i32 : i32
  }
  func.func @transform_5(%arg0: i32) -> i32 {
    %c0_i32 = arith.constant 0 : i32
    %c0_i32_0 = arith.constant 0 : i32
    return %c0_i32 : i32
  }
  func.func @transform_6(%arg0: i32) -> i32 {
    %c0_i32 = arith.constant 0 : i32
    %c0_i32_0 = arith.constant 0 : i32
    return %c0_i32 : i32
  }
  func.func @transform_7(%arg0: i32) -> (i32, i32, i32, i32) {
    %c0_i32 = arith.constant 0 : i32
    %c0_i32_0 = arith.constant 0 : i32
    %c0_i32_1 = arith.constant 0 : i32
    %c0_i32_2 = arith.constant 0 : i32
    return %arg0, %c0_i32, %c0_i32_0, %c0_i32_1 : i32, i32, i32, i32
  }
}

</mosaic_0001>

<bundles_post_ra>
// kernel: tpu_custom_call.1
= control target key start
LH: loop header
LB: loop body
LE: loop exit
PB: predicated region body
PF: predicated region fallthrough
CT: control target
= control target key end

     0   :  { %s7981_s0 = inlined_call_operand.hbm [shape: f32[2,4,16,16], index: 0, kind: input, shape index: {}]   ;;  %s7982_s1 = inlined_call_operand.hbm [shape: f32[144], index: 1, kind: input, shape index: {}]   ;;  %s7983_s2 = inlined_call_operand.vmem [shape: f32[144], index: 2, kind: input, shape index: {}]   ;;  %s7984_s3 = inlined_call_operand.vmem [shape: f32[4], index: 3, kind: input, shape index: {}]   ;;  %s7985_s4 = inlined_call_operand.vmem [shape: f32[4], index: 4, kind: input, shape index: {}]   ;;  %s7986_s5 = inlined_call_operand.vmem [shape: f32[4], index: 5, kind: input, shape index: {}]   ;;  %s7987_s6 = inlined_call_operand.vmem [shape: f32[4], index: 6, kind: input, shape index: {}]   ;;  %s7988_s7 = inlined_call_operand.hbm [shape: f32[2,4,16,16], index: 7, kind: output, shape index: {}]  }
   0x1   :  { %8286 = sst [smem:[#allocation224_spill]] %s7981_s0 }
   0x2   :  { %8287 = sst [smem:[#allocation225_spill]] %s7982_s1 }
   0x3   :  { %8288 = sst [smem:[#allocation226_spill]] %s7983_s2 }
   0x4   :  { %8289 = sst [smem:[#allocation227_spill]] %s7984_s3 }
   0x5   :  { %8290 = sst [smem:[#allocation228_spill]] %s7985_s4 }
   0x6   :  { %8291 = sst [smem:[#allocation229_spill]] %s7986_s5 }
   0x7   :  { %8292 = sst [smem:[#allocation230_spill]] %s7987_s6 }
   0x8   :  { %8293 = sst [smem:[#allocation231_spill]] %s7988_s7 }
   0x9   :  { %12 = vsyncpa [#allocation3], 0 }
   0xa   :  { %14 = vsyncpa [#allocation3 + $0x1], 0 }
   0xb   :  { %15 = vsyncpa [#allocation5], 0 }
   0xc   :  { %16 = vsyncpa [#allocation6], 0 }
   0xd   :  { %17 = vsyncpa [#allocation10], 0 }
   0xe   :  { %18 = vsyncpa [#allocation13], 0 }
   0xf   :  { %19 = vsyncpa [#allocation4], 0 }
  0x10   :  { %21 = vsyncpa [#allocation4 + $0x1], 0  ;;  %s3913_s24 = smov 0   ;;  %s3915_s25 = smov 0  }
  0x11   :  { %s3917_s26 = smov 0   ;;  %s3919_s27 = smov 0  }
  0x12 LB: > { %8294 = sst [smem:[#allocation22_spill]] %s3844_s24  ;;  %s3937_s8 = sadd.s32 4294967295, %s3856_s27   ;;  %s3856_s27 = sphi %s3919_s27, %s9681_s27   ;;  %s3852_s26 = sphi %s3917_s26, %s9684_s26   ;;  %s3848_s25 = sphi %s3915_s25, %s9683_s25   ;;  %s3844_s24 = sphi %s3913_s24, %s9682_s24  }
  0x13   : > { %8295 = sst [smem:[#allocation23_spill]] %s3848_s25  ;;  %p3199_p0 = scmp.ge.s32.totalorder %s3856_s27, 1 }
  0x14   : > { %8296 = sst [smem:[#allocation24_spill]] %s3852_s26  ;;  %p7989_p1 = scmp.eq.s32.totalorder %s3937_s8, 0 }
  0x15   : > { %8297 = sst [smem:[#allocation25_spill]] %s3856_s27  ;;  %p210_p2 = scmp.lt.s32.totalorder %s3856_s27, 3 }
  0x16   : > { %s8298_s3 = sld [smem:[#allocation227_spill]] }
  0x17   : > { %8299 = sst [smem:[#allocation26_spill]] %s3937_s8  ;;  %p3942_p3 = pnand %p3199_p0, %p210_p2 }
  0x18   : > { %s8301_s5 = sld [smem:[#allocation229_spill]] }
  0x19   : > { %s8300_s9 = scalar_select %p3942_p3, 1, 0 }
  0x1a   : > { %p3564_p5 = pneg %p3942_p3  ;;  %s8302_s2 = sld [smem:[#allocation226_spill]] }
  0x1b   : > { %s8304_s4 = sld [smem:[#allocation228_spill]] }
  0x1c   : > { %s243_s30 = sshll.u32 %s8298_s3, 4  ;;  %p3957_p6 = pnand %p3564_p5, %p7989_p1  ;;  %s244_s30 = int_to_ptr.vmem [resolvable:$true] %s243_s30 }
  0x1d   : > { %s3662_s20 = scalar_lea.vmem %s244_s30, 16  ;;  %p3670_p11 = scmp.lt.s32.totalorder %s244_s30, %s244_s30 }
  0x1e   : > { %s265_s12 = sshll.u32 %s8301_s5, 4  ;;  %p3663_p7 = scmp.ne.s32.totalorder %s244_s30, %s3662_s20  ;;  %s266_s12 = int_to_ptr.vmem [resolvable:$true] %s265_s12 }
  0x1f   : > { %p3970_p8 = pneg %p3957_p6  ;;  %p3671_p12 = scmp.lt.s32.totalorder %s3662_s20, %s3662_s20 }
  0x20   : > { %s232_s15 = sshll.u32 %s8302_s2, 4  ;;  %s3961_s15 = int_to_ptr.vmem [resolvable:$true] %s232_s15 }
  0x21   : > { %s254_s19 = sshll.u32 %s8304_s4, 4  ;;  %p3665_p9 = pnand %p3970_p8, %p3663_p7  ;;  %s3966_s19 = int_to_ptr.vmem [resolvable:$true] %s254_s19 }
  0x22   : > { %p3672_p13 = por %p3671_p12, %p3670_p11 }
  0x23   : > { %p3666_p10 = pneg %p3665_p9 }
  0x25   : > { %p3673_p0 = pnand %p3672_p13, %p3666_p10 }
  0x27   : > { %3676 = shalt.err (!%p3673_p0)
}
  0x28   : > { %s3858_s22 = smov [#allocation9]   ;;  %s3677_s23 = scalar_lea.vmem %s266_s12, 16 }
  0x29   : > { %3573 = dma.vmem_to_smem (!%p3957_p6), %s244_s30, 16, %s3858_s22, [#allocation10]  }
  0x2a   : > { %p3678_p2 = scmp.ne.s32.totalorder %s266_s12, %s3677_s23  ;;  %p3685_p1 = scmp.lt.s32.totalorder %s266_s12, %s266_s12 }
  0x2b   : > { %p3686_p3 = scmp.lt.s32.totalorder %s3677_s23, %s3677_s23 }
  0x2c   : > { %p3680_p5 = pnand %p3678_p2, %p3970_p8 }
  0x2d   : > { %p3687_p7 = por %p3686_p3, %p3685_p1 }
  0x2e   : > { %p3681_p4 = pneg %p3680_p5 }
  0x30   : > { %p3688_p9 = pnand %p3687_p7, %p3681_p4 }
  0x32   : > { %3691 = shalt.err (!%p3688_p9)
}
  0x33   : > { %s3859_s28 = smov [#allocation12]   ;;  %s3860_s29 = smov [#allocation7]  }
  0x34   : > { %3579 = dma.vmem_to_smem (!%p3957_p6), %s266_s12, 16, %s3859_s28, [#allocation13]  }
  0x35   : > { %s8306_s1 = sld [smem:[#allocation225_spill]]  ;;  %s3703_s11 = scalar_lea.vmem %s3961_s15, 32 }
  0x36   : > { %p3704_p10 = scmp.ne.s32.totalorder %s3961_s15, %s3703_s11  ;;  %p3711_p4 = scmp.lt.s32.totalorder %s3961_s15, %s3961_s15 }
  0x37   : > { %p3712_p11 = scmp.lt.s32.totalorder %s3703_s11, %s3703_s11 }
  0x38   : > { %p3706_p1 = pnand %p3704_p10, %p3970_p8 }
  0x39   : > { %p3713_p12 = por %p3712_p11, %p3711_p4 }
  0x3a   : > { %p3707_p3 = pneg %p3706_p1 }
  0x3b   : > { %3567 = dma.hbm_to_smem (!%p3957_p6), %s8306_s1, 32, %s3860_s29, [#allocation5]  }
  0x3c   : > { %p3714_p13 = pnand %p3713_p12, %p3707_p3 }
  0x3e   : > { %3717 = shalt.err (!%p3714_p13)
}
  0x3f   : > { %s3861_s13 = smov [#allocation8]   ;;  %s8307_s6 = sld [smem:[#allocation230_spill]] }
  0x40   : > { %3570 = dma.vmem_to_smem (!%p3957_p6), %s3961_s15, 32, %s3861_s13, [#allocation6]  }
  0x41   : > { %s3718_s18 = scalar_lea.vmem %s3966_s19, 16  ;;  %p3726_p7 = scmp.lt.s32.totalorder %s3966_s19, %s3966_s19 }
  0x42   : > { %p3719_p0 = scmp.ne.s32.totalorder %s3966_s19, %s3718_s18  ;;  %p3727_p9 = scmp.lt.s32.totalorder %s3718_s18, %s3718_s18 }
  0x44   : > { %p3721_p2 = pnand %p3719_p0, %p3970_p8  ;;  %p3728_p10 = por %p3727_p9, %p3726_p7 }
  0x45   : > { %s276_s17 = sshll.u32 %s8307_s6, 4  ;;  %s277_s17 = int_to_ptr.vmem [resolvable:$true] %s276_s17 }
  0x46   : > { %p3722_p5 = pneg %p3721_p2 }
  0x48   : > { %p3729_p1 = pnand %p3728_p10, %p3722_p5 }
  0x4a   : > { %3732 = shalt.err (!%p3729_p1)
}
  0x4b   : > { %s3862_s20 = smov [#allocation11]   ;;  %s3733_s15 = scalar_lea.vmem %s277_s17, 16 }
  0x4c   : > { %3576 = dma.vmem_to_smem (!%p3957_p6), %s3966_s19, 16, %s3862_s20, [#allocation10]  }
  0x4d   : > { %p3734_p3 = scmp.ne.s32.totalorder %s277_s17, %s3733_s15  ;;  %p3741_p12 = scmp.lt.s32.totalorder %s277_s17, %s277_s17 }
  0x4e   : > { %p3742_p13 = scmp.lt.s32.totalorder %s3733_s15, %s3733_s15 }
  0x4f   : > { %p3736_p4 = pnand %p3734_p3, %p3970_p8 }
  0x50   : > { %p3743_p0 = por %p3742_p13, %p3741_p12 }
  0x51   : > { %p3737_p11 = pneg %p3736_p4 }
  0x53   : > { %p3744_p2 = pnand %p3743_p0, %p3737_p11 }
  0x55   : > { %3747 = shalt.err (!%p3744_p2)
}
  0x56   : > { %s3863_s22 = smov [#allocation14]   ;;  %s3198_s19 = sadd.s32 4294967294, %s3856_s27  }
  0x57   : > { %3582 = dma.vmem_to_smem (!%p3957_p6), %s277_s17, 16, %s3863_s22, [#allocation13]  }
  0x58   : > { %s4014_s21 = sadd.s32 1, %s3856_s27   ;;  %s34_s23 = sadd.s32 1, %s3852_s26 }
  0x59   : > { %8308 = sst [smem:[#allocation27_spill]] %s4014_s21  ;;  %s31_s16 = ssub.s32 %s3856_s27, %s4014_s21 }
  0x5a   : > { %p32_p8 = scmp.eq.s32.totalorder %s31_s16, 0  ;;  %p41_p5 = scmp.ne.s32.totalorder %s3852_s26, %s3848_s25 }
  0x5b   : > { %p42_p7 = scmp.eq.s32.totalorder %s3856_s27, 0  ;;  %p47_p9 = scmp.ne.s32.totalorder %s3848_s25, %s3844_s24 }
  0x5c   : > { %s4025_s28 = scalar_select %p32_p8, %s3852_s26, %s34_s23  }
  0x5d   : > { %p4027_p10 = por %p42_p7, %p41_p5  ;;  %p8311_p1 = scmp.eq.s32.totalorder %s3937_s8, 0 }
  0x5e   : > { %8309 = sst [smem:[#allocation28_spill]] %s4025_s28  ;;  %p197_p3 = scmp.eq.s32.totalorder %s3937_s8, 1 }
  0x5f   : > { %p4033_p6 = por %p8311_p1, %p47_p9  ;;  %p203_p4 = scmp.eq.s32.totalorder %s3198_s19, 1 }
  0x60   : > { %p3597_p11 = scmp.lt.s32.totalorder %s3856_s27, 2  ;;  %s287_s10 = sand.u32 1, %s3852_s26  }
  0x61   : > { %s8312_s30 = scalar_select %p4033_p6, 1, 0 }
  0x62   : > { %p4040_p12 = por %p197_p3, %p41_p5  ;;  %p4044_p13 = por %p203_p4, %p47_p9 }
  0x63   : > { %s3207_s12 = sshll.u32 %s287_s10, 6  ;;  %s3534_s14 = sshll.u32 %s3856_s27, 10 }
  0x64   : > { %s8313_s11 = scalar_select %p4040_p12, 1, 0 }
  0x65   : > { %s8315_s13 = scalar_select %p4044_p13, 1, 0 }
  0x66   : > { %8314 = sst [smem:[#allocation29_spill]] %s8313_s11  ;;  %s291_s15 = scalar_lea.vmem [#allocation2], %s3207_s12 }
  0x67   : > { %8316 = sst [smem:[#allocation30_spill]] %s8315_s13  ;;  %s298_s22 = sshll.u32 %s291_s15, 4  ;;  %s4054_s22 = int_to_ptr.vmem [resolvable:$true] %s298_s22 }
  0x68   : > { %s8317_s0 = sld [smem:[#allocation224_spill]]  ;;  %p4058_p0 = pnand %p3597_p11, %p4027_p10 }
  0x69   : > { %s4062_s16 = scalar_lea.sflag [#allocation3], %s287_s10 }
  0x6a   : > { %p3750_p8 = pneg %p4058_p0 }
  0x6e   : > { %s4052_s20 = scalar_lea.hbm %s8317_s0, %s3534_s14  ;;  %s3753_s12 = scalar_lea.hbm %s8317_s0, 2048 }
  0x6f   : > { %s3748_s23 = scalar_lea.hbm %s4052_s20, 1024  ;;  %p3754_p9 = scmp.lt.s32.totalorder %s4052_s20, %s8317_s0 }
  0x70   : > { %p3749_p2 = scmp.ne.s32.totalorder %s4052_s20, %s3748_s23  ;;  %p3755_p10 = scmp.lt.s32.totalorder %s3753_s12, %s3748_s23 }
  0x72   : > { %p3751_p5 = pnand %p3750_p8, %p3749_p2  ;;  %p3756_p1 = por %p3755_p10, %p3754_p9 }
  0x74   : > { %p3752_p7 = pneg %p3751_p5 }
  0x76   : > { %p3757_p3 = pnand %p3756_p1, %p3752_p7 }
  0x78   : > { %3760 = shalt.err (!%p3757_p3)
}
  0x79   : > { %s3761_s29 = scalar_lea.vmem %s4054_s22, 1024  ;;  %s3864_s10 = smov [#allocation2]  }
  0x7a   : > { %p3762_p4 = scmp.ne.s32.totalorder %s4054_s22, %s3761_s29  ;;  %s3766_s1 = sshll.u32 %s3864_s10, 4  ;;  %s3767_s1 = int_to_ptr.vmem [resolvable:$false] %s3766_s1 }
  0x7b   : > { %s3768_s14 = scalar_lea.vmem %s3767_s1, 2048  ;;  %p3769_p5 = scmp.lt.s32.totalorder %s4054_s22, %s3767_s1 }
  0x7c   : > { %p3764_p11 = pnand %p3762_p4, %p3750_p8  ;;  %p3770_p13 = scmp.lt.s32.totalorder %s3768_s14, %s3761_s29 }
  0x7e   : > { %p3765_p2 = pneg %p3764_p11  ;;  %p3771_p12 = por %p3770_p13, %p3769_p5 }
  0x80   : > { %p3772_p6 = pnand %p3771_p12, %p3765_p2 }
  0x82   : > { %3775 = shalt.err (!%p3772_p6)
}
  0x83   : > { %s3865_s23 = smov 128   ;;  %s3866_s17 = smov 8  }
  0x84   : > { %3586 = dma.hbm_to_vmem [thread:$0]  (!%p4058_p0), %s4052_s20, 1024, %s4054_s22, %s4062_s16, %s3865_s23, %s3865_s23, %s3866_s17  }
  0x85   : > { %p8319_p8 = scmp.ne.s32.totalorder %s8300_s9, 0 }
  0x87   : > { %310 = sbr.rel (%p8319_p8) target bundleno = 1342 (0x53e), region = 48 }
  0x8c   : > { %s4086_s12 = sand.u32 1, %s3848_s25   ;;  %p8322_p6 = scmp.ne.s32.totalorder %s8312_s30, 0 }
  0x8d   : > { %8320 = sst [smem:[#allocation31_spill]] %s4086_s12  ;;  %s7993_s1 = sshll.u32 %s4086_s12, 6 }
  0x8e   : > { %s313_s18 = scalar_lea.sflag [#allocation3], %s4086_s12  ;;  %s4092_s15 = scalar_lea.vmem [#allocation2], %s7993_s1 }
  0x8f   : > { %8321 = sst [smem:[#allocation32_spill]] %s4092_s15 }
  0x90   : > { %3819 = dma.done.wait (%p8322_p6), %s313_s18, 1024  }
  0x91   : > { %3821 = vsyncadd (%p8322_p6), %s313_s18, 4294966272  ;;  %p8323_p12 = scmp.eq.s32.totalorder %s3937_s8, 0 }
  0x93   : > { %3823 = dma.done.wait (%p8323_p12), [#allocation5], 32   ;;  %p8324_p13 = pmov %p8323_p12 }
  0x94   : > { %p8325_p0 = pmov %p8323_p12 }
  0x95   : > { %3825 = vsyncadd (%p8324_p13), [#allocation5], 4294967264 }
  0x96   : > { %3827 = dma.done.wait (%p8325_p0), [#allocation6], 32   ;;  %p8326_p7 = pmov %p8325_p0 }
  0x97   : > { %p8327_p9 = pmov %p8325_p0 }
  0x98   : > { %3829 = vsyncadd (%p8326_p7), [#allocation6], 4294967264 }
  0x99   : > { %3831 = dma.done.wait (%p8327_p9), [#allocation10], 32   ;;  %p8328_p10 = pmov %p8325_p0 }
  0x9a   : > { %p8329_p1 = pmov %p8325_p0 }
  0x9b   : > { %3833 = vsyncadd (%p8328_p10), [#allocation10], 4294967264 }
  0x9c   : > { %3835 = dma.done.wait (%p8329_p1), [#allocation13], 32   ;;  %p8330_p3 = pmov %p8325_p0 }
  0x9e   : > { %3837 = vsyncadd (%p8330_p3), [#allocation13], 4294967264 }
  0x9f   : > { %345 = sfence }
  0xa0   : > { %v4115_v0 = vld [vmem:[%s4092_s15] sm:$0xff]  ;;  %v4118_v1 = vld [vmem:[%s4092_s15 + $0x8] sm:$0xff]  ;;  %v372_v2 = vlaneseq  ;;  %s7994_s9 = smov 16   ;;  %v4130_v8 = vld [vmem:[%s4092_s15 + $0x10] sm:$0xff]  ;;  %vm407_vm2 = vcmask 1047680   ;;  %s8016_s30 = smov 113  }
  0xa1   : > { %512 = vrot.lane.b32.xlu1 %v4115_v0, %s7994_s9  ;;  %v402_v3 = vrot.slane %v4115_v0, 7  ;;  %v403_v4 = vrot.slane %v4118_v1, 7  ;;  %v614_v6 = vrot.slane %v4115_v0, 1  ;;  %v615_v7 = vrot.slane %v4118_v1, 1  ;;  %v4133_v9 = vld [vmem:[%s4092_s15 + $0x18] sm:$0xff]  ;;  %v4178_v20 = vld [vmem:[%s4092_s15 + $0x20] sm:$0xff] }
  0xa2   : > { %v4125_v5 = vshrl.u32 %v372_v2, 7  ;;  %v723_v12 = vrot.slane %v4130_v8, 7  ;;  %v724_v13 = vrot.slane %v4133_v9, 7  ;;  %v933_v17 = vrot.slane %v4130_v8, 1  ;;  %v4181_v21 = vld [vmem:[%s4092_s15 + $0x28] sm:$0xff]  ;;  %v4216_v30 = vld [vmem:[%s4092_s15 + $0x30] sm:$0xff] }
  0xa3   : > { %v934_v18 = vrot.slane %v4133_v9, 1  ;;  %v1041_v23 = vrot.slane %v4178_v20, 7  ;;  %v1042_v24 = vrot.slane %v4181_v21, 7  ;;  %v1251_v27 = vrot.slane %v4178_v20, 1  ;;  %v4219_v31 = vld [vmem:[%s4092_s15 + $0x38] sm:$0xff]  ;;  %s8000_s20 = smov 127  }
  0xa4   : > { %8331 = vst [vmem:[#allocation33_spill] sm:$0xff] %v4125_v5  ;;  %vm404_vm0 = vcmp.lt.s32.totalorder %v4125_v5, 1  ;;  %vm616_vm1 = vcmp.lt.s32.totalorder %v4125_v5, 7  ;;  %v1252_v28 = vrot.slane %v4181_v21, 1  ;;  %v1359_v33 = vrot.slane %v4216_v30, 7  ;;  %s4351_s22 = sld [smem:[#allocation7 + $0x7]] }
  0xa5   : > { %515 = vrot.lane.b32.xlu1 %v4118_v1, %s7994_s9  ;;  %v4140_v10 = vsel %vm404_vm0, %v403_v4, %v402_v3  ;;  %v4147_v11 = vsel %vm616_vm1, %v615_v7, %v614_v6  ;;  %v4153_v14 = vsel %vm404_vm0, %v402_v3, %v403_v4  ;;  %v4161_v15 = vsel %vm404_vm0, %v723_v12, %v724_v13  ;;  %s4353_s19 = sld [smem:[#allocation7 + $0x2b]]  ;;  %s8354_s7 = smov 127  }
  0xa6   : > { %408 = vrot.lane.b32.xlu0 %v4140_v10, %s7994_s9  ;;  %v4165_v16 = vsel %vm616_vm1, %v614_v6, %v615_v7  ;;  %v4175_v19 = vsel %vm404_vm0, %v724_v13, %v723_v12  ;;  %v4189_v22 = vsel %vm616_vm1, %v934_v18, %v933_v17  ;;  %v4199_v25 = vsel %vm404_vm0, %v1041_v23, %v1042_v24  ;;  %s4355_s16 = sld [smem:[#allocation7 + $0x4f]] }
  0xa7   : > { %v4203_v26 = vsel %vm616_vm1, %v933_v17, %v934_v18  ;;  %v4213_v29 = vsel %vm404_vm0, %v1042_v24, %v1041_v23  ;;  %v4227_v32 = vsel %vm616_vm1, %v1252_v28, %v1251_v27  ;;  %v1360_v34 = vrot.slane %v4219_v31, 7  ;;  %s4357_s29 = sld [smem:[#allocation7 + $0x73]] }
  0xa8   : > { %v4241_v36 = vsel %vm616_vm1, %v1251_v27, %v1252_v28  ;;  %v1569_v37 = vrot.slane %v4216_v30, 1  ;;  %v1570_v38 = vrot.slane %v4219_v31, 1  ;;  %s4359_s10 = sld [smem:[#allocation7 + $0xa]]  ;;  %vm377_vm3 = vcmp.ge.s32.totalorder %v4125_v5, 1 }
  0xa9   : > { %622 = vrot.lane.b32.xlu1 %v4147_v11, %s7994_s9  ;;  %v4237_v35 = vsel %vm404_vm0, %v1359_v33, %v1360_v34  ;;  %v4251_v39 = vsel %vm404_vm0, %v1360_v34, %v1359_v33  ;;  %s4363_s14 = sld [smem:[#allocation7 + $0x2e]]  ;;  %vm3001_vm11 = vcmask 130048  }
  0xaa   : > { %411 = vrot.lane.b32.xlu0 %v4153_v14, %s7994_s9  ;;  %v4259_v40 = vsel %vm616_vm1, %v1570_v38, %v1569_v37  ;;  %v4267_v41 = vsel %vm616_vm1, %v1569_v37, %v1570_v38  ;;  %s4366_s23 = sld [smem:[#allocation7 + $0x52]] }
  0xab   : > { %8332 = vst [vmem:[#allocation34_spill] sm:$0xff] %v4267_v41  ;;  %s4368_s17 = sld [smem:[#allocation7 + $0x76]] }
  0xac   : > { %s4370_s18 = sld [smem:[#allocation7 + $0x10]] }
  0xad   : > { %730 = vrot.lane.b32.xlu1 %v4161_v15, %s7994_s9  ;;  %s4372_s1 = sld [smem:[#allocation7 + $0x34]] }
  0xae   : > { %619 = vrot.lane.b32.xlu0 %v4165_v16, %s7994_s9  ;;  %8333 = sst [smem:[#allocation35_spill]] %s4359_s10 }
  0xaf   : > { %8334 = sst [smem:[#allocation36_spill]] %s4363_s14 }
  0xb0   : > { %8335 = sst [smem:[#allocation37_spill]] %s4366_s23 }
  0xb1   : > { %834 = vrot.lane.b32.xlu1 %v4133_v9, %s7994_s9  ;;  %8336 = sst [smem:[#allocation38_spill]] %s4368_s17 }
  0xb2   : > { %727 = vrot.lane.b32.xlu0 %v4175_v19, %s7994_s9  ;;  %8337 = sst [smem:[#allocation39_spill]] %s4370_s18 }
  0xb3   : > { %8338 = sst [smem:[#allocation40_spill]] %s4372_s1 }
  0xb4   : > { %s4380_s0 = sld [smem:[#allocation7 + $0x7c]] }
  0xb5   : > { %940 = vrot.lane.b32.xlu1 %v4189_v22, %s7994_s9  ;;  %s4382_s2 = sld [smem:[#allocation7 + $0x13]] }
  0xb6   : > { %831 = vrot.lane.b32.xlu0 %v4130_v8, %s7994_s9  ;;  %s4384_s3 = sld [smem:[#allocation7 + $0x37]] }
  0xb7   : > { %s4386_s4 = sld [smem:[#allocation7 + $0x5b]] }
  0xb8   : > { %s4389_s5 = sld [smem:[#allocation7 + $0x7f]] }
  0xb9   : > { %1048 = vrot.lane.b32.xlu1 %v4199_v25, %s7994_s9  ;;  %s4391_s6 = sld [smem:[#allocation7 + $0x19]] }
  0xba   : > { %937 = vrot.lane.b32.xlu0 %v4203_v26, %s7994_s9  ;;  %8340 = sst [smem:[#allocation42_spill]] %s4380_s0 }
  0xbb   : > { %8341 = sst [smem:[#allocation43_spill]] %s4382_s2 }
  0xbc   : > { %8342 = sst [smem:[#allocation44_spill]] %s4384_s3 }
  0xbd   : > { %1152 = vrot.lane.b32.xlu1 %v4181_v21, %s7994_s9  ;;  %8343 = sst [smem:[#allocation45_spill]] %s4386_s4 }
  0xbe   : > { %1045 = vrot.lane.b32.xlu0 %v4213_v29, %s7994_s9  ;;  %8344 = sst [smem:[#allocation46_spill]] %s4389_s5 }
  0xbf   : > { %8345 = sst [smem:[#allocation47_spill]] %s4391_s6 }
  0xc0   : > { %s4395_s28 = sld [smem:[#allocation7 + $0x3d]] }
  0xc1   : > { %1258 = vrot.lane.b32.xlu1 %v4227_v32, %s7994_s9  ;;  %s4398_s26 = sld [smem:[#allocation7 + $0x61]] }
  0xc2   : > { %1149 = vrot.lane.b32.xlu0 %v4178_v20, %s7994_s9  ;;  %s4400_s25 = sld [smem:[#allocation7 + $0x85]] }
  0xc3   : > { %s4402_s21 = sld [smem:[#allocation7 + $0x1c]] }
  0xc4   : > { %s4411_s27 = sld [smem:[#allocation7 + $0x64]] }
  0xc5   : > { %1366 = vrot.lane.b32.xlu1 %v4237_v35, %s7994_s9  ;;  %s4414_s13 = sld [smem:[#allocation7 + $0x88]] }
  0xc6   : > { %1255 = vrot.lane.b32.xlu0 %v4241_v36, %s7994_s9  ;;  %8346 = sst [smem:[#allocation48_spill]] %s4395_s28 }
  0xc7   : > { %8347 = sst [smem:[#allocation49_spill]] %s4398_s26 }
  0xc8   : > { %8348 = sst [smem:[#allocation50_spill]] %s4400_s25 }
  0xc9   : > { %1470 = vrot.lane.b32.xlu1 %v4219_v31, %s7994_s9  ;;  %8349 = sst [smem:[#allocation51_spill]] %s4402_s21 }
  0xca   : > { %1363 = vrot.lane.b32.xlu0 %v4251_v39, %s7994_s9  ;;  %8351 = sst [smem:[#allocation53_spill]] %s4411_s27 }
  0xcb   : > { %8352 = sst [smem:[#allocation54_spill]] %s4414_s13 }
  0xcc   : > { %s4416_s24 = sld [smem:[#allocation7 + $0x3]] }
  0xcd   : > { %1576 = vrot.lane.b32.xlu1 %v4259_v40, %s7994_s9  ;;  %s4421_s11 = sld [smem:[#allocation7 + $0x27]] }
  0xce   : > { %1467 = vrot.lane.b32.xlu0 %v4216_v30, %s7994_s9  ;;  %s4424_s12 = sld [smem:[#allocation7 + $0x4b]] }
  0xcf   : > { %s4428_s8 = sld [smem:[#allocation7 + $0x6f]] }
  0xd0   : > { %s4430_s15 = sld [smem:[#allocation7 + $0x5]] }
  0xd1   : > { %s4436_s13 = sld [smem:[#allocation7 + $0x4d]] }
  0xd2   : > { %1573 = vrot.lane.b32.xlu0 %v4267_v41, %s7994_s9  ;;  %8353 = sst [smem:[#allocation55_spill]] %s4416_s24 }
  0xd3   : > { %8355 = sst [smem:[#allocation56_spill]] %s4421_s11 }
  0xd4   : > { %8356 = sst [smem:[#allocation57_spill]] %s4424_s12 }
  0xd5   : > { %8357 = sst [smem:[#allocation58_spill]] %s4428_s8  ;;  %s8363_s8 = smov 113  }
  0xd6   : > { %8358 = sst [smem:[#allocation59_spill]] %s4430_s15 }
  0xd7   : > { %s4433_s24 = sld [smem:[#allocation7 + $0x29]] }
  0xd8   : > { %8360 = sst [smem:[#allocation61_spill]] %s4436_s13 }
  0xd9   : > { %s4438_s11 = sld [smem:[#allocation7 + $0x71]] }
  0xda   : > { %s4447_s15 = sld [smem:[#allocation7 + $0x30]] }
  0xdb   : > { %s4452_s12 = sld [smem:[#allocation7 + $0x78]] }
  0xdc   : > { %s4454_s13 = sld [smem:[#allocation7 + $0xe]] }
  0xdd   : > { %8359 = sst [smem:[#allocation60_spill]] %s4433_s24 }
  0xde   : > { %s4450_s24 = sld [smem:[#allocation7 + $0x54]] }
  0xdf   : > { %8361 = sst [smem:[#allocation62_spill]] %s4438_s11 }
  0xe0   : > { %8364 = sst [smem:[#allocation64_spill]] %s4447_s15 }
  0xe1   : > { %8366 = sst [smem:[#allocation66_spill]] %s4452_s12 }
  0xe2   : > { %8367 = sst [smem:[#allocation67_spill]] %s4454_s13 }
  0xe3   : > { %s4462_s15 = sld [smem:[#allocation7 + $0x56]] }
  0xe4   : > { %8365 = sst [smem:[#allocation65_spill]] %s4450_s24 }
  0xe5   : > { %s4464_s11 = sld [smem:[#allocation7 + $0x7a]] }
  0xe6   : > { %s4468_s12 = sld [smem:[#allocation7 + $0x15]] }
  0xe7   : > { %s4471_s13 = sld [smem:[#allocation7 + $0x39]] }
  0xe8   : > { %s4474_s24 = sld [smem:[#allocation7 + $0x5d]] }
  0xe9   : > { %8369 = sst [smem:[#allocation69_spill]] %s4462_s15 }
  0xea   : > { %s4478_s27 = sld [smem:[#allocation7]] }
  0xeb   : > { %8370 = sst [smem:[#allocation70_spill]] %s4464_s11 }
  0xec   : > { %8371 = sst [smem:[#allocation71_spill]] %s4468_s12 }
  0xed   : > { %8372 = sst [smem:[#allocation72_spill]] %s4471_s13 }
  0xee   : > { %8373 = sst [smem:[#allocation73_spill]] %s4474_s24 }
  0xef   : > { %s4483_s12 = sld [smem:[#allocation7 + $0x24]] }
  0xf0   : > { %8375 = sst [smem:[#allocation75_spill]] %s4478_s27 }
  0xf1   : > { %s4486_s13 = sld [smem:[#allocation7 + $0x48]] }
  0xf2   : > { %s4488_s11 = sld [smem:[#allocation7 + $0x6c]] }
  0xf3   : > { %s4495_s27 = sld [smem:[#allocation7 + $0x25]] }
  0xf4   : > { %s4498_s24 = sld [smem:[#allocation7 + $0x49]] }
  0xf5   : > { %8376 = sst [smem:[#allocation76_spill]] %s4483_s12 }
  0xf6   : > { %s4500_s12 = sld [smem:[#allocation7 + $0x6d]] }
  0xf7   : > { %8377 = sst [smem:[#allocation77_spill]] %s4486_s13 }
  0xf8   : > { %8378 = sst [smem:[#allocation78_spill]] %s4488_s11 }
  0xf9   : > { %8380 = sst [smem:[#allocation80_spill]] %s4495_s27 }
  0xfa   : > { %8381 = sst [smem:[#allocation81_spill]] %s4498_s24 }
  0xfb   : > { %s4502_s15 = sld [smem:[#allocation7 + $0x2]] }
  0xfc   : > { %8382 = sst [smem:[#allocation82_spill]] %s4500_s12 }
  0xfd   : > { %s4507_s11 = sld [smem:[#allocation7 + $0x26]] }
  0xfe   : > { %s4510_s13 = sld [smem:[#allocation7 + $0x4a]] }
  0xff   : > { %s4512_s27 = sld [smem:[#allocation7 + $0x6e]] }
 0x100   : > { %s4516_s12 = sld [smem:[#allocation7 + $0x17]] }
 0x101   : > { %8383 = sst [smem:[#allocation83_spill]] %s4502_s15 }
 0x102   : > { %s4519_s15 = sld [smem:[#allocation7 + $0x3b]] }
 0x103   : > { %8384 = sst [smem:[#allocation84_spill]] %s4507_s11 }
 0x104   : > { %8385 = sst [smem:[#allocation85_spill]] %s4510_s13 }
 0x105   : > { %8386 = sst [smem:[#allocation86_spill]] %s4512_s27 }
 0x106   : > { %8387 = sst [smem:[#allocation87_spill]] %s4516_s12 }
 0x107   : > { %s4522_s24 = sld [smem:[#allocation7 + $0x5f]] }
 0x108   : > { %8388 = sst [smem:[#allocation88_spill]] %s4519_s15 }
 0x109   : > { %s4524_s11 = sld [smem:[#allocation7 + $0x83]] }
 0x10a   : > { %s4531_s27 = sld [smem:[#allocation7 + $0x28]] }
 0x10b   : > { %s4534_s12 = sld [smem:[#allocation7 + $0x4c]] }
 0x10c   : > { %s4536_s15 = sld [smem:[#allocation7 + $0x70]] }
 0x10d   : > { %8389 = sst [smem:[#allocation89_spill]] %s4522_s24 }
 0x10e   : > { %s4547_s24 = sld [smem:[#allocation7 + $0x2a]] }
 0x10f   : > { %8390 = sst [smem:[#allocation90_spill]] %s4524_s11 }
 0x110   : > { %s4543_s11 = sld [smem:[#allocation7 + $0x6]] }
 0x111   : > { %8391 = sst [smem:[#allocation91_spill]] %s4534_s12 }
 0x112   : > { %8392 = sst [smem:[#allocation92_spill]] %s4536_s15 }
 0x113   : > { %v513_v42 = vpop.permute.xlu1 %512  ;;  %s4550_s13 = sld [smem:[#allocation7 + $0x4e]] }
 0x114   : > { %v514_v43 = vsel %vm407_vm2, %v513_v42, %v4115_v0  ;;  %8394 = sst [smem:[#allocation94_spill]] %s4547_s24 }
 0x115   : > { %518 = vrot.lane.b32.xlu0 %v514_v43, %s7994_s9  ;;  %s4552_s12 = sld [smem:[#allocation7 + $0x72]] }
 0x116   : > { %8393 = sst [smem:[#allocation93_spill]] %s4543_s11 }
 0x117   : > { %v516_v44 = vpop.permute.xlu1 %515  ;;  %s4556_s15 = sld [smem:[#allocation7 + $0x8]] }
 0x118   : > { %v409_v45 = vpop.permute.xlu0 %408  ;;  %v517_v46 = vsel %vm407_vm2, %v516_v44, %v4118_v1  ;;  %s4564_s11 = sld [smem:[#allocation7 + $0x2c]] }
 0x119   : > { %520 = vrot.lane.b32.xlu1 %v517_v46, %s7994_s9  ;;  %v410_v12 = vsel %vm407_vm2, %v409_v45, %v4140_v10  ;;  %8395 = sst [smem:[#allocation95_spill]] %s4550_s13 }
 0x11a   : > { %s4568_s13 = sld [smem:[#allocation7 + $0x50]] }
 0x11b   : > { %v623_v47 = vpop.permute.xlu1 %622  ;;  %8396 = sst [smem:[#allocation96_spill]] %s4552_s12 }
 0x11c   : > { %v412_v48 = vpop.permute.xlu0 %411  ;;  %v624_v24 = vsel %vm407_vm2, %v623_v47, %v4147_v11  ;;  %s4570_s12 = sld [smem:[#allocation7 + $0x74]] }
 0x11d   : > { %v413_v3 = vsel %vm407_vm2, %v412_v48, %v4153_v14  ;;  %8397 = sst [smem:[#allocation97_spill]] %s4556_s15 }
 0x11e   : > { %8398 = sst [smem:[#allocation98_spill]] %s4564_s11 }
 0x11f   : > { %v731_v49 = vpop.permute.xlu1 %730  ;;  %s4572_s24 = sld [smem:[#allocation7 + $0x9]] }
 0x120   : > { %v620_v50 = vpop.permute.xlu0 %619  ;;  %v732_v28 = vsel %vm407_vm2, %v731_v49, %v4161_v15  ;;  %8399 = sst [smem:[#allocation99_spill]] %s4568_s13 }
 0x121   : > { %v621_v33 = vsel %vm407_vm2, %v620_v50, %v4165_v16  ;;  %s4580_s11 = sld [smem:[#allocation7 + $0x2d]] }
 0x122   : > { %8400 = sst [smem:[#allocation100_spill]] %s4570_s12 }
 0x123   : > { %v835_v51 = vpop.permute.xlu1 %834  ;;  %s4583_s12 = sld [smem:[#allocation7 + $0x51]] }
 0x124   : > { %v728_v52 = vpop.permute.xlu0 %727  ;;  %v836_v53 = vsel %vm407_vm2, %v835_v51, %v4133_v9  ;;  %s4585_s13 = sld [smem:[#allocation7 + $0x75]] }
 0x125   : > { %839 = vrot.lane.b32.xlu1 %v836_v53, %s7994_s9  ;;  %v729_v37 = vsel %vm407_vm2, %v728_v52, %v4175_v19  ;;  %8401 = sst [smem:[#allocation101_spill]] %s4572_s24 }
 0x126   : > { %s4589_s24 = sld [smem:[#allocation7 + $0xb]] }
 0x127   : > { %v941_v54 = vpop.permute.xlu1 %940  ;;  %8402 = sst [smem:[#allocation102_spill]] %s4580_s11 }
 0x128   : > { %v832_v55 = vpop.permute.xlu0 %831  ;;  %v942_v34 = vsel %vm407_vm2, %v941_v54, %v4189_v22  ;;  %s4594_s11 = sld [smem:[#allocation7 + $0x2f]] }
 0x129   : > { %v833_v56 = vsel %vm407_vm2, %v832_v55, %v4130_v8  ;;  %8403 = sst [smem:[#allocation103_spill]] %s4583_s12 }
 0x12a   : > { %837 = vrot.lane.b32.xlu0 %v833_v56, %s7994_s9  ;;  %8404 = sst [smem:[#allocation104_spill]] %s4585_s13 }
 0x12b   : > { %v1049_v57 = vpop.permute.xlu1 %1048  ;;  %s4606_s13 = sld [smem:[#allocation7 + $0x77]] }
 0x12c   : > { %v938_v58 = vpop.permute.xlu0 %937  ;;  %v1050_v38 = vsel %vm407_vm2, %v1049_v57, %v4199_v25  ;;  %8405 = sst [smem:[#allocation105_spill]] %s4589_s24 }
 0x12d   : > { %v939_v42 = vsel %vm407_vm2, %v938_v58, %v4203_v26  ;;  %s4603_s24 = sld [smem:[#allocation7 + $0x53]] }
 0x12e   : > { %8406 = sst [smem:[#allocation106_spill]] %s4594_s11 }
 0x12f   : > { %v1153_v59 = vpop.permute.xlu1 %1152  ;;  %s4619_s11 = sld [smem:[#allocation7 + $0xd]] }
 0x130   : > { %v1046_v60 = vpop.permute.xlu0 %1045  ;;  %v1154_v61 = vsel %vm407_vm2, %v1153_v59, %v4181_v21  ;;  %s4809_s12 = sld [smem:[#allocation7 + $0x14]] }
 0x131   : > { %1157 = vrot.lane.b32.xlu1 %v1154_v61, %s7994_s9  ;;  %v1047_v44 = vsel %vm407_vm2, %v1046_v60, %v4213_v29  ;;  %8408 = sst [smem:[#allocation108_spill]] %s4606_s13 }
 0x132   : > { %s4636_s13 = sld [smem:[#allocation7 + $0x31]] }
 0x133   : > { %v1259_v62 = vpop.permute.xlu1 %1258  ;;  %8407 = sst [smem:[#allocation107_spill]] %s4603_s24 }
 0x134   : > { %v1150_v63 = vpop.permute.xlu0 %1149  ;;  %v1260_v43 = vsel %vm407_vm2, %v1259_v62, %v4227_v32  ;;  %s4648_s24 = sld [smem:[#allocation7 + $0x55]] }
 0x135   : > { %416 = vrot.lane.b32.xlu1 %v413_v3, %s7994_s9  ;;  %v1151_v4 = vsel %vm407_vm2, %v1150_v63, %v4178_v20  ;;  %8409 = sst [smem:[#allocation109_spill]] %s4619_s11 }
 0x136   : > { %1155 = vrot.lane.b32.xlu0 %v1151_v4, %s7994_s9  ;;  %s4883_s11 = sld [smem:[#allocation7 + $0x3a]] }
 0x137   : > { %v1367_v6 = vpop.permute.xlu1 %1366  ;;  %s8508_s15 = sld [smem:[#allocation36_spill]] }
 0x138   : > { %v1256_v7 = vpop.permute.xlu0 %1255  ;;  %v1368_v46 = vsel %vm407_vm2, %v1367_v6, %v4237_v35  ;;  %8410 = sst [smem:[#allocation110_spill]] %s4636_s13 }
 0x139   : > { %v1257_v47 = vsel %vm407_vm2, %v1256_v7, %v4241_v36  ;;  %s4657_s13 = sld [smem:[#allocation7 + $0x79]] }
 0x13a   : > { %414 = vrot.lane.b32.xlu0 %v410_v12, %s7994_s9  ;;  %8411 = sst [smem:[#allocation111_spill]] %s4648_s24 }
 0x13b   : > { %v1471_v13 = vpop.permute.xlu1 %1470  ;;  %s4666_s24 = sld [smem:[#allocation7 + $0xf]] }
 0x13c   : > { %v1364_v17 = vpop.permute.xlu0 %1363  ;;  %v1472_v18 = vsel %vm407_vm2, %v1471_v13, %v4219_v31 }
 0x13d   : > { %1475 = vrot.lane.b32.xlu1 %v1472_v18, %s7994_s9  ;;  %v1365_v50 = vsel %vm407_vm2, %v1364_v17, %v4251_v39 }
 0x13f   : > { %v1577_v45 = vpop.permute.xlu1 %1576  ;;  %8413 = sst [smem:[#allocation113_spill]] %s4657_s13 }
 0x140   : > { %v1468_v23 = vpop.permute.xlu0 %1467  ;;  %v1578_v48 = vsel %vm407_vm2, %v1577_v45, %v4259_v40  ;;  %s4877_s13 = sld [smem:[#allocation7 + $0x16]] }
 0x141   : > { %627 = vrot.lane.b32.xlu1 %v624_v24, %s7994_s9  ;;  %v1469_v27 = vsel %vm407_vm2, %v1468_v23, %v4216_v30  ;;  %8415 = sst [smem:[#allocation115_spill]] %s4666_s24 }
 0x142   : > { %1473 = vrot.lane.b32.xlu0 %v1469_v27, %s7994_s9  ;;  %s4685_s24 = sld [smem:[#allocation7 + $0x33]] }
 0x144   : > { %v1574_v49 = vpop.permute.xlu0 %1573 }
 0x145   : > { %735 = vrot.lane.b32.xlu1 %v732_v28, %s7994_s9  ;;  %v1575_v51 = vsel %vm407_vm2, %v1574_v49, %v4267_v41 }
 0x146   : > { %625 = vrot.lane.b32.xlu0 %v621_v33, %s7994_s9 }
 0x148   : > { %8419 = sst [smem:[#allocation119_spill]] %s4685_s24 }
 0x149   : > { %945 = vrot.lane.b32.xlu1 %v942_v34, %s7994_s9  ;;  %s4777_s24 = sld [smem:[#allocation7 + $0x12]] }
 0x14a   : > { %733 = vrot.lane.b32.xlu0 %v729_v37, %s7994_s9 }
 0x14d   : > { %1053 = vrot.lane.b32.xlu1 %v1050_v38, %s7994_s9 }
 0x14e   : > { %943 = vrot.lane.b32.xlu0 %v939_v42, %s7994_s9 }
 0x14f   : > { %8449 = sst [smem:[#allocation139_spill]] %s4777_s24 }
 0x150   : > { %s8551_s24 = sld [smem:[#allocation42_spill]] }
 0x151   : > { %1263 = vrot.lane.b32.xlu1 %v1260_v43, %s7994_s9 }
 0x152   : > { %1051 = vrot.lane.b32.xlu0 %v1047_v44, %s7994_s9 }
 0x155   : > { %1371 = vrot.lane.b32.xlu1 %v1368_v46, %s7994_s9 }
 0x156   : > { %1261 = vrot.lane.b32.xlu0 %v1257_v47, %s7994_s9 }
 0x159   : > { %1581 = vrot.lane.b32.xlu1 %v1578_v48, %s7994_s9 }
 0x15a   : > { %1369 = vrot.lane.b32.xlu0 %v1365_v50, %s7994_s9  ;;  %v4575_v50 = vadd.s32 8, %v4125_v5 }
 0x15c   : > { %vm380_vm4 = vcmp.lt.s32.totalorder %v4575_v50, 15 }
 0x15e   : > { %1579 = vrot.lane.b32.xlu0 %v1575_v51, %s7994_s9  ;;  %s4377_s9 = sld [smem:[#allocation7 + $0x58]] }
 0x164   : > { %8339 = sst [smem:[#allocation41_spill]] %s4377_s9 }
 0x187   : > { %v519_v52 = vpop.permute.xlu0 %518 }
 0x188   : > { %v522_v53 = vsel %vm407_vm2, %v519_v52, %v4115_v0 }
 0x189   : > { %526 = vrot.lane.b32.xlu0 %v522_v53, %s8016_s30 }
 0x18b   : > { %v521_v54 = vpop.permute.xlu1 %520 }
 0x18c   : > { %v523_v55 = vsel %vm407_vm2, %v521_v54, %v4118_v1  ;;  %v674_v54 = vstv %s4353_s19  ;;  %s8513_s19 = sld [smem:[#allocation38_spill]] }
 0x18d   : > { %528 = vrot.lane.b32.xlu1 %v523_v55, %s8016_s30  ;;  %582 = vrot.lane.b32.xlu0 %v522_v53, %s8000_s20  ;;  %v668_v53 = vstv %s4351_s22  ;;  %s8511_s22 = sld [smem:[#allocation37_spill]] }
 0x191   : > { %584 = vrot.lane.b32.xlu1 %v523_v55, %s8000_s20  ;;  %v680_v55 = vstv %s4355_s16  ;;  %s8544_s16 = sld [smem:[#allocation139_spill]] }
 0x197   : > { %v840_v56 = vpop.permute.xlu1 %839 }
 0x198   : > { %v842_v57 = vsel %vm407_vm2, %v840_v56, %v4133_v9  ;;  %v666_v56 = vsel %vm380_vm4, %v4147_v11, 0.0 }
 0x199   : > { %847 = vrot.lane.b32.xlu1 %v842_v57, %s8016_s30 }
 0x19c   : > { %v838_v58 = vpop.permute.xlu0 %837 }
 0x19d   : > { %903 = vrot.lane.b32.xlu1 %v842_v57, %s8000_s20  ;;  %v841_v59 = vsel %vm407_vm2, %v838_v58, %v4130_v8  ;;  %v8116_v58 = vstv %s4357_s29 }
 0x19e   : > { %845 = vrot.lane.b32.xlu0 %v841_v59, %s8016_s30 }
 0x1a2   : > { %901 = vrot.lane.b32.xlu0 %v841_v59, %s8000_s20  ;;  %s4406_s20 = sld [smem:[#allocation7 + $0x40]]  ;;  %v4609_v59 = vand.u32 127, %v372_v2  ;;  %v4627_v2 = vmul.f32 %v674_v54, %v666_v56 }
 0x1a3   : > { %v1158_v60 = vpop.permute.xlu1 %1157 }
 0x1a4   : > { %v1160_v61 = vsel %vm407_vm2, %v1158_v60, %v4181_v21  ;;  %v4614_v60 = vsel %vm377_vm3, %v4140_v10, 0.0  ;;  %vm381_vm5 = vcmp.ge.s32.totalorder %v4609_v59, 1  ;;  %vm382_vm6 = vcmp.lt.s32.totalorder %v4609_v59, 15 }
 0x1a5   : > { %1165 = vrot.lane.b32.xlu1 %v1160_v61, %s8016_s30  ;;  %vm5272_vm7 = vmand %vm377_vm3, %vm381_vm5 }
 0x1a6   : > { %vm5322_vm8 = vmand %vm377_vm3, %vm382_vm6 }
 0x1a7   : > { %v417_v62 = vpop.permute.xlu1 %416  ;;  %vm5363_vm9 = vmand %vm380_vm4, %vm381_vm5 }
 0x1a8   : > { %v1156_v63 = vpop.permute.xlu0 %1155  ;;  %v419_v3 = vsel %vm407_vm2, %v417_v62, %v4153_v14  ;;  %8350 = sst [smem:[#allocation52_spill]] %s4406_s20  ;;  %v4631_v62 = vmul.f32 %v680_v55, %v666_v56  ;;  %vm5386_vm10 = vmand %vm380_vm4, %vm382_vm6 }
 0x1a9   : > { %424 = vrot.lane.b32.xlu1 %v419_v3, %s8016_s30  ;;  %v1159_v21 = vsel %vm407_vm2, %v1156_v63, %v4178_v20  ;;  %v8115_v63 = vstv %s4359_s10  ;;  %s4797_s10 = sld [smem:[#allocation7 + $0x5a]] }
 0x1aa   : > { %1163 = vrot.lane.b32.xlu0 %v1159_v21, %s8016_s30 }
 0x1ac   : > { %v415_v4 = vpop.permute.xlu0 %414 }
 0x1ad   : > { %482 = vrot.lane.b32.xlu1 %v419_v3, %s8354_s7  ;;  %v418_v6 = vsel %vm407_vm2, %v415_v4, %v4140_v10  ;;  %v8111_v3 = vstv %s4370_s18  ;;  %v8114_v4 = vstv %s4363_s14  ;;  %s4701_s18 = sld [smem:[#allocation7 + $0x57]] }
 0x1ae   : > { %422 = vrot.lane.b32.xlu0 %v418_v6, %s8016_s30  ;;  %s4444_s30 = sld [smem:[#allocation7 + $0xc]] }
 0x1af   : > { %v4426_v20 = vpop.permute.xlu1 %1475  ;;  %8462 = sst [smem:[#allocation143_spill]] %s4797_s10 }
 0x1b0   : > { %v4541_v46 = vsel %vm407_vm2, %v4426_v20, %v4219_v31  ;;  %v8110_v20 = vstv %s4372_s1  ;;  %s4731_s1 = sld [smem:[#allocation7 + $0x35]] }
 0x1b1   : > { %1221 = vrot.lane.b32.xlu1 %v1160_v61, %s8354_s7  ;;  %v4623_v61 = vmul.f32 %v668_v53, %v666_v56  ;;  %s4815_s10 = sld [smem:[#allocation7 + $0x38]] }
 0x1b2   : > { %480 = vrot.lane.b32.xlu0 %v418_v6, %s8354_s7  ;;  %s4825_s14 = sld [smem:[#allocation7 + $0x5c]] }
 0x1b3   : > { %v628_v7 = vpop.permute.xlu1 %627  ;;  %8422 = sst [smem:[#allocation122_spill]] %s4701_s18 }
 0x1b4   : > { %v4440_v12 = vpop.permute.xlu0 %1473  ;;  %v630_v13 = vsel %vm407_vm2, %v628_v7, %v4147_v11  ;;  %8362 = sst [smem:[#allocation63_spill]] %s4444_s30  ;;  %v773_v11 = vsel %vm377_vm3, %v4175_v19, 0.0  ;;  %v8109_v7 = vstv %s4377_s9 }
 0x1b5   : > { %635 = vrot.lane.b32.xlu1 %v630_v13, %s8363_s8  ;;  %s4459_s30 = sld [smem:[#allocation7 + $0x32]]  ;;  %v4562_v31 = vsel %vm407_vm2, %v4440_v12, %v4216_v30  ;;  %v4653_v6 = vmul.f32 %v8115_v63, %v773_v11  ;;  %v8523_v63 = vstv %s8508_s15 }
 0x1b6   : > { %1219 = vrot.lane.b32.xlu0 %v1159_v21, %s8354_s7  ;;  %v984_v21 = vsel %vm380_vm4, %v4189_v22, 0.0  ;;  %s4710_s9 = sld [smem:[#allocation7 + $0x7b]] }
 0x1b7   : > { %v736_v18 = vpop.permute.xlu1 %735  ;;  %8412 = vst [vmem:[#allocation112_spill] sm:$0xff] %v4653_v6  ;;  %8429 = sst [smem:[#allocation128_spill]] %s4731_s1 }
 0x1b8   : > { %v626_v17 = vpop.permute.xlu0 %625  ;;  %v738_v24 = vsel %vm407_vm2, %v736_v18, %v4161_v15  ;;  %v8106_v18 = vstv %s4380_s0  ;;  %s4721_s0 = sld [smem:[#allocation7 + $0x11]] }
 0x1b9   : > { %693 = vrot.lane.b32.xlu1 %v630_v13, %s8354_s7  ;;  %v629_v23 = vsel %vm407_vm2, %v626_v17, %v4165_v16  ;;  %v8113_v13 = vstv %s4366_s23  ;;  %v8112_v17 = vstv %s4368_s17  ;;  %s4752_s1 = sld [smem:[#allocation7 + $0x59]] }
 0x1ba   : > { %633 = vrot.lane.b32.xlu0 %v629_v23, %s8363_s8  ;;  %s8470_s18 = sld [smem:[#allocation82_spill]] }
 0x1bb   : > { %8368 = sst [smem:[#allocation68_spill]] %s4459_s30  ;;  %v946_v28 = vpop.permute.xlu1 %945 }
 0x1bc   : > { %v734_v27 = vpop.permute.xlu0 %733  ;;  %s4476_s30 = sld [smem:[#allocation7 + $0x81]]  ;;  %v948_v34 = vsel %vm407_vm2, %v946_v28, %v4189_v22  ;;  %v4663_v22 = vmul.f32 %v8114_v4, %v773_v11  ;;  %v1091_v28 = vsel %vm377_vm3, %v4213_v29, 0.0 }
 0x1bd   : > { %743 = vrot.lane.b32.xlu1 %v738_v24, %s8363_s8  ;;  %v737_v33 = vsel %vm407_vm2, %v734_v27, %v4175_v19  ;;  %v4640_v19 = vmul.f32 %v8116_v58, %v666_v56  ;;  %v4678_v27 = vmul.f32 %v8111_v3, %v984_v21  ;;  %8424 = sst [smem:[#allocation124_spill]] %s4710_s9  ;;  %v4929_v3 = vmul.f32 %v674_v54, %v4165_v16 }
 0x1be   : > { %691 = vrot.lane.b32.xlu0 %v629_v23, %s8354_s7  ;;  %8414 = vst [vmem:[#allocation114_spill] sm:$0xff] %v4663_v22  ;;  %v4670_v23 = vmul.f32 %v8113_v13, %v773_v11  ;;  %8426 = sst [smem:[#allocation126_spill]] %s4721_s0 }
 0x1bf   : > { %v1054_v38 = vpop.permute.xlu1 %1053  ;;  %8418 = vst [vmem:[#allocation118_spill] sm:$0xff] %v4678_v27  ;;  %s8431_s9 = sld [smem:[#allocation54_spill]] }
 0x1c0   : > { %v944_v37 = vpop.permute.xlu0 %943  ;;  %v1056_v43 = vsel %vm407_vm2, %v1054_v38, %v4199_v25  ;;  %8416 = vst [vmem:[#allocation116_spill] sm:$0xff] %v4670_v23  ;;  %v4705_v38 = vmul.f32 %v8106_v18, %v984_v21  ;;  %8437 = sst [smem:[#allocation133_spill]] %s4752_s1 }
 0x1c1   : > { %801 = vrot.lane.b32.xlu1 %v738_v24, %s8354_s7  ;;  %v947_v42 = vsel %vm407_vm2, %v944_v37, %v4203_v26  ;;  %v4674_v24 = vmul.f32 %v8112_v17, %v773_v11  ;;  %v1302_v37 = vsel %vm380_vm4, %v4227_v32, 0.0  ;;  %v4748_v11 = vsel %vm380_vm4, %v4259_v40, 0.0  ;;  %s4765_s0 = sld [smem:[#allocation7 + $0x7d]] }
 0x1c2   : > { %8374 = sst [smem:[#allocation74_spill]] %s4476_s30  ;;  %741 = vrot.lane.b32.xlu0 %v737_v33, %s8363_s8  ;;  %8423 = vst [vmem:[#allocation123_spill] sm:$0xff] %v4705_v38  ;;  %8434 = vst [vmem:[#allocation132_spill] sm:$0xff] %v4748_v11 }
 0x1c3   : > { %s4492_s30 = sld [smem:[#allocation7 + $0x1]]  ;;  %v1264_v47 = vpop.permute.xlu1 %1263  ;;  %8417 = vst [vmem:[#allocation117_spill] sm:$0xff] %v4674_v24 }
 0x1c4   : > { %v1052_v44 = vpop.permute.xlu0 %1051  ;;  %v1266_v48 = vsel %vm407_vm2, %v1264_v47, %v4227_v32  ;;  %v1409_v47 = vsel %vm377_vm3, %v4251_v39, 0.0  ;;  %s4909_s23 = sld [smem:[#allocation7 + $0x82]] }
 0x1c5   : > { %953 = vrot.lane.b32.xlu1 %v948_v34, %s8363_s8  ;;  %v1055_v45 = vsel %vm407_vm2, %v1052_v44, %v4213_v29  ;;  %v8080_v44 = vstv %s4391_s6  ;;  %s4851_s6 = sld [smem:[#allocation7 + $0x42]] }
 0x1c6   : > { %799 = vrot.lane.b32.xlu0 %v737_v33, %s8354_s7  ;;  %v4689_v33 = vmul.f32 %v8110_v20, %v984_v21  ;;  %v565_v20 = vstv %s4531_s27  ;;  %s8502_s17 = sld [smem:[#allocation109_spill]] }
 0x1c7   : > { %v1372_v30 = vpop.permute.xlu1 %1371  ;;  %8442 = sst [smem:[#allocation136_spill]] %s4765_s0  ;;  %v4895_v18 = vmul.f32 %v565_v20, %v4115_v0 }
 0x1c8   : > { %v1262_v49 = vpop.permute.xlu0 %1261  ;;  %v1374_v52 = vsel %vm407_vm2, %v1372_v30, %v4237_v35  ;;  %8420 = vst [vmem:[#allocation120_spill] sm:$0xff] %v4689_v33  ;;  %v8093_v30 = vstv %s4389_s5  ;;  %s8469_s5 = sld [smem:[#allocation81_spill]] }
 0x1c9   : > { %8379 = sst [smem:[#allocation79_spill]] %s4492_s30  ;;  %1011 = vrot.lane.b32.xlu1 %v948_v34, %s8354_s7  ;;  %v1265_v51 = vsel %vm407_vm2, %v1262_v49, %v4241_v36  ;;  %v4693_v34 = vmul.f32 %v8109_v7, %v984_v21  ;;  %v8096_v49 = vstv %s4386_s4  ;;  %v4739_v56 = vmul.f32 %v8093_v30, %v1091_v28 }
 0x1ca   : > { %951 = vrot.lane.b32.xlu0 %v947_v42, %s8363_s8  ;;  %s4526_s30 = sld [smem:[#allocation7 + $0x4]] }
 0x1cb   : > { %v1582_v12 = vpop.permute.xlu1 %1581  ;;  %8421 = vst [vmem:[#allocation121_spill] sm:$0xff] %v4693_v34  ;;  %8432 = vst [vmem:[#allocation130_spill] sm:$0xff] %v4739_v56  ;;  %8483 = sst [smem:[#allocation81_spill]] %s4851_s6 }
 0x1cc   : > { %v1370_v57 = vpop.permute.xlu0 %1369  ;;  %v1584_v29 = vsel %vm407_vm2, %v1582_v12, %v4259_v40  ;;  %v8091_v12 = vstv %s4402_s21  ;;  %s4787_s21 = sld [smem:[#allocation7 + $0x36]] }
 0x1cd   : > { %1061 = vrot.lane.b32.xlu1 %v1056_v43, %s8363_s8  ;;  %v1373_v10 = vsel %vm407_vm2, %v1370_v57, %v4251_v39  ;;  %v4735_v39 = vmul.f32 %v8096_v49, %v1091_v28  ;;  %v4743_v57 = vmul.f32 %v8080_v44, %v1302_v37  ;;  %v4775_v44 = vmul.f32 %v8091_v12, %v1409_v47  ;;  %s4863_s0 = sld [smem:[#allocation7 + $0x66]] }
 0x1ce   : > { %1009 = vrot.lane.b32.xlu0 %v947_v42, %s8354_s7  ;;  %v8103_v42 = vstv %s4382_s2  ;;  %s8428_s2 = sld [smem:[#allocation53_spill]] }
 0x1cf   : > { %v4714_v32 = vmul.f32 %v8103_v42, %v1091_v28  ;;  %8430 = vst [vmem:[#allocation129_spill] sm:$0xff] %v4735_v39  ;;  %8433 = vst [vmem:[#allocation131_spill] sm:$0xff] %v4743_v57  ;;  %s4931_s1 = sld [smem:[#allocation7 + $0x3c]] }
 0x1d0   : > { %8447 = vst [vmem:[#allocation138_spill] sm:$0xff] %v4775_v44  ;;  %v559_v7 = vstv %s4526_s30  ;;  %s4897_s30 = sld [smem:[#allocation7 + $0x5e]]  ;;  %v8568_v44 = vstv %s8551_s24 }
 0x1d1   : > { %1119 = vrot.lane.b32.xlu1 %v1056_v43, %s8354_s7  ;;  %v8098_v43 = vstv %s4384_s3  ;;  %8425 = vst [vmem:[#allocation125_spill] sm:$0xff] %v4714_v32  ;;  %s8464_s3 = sld [smem:[#allocation79_spill]]  ;;  %v4892_v17 = vmul.f32 %v559_v7, %v4115_v0 }
 0x1d2   : > { %1059 = vrot.lane.b32.xlu0 %v1055_v45, %s8363_s8  ;;  %8456 = sst [smem:[#allocation141_spill]] %s4787_s21 }
 0x1d3   : > { %s4803_s21 = sld [smem:[#allocation7 + $0x7e]] }
 0x1d4   : > { %8488 = sst [smem:[#allocation82_spill]] %s4863_s0 }
 0x1d5   : > { %1483 = vrot.lane.b32.xlu1 %v4541_v46, %s8363_s8  ;;  %s4945_s27 = sld [smem:[#allocation7 + $0x60]] }
 0x1d6   : > { %1117 = vrot.lane.b32.xlu0 %v1055_v45, %s8354_s7  ;;  %v8078_v45 = vstv %s4395_s28  ;;  %s8505_s28 = sld [smem:[#allocation113_spill]] }
 0x1d7   : > { %s8547_s4 = sld [smem:[#allocation39_spill]] }
 0x1d8   : > { %s5031_s15 = sld [smem:[#allocation7 + $0x63]] }
 0x1d9   : > { %1271 = vrot.lane.b32.xlu1 %v1266_v48, %s8363_s8  ;;  %8466 = sst [smem:[#allocation79_spill]] %s4803_s21 }
 0x1da   : > { %1481 = vrot.lane.b32.xlu0 %v4562_v31, %s8363_s8  ;;  %s5060_s21 = sld [smem:[#allocation7 + $0x1d]] }
 0x1db   : > { %8514 = sst [smem:[#allocation109_spill]] %s4945_s27 }
 0x1dc   : > { %s4963_s27 = sld [smem:[#allocation7 + $0x1a]] }
 0x1dd   : > { %1329 = vrot.lane.b32.xlu1 %v1266_v48, %s8354_s7  ;;  %v1580_v48 = vpop.permute.xlu0 %1579  ;;  %s8594_s24 = sld [smem:[#allocation48_spill]] }
 0x1de   : > { %1269 = vrot.lane.b32.xlu0 %v1265_v51, %s8363_s8  ;;  %v1583_v40 = vsel %vm407_vm2, %v1580_v48, %v4267_v41  ;;  %8559 = sst [smem:[#allocation139_spill]] %s5031_s15 }
 0x1df   : > { %s8595_s0 = sld [smem:[#allocation49_spill]] }
 0x1e0   : > { %s8596_s6 = sld [smem:[#allocation50_spill]] }
 0x1e1   : > { %1379 = vrot.lane.b32.xlu1 %v1374_v52, %s8363_s8  ;;  %s8616_s15 = sld [smem:[#allocation56_spill]] }
 0x1e2   : > { %1327 = vrot.lane.b32.xlu0 %v1265_v51, %s8354_s7  ;;  %v4727_v51 = vmul.f32 %v8098_v43, %v1091_v28  ;;  %v8095_v28 = vstv %s4406_s20  ;;  %s4831_s20 = sld [smem:[#allocation7 + $0x80]] }
 0x1e3   : > { %v4782_v48 = vmul.f32 %v8095_v28, %v1409_v47  ;;  %v457_v28 = vstv %s8464_s3  ;;  %s8500_s3 = sld [smem:[#allocation35_spill]] }
 0x1e4   : > { %8427 = vst [vmem:[#allocation127_spill] sm:$0xff] %v4727_v51  ;;  %v4846_v49 = vmul.f32 %v457_v28, %v4614_v60  ;;  %8506 = sst [smem:[#allocation35_spill]] %s4931_s1 }
 0x1e5   : > { %1437 = vrot.lane.b32.xlu1 %v1374_v52, %s8354_s7  ;;  %v8088_v52 = vstv %s4400_s25  ;;  %8451 = vst [vmem:[#allocation140_spill] sm:$0xff] %v4782_v48  ;;  %s4871_s25 = sld [smem:[#allocation7 + $0x8a]] }
 0x1e6   : > { %1377 = vrot.lane.b32.xlu0 %v1373_v10, %s8363_s8  ;;  %s8600_s1 = sld [smem:[#allocation51_spill]] }
 0x1e9   : > { %1539 = vrot.lane.b32.xlu1 %v4541_v46, %s8354_s7  ;;  %v8084_v46 = vstv %s4398_s26  ;;  %s8504_s26 = sld [smem:[#allocation111_spill]] }
 0x1ea   : > { %1435 = vrot.lane.b32.xlu0 %v1373_v10, %s8354_s7  ;;  %v4756_v10 = vmul.f32 %v8078_v45, %v1302_v37  ;;  %v4760_v21 = vmul.f32 %v8084_v46, %v1302_v37  ;;  %v8101_v45 = vstv %s8428_s2  ;;  %v8107_v46 = vstv %s8431_s9  ;;  %s8465_s2 = sld [smem:[#allocation80_spill]] }
 0x1eb   : > { %v4791_v12 = vmul.f32 %v8101_v45, %v1409_v47  ;;  %v4819_v45 = vmul.f32 %v8107_v46, %v1409_v47  ;;  %s8503_s9 = sld [smem:[#allocation110_spill]] }
 0x1ec   : > { %8438 = vst [vmem:[#allocation134_spill] sm:$0xff] %v4756_v10  ;;  %8439 = vst [vmem:[#allocation135_spill] sm:$0xff] %v4760_v21  ;;  %8522 = sst [smem:[#allocation111_spill]] %s4963_s27 }
 0x1ed   : > { %1589 = vrot.lane.b32.xlu1 %v1584_v29, %s8363_s8  ;;  %8457 = vst [vmem:[#allocation142_spill] sm:$0xff] %v4791_v12  ;;  %8475 = vst [vmem:[#allocation144_spill] sm:$0xff] %v4819_v45  ;;  %v896_v12 = vstv %s8505_s28  ;;  %s4981_s28 = sld [smem:[#allocation7 + $0x3e]] }
 0x1ee   : > { %1537 = vrot.lane.b32.xlu0 %v4562_v31, %s8354_s7  ;;  %v4769_v31 = vmul.f32 %v8088_v52, %v1302_v37  ;;  %v469_v52 = vstv %s8469_s5  ;;  %v475_v37 = vstv %s8470_s18  ;;  %s8481_s5 = sld [smem:[#allocation91_spill]] }
 0x1ef   : > { %s8482_s18 = sld [smem:[#allocation92_spill]]  ;;  %v4854_v46 = vmul.f32 %v469_v52, %v4153_v14  ;;  %v4857_v47 = vmul.f32 %v475_v37, %v4153_v14  ;;  %v4867_v43 = vmul.f32 %v475_v37, %v4614_v60  ;;  %v4889_v37 = vmul.f32 %v565_v20, %v4118_v1 }
 0x1f0   : > { %8444 = vst [vmem:[#allocation137_spill] sm:$0xff] %v4769_v31  ;;  %v463_v42 = vstv %s8465_s2  ;;  %8489 = sst [smem:[#allocation91_spill]] %s4871_s25  ;;  %v8518_v20 = vstv %s8500_s3  ;;  %v890_v45 = vstv %s8504_s26 }
 0x1f1   : > { %1647 = vrot.lane.b32.xlu1 %v1584_v29, %s8354_s7  ;;  %v4843_v29 = vmul.f32 %v463_v42, %v4153_v14  ;;  %v4849_v30 = vmul.f32 %v463_v42, %v4614_v60  ;;  %s4917_s2 = sld [smem:[#allocation7 + $0x18]]  ;;  %v5026_v41 = vmul.f32 %v4130_v8, %v890_v45 }
 0x1f2   : > { %1587 = vrot.lane.b32.xlu0 %v1583_v40, %s8363_s8  ;;  %s4987_s25 = sld [smem:[#allocation7 + $0x62]] }
 0x1f3   : > { %8533 = sst [smem:[#allocation113_spill]] %s4981_s28  ;;  %8555 = vst [vmem:[#allocation157_spill] sm:$0xff] %v5026_v41 }
 0x1f4   : > { %s5019_s3 = sld [smem:[#allocation7 + $0x3f]] }
 0x1f5   : > { %v577_v13 = vstv %s8482_s18  ;;  %s8545_s18 = sld [smem:[#allocation141_spill]] }
 0x1f6   : > { %1645 = vrot.lane.b32.xlu0 %v1583_v40, %s8354_s7  ;;  %s4837_s7 = sld [smem:[#allocation7 + $0x1e]]  ;;  %v4840_v40 = vmul.f32 %v457_v28, %v4153_v14  ;;  %v4861_v28 = vmul.f32 %v469_v52, %v4614_v60  ;;  %v571_v14 = vstv %s8481_s5  ;;  %v4886_v60 = vmul.f32 %v559_v7, %v4118_v1 }
 0x1f7   : > { %v4900_v4 = vmul.f32 %v571_v14, %v4118_v1  ;;  %v4903_v42 = vmul.f32 %v577_v13, %v4118_v1  ;;  %v4907_v7 = vmul.f32 %v571_v14, %v4115_v0  ;;  %v4915_v58 = vmul.f32 %v577_v13, %v4115_v0  ;;  %8501 = sst [smem:[#allocation92_spill]] %s4917_s2 }
 0x1f8   : > { %v4924_v14 = vmul.f32 %v668_v53, %v4165_v16  ;;  %v4938_v52 = vmul.f32 %v680_v55, %v4165_v16  ;;  %v8510_v1 = vstv %s4357_s29  ;;  %v4955_v55 = vmul.f32 %v8518_v20, %v4161_v15  ;;  %s4957_s29 = sld [smem:[#allocation7 + $0x84]] }
 0x1f9   : > { %v4943_v53 = vmul.f32 %v8510_v1, %v4165_v16  ;;  %v878_v16 = vstv %s8502_s17  ;;  %v884_v1 = vstv %s8503_s9  ;;  %v4969_v0 = vmul.f32 %v8523_v63, %v4161_v15  ;;  %8537 = sst [smem:[#allocation36_spill]] %s4987_s25 }
 0x1fa   : > { %8509 = vst [vmem:[#allocation145_spill] sm:$0xff] %v4938_v52  ;;  %8520 = vst [vmem:[#allocation147_spill] sm:$0xff] %v4955_v55  ;;  %v8526_v13 = vstv %s8511_s22  ;;  %v8529_v20 = vstv %s8513_s19  ;;  %v4993_v21 = vmul.f32 %v4133_v9, %v884_v1  ;;  %s5001_s19 = sld [smem:[#allocation7 + $0x86]]  ;;  %v5017_v51 = vmul.f32 %v4130_v8, %v878_v16 }
 0x1fb   : > { %8512 = vst [vmem:[#allocation146_spill] sm:$0xff] %v4943_v53  ;;  %8525 = vst [vmem:[#allocation148_spill] sm:$0xff] %v4969_v0  ;;  %v4974_v11 = vmul.f32 %v8526_v13, %v4161_v15  ;;  %v4979_v48 = vmul.f32 %v8529_v20, %v4161_v15  ;;  %v4990_v13 = vmul.f32 %v4133_v9, %v878_v16  ;;  %v5003_v31 = vpop.permute.xlu0 %526  ;;  %s8546_s5 = sld [smem:[#allocation143_spill]] }
 0x1fc   : > { %8478 = sst [smem:[#allocation80_spill]] %s4837_s7  ;;  %8539 = vst [vmem:[#allocation152_spill] sm:$0xff] %v4993_v21  ;;  %v4996_v15 = vmul.f32 %v4133_v9, %v890_v45  ;;  %v4999_v20 = vmul.f32 %v4133_v9, %v896_v12  ;;  %8550 = vst [vmem:[#allocation155_spill] sm:$0xff] %v5017_v51  ;;  %v5023_v10 = vmul.f32 %v4130_v8, %v884_v1  ;;  %v8562_v45 = vstv %s8547_s4 }
 0x1fd   : > { %8528 = vst [vmem:[#allocation149_spill] sm:$0xff] %v4974_v11  ;;  %8531 = vst [vmem:[#allocation150_spill] sm:$0xff] %v4979_v48  ;;  %s5009_s2 = sld [smem:[#allocation7 + $0x1b]]  ;;  %v5029_v9 = vmul.f32 %v4130_v8, %v896_v12  ;;  %v5043_v8 = vmul.f32 %v8562_v45, %v4203_v26  ;;  %v5058_v16 = vmul.f32 %v8568_v44, %v4203_v26 }
 0x1fe   : > { %8521 = sst [smem:[#allocation110_spill]] %s4957_s29  ;;  %8538 = vst [vmem:[#allocation151_spill] sm:$0xff] %v4990_v13  ;;  %8541 = vst [vmem:[#allocation153_spill] sm:$0xff] %v4996_v15 }
 0x1ff   : > { %v4947_v54 = vpop.permute.xlu1 %528  ;;  %8542 = vst [vmem:[#allocation154_spill] sm:$0xff] %v4999_v20  ;;  %s8548_s25 = sld [smem:[#allocation40_spill]]  ;;  %8553 = vst [vmem:[#allocation156_spill] sm:$0xff] %v5023_v10 }
 0x200   : > { %8543 = sst [smem:[#allocation37_spill]] %s5001_s19  ;;  %8557 = vst [vmem:[#allocation158_spill] sm:$0xff] %v5029_v9  ;;  %8563 = vst [vmem:[#allocation159_spill] sm:$0xff] %v5043_v8 }
 0x201   : > { %s8549_s19 = sld [smem:[#allocation41_spill]]  ;;  %8569 = vst [vmem:[#allocation162_spill] sm:$0xff] %v5058_v16  ;;  %v1196_v16 = vstv %s4877_s13 }
 0x202   : > { %8552 = sst [smem:[#allocation38_spill]] %s5019_s3 }
 0x203   : > { %v5011_v57 = vpop.permute.xlu1 %584  ;;  %s8554_s26 = sld [smem:[#allocation43_spill]] }
 0x204   : > { %s8556_s9 = sld [smem:[#allocation44_spill]] }
 0x205   : > { %s8558_s17 = sld [smem:[#allocation45_spill]]  ;;  %v8564_v12 = vstv %s8548_s25 }
 0x206   : > { %s8560_s8 = sld [smem:[#allocation46_spill]]  ;;  %v5048_v1 = vmul.f32 %v8564_v12, %v4203_v26 }
 0x207   : > { %s5037_s22 = sld [smem:[#allocation7 + $0x87]]  ;;  %v8566_v39 = vstv %s8549_s19 }
 0x208   : > { %8565 = vst [vmem:[#allocation160_spill] sm:$0xff] %v5048_v1  ;;  %v5053_v56 = vmul.f32 %v8566_v39, %v4203_v26  ;;  %8570 = sst [smem:[#allocation143_spill]] %s5060_s21 }
 0x209   : > { %v8571_v63 = vstv %s8554_s26  ;;  %s5084_s4 = sld [smem:[#allocation7 + $0x41]] }
 0x20a   : > { %8567 = vst [vmem:[#allocation161_spill] sm:$0xff] %v5053_v56  ;;  %v5067_v12 = vmul.f32 %v8571_v63, %v4199_v25  ;;  %v8573_v32 = vstv %s8556_s9  ;;  %v5086_v63 = vpop.permute.xlu0 %582  ;;  %s8581_s25 = sld [smem:[#allocation32_spill]] }
 0x20b   : > { %v5062_v45 = vpop.permute.xlu1 %847  ;;  %v5072_v38 = vmul.f32 %v8573_v32, %v4199_v25  ;;  %v8575_v39 = vstv %s8558_s17  ;;  %v1202_v32 = vstv %s4883_s11  ;;  %s5092_s26 = sld [smem:[#allocation7 + $0x65]] }
 0x20c   : > { %8572 = vst [vmem:[#allocation163_spill] sm:$0xff] %v5067_v12  ;;  %v5077_v56 = vmul.f32 %v8575_v39, %v4199_v25  ;;  %v8577_v26 = vstv %s8560_s8  ;;  %v1214_v12 = vstv %s4909_s23  ;;  %s8583_s8 = sld [smem:[#allocation92_spill]] }
 0x20d   : > { %8561 = sst [smem:[#allocation141_spill]] %s5037_s22  ;;  %8574 = vst [vmem:[#allocation164_spill] sm:$0xff] %v5072_v38  ;;  %v5082_v44 = vmul.f32 %v8577_v26, %v4199_v25  ;;  %v1208_v38 = vstv %s4897_s30 }
 0x20e   : > { %8576 = vst [vmem:[#allocation165_spill] sm:$0xff] %v5077_v56  ;;  %s5098_s9 = sld [smem:[#allocation7 + $0x1f]] }
 0x20f   : > { %8578 = vst [vmem:[#allocation166_spill] sm:$0xff] %v5082_v44  ;;  %8579 = sst [smem:[#allocation39_spill]] %s5084_s4  ;;  %v8618_v44 = vstv %s8600_s1 }
 0x210   : > { %s5105_s11 = sld [smem:[#allocation7 + $0x43]]  ;;  %v3650_v56 = vld [vmem:[%s8581_s25 + $0x28] sm:$0xff]  ;;  %v5118_v26 = vpop.permute.xlu0 %845 }
 0x211   : > { %8582 = sst [smem:[#allocation40_spill]] %s5092_s26  ;;  %v5108_v1 = vmul.f32 %v3650_v56, %v1196_v16  ;;  %v5110_v8 = vmul.f32 %v3650_v56, %v1202_v32  ;;  %v5112_v39 = vmul.f32 %v3650_v56, %v1208_v38  ;;  %v5114_v9 = vmul.f32 %v3650_v56, %v1214_v12 }
 0x212   : > { %s5116_s30 = sld [smem:[#allocation7 + $0x89]] }
 0x213   : > { %8586 = vst [vmem:[#allocation167_spill] sm:$0xff] %v5108_v1  ;;  %8587 = vst [vmem:[#allocation168_spill] sm:$0xff] %v5110_v8  ;;  %s8593_s19 = sld [smem:[#allocation47_spill]]  ;;  %v5124_v8 = vpop.permute.xlu1 %903 }
 0x214   : > { %8589 = vst [vmem:[#allocation169_spill] sm:$0xff] %v5112_v39  ;;  %8591 = vst [vmem:[#allocation170_spill] sm:$0xff] %v5114_v9  ;;  %v3651_v9 = vld [vmem:[%s8581_s25 + $0x20] sm:$0xff]  ;;  %s5133_s7 = sld [smem:[#allocation7 + $0x67]] }
 0x215   : > { %v5129_v41 = vmul.f32 %v3651_v9, %v1196_v16  ;;  %v5131_v10 = vmul.f32 %v3651_v9, %v1202_v32  ;;  %s8601_s17 = sld [smem:[#allocation52_spill]]  ;;  %v5137_v1 = vmul.f32 %v3651_v9, %v1208_v38  ;;  %v5139_v34 = vmul.f32 %v3651_v9, %v1214_v12 }
 0x216   : > { %8585 = sst [smem:[#allocation41_spill]] %s5105_s11  ;;  %v8608_v32 = vstv %s8594_s24  ;;  %v8610_v38 = vstv %s8595_s0  ;;  %v8612_v12 = vstv %s8596_s6 }
 0x217   : > { %8597 = vst [vmem:[#allocation171_spill] sm:$0xff] %v5129_v41  ;;  %8598 = vst [vmem:[#allocation172_spill] sm:$0xff] %v5131_v10  ;;  %s8602_s29 = sld [smem:[#allocation53_spill]]  ;;  %v5151_v10 = vmul.f32 %v8608_v32, %v4241_v36  ;;  %v5158_v9 = vmul.f32 %v8610_v38, %v4241_v36  ;;  %v5163_v56 = vmul.f32 %v8612_v12, %v4241_v36  ;;  %v5170_v32 = vpop.permute.xlu1 %1165 }
 0x218   : > { %8592 = sst [smem:[#allocation42_spill]] %s5116_s30  ;;  %8603 = vst [vmem:[#allocation173_spill] sm:$0xff] %v5137_v1  ;;  %8604 = vst [vmem:[#allocation174_spill] sm:$0xff] %v5139_v34  ;;  %v5175_v38 = vmul.f32 %v8618_v44, %v4237_v35 }
 0x219   : > { %s8605_s27 = sld [smem:[#allocation54_spill]]  ;;  %v8606_v51 = vstv %s8593_s19  ;;  %8609 = vst [vmem:[#allocation176_spill] sm:$0xff] %v5151_v10  ;;  %8611 = vst [vmem:[#allocation177_spill] sm:$0xff] %v5158_v9 }
 0x21a   : > { %8599 = sst [smem:[#allocation43_spill]] %s5133_s7  ;;  %v5146_v16 = vmul.f32 %v8606_v51, %v4241_v36  ;;  %8613 = vst [vmem:[#allocation178_spill] sm:$0xff] %v5163_v56  ;;  %v532_v51 = vsel %vm381_vm5, %v5003_v31, 0.0  ;;  %8617 = vst [vmem:[#allocation179_spill] sm:$0xff] %v5170_v32  ;;  %v5189_v31 = vpop.permute.xlu0 %901 }
 0x21b   : > { %s5165_s19 = sld [smem:[#allocation7 + $0x8b]]  ;;  %8620 = vst [vmem:[#allocation180_spill] sm:$0xff] %v5175_v38  ;;  %v8621_v25 = vstv %s8601_s17  ;;  %8627 = vst [vmem:[#allocation183_spill] sm:$0xff] %v5189_v31  ;;  %v425_v34 = vpop.permute.xlu1 %424 }
 0x21c   : > { %8607 = vst [vmem:[#allocation175_spill] sm:$0xff] %v5146_v16  ;;  %s8615_s24 = sld [smem:[#allocation55_spill]]  ;;  %v5180_v36 = vmul.f32 %v8621_v25, %v4237_v35  ;;  %v429_v27 = vsel %vm381_vm5, %v425_v34, 0.0 }
 0x21d   : > { %s8619_s0 = sld [smem:[#allocation57_spill]]  ;;  %v8624_v12 = vstv %s8602_s29 }
 0x21e   : > { %s8622_s6 = sld [smem:[#allocation58_spill]]  ;;  %8623 = vst [vmem:[#allocation181_spill] sm:$0xff] %v5180_v36  ;;  %v5185_v39 = vmul.f32 %v8624_v12, %v4237_v35  ;;  %v533_v12 = vsel %vm381_vm5, %v4947_v54, 0.0  ;;  %v588_v54 = vsel %vm382_vm6, %v5086_v63, 0.0  ;;  %v8639_v36 = vstv %s5098_s9 }
 0x21f   : > { %s5187_s22 = sld [smem:[#allocation7 + $0x20]]  ;;  %v8628_v56 = vstv %s8605_s27 }
 0x220   : > { %8625 = vst [vmem:[#allocation182_spill] sm:$0xff] %v5185_v39  ;;  %v5194_v9 = vmul.f32 %v8628_v56, %v4237_v35  ;;  %s8631_s1 = sld [smem:[#allocation75_spill]]  ;;  %v8632_v35 = vstv %s8616_s15  ;;  %v8642_v39 = vstv %s5105_s11 }
 0x221   : > { %8614 = sst [smem:[#allocation44_spill]] %s5165_s19  ;;  %v5211_v56 = vmul.f32 %v8632_v35, %v532_v51 }
 0x222   : > { %8629 = vst [vmem:[#allocation184_spill] sm:$0xff] %v5194_v9  ;;  %v8630_v10 = vstv %s8615_s24  ;;  %s8633_s27 = sld [smem:[#allocation76_spill]]  ;;  %v8645_v41 = vstv %s8615_s24 }
 0x223   : > { %v5207_v16 = vmul.f32 %v8630_v10, %v532_v51  ;;  %v8634_v44 = vstv %s8619_s0  ;;  %s8635_s29 = sld [smem:[#allocation77_spill]]  ;;  %v3652_v10 = vld [vmem:[%s8581_s25 + $0x38] sm:$0xff]  ;;  %v8648_v33 = vstv %s8619_s0 }
 0x224   : > { %v5215_v25 = vmul.f32 %v8634_v44, %v532_v51  ;;  %v8636_v38 = vstv %s8622_s6  ;;  %s8637_s17 = sld [smem:[#allocation78_spill]]  ;;  %v5227_v35 = vmul.f32 %v3652_v10, %v8639_v36  ;;  %v5231_v44 = vmul.f32 %v3652_v10, %v8642_v39  ;;  %v5242_v36 = vpop.permute.xlu0 %1163 }
 0x225   : > { %8626 = sst [smem:[#allocation45_spill]] %s5187_s22  ;;  %v5219_v9 = vmul.f32 %v8636_v38, %v532_v51  ;;  %v537_v51 = vmul.f32 %v8645_v41, %v533_v12  ;;  %v8647_v38 = vstv %s8616_s15  ;;  %v549_v63 = vmul.f32 %v8648_v33, %v533_v12  ;;  %8649 = vst [vmem:[#allocation187_spill] sm:$0xff] %v5242_v36 }
 0x226   : > { %s8638_s30 = sld [smem:[#allocation59_spill]]  ;;  %8641 = vst [vmem:[#allocation185_spill] sm:$0xff] %v5227_v35  ;;  %8644 = vst [vmem:[#allocation186_spill] sm:$0xff] %v5231_v44  ;;  %v543_v32 = vmul.f32 %v8647_v38, %v533_v12  ;;  %v8650_v35 = vstv %s8631_s1  ;;  %v8655_v38 = vstv %s8622_s6 }
 0x227   : > { %s8640_s26 = sld [smem:[#allocation60_spill]]  ;;  %v433_v20 = vmul.f32 %v8650_v35, %v429_v27  ;;  %v555_v23 = vmul.f32 %v8655_v38, %v533_v12  ;;  %v483_v12 = vpop.permute.xlu1 %482  ;;  %v589_v38 = vsel %vm382_vm6, %v5011_v57, 0.0 }
 0x228   : > { %s8643_s4 = sld [smem:[#allocation61_spill]]  ;;  %v8651_v39 = vstv %s8633_s27 }
 0x229   : > { %s8646_s23 = sld [smem:[#allocation62_spill]]  ;;  %v439_v44 = vmul.f32 %v8651_v39, %v429_v27  ;;  %v8652_v1 = vstv %s8635_s29  ;;  %v487_v39 = vsel %vm382_vm6, %v483_v12, 0.0  ;;  %v8674_v12 = vstv %s8635_s29 }
 0x22a   : > { %v445_v15 = vmul.f32 %v8652_v1, %v429_v27  ;;  %v8653_v24 = vstv %s8637_s17  ;;  %s5252_s15 = sld [smem:[#allocation7 + $0x44]]  ;;  %v8675_v0 = vstv %s8637_s17 }
 0x22b   : > { %v451_v41 = vmul.f32 %v8653_v24, %v429_v27  ;;  %s8659_s24 = sld [smem:[#allocation83_spill]]  ;;  %v5316_v55 = vpop.permute.xlu1 %1221 }
 0x22c   : > { %v8656_v33 = vstv %s8638_s30  ;;  %s8663_s0 = sld [smem:[#allocation84_spill]]  ;;  %8676 = vst [vmem:[#allocation189_spill] sm:$0xff] %v5316_v55 }
 0x22d   : > { %v5258_v22 = vmul.f32 %v8656_v33, %v588_v54  ;;  %v8657_v6 = vstv %s8640_s26  ;;  %s8664_s6 = sld [smem:[#allocation85_spill]]  ;;  %v461_v33 = vadd.f32 %v4840_v40, %v433_v20 }
 0x22e   : > { %v5262_v34 = vmul.f32 %v8657_v6, %v588_v54  ;;  %v8658_v21 = vstv %s8643_s4  ;;  %v8665_v6 = vstv %s5133_s7  ;;  %s8666_s13 = sld [smem:[#allocation86_spill]] }
 0x22f   : > { %v5266_v36 = vmul.f32 %v8658_v21, %v588_v54  ;;  %v8662_v27 = vstv %s8646_s23  ;;  %v5282_v35 = vmul.f32 %v3652_v10, %v8665_v6  ;;  %v423_v6 = vpop.permute.xlu0 %422  ;;  %v479_v21 = vadd.f32 %v4857_v47, %v451_v41  ;;  %s8677_s7 = sld [smem:[#allocation63_spill]] }
 0x230   : > { %8654 = sst [smem:[#allocation46_spill]] %s5252_s15  ;;  %v5278_v1 = vmul.f32 %v8662_v27, %v588_v54  ;;  %v852_v54 = vsel %vm381_vm5, %v5062_v45, 0.0  ;;  %v467_v27 = vadd.f32 %v4843_v29, %v439_v44  ;;  %v428_v57 = vsel %vm5272_vm7, %v423_v6, 0.0 }
 0x231   : > { %8667 = vst [vmem:[#allocation188_spill] sm:$0xff] %v5282_v35  ;;  %v473_v35 = vadd.f32 %v4854_v46, %v445_v15  ;;  %v8668_v13 = vstv %s8659_s24  ;;  %v8672_v15 = vstv %s8631_s1  ;;  %v8673_v44 = vstv %s8633_s27  ;;  %s8700_s1 = sld [smem:[#allocation94_spill]] }
 0x232   : > { %v491_v31 = vmul.f32 %v8668_v13, %v487_v39  ;;  %v8669_v48 = vstv %s8663_s0  ;;  %v432_v47 = vmul.f32 %v8672_v15, %v428_v57  ;;  %v438_v41 = vmul.f32 %v8673_v44, %v428_v57  ;;  %s8705_s27 = sld [smem:[#allocation95_spill]] }
 0x233   : > { %v497_v45 = vmul.f32 %v8669_v48, %v487_v39  ;;  %v8670_v40 = vstv %s8664_s6  ;;  %v444_v11 = vmul.f32 %v8674_v12, %v428_v57  ;;  %v450_v6 = vmul.f32 %v8675_v0, %v428_v57  ;;  %v481_v52 = vpop.permute.xlu0 %480  ;;  %s8706_s29 = sld [smem:[#allocation96_spill]] }
 0x234   : > { %v503_v29 = vmul.f32 %v8670_v40, %v487_v39  ;;  %v8671_v20 = vstv %s8666_s13  ;;  %v493_v13 = vadd.f32 %v491_v31, %v461_v33  ;;  %v8682_v57 = vstv %s8640_s26  ;;  %s8687_s26 = sld [smem:[#allocation64_spill]] }
 0x235   : > { %v509_v46 = vmul.f32 %v8671_v20, %v487_v39  ;;  %v499_v48 = vadd.f32 %v497_v45, %v467_v27  ;;  %v8678_v39 = vmov 0  ;;  %v8681_v20 = vstv %s8638_s30  ;;  %s8688_s30 = sld [smem:[#allocation65_spill]] }
 0x236   : > { %v505_v53 = vadd.f32 %v503_v29, %v473_v35  ;;  %v8679_v39 = vsel %vm5322_vm8, 4294967295, %v8678_v39  ;;  %v593_v0 = vmul.f32 %v8681_v20, %v589_v38  ;;  %v599_v15 = vmul.f32 %v8682_v57, %v589_v38  ;;  %v636_v57 = vpop.permute.xlu1 %635  ;;  %s8708_s17 = sld [smem:[#allocation97_spill]] }
 0x237   : > { %v511_v40 = vadd.f32 %v509_v46, %v479_v21  ;;  %8680 = vst [vmem:[#allocation190_spill] sm:$0xff] %v8679_v39  ;;  %v8683_v44 = vstv %s5165_s19  ;;  %v1552_v31 = vstv %s5252_s15  ;;  %v539_v35 = vadd.f32 %v537_v51, %v493_v13  ;;  %s8716_s19 = sld [smem:[#allocation68_spill]] }
 0x238   : > { %v5332_v12 = vmul.f32 %v3652_v10, %v8683_v44  ;;  %v545_v21 = vadd.f32 %v543_v32, %v499_v48  ;;  %v551_v33 = vadd.f32 %v549_v63, %v505_v53  ;;  %v8684_v45 = vstv %s8643_s4  ;;  %v5349_v63 = vpop.permute.xlu0 %1219  ;;  %s8690_s4 = sld [smem:[#allocation66_spill]] }
 0x239   : > { %v557_v27 = vadd.f32 %v555_v23, %v511_v40  ;;  %v605_v29 = vmul.f32 %v8684_v45, %v589_v38  ;;  %v8685_v46 = vstv %s8646_s23  ;;  %v8686_v55 = vstv %s8677_s7  ;;  %s8697_s23 = sld [smem:[#allocation67_spill]] }
 0x23a   : > { %v611_v5 = vmul.f32 %v8685_v46, %v589_v38  ;;  %v5341_v20 = vmul.f32 %v8686_v55, %v852_v54  ;;  %v486_v10 = vsel %vm5322_vm8, %v481_v52, 0.0  ;;  %v460_v51 = vadd.f32 %v4846_v49, %v432_v47  ;;  %s8718_s15 = sld [smem:[#allocation69_spill]] }
 0x23b   : > { %v466_v32 = vadd.f32 %v4849_v30, %v438_v41  ;;  %v472_v53 = vadd.f32 %v4861_v28, %v444_v11  ;;  %v478_v23 = vadd.f32 %v4867_v43, %v450_v6  ;;  %v8689_v38 = vstv %s8659_s24  ;;  %s8709_s24 = sld [smem:[#allocation98_spill]] }
 0x23c   : > { %v490_v55 = vmul.f32 %v8689_v38, %v486_v10  ;;  %v8691_v13 = vstv %s8663_s0  ;;  %v8692_v40 = vstv %s8664_s6  ;;  %v8693_v44 = vstv %s8666_s13  ;;  %s8699_s13 = sld [smem:[#allocation93_spill]] }
 0x23d   : > { %v496_v48 = vmul.f32 %v8691_v13, %v486_v10  ;;  %v502_v52 = vmul.f32 %v8692_v40, %v486_v10  ;;  %v508_v45 = vmul.f32 %v8693_v44, %v486_v10  ;;  %v563_v43 = vadd.f32 %v4886_v60, %v539_v35  ;;  %v694_v60 = vpop.permute.xlu1 %693  ;;  %s8710_s0 = sld [smem:[#allocation99_spill]] }
 0x23e   : > { %v569_v30 = vadd.f32 %v4889_v37, %v545_v21  ;;  %v575_v11 = vadd.f32 %v4900_v4, %v551_v33  ;;  %v581_v28 = vadd.f32 %v4903_v42, %v557_v27  ;;  %v8696_v47 = vstv %s8687_s26  ;;  %v634_v33 = vpop.permute.xlu0 %633  ;;  %s8712_s6 = sld [smem:[#allocation100_spill]] }
 0x23f   : > { %v5373_v41 = vmul.f32 %v8696_v47, %v852_v54  ;;  %v8698_v6 = vstv %s8688_s30  ;;  %v908_v10 = vsel %vm382_vm6, %v5124_v8, 0.0  ;;  %v492_v38 = vadd.f32 %v490_v55, %v460_v51  ;;  %s8720_s22 = sld [smem:[#allocation70_spill]] }
 0x240   : > { %v5377_v46 = vmul.f32 %v8698_v6, %v852_v54  ;;  %v8701_v4 = vmov 0  ;;  %v8704_v42 = vstv %s8690_s4  ;;  %v498_v35 = vadd.f32 %v496_v48, %v466_v32  ;;  %s8726_s11 = sld [smem:[#allocation101_spill]] }
 0x241   : > { %v8702_v4 = vsel %vm5386_vm10, 4294967295, %v8701_v4  ;;  %v5392_v37 = vmul.f32 %v8704_v42, %v852_v54  ;;  %v504_v21 = vadd.f32 %v502_v52, %v472_v53  ;;  %v510_v8 = vadd.f32 %v508_v45, %v478_v23  ;;  %s8728_s21 = sld [smem:[#allocation102_spill]] }
 0x242   : > { %8703 = vst [vmem:[#allocation191_spill] sm:$0xff] %v8702_v4  ;;  %v595_v27 = vadd.f32 %v593_v0, %v563_v43  ;;  %v601_v51 = vadd.f32 %v599_v15, %v569_v30  ;;  %v607_v55 = vadd.f32 %v605_v29, %v575_v11  ;;  %v613_v13 = vadd.f32 %v611_v5, %v581_v28  ;;  %s8730_s3 = sld [smem:[#allocation103_spill]] }
 0x243   : > { %v8707_v40 = vstv %s8697_s23  ;;  %v538_v47 = vadd.f32 %v5207_v16, %v492_v38  ;;  %v640_v54 = vsel %vm5363_vm9, %v636_v57, 0.0  ;;  %v698_v32 = vsel %vm5386_vm10, %v694_v60, 0.0  ;;  %s8732_s28 = sld [smem:[#allocation104_spill]] }
 0x244   : > { %v5396_v44 = vmul.f32 %v8707_v40, %v908_v10  ;;  %v8711_v53 = vstv %s8699_s13  ;;  %v8713_v15 = vstv %s8700_s1  ;;  %v8714_v5 = vstv %s8705_s27 }
 0x245   : > { %v644_v0 = vmul.f32 %v8711_v53, %v640_v54  ;;  %v650_v29 = vmul.f32 %v8713_v15, %v640_v54  ;;  %v656_v23 = vmul.f32 %v8714_v5, %v640_v54  ;;  %v8715_v48 = vstv %s8706_s29 }
 0x246   : > { %v662_v52 = vmul.f32 %v8715_v48, %v640_v54  ;;  %v544_v45 = vadd.f32 %v5211_v56, %v498_v35  ;;  %v550_v16 = vadd.f32 %v5215_v25, %v504_v21  ;;  %v556_v43 = vadd.f32 %v5219_v9, %v510_v8  ;;  %v744_v21 = vpop.permute.xlu1 %743  ;;  %v692_v9 = vpop.permute.xlu0 %691 }
 0x247   : > { %v639_v57 = vsel %vm381_vm5, %v634_v33, 0.0  ;;  %v646_v30 = vadd.f32 %v644_v0, %v595_v27  ;;  %v652_v11 = vadd.f32 %v650_v29, %v601_v51  ;;  %v658_v28 = vadd.f32 %v656_v23, %v607_v55 }
 0x248   : > { %v664_v6 = vadd.f32 %v662_v52, %v613_v13  ;;  %v8717_v38 = vstv %s8708_s17  ;;  %v8719_v42 = vstv %s8709_s24  ;;  %v8721_v54 = vstv %s8710_s0 }
 0x249   : > { %v702_v60 = vmul.f32 %v8717_v38, %v698_v32  ;;  %v708_v40 = vmul.f32 %v8719_v42, %v698_v32  ;;  %v714_v56 = vmul.f32 %v8721_v54, %v698_v32  ;;  %v8722_v35 = vstv %s8712_s6 }
 0x24a   : > { %v720_v25 = vmul.f32 %v8722_v35, %v698_v32  ;;  %v672_v8 = vadd.f32 %v4623_v61, %v646_v30  ;;  %v678_v33 = vadd.f32 %v4627_v2, %v652_v11  ;;  %v684_v27 = vadd.f32 %v4631_v62, %v658_v28  ;;  %v742_v11 = vpop.permute.xlu0 %741 }
 0x24b   : > { %v690_v51 = vadd.f32 %v4640_v19, %v664_v6  ;;  %v562_v55 = vadd.f32 %v4892_v17, %v538_v47  ;;  %v568_v13 = vadd.f32 %v4895_v18, %v544_v45  ;;  %v574_v32 = vadd.f32 %v4907_v7, %v550_v16 }
 0x24c   : > { %v580_v53 = vadd.f32 %v4915_v58, %v556_v43  ;;  %v8723_v0 = vstv %s8716_s19  ;;  %v8724_v15 = vstv %s8718_s15  ;;  %v8725_v29 = vstv %s8720_s22 }
 0x24d   : > { %v5434_v61 = vmul.f32 %v8723_v0, %v908_v10  ;;  %v5438_v2 = vmul.f32 %v8724_v15, %v908_v10  ;;  %v5442_v62 = vmul.f32 %v8725_v29, %v908_v10  ;;  %v704_v5 = vadd.f32 %v702_v60, %v672_v8  ;;  %v8743_v15 = vld [vmem:[#allocation146_spill] sm:$0xff] }
 0x24e   : > { %v594_v19 = vadd.f32 %v5258_v22, %v562_v55  ;;  %v600_v17 = vadd.f32 %v5262_v34, %v568_v13  ;;  %v606_v18 = vadd.f32 %v5266_v36, %v574_v32  ;;  %v612_v7 = vadd.f32 %v5278_v1, %v580_v53  ;;  %v802_v34 = vpop.permute.xlu1 %801  ;;  %v8742_v53 = vld [vmem:[#allocation145_spill] sm:$0xff] }
 0x24f   : > { %v8727_v58 = vstv %s8699_s13  ;;  %v8729_v23 = vstv %s8700_s1  ;;  %v8731_v52 = vstv %s8705_s27  ;;  %v8733_v45 = vstv %s8706_s29  ;;  %s8738_s13 = sld [smem:[#allocation105_spill]] }
 0x250   : > { %v643_v47 = vmul.f32 %v8727_v58, %v639_v57  ;;  %v649_v48 = vmul.f32 %v8729_v23, %v639_v57  ;;  %v655_v10 = vmul.f32 %v8731_v52, %v639_v57  ;;  %v661_v16 = vmul.f32 %v8733_v45, %v639_v57  ;;  %s8739_s1 = sld [smem:[#allocation106_spill]] }
 0x251   : > { %v710_v43 = vadd.f32 %v708_v40, %v678_v33  ;;  %v716_v22 = vadd.f32 %v714_v56, %v684_v27  ;;  %v722_v30 = vadd.f32 %v720_v25, %v690_v51  ;;  %v748_v36 = vsel %vm381_vm5, %v744_v21, 0.0  ;;  %s8740_s27 = sld [smem:[#allocation107_spill]] }
 0x252   : > { %v645_v1 = vadd.f32 %v643_v47, %v594_v19  ;;  %v651_v28 = vadd.f32 %v649_v48, %v600_v17  ;;  %v657_v6 = vadd.f32 %v655_v10, %v606_v18  ;;  %v663_v38 = vadd.f32 %v661_v16, %v612_v7  ;;  %s8741_s29 = sld [smem:[#allocation108_spill]]  ;;  %v8745_v17 = vld [vmem:[#allocation147_spill] sm:$0xff]  ;;  %v8746_v7 = vld [vmem:[#allocation148_spill] sm:$0xff]  ;;  %v8747_v47 = vld [vmem:[#allocation149_spill] sm:$0xff] }
 0x253   : > { %v8734_v60 = vstv %s8726_s11  ;;  %v8735_v54 = vstv %s8728_s21  ;;  %v8736_v8 = vstv %s8730_s3  ;;  %v8737_v57 = vstv %s8732_s28  ;;  %v8751_v16 = vld [vmem:[#allocation150_spill] sm:$0xff]  ;;  %s8765_s21 = sld [smem:[#allocation115_spill]] }
 0x254   : > { %v752_v42 = vmul.f32 %v8734_v60, %v748_v36  ;;  %v758_v35 = vmul.f32 %v8735_v54, %v748_v36  ;;  %v764_v55 = vmul.f32 %v8736_v8, %v748_v36  ;;  %v770_v40 = vmul.f32 %v8737_v57, %v748_v36  ;;  %s8767_s3 = sld [smem:[#allocation119_spill]] }
 0x255   : > { %v851_v56 = vsel %vm381_vm5, %v5118_v26, 0.0  ;;  %v697_v25 = vsel %vm382_vm6, %v692_v9, 0.0  ;;  %v806_v21 = vsel %vm382_vm6, %v802_v34, 0.0  ;;  %v747_v33 = vsel %vm5272_vm7, %v742_v11, 0.0  ;;  %s8785_s28 = sld [smem:[#allocation124_spill]] }
 0x256   : > { %v754_v27 = vadd.f32 %v752_v42, %v704_v5  ;;  %v760_v51 = vadd.f32 %v758_v35, %v710_v43  ;;  %v766_v13 = vadd.f32 %v764_v55, %v716_v22  ;;  %v772_v32 = vadd.f32 %v770_v40, %v722_v30  ;;  %s8788_s11 = sld [smem:[#allocation126_spill]] }
 0x257   : > { %v671_v26 = vadd.f32 %v4924_v14, %v645_v1  ;;  %v677_v9 = vadd.f32 %v4929_v3, %v651_v28  ;;  %v683_v0 = vadd.f32 %v8742_v53, %v657_v6  ;;  %v689_v29 = vadd.f32 %v8743_v15, %v663_v38 }
 0x258   : > { %v8744_v19 = vstv %s8708_s17  ;;  %v780_v18 = vadd.f32 %v8745_v17, %v754_v27  ;;  %v786_v58 = vadd.f32 %v8746_v7, %v760_v51  ;;  %v792_v23 = vadd.f32 %v8747_v47, %v766_v13  ;;  %v8760_v13 = vld [vmem:[#allocation183_spill] sm:$0xff]  ;;  %s5664_s17 = sld [smem:[#allocation7 + $0x45]] }
 0x259   : > { %v701_v5 = vmul.f32 %v8744_v19, %v697_v25  ;;  %v8748_v48 = vstv %s8709_s24  ;;  %v8749_v52 = vstv %s8710_s0  ;;  %v8750_v3 = vstv %s8712_s6  ;;  %s8860_s24 = sld [smem:[#allocation35_spill]] }
 0x25a   : > { %v707_v14 = vmul.f32 %v8748_v48, %v697_v25  ;;  %v713_v10 = vmul.f32 %v8749_v52, %v697_v25  ;;  %v719_v45 = vmul.f32 %v8750_v3, %v697_v25  ;;  %v798_v43 = vadd.f32 %v8751_v16, %v772_v32  ;;  %v800_v48 = vpop.permute.xlu0 %799  ;;  %s8871_s0 = sld [smem:[#allocation89_spill]] }
 0x25b   : > { %v8752_v22 = vstv %s8738_s13  ;;  %v8753_v36 = vstv %s8739_s1  ;;  %v8754_v11 = vstv %s8740_s27  ;;  %v8755_v28 = vstv %s8741_s29  ;;  %s8885_s6 = sld [smem:[#allocation110_spill]] }
 0x25c   : > { %v810_v30 = vmul.f32 %v8752_v22, %v806_v21  ;;  %v816_v34 = vmul.f32 %v8753_v36, %v806_v21  ;;  %v822_v1 = vmul.f32 %v8754_v11, %v806_v21  ;;  %v828_v6 = vmul.f32 %v8755_v28, %v806_v21  ;;  %v8770_v11 = vld [vmem:[#allocation112_spill] sm:$0xff]  ;;  %v8771_v28 = vld [vmem:[#allocation114_spill] sm:$0xff] }
 0x25d   : > { %v8756_v38 = vmov %v8734_v60  ;;  %v8757_v42 = vmov %v8735_v54  ;;  %v8758_v35 = vmov %v8736_v8  ;;  %v8759_v55 = vmov %v8737_v57 }
 0x25e   : > { %v751_v60 = vmul.f32 %v8756_v38, %v747_v33  ;;  %v757_v54 = vmul.f32 %v8757_v42, %v747_v33  ;;  %v763_v8 = vmul.f32 %v8758_v35, %v747_v33  ;;  %v769_v57 = vmul.f32 %v8759_v55, %v747_v33 }
 0x25f   : > { %v703_v40 = vadd.f32 %v701_v5, %v671_v26  ;;  %v812_v25 = vadd.f32 %v810_v30, %v780_v18  ;;  %v818_v27 = vadd.f32 %v816_v34, %v786_v58  ;;  %v824_v51 = vadd.f32 %v822_v1, %v792_v23  ;;  %v954_v5 = vpop.permute.xlu1 %953 }
 0x260   : > { %v907_v32 = vsel %vm382_vm6, %v8760_v13, 0.0  ;;  %v709_v53 = vadd.f32 %v707_v14, %v677_v9  ;;  %v715_v21 = vadd.f32 %v713_v10, %v683_v0  ;;  %v721_v15 = vadd.f32 %v719_v45, %v689_v29  ;;  %v8763_v29 = vld [vmem:[#allocation151_spill] sm:$0xff]  ;;  %v8764_v10 = vld [vmem:[#allocation152_spill] sm:$0xff] }
 0x261   : > { %v830_v19 = vadd.f32 %v828_v6, %v798_v43  ;;  %v858_v17 = vadd.f32 %v5341_v20, %v812_v25  ;;  %v864_v33 = vadd.f32 %v5373_v41, %v818_v27  ;;  %v753_v26 = vadd.f32 %v751_v60, %v703_v40  ;;  %v8772_v6 = vld [vmem:[#allocation116_spill] sm:$0xff]  ;;  %v8773_v60 = vld [vmem:[#allocation117_spill] sm:$0xff] }
 0x262   : > { %v8761_v18 = vstv %s8677_s7  ;;  %v759_v58 = vadd.f32 %v757_v54, %v709_v53  ;;  %v765_v47 = vadd.f32 %v763_v8, %v715_v21  ;;  %v771_v23 = vadd.f32 %v769_v57, %v721_v15  ;;  %s8779_s7 = sld [smem:[#allocation122_spill]] }
 0x263   : > { %v855_v7 = vmul.f32 %v8761_v18, %v851_v56  ;;  %v8762_v52 = vstv %s8687_s26  ;;  %v870_v0 = vadd.f32 %v5377_v46, %v824_v51  ;;  %v882_v14 = vadd.f32 %v8763_v29, %v858_v17  ;;  %v1012_v25 = vpop.permute.xlu1 %1011  ;;  %v8784_v18 = vld [vmem:[#allocation154_spill] sm:$0xff]  ;;  %s8810_s26 = sld [smem:[#allocation71_spill]] }
 0x264   : > { %v861_v9 = vmul.f32 %v8762_v52, %v851_v56  ;;  %v888_v20 = vadd.f32 %v8764_v10, %v864_v33  ;;  %v8766_v3 = vstv %s8688_s30  ;;  %v8768_v45 = vstv %s8690_s4  ;;  %v952_v33 = vpop.permute.xlu0 %951  ;;  %s8812_s30 = sld [smem:[#allocation136_spill]] }
 0x265   : > { %v867_v41 = vmul.f32 %v8766_v3, %v851_v56  ;;  %v873_v16 = vmul.f32 %v8768_v45, %v851_v56  ;;  %v8769_v43 = vstv %s8697_s23  ;;  %v958_v30 = vsel %vm5363_vm9, %v954_v5, 0.0  ;;  %s8821_s4 = sld [smem:[#allocation72_spill]] }
 0x266   : > { %v911_v22 = vmul.f32 %v8769_v43, %v907_v32  ;;  %v876_v46 = vadd.f32 %v5392_v37, %v830_v19  ;;  %v914_v36 = vadd.f32 %v5396_v44, %v882_v14  ;;  %v920_v34 = vadd.f32 %v5434_v61, %v888_v20  ;;  %v8775_v37 = vld [vmem:[#allocation153_spill] sm:$0xff]  ;;  %s8822_s23 = sld [smem:[#allocation79_spill]] }
 0x267   : > { %v779_v1 = vadd.f32 %v8770_v11, %v753_v26  ;;  %v785_v56 = vadd.f32 %v8771_v28, %v759_v58  ;;  %v791_v38 = vadd.f32 %v8772_v6, %v765_v47  ;;  %v797_v42 = vadd.f32 %v8773_v60, %v771_v23  ;;  %v8791_v6 = vld [vmem:[#allocation118_spill] sm:$0xff]  ;;  %v8792_v60 = vld [vmem:[#allocation120_spill] sm:$0xff] }
 0x268   : > { %v805_v54 = vsel %vm5322_vm8, %v800_v48, 0.0  ;;  %v8774_v35 = vstv %s8716_s19  ;;  %v894_v55 = vadd.f32 %v8775_v37, %v870_v0  ;;  %v8776_v57 = vstv %s8765_s21  ;;  %s8789_s19 = sld [smem:[#allocation128_spill]]  ;;  %v1010_v37 = vpop.permute.xlu0 %1009 }
 0x269   : > { %v917_v8 = vmul.f32 %v8774_v35, %v907_v32  ;;  %v962_v44 = vmul.f32 %v8776_v57, %v958_v30  ;;  %v8777_v40 = vstv %s8767_s3  ;;  %v8778_v27 = vstv %s8738_s13  ;;  %v8794_v35 = vld [vmem:[#allocation156_spill] sm:$0xff]  ;;  %s8886_s13 = sld [smem:[#allocation113_spill]] }
 0x26a   : > { %v968_v61 = vmul.f32 %v8777_v40, %v958_v30  ;;  %v809_v51 = vmul.f32 %v8778_v27, %v805_v54  ;;  %v8780_v13 = vstv %s8739_s1  ;;  %v8781_v21 = vstv %s8740_s27  ;;  %v8798_v40 = vld [vmem:[#allocation158_spill] sm:$0xff]  ;;  %s8896_s1 = sld [smem:[#allocation143_spill]] }
 0x26b   : > { %v815_v53 = vmul.f32 %v8780_v13, %v805_v54  ;;  %v821_v15 = vmul.f32 %v8781_v21, %v805_v54  ;;  %v8782_v19 = vstv %s8741_s29  ;;  %v8783_v26 = vstv %s8718_s15  ;;  %s8802_s15 = sld [smem:[#allocation133_spill]] }
 0x26c   : > { %v827_v17 = vmul.f32 %v8782_v19, %v805_v54  ;;  %v923_v5 = vmul.f32 %v8783_v26, %v907_v32  ;;  %v900_v58 = vadd.f32 %v8784_v18, %v876_v46  ;;  %v964_v47 = vadd.f32 %v962_v44, %v914_v36  ;;  %v8793_v54 = vld [vmem:[#allocation155_spill] sm:$0xff]  ;;  %s5800_s27 = sld [smem:[#allocation7 + $0x22]] }
 0x26d   : > { %v970_v23 = vadd.f32 %v968_v61, %v920_v34  ;;  %v811_v48 = vadd.f32 %v809_v51, %v779_v1  ;;  %v817_v52 = vadd.f32 %v815_v53, %v785_v56  ;;  %v823_v0 = vadd.f32 %v821_v15, %v791_v38  ;;  %v1062_v38 = vpop.permute.xlu1 %1061  ;;  %v8801_v15 = vld [vmem:[#allocation179_spill] sm:$0xff]  ;;  %s8897_s29 = sld [smem:[#allocation41_spill]] }
 0x26e   : > { %v829_v29 = vadd.f32 %v827_v17, %v797_v42  ;;  %v8786_v14 = vstv %s8720_s22  ;;  %v926_v20 = vadd.f32 %v5438_v2, %v894_v55  ;;  %v8787_v3 = vstv %s8779_s7  ;;  %s5580_s22 = sld [smem:[#allocation7 + $0x68]] }
 0x26f   : > { %v929_v10 = vmul.f32 %v8786_v14, %v907_v32  ;;  %v974_v45 = vmul.f32 %v8787_v3, %v958_v30  ;;  %v1016_v43 = vsel %vm5386_vm10, %v1012_v25, 0.0  ;;  %v857_v11 = vadd.f32 %v855_v7, %v811_v48  ;;  %v8805_v14 = vld [vmem:[#allocation121_spill] sm:$0xff]  ;;  %s8911_s7 = sld [smem:[#allocation37_spill]] }
 0x270   : > { %v863_v46 = vadd.f32 %v861_v9, %v817_v52  ;;  %v869_v28 = vadd.f32 %v867_v41, %v823_v0  ;;  %v875_v36 = vadd.f32 %v873_v16, %v829_v29  ;;  %v932_v34 = vadd.f32 %v5442_v62, %v900_v58  ;;  %v8795_v41 = vld [vmem:[#allocation157_spill] sm:$0xff] }
 0x271   : > { %v8790_v1 = vstv %s8785_s28  ;;  %v990_v32 = vadd.f32 %v8791_v6, %v964_v47  ;;  %v957_v2 = vsel %vm381_vm5, %v952_v33, 0.0  ;;  %v996_v42 = vadd.f32 %v8792_v60, %v970_v23 }
 0x272   : > { %v980_v56 = vmul.f32 %v8790_v1, %v958_v30  ;;  %v881_v7 = vadd.f32 %v8793_v54, %v857_v11  ;;  %v887_v9 = vadd.f32 %v8794_v35, %v863_v46  ;;  %v893_v16 = vadd.f32 %v8795_v41, %v869_v28  ;;  %v8807_v11 = vld [vmem:[#allocation159_spill] sm:$0xff]  ;;  %v8808_v28 = vld [vmem:[#allocation160_spill] sm:$0xff] }
 0x273   : > { %v976_v62 = vadd.f32 %v974_v45, %v926_v20  ;;  %v8796_v55 = vstv %s8788_s11  ;;  %v8797_v30 = vstv %s8789_s19  ;;  %v899_v61 = vadd.f32 %v8798_v40, %v875_v36  ;;  %v8815_v41 = vld [vmem:[#allocation123_spill] sm:$0xff]  ;;  %s8920_s11 = sld [smem:[#allocation45_spill]] }
 0x274   : > { %v1020_v57 = vmul.f32 %v8796_v55, %v1016_v43  ;;  %v1026_v44 = vmul.f32 %v8797_v30, %v1016_v43  ;;  %v913_v25 = vadd.f32 %v911_v22, %v881_v7  ;;  %v919_v27 = vadd.f32 %v917_v8, %v887_v9  ;;  %s8921_s19 = sld [smem:[#allocation141_spill]] }
 0x275   : > { %v8799_v51 = vstv %s8765_s21  ;;  %v8800_v53 = vstv %s8767_s3  ;;  %v5585_v19 = vsel %vm381_vm5, %v8801_v15, 0.0  ;;  %v925_v33 = vadd.f32 %v923_v5, %v893_v16  ;;  %v1120_v5 = vpop.permute.xlu1 %1119  ;;  %s8899_s21 = sld [smem:[#allocation80_spill]] }
 0x276   : > { %v961_v13 = vmul.f32 %v8799_v51, %v957_v2  ;;  %v967_v21 = vmul.f32 %v8800_v53, %v957_v2  ;;  %v1022_v17 = vadd.f32 %v1020_v57, %v990_v32  ;;  %v1066_v26 = vsel %vm381_vm5, %v1062_v38, 0.0  ;;  %s8908_s3 = sld [smem:[#allocation36_spill]] }
 0x277   : > { %v982_v22 = vadd.f32 %v980_v56, %v932_v34  ;;  %v1028_v8 = vadd.f32 %v1026_v44, %v996_v42  ;;  %v931_v47 = vadd.f32 %v929_v10, %v899_v61  ;;  %v8803_v23 = vmov %v8787_v3  ;;  %v1060_v34 = vpop.permute.xlu0 %1059 }
 0x278   : > { %v963_v18 = vadd.f32 %v961_v13, %v913_v25  ;;  %v969_v58 = vadd.f32 %v967_v21, %v919_v27  ;;  %v973_v48 = vmul.f32 %v8803_v23, %v957_v2  ;;  %v8804_v52 = vstv %s8544_s16  ;;  %v8819_v13 = vld [vmem:[#allocation161_spill] sm:$0xff]  ;;  %s8835_s16 = sld [smem:[#allocation87_spill]] }
 0x279   : > { %v1070_v0 = vmul.f32 %v8804_v52, %v1066_v26  ;;  %v1015_v29 = vsel %vm382_vm6, %v1010_v37, 0.0  ;;  %v1002_v20 = vadd.f32 %v8805_v14, %v976_v62  ;;  %v8806_v3 = vstv %s8545_s18  ;;  %v8816_v62 = vld [vmem:[#allocation163_spill] sm:$0xff]  ;;  %s5646_s18 = sld [smem:[#allocation7 + $0x21]] }
 0x27a   : > { %v1076_v45 = vmul.f32 %v8806_v3, %v1066_v26  ;;  %v989_v46 = vadd.f32 %v8807_v11, %v963_v18  ;;  %v995_v36 = vadd.f32 %v8808_v28, %v969_v58  ;;  %v8809_v1 = vstv %s8802_s15  ;;  %s5865_s15 = sld [smem:[#allocation7 + $0x23]] }
 0x27b   : > { %v1032_v10 = vmul.f32 %v8809_v1, %v1016_v43  ;;  %v975_v56 = vadd.f32 %v973_v48, %v925_v33  ;;  %v8811_v6 = vstv %s8785_s28  ;;  %v1072_v38 = vadd.f32 %v1070_v0, %v1022_v17  ;;  %v5626_v17 = vpop.permute.xlu1 %1483  ;;  %v8827_v0 = vld [vmem:[#allocation162_spill] sm:$0xff]  ;;  %s8918_s28 = sld [smem:[#allocation139_spill]] }
 0x27c   : > { %v979_v32 = vmul.f32 %v8811_v6, %v957_v2  ;;  %v1078_v60 = vadd.f32 %v1076_v45, %v1028_v8  ;;  %v8813_v42 = vmov %v8796_v55  ;;  %v8814_v7 = vmov %v8797_v30  ;;  %v8824_v8 = vld [vmem:[#allocation164_spill] sm:$0xff] }
 0x27d   : > { %v1019_v54 = vmul.f32 %v8813_v42, %v1015_v29  ;;  %v1025_v35 = vmul.f32 %v8814_v7, %v1015_v29  ;;  %v5610_v9 = vsel %vm382_vm6, %v1120_v5, 0.0  ;;  %v1008_v16 = vadd.f32 %v8815_v41, %v982_v22  ;;  %v8833_v42 = vld [vmem:[#allocation189_spill] sm:$0xff] }
 0x27e   : > { %v981_v37 = vadd.f32 %v979_v32, %v931_v47  ;;  %v1098_v55 = vadd.f32 %v8816_v62, %v1072_v38  ;;  %v1065_v2 = vsel %vm5272_vm7, %v1060_v34, 0.0  ;;  %v1034_v57 = vadd.f32 %v1032_v10, %v1002_v20  ;;  %v8832_v38 = vld [vmem:[#allocation187_spill] sm:$0xff]  ;;  %v8837_v62 = vld [vmem:[#allocation125_spill] sm:$0xff] }
 0x27f   : > { %v1021_v30 = vadd.f32 %v1019_v54, %v989_v46  ;;  %v1027_v44 = vadd.f32 %v1025_v35, %v995_v36  ;;  %v1558_v40 = vstv %s5580_s22  ;;  %v8817_v61 = vstv %s8810_s26  ;;  %v1118_v36 = vpop.permute.xlu0 %1117  ;;  %s6056_s22 = sld [smem:[#allocation9 + $0x2]] }
 0x280   : > { %v1174_v25 = vmul.f32 %v8817_v61, %v5585_v19  ;;  %v8818_v27 = vstv %s8812_s30  ;;  %v1001_v53 = vadd.f32 %v8819_v13, %v975_v56  ;;  %v8820_v21 = vstv %s4809_s12  ;;  %s5892_s30 = sld [smem:[#allocation7 + $0x46]] }
 0x281   : > { %v1038_v51 = vmul.f32 %v8818_v27, %v1016_v43  ;;  %v1128_v15 = vmul.f32 %v8820_v21, %v5610_v9  ;;  %v8823_v33 = vstv %s8546_s5  ;;  %v1104_v18 = vadd.f32 %v8824_v8, %v1078_v60  ;;  %s8847_s5 = sld [smem:[#allocation73_spill]] }
 0x282   : > { %v1082_v22 = vmul.f32 %v8823_v33, %v1066_v26  ;;  %v8825_v58 = vmov %v8804_v52  ;;  %v8826_v23 = vmov %v8806_v3  ;;  %v1007_v43 = vadd.f32 %v8827_v0, %v981_v37 }
 0x283   : > { %v1069_v47 = vmul.f32 %v8825_v58, %v1065_v2  ;;  %v1075_v48 = vmul.f32 %v8826_v23, %v1065_v2  ;;  %v1040_v52 = vadd.f32 %v1038_v51, %v1008_v16  ;;  %v8828_v5 = vmov %v8809_v1  ;;  %v8840_v51 = vld [vmem:[#allocation167_spill] sm:$0xff] }
 0x284   : > { %v1031_v14 = vmul.f32 %v8828_v5, %v1015_v29  ;;  %v1130_v20 = vadd.f32 %v1128_v15, %v1098_v55  ;;  %v1084_v3 = vadd.f32 %v1082_v22, %v1034_v57  ;;  %v8829_v45 = vstv %s4815_s10  ;;  %v8838_v57 = vld [vmem:[#allocation127_spill] sm:$0xff]  ;;  %v5685_v5 = vpop.permute.xlu0 %1481  ;;  %s8855_s10 = sld [smem:[#allocation74_spill]] }
 0x285   : > { %v1134_v11 = vmul.f32 %v8829_v45, %v5610_v9  ;;  %v1071_v46 = vadd.f32 %v1069_v47, %v1021_v30  ;;  %v1077_v28 = vadd.f32 %v1075_v48, %v1027_v44  ;;  %v8830_v34 = vstv %s8821_s4  ;;  %v1272_v44 = vpop.permute.xlu1 %1271  ;;  %s5903_s4 = sld [smem:[#allocation9]] }
 0x286   : > { %v1180_v1 = vmul.f32 %v8830_v34, %v5585_v19  ;;  %v8831_v10 = vstv %s8822_s23  ;;  %v1033_v6 = vadd.f32 %v1031_v14, %v1001_v53  ;;  %v1176_v32 = vadd.f32 %v1174_v25, %v1130_v20  ;;  %v8839_v25 = vld [vmem:[#allocation165_spill] sm:$0xff]  ;;  %s8940_s23 = sld [smem:[#allocation40_spill]] }
 0x287   : > { %v1088_v56 = vmul.f32 %v8831_v10, %v1066_v26  ;;  %v5651_v60 = vsel %vm381_vm5, %v8832_v38, 0.0  ;;  %v5656_v54 = vsel %vm382_vm6, %v8833_v42, 0.0  ;;  %v8834_v7 = vmov %v8818_v27 }
 0x288   : > { %v1037_v35 = vmul.f32 %v8834_v7, %v1015_v29  ;;  %v1136_v26 = vadd.f32 %v1134_v11, %v1104_v18  ;;  %v8836_v16 = vmov %v8823_v33  ;;  %v1097_v55 = vadd.f32 %v8837_v62, %v1071_v46 }
 0x289   : > { %v1090_v41 = vadd.f32 %v1088_v56, %v1040_v52  ;;  %v1081_v37 = vmul.f32 %v8836_v16, %v1065_v2  ;;  %v1103_v30 = vadd.f32 %v8838_v57, %v1077_v28  ;;  %v1110_v27 = vadd.f32 %v8839_v25, %v1084_v3  ;;  %v8849_v3 = vld [vmem:[#allocation166_spill] sm:$0xff] }
 0x28a   : > { %v1039_v61 = vadd.f32 %v1037_v35, %v1007_v43  ;;  %v1123_v29 = vsel %vm5322_vm8, %v1118_v36, 0.0  ;;  %v1200_v13 = vadd.f32 %v8840_v51, %v1176_v32  ;;  %v8841_v53 = vstv %s8810_s26  ;;  %v1330_v32 = vpop.permute.xlu1 %1329  ;;  %v8859_v51 = vld [vmem:[#allocation130_spill] sm:$0xff]  ;;  %s8931_s26 = sld [smem:[#allocation81_spill]] }
 0x28b   : > { %v1173_v21 = vmul.f32 %v8841_v53, %v5651_v60  ;;  %v1083_v15 = vadd.f32 %v1081_v37, %v1033_v6  ;;  %v8842_v33 = vstv %s4809_s12  ;;  %v8843_v8 = vmov %v8829_v45  ;;  %s8850_s12 = sld [smem:[#allocation88_spill]] }
 0x28c   : > { %v1127_v22 = vmul.f32 %v8842_v33, %v1123_v29  ;;  %v1133_v18 = vmul.f32 %v8843_v8, %v1123_v29  ;;  %v8844_v58 = vstv %s8835_s16  ;;  %v8845_v23 = vstv %s4825_s14  ;;  %s8862_s14 = sld [smem:[#allocation111_spill]]  ;;  %v8863_v8 = vld [vmem:[#allocation172_spill] sm:$0xff] }
 0x28d   : > { %v1230_v47 = vmul.f32 %v8844_v58, %v5656_v54  ;;  %v1140_v48 = vmul.f32 %v8845_v23, %v5610_v9  ;;  %v1182_v52 = vadd.f32 %v1180_v1, %v1136_v26  ;;  %v8846_v0 = vmov %v8831_v10  ;;  %v8851_v1 = vld [vmem:[#allocation129_spill] sm:$0xff] }
 0x28e   : > { %v1087_v43 = vmul.f32 %v8846_v0, %v1065_v2  ;;  %v8848_v14 = vmov %v8830_v34  ;;  %v1116_v45 = vadd.f32 %v8849_v3, %v1090_v41  ;;  %v1129_v11 = vadd.f32 %v1127_v22, %v1097_v55  ;;  %v8854_v41 = vld [vmem:[#allocation168_spill] sm:$0xff] }
 0x28f   : > { %v1179_v20 = vmul.f32 %v8848_v14, %v5651_v60  ;;  %v1135_v46 = vadd.f32 %v1133_v18, %v1103_v30  ;;  %v1142_v28 = vadd.f32 %v1140_v48, %v1110_v27  ;;  %v1232_v34 = vadd.f32 %v1230_v47, %v1200_v13  ;;  %v8865_v48 = vld [vmem:[#allocation131_spill] sm:$0xff] }
 0x290   : > { %v1089_v36 = vadd.f32 %v1087_v43, %v1039_v61  ;;  %v5693_v2 = vsel %vm5363_vm9, %v1272_v44, 0.0  ;;  %v1109_v10 = vadd.f32 %v8851_v1, %v1083_v15  ;;  %v1175_v56 = vadd.f32 %v1173_v21, %v1129_v11  ;;  %v1270_v21 = vpop.permute.xlu0 %1269  ;;  %v5728_v0 = vld [vmem:[%s8581_s25 + $0x30] sm:$0xff]  ;;  %s8977_s25 = smov 127  }
 0x291   : > { %v1181_v6 = vadd.f32 %v1179_v20, %v1135_v46  ;;  %v1596_v38 = vstv %s5646_s18  ;;  %v8852_v42 = vstv %s8847_s5  ;;  %v8853_v35 = vstv %s4831_s20  ;;  %s8879_s20 = sld [smem:[#allocation109_spill]] }
 0x292   : > { %v1186_v7 = vmul.f32 %v8852_v42, %v5585_v19  ;;  %v1146_v26 = vmul.f32 %v8853_v35, %v5610_v9  ;;  %v1206_v16 = vadd.f32 %v8854_v41, %v1182_v52  ;;  %v8856_v37 = vstv %s8583_s8  ;;  %s8946_s5 = sld [smem:[#allocation42_spill]] }
 0x293   : > { %v1280_v62 = vmul.f32 %v8856_v37, %v5693_v2  ;;  %v8857_v55 = vstv %s8850_s12  ;;  %v1225_v30 = vsel %vm382_vm6, %v5349_v63, 0.0  ;;  %v8858_v44 = vmov %v8845_v23  ;;  %v8861_v63 = vld [vmem:[#allocation171_spill] sm:$0xff]  ;;  %s5937_s12 = sld [smem:[#allocation11]] }
 0x294   : > { %v1236_v57 = vmul.f32 %v8857_v55, %v5656_v54  ;;  %v1139_v61 = vmul.f32 %v8858_v44, %v1123_v29  ;;  %v1602_v25 = vstv %s5664_s17  ;;  %v1148_v9 = vadd.f32 %v1146_v26, %v1116_v45  ;;  %s5978_s18 = sld [smem:[#allocation7 + $0x8d]] }
 0x295   : > { %v1188_v27 = vadd.f32 %v1186_v7, %v1142_v28  ;;  %v1115_v13 = vadd.f32 %v8859_v51, %v1089_v36  ;;  %v1282_v53 = vadd.f32 %v1280_v62, %v1232_v34  ;;  %v5719_v33 = vsel %vm5386_vm10, %v1330_v32, 0.0  ;;  %s8962_s17 = sld [smem:[#allocation44_spill]] }
 0x296   : > { %v1141_v15 = vadd.f32 %v1139_v61, %v1109_v10  ;;  %v1199_v22 = vadd.f32 %v8861_v63, %v1175_v56  ;;  %v1205_v18 = vadd.f32 %v8863_v8, %v1181_v6  ;;  %v8864_v58 = vstv %s8855_s10  ;;  %v8872_v10 = vld [vmem:[#allocation169_spill] sm:$0xff]  ;;  %s6304_s10 = sld [smem:[#allocation8 + $0x4f]] }
 0x297   : > { %v1192_v47 = vmul.f32 %v8864_v58, %v5585_v19  ;;  %v1238_v23 = vadd.f32 %v1236_v57, %v1206_v16  ;;  %v1308_v52 = vadd.f32 %v8865_v48, %v1282_v53  ;;  %v8866_v43 = vstv %s5098_s9  ;;  %v1380_v19 = vpop.permute.xlu1 %1379  ;;  %s8874_s9 = sld [smem:[#allocation90_spill]]  ;;  %v1328_v57 = vpop.permute.xlu0 %1327 }
 0x298   : > { %v5733_v14 = vmul.f32 %v5728_v0, %v8866_v43  ;;  %v8867_v20 = vmov %v8852_v42  ;;  %v8868_v45 = vstv %s8835_s16  ;;  %v8869_v46 = vmov %v8857_v55  ;;  %s5927_s16 = sld [smem:[#allocation7 + $0x8c]] }
 0x299   : > { %v1185_v3 = vmul.f32 %v8867_v20, %v5651_v60  ;;  %v1229_v11 = vmul.f32 %v8868_v45, %v1225_v30  ;;  %v1235_v28 = vmul.f32 %v8869_v46, %v1225_v30  ;;  %v8870_v36 = vmov %v8853_v35  ;;  %v8887_v20 = vld [vmem:[#allocation134_spill] sm:$0xff]  ;;  %v8888_v45 = vld [vmem:[#allocation173_spill] sm:$0xff] }
 0x29a   : > { %v1145_v34 = vmul.f32 %v8870_v36, %v1123_v29  ;;  %v1194_v1 = vadd.f32 %v1192_v47, %v1148_v9  ;;  %v1212_v56 = vadd.f32 %v8872_v10, %v1188_v27  ;;  %v8873_v6 = vstv %s8860_s24  ;;  %s8951_s24 = sld [smem:[#allocation82_spill]] }
 0x29b   : > { %v1286_v32 = vmul.f32 %v8873_v6, %v5693_v2  ;;  %v8875_v42 = vstv %s8862_s14  ;;  %v1187_v26 = vadd.f32 %v1185_v3, %v1141_v15  ;;  %v1231_v41 = vadd.f32 %v1229_v11, %v1199_v22 }
 0x29c   : > { %v1338_v7 = vmul.f32 %v8875_v42, %v5719_v33  ;;  %v1147_v35 = vadd.f32 %v1145_v34, %v1115_v13  ;;  %v1237_v29 = vadd.f32 %v1235_v28, %v1205_v18  ;;  %v1275_v62 = vsel %vm381_vm5, %v1270_v21, 0.0  ;;  %v8883_v18 = vld [vmem:[#allocation170_spill] sm:$0xff] }
 0x29d   : > { %v1288_v16 = vadd.f32 %v1286_v32, %v1238_v23  ;;  %v5755_v55 = vsel %vm381_vm5, %v1380_v19, 0.0  ;;  %v8876_v44 = vmov %v8864_v58  ;;  %v8877_v9 = vstv %s8871_s0  ;;  %v1438_v32 = vpop.permute.xlu1 %1437  ;;  %s5960_s0 = sld [smem:[#allocation7 + $0x47]] }
 0x29e   : > { %v1340_v37 = vadd.f32 %v1338_v7, %v1308_v52  ;;  %v1191_v61 = vmul.f32 %v8876_v44, %v5651_v60  ;;  %v1242_v27 = vmul.f32 %v8877_v9, %v5656_v54  ;;  %v8878_v51 = vstv %s8583_s8  ;;  %s8892_s8 = sld [smem:[#allocation38_spill]] }
 0x29f   : > { %v1279_v13 = vmul.f32 %v8878_v51, %v1275_v62  ;;  %v8880_v53 = vmov %v8873_v6  ;;  %v8881_v63 = vstv %s8874_s9  ;;  %v8882_v22 = vmov %v8877_v9  ;;  %s8957_s9 = sld [smem:[#allocation43_spill]] }
 0x2a0   : > { %v1285_v15 = vmul.f32 %v8880_v53, %v1275_v62  ;;  %v1248_v21 = vmul.f32 %v8881_v63, %v5656_v54  ;;  %v1241_v8 = vmul.f32 %v8882_v22, %v1225_v30  ;;  %v1218_v58 = vadd.f32 %v8883_v18, %v1194_v1  ;;  %v8891_v1 = vld [vmem:[#allocation175_spill] sm:$0xff]  ;;  %v8903_v53 = vld [vmem:[#allocation180_spill] sm:$0xff] }
 0x2a1   : > { %v8884_v47 = vstv %s5009_s2  ;;  %v1193_v60 = vadd.f32 %v1191_v61, %v1147_v35  ;;  %v1244_v48 = vadd.f32 %v1242_v27, %v1212_v56  ;;  %v1281_v52 = vadd.f32 %v1279_v13, %v1231_v41  ;;  %v8893_v56 = vld [vmem:[#allocation176_spill] sm:$0xff] }
 0x2a2   : > { %v1388_v23 = vmul.f32 %v8884_v47, %v5755_v55  ;;  %v1287_v43 = vadd.f32 %v1285_v15, %v1237_v29  ;;  %v1314_v3 = vadd.f32 %v8887_v20, %v1288_v16  ;;  %v1211_v11 = vadd.f32 %v8888_v45, %v1187_v26  ;;  %v1378_v29 = vpop.permute.xlu0 %1377 }
 0x2a3   : > { %v5780_v54 = vsel %vm382_vm6, %v1328_v57, 0.0  ;;  %v8889_v28 = vmov %v8881_v63  ;;  %v8890_v34 = vstv %s8879_s20  ;;  %v1307_v10 = vadd.f32 %v8891_v1, %v1281_v52  ;;  %v8912_v1 = vld [vmem:[#allocation135_spill] sm:$0xff]  ;;  %s5983_s20 = sld [smem:[#allocation7 + $0x6a]] }
 0x2a4   : > { %v1390_v46 = vadd.f32 %v1388_v23, %v1340_v37  ;;  %v1247_v36 = vmul.f32 %v8889_v28, %v1225_v30  ;;  %v1292_v19 = vmul.f32 %v8890_v34, %v5693_v2  ;;  %v1313_v6 = vadd.f32 %v8893_v56, %v1287_v43  ;;  %v8898_v37 = vld [vmem:[#allocation174_spill] sm:$0xff] }
 0x2a5   : > { %v5792_v42 = vsel %vm381_vm5, %v5626_v17, 0.0  ;;  %v1250_v7 = vadd.f32 %v1248_v21, %v1218_v58  ;;  %v8894_v35 = vstv %s8885_s6  ;;  %v8895_v30 = vstv %s8886_s13  ;;  %s8959_s6 = sld [smem:[#allocation91_spill]] }
 0x2a6   : > { %v1298_v26 = vmul.f32 %v8894_v35, %v5693_v2  ;;  %v1344_v41 = vmul.f32 %v8895_v30, %v5719_v33  ;;  %v1294_v16 = vadd.f32 %v1292_v19, %v1244_v48  ;;  %v1217_v57 = vadd.f32 %v8898_v37, %v1193_v60  ;;  %s5995_s13 = sld [smem:[#allocation7 + $0x8e]] }
 0x2a7   : > { %v8900_v17 = vstv %s8862_s14  ;;  %v8901_v61 = vmov %v8895_v30  ;;  %v1243_v27 = vadd.f32 %v1241_v8, %v1211_v11  ;;  %v8902_v51 = vstv %s8892_s8  ;;  %s5949_s14 = sld [smem:[#allocation7 + $0x69]] }
 0x2a8   : > { %v1337_v44 = vmul.f32 %v8900_v17, %v5780_v54  ;;  %v1343_v2 = vmul.f32 %v8901_v61, %v5780_v54  ;;  %v1346_v9 = vadd.f32 %v1344_v41, %v1314_v3  ;;  %v1394_v13 = vmul.f32 %v8902_v51, %v5755_v55  ;;  %v8915_v41 = vld [vmem:[#allocation137_spill] sm:$0xff]  ;;  %s6012_s8 = sld [smem:[#allocation9 + $0x1]] }
 0x2a9   : > { %v1416_v15 = vadd.f32 %v8903_v53, %v1390_v46  ;;  %v5815_v22 = vsel %vm382_vm6, %v1438_v32, 0.0  ;;  %v1383_v18 = vsel %vm5272_vm7, %v1378_v29, 0.0  ;;  %v1300_v58 = vadd.f32 %v1298_v26, %v1250_v7  ;;  %v1436_v32 = vpop.permute.xlu0 %1435  ;;  %v8923_v53 = vld [vmem:[#allocation185_spill] sm:$0xff] }
 0x2aa   : > { %v1339_v63 = vadd.f32 %v1337_v44, %v1307_v10  ;;  %v1345_v21 = vadd.f32 %v1343_v2, %v1313_v6  ;;  %v8904_v47 = vmov %v8890_v34  ;;  %v8905_v8 = vstv %s8896_s1  ;;  %v1540_v34 = vpop.permute.xlu1 %1539 }
 0x2ab   : > { %v1291_v23 = vmul.f32 %v8904_v47, %v1275_v62  ;;  %v1446_v60 = vmul.f32 %v8905_v8, %v5815_v22  ;;  %v8906_v48 = vstv %s8897_s29  ;;  %v8907_v43 = vstv %s8899_s21  ;;  %s6038_s29 = sld [smem:[#allocation7 + $0x8f]]  ;;  %s8968_s21 = smov 16  }
 0x2ac   : > { %v5827_v52 = vmul.f32 %v5728_v0, %v8906_v48  ;;  %v1492_v20 = vmul.f32 %v8907_v43, %v5792_v42  ;;  %v1249_v3 = vadd.f32 %v1247_v36, %v1217_v57  ;;  %v8909_v45 = vstv %s5009_s2  ;;  %s8914_s2 = sld [smem:[#allocation39_spill]] }
 0x2ad   : > { %v1387_v11 = vmul.f32 %v8909_v45, %v1383_v18  ;;  %v8910_v46 = vmov %v8902_v51  ;;  %v5839_v19 = vsel %vm381_vm5, %v5685_v5, 0.0  ;;  %v1320_v10 = vadd.f32 %v8912_v1, %v1294_v16  ;;  %v8922_v51 = vld [vmem:[#allocation177_spill] sm:$0xff]  ;;  %v1538_v1 = vpop.permute.xlu0 %1537 }
 0x2ae   : > { %v1393_v28 = vmul.f32 %v8910_v46, %v1383_v18  ;;  %v1293_v56 = vadd.f32 %v1291_v23, %v1243_v27  ;;  %v1448_v6 = vadd.f32 %v1446_v60, %v1416_v15  ;;  %v8913_v7 = vmov %v8894_v35  ;;  %v8926_v23 = vld [vmem:[#allocation138_spill] sm:$0xff]  ;;  %v8927_v60 = vld [vmem:[#allocation140_spill] sm:$0xff] }
 0x2af   : > { %v1297_v36 = vmul.f32 %v8913_v7, %v1275_v62  ;;  %v1396_v35 = vadd.f32 %v1394_v13, %v1346_v9  ;;  %v1389_v26 = vadd.f32 %v1387_v11, %v1339_v63  ;;  %v1326_v29 = vadd.f32 %v8915_v41, %v1300_v58 }
 0x2b0   : > { %v1395_v30 = vadd.f32 %v1393_v28, %v1345_v21  ;;  %v8916_v37 = vstv %s8908_s3  ;;  %v1494_v17 = vadd.f32 %v1492_v20, %v1448_v6  ;;  %v1622_v44 = vstv %s5800_s27  ;;  %v8933_v6 = vld [vmem:[#allocation178_spill] sm:$0xff]  ;;  %s6031_s27 = sld [smem:[#allocation11 + $0x1]] }
 0x2b1   : > { %v1350_v57 = vmul.f32 %v8916_v37, %v5719_v33  ;;  %v8917_v5 = vmov %v8907_v43  ;;  %v8919_v61 = vstv %s8911_s7  ;;  %v1299_v62 = vadd.f32 %v1297_v36, %v1249_v3  ;;  %v1590_v43 = vpop.permute.xlu1 %1589  ;;  %s6073_s3 = sld [smem:[#allocation11 + $0x2]] }
 0x2b2   : > { %v1491_v16 = vmul.f32 %v8917_v5, %v5839_v19  ;;  %v1356_v2 = vmul.f32 %v8919_v61, %v5719_v33  ;;  %v5857_v9 = vsel %vm382_vm6, %v1540_v34, 0.0  ;;  %v1319_v13 = vadd.f32 %v8922_v51, %v1293_v56  ;;  %v8924_v33 = vld [vmem:[#allocation181_spill] sm:$0xff]  ;;  %s6077_s7 = sld [smem:[#allocation9 + $0x3]] }
 0x2b3   : > { %v1352_v27 = vadd.f32 %v1350_v57, %v1320_v10  ;;  %v1518_v15 = vadd.f32 %v8923_v53, %v1494_v17  ;;  %v5863_v63 = vsel %vm5322_vm8, %v1436_v32, 0.0  ;;  %v1422_v21 = vadd.f32 %v8924_v33, %v1396_v35 }
 0x2b4   : > { %v8925_v58 = vstv %s8914_s2  ;;  %v1415_v8 = vadd.f32 %v8926_v23, %v1389_v26  ;;  %v1421_v48 = vadd.f32 %v8927_v60, %v1395_v30  ;;  %v1358_v20 = vadd.f32 %v1356_v2, %v1326_v29  ;;  %s3373_s2 = sld [smem:[#allocation11 + $0x3]] }
 0x2b5   : > { %v1452_v47 = vmul.f32 %v8925_v58, %v5815_v22  ;;  %v8928_v3 = vstv %s8918_s28  ;;  %v8929_v11 = vmov %v8916_v37  ;;  %v8930_v28 = vstv %s8920_s11  ;;  %s6282_s28 = sld [smem:[#allocation8 + $0x4]] }
 0x2b6   : > { %v1400_v45 = vmul.f32 %v8928_v3, %v5755_v55  ;;  %v1349_v46 = vmul.f32 %v8929_v11, %v5780_v54  ;;  %v1548_v34 = vmul.f32 %v8930_v28, %v5857_v9  ;;  %v8932_v10 = vstv %s8921_s19  ;;  %s6286_s19 = sld [smem:[#allocation8 + $0x4c]] }
 0x2b7   : > { %v1406_v56 = vmul.f32 %v8932_v10, %v5755_v55  ;;  %v1325_v32 = vadd.f32 %v8933_v6, %v1299_v62  ;;  %v8934_v7 = vstv %s8896_s1  ;;  %v8935_v35 = vmov %v8925_v58  ;;  %s6024_s1 = sld [smem:[#allocation7 + $0x6b]] }
 0x2b8   : > { %v1445_v36 = vmul.f32 %v8934_v7, %v5863_v63  ;;  %v1451_v26 = vmul.f32 %v8935_v35, %v5863_v63  ;;  %v1351_v30 = vadd.f32 %v1349_v46, %v1319_v13  ;;  %v8936_v41 = vmov %v8928_v3  ;;  %v8942_v3 = vld [vmem:[#allocation132_spill] sm:$0xff] }
 0x2b9   : > { %v1399_v29 = vmul.f32 %v8936_v41, %v1383_v18  ;;  %v1550_v37 = vadd.f32 %v1548_v34, %v1518_v15  ;;  %v5898_v57 = vsel %vm5363_vm9, %v1590_v43, 0.0  ;;  %v8937_v55 = vmov %v8919_v61  ;;  %v8943_v34 = vld [vmem:[#allocation182_spill] sm:$0xff] }
 0x2ba   : > { %v1355_v17 = vmul.f32 %v8937_v55, %v5780_v54  ;;  %v1454_v5 = vadd.f32 %v1452_v47, %v1422_v21  ;;  %v1447_v61 = vadd.f32 %v1445_v36, %v1415_v8  ;;  %v1453_v2 = vadd.f32 %v1451_v26, %v1421_v48  ;;  %v1648_v8 = vpop.permute.xlu1 %1647  ;;  %v8947_v36 = vld [vmem:[#allocation34_spill] sm:$0xff] }
 0x2bb   : > { %v8938_v62 = vstv %s8931_s26  ;;  %v1402_v15 = vadd.f32 %v1400_v45, %v1352_v27  ;;  %v1598_v33 = vmul.f32 %v1596_v38, %v5898_v57  ;;  %v8941_v23 = vmov %v8932_v10  ;;  %v1588_v45 = vpop.permute.xlu0 %1587  ;;  %v8949_v26 = vld [vmem:[#allocation142_spill] sm:$0xff]  ;;  %s6290_s26 = sld [smem:[#allocation8 + $0x1]] }
 0x2bc   : > { %v1498_v51 = vmul.f32 %v8938_v62, %v5792_v42  ;;  %v8939_v13 = vmov %v8938_v62  ;;  %v1357_v58 = vadd.f32 %v1355_v17, %v1325_v32  ;;  %v1405_v54 = vmul.f32 %v8941_v23, %v1383_v18  ;;  %v8952_v17 = vld [vmem:[#allocation186_spill] sm:$0xff]  ;;  %v8953_v62 = vld [vmem:[#allocation184_spill] sm:$0xff] }
 0x2bd   : > { %v1497_v53 = vmul.f32 %v8939_v13, %v5839_v19  ;;  %v1493_v21 = vadd.f32 %v1491_v16, %v1447_v61  ;;  %v5918_v47 = vsel %vm382_vm6, %v1538_v1, 0.0  ;;  %v1401_v60 = vadd.f32 %v1399_v29, %v1351_v30 }
 0x2be   : > { %v1600_v48 = vadd.f32 %v1598_v33, %v1550_v37  ;;  %v1654_v43 = vstv %s5865_s15  ;;  %v1624_v27 = vmul.f32 %v1622_v44, %v8942_v3  ;;  %v1408_v11 = vadd.f32 %v1406_v56, %v1358_v20  ;;  %s6288_s15 = sld [smem:[#allocation8 + $0x70]] }
 0x2bf   : > { %v1500_v46 = vadd.f32 %v1498_v51, %v1454_v5  ;;  %v1499_v28 = vadd.f32 %v1497_v53, %v1453_v2  ;;  %v1517_v18 = vadd.f32 %v5733_v14, %v1493_v21  ;;  %v1428_v16 = vadd.f32 %v8943_v34, %v1402_v15 }
 0x2c0   : > { %v8944_v10 = vstv %s8940_s23  ;;  %v8945_v6 = vstv %s8920_s11  ;;  %v5934_v7 = vsel %vm5386_vm10, %v1648_v8, 0.0  ;;  %v1407_v20 = vadd.f32 %v1405_v54, %v1357_v58  ;;  %v8955_v58 = vld [vmem:[#allocation144_spill] sm:$0xff]  ;;  %s6284_s11 = sld [smem:[#allocation8 + $0x28]] }
 0x2c1   : > { %v1458_v1 = vmul.f32 %v8944_v10, %v5815_v22  ;;  %v1547_v32 = vmul.f32 %v8945_v6, %v5918_v47  ;;  %v1628_v56 = vstv %s5892_s30  ;;  %v5941_v14 = vsel %vm381_vm5, %v1588_v45, 0.0  ;;  %s6292_s30 = sld [smem:[#allocation8 + $0x25]] }
 0x2c2   : > { %v1623_v35 = vmul.f32 %v1622_v44, %v8947_v36  ;;  %v1427_v30 = vadd.f32 %v8949_v26, %v1401_v60  ;;  %v8950_v41 = vmov %v8944_v10  ;;  %v1626_v55 = vadd.f32 %v1624_v27, %v1600_v48  ;;  %s6296_s23 = sld [smem:[#allocation8 + $0x6d]] }
 0x2c3   : > { %v1457_v29 = vmul.f32 %v8950_v41, %v5863_v63  ;;  %v1549_v37 = vadd.f32 %v1547_v32, %v1517_v18  ;;  %v1524_v5 = vadd.f32 %v8952_v17, %v1500_v46  ;;  %v1523_v61 = vadd.f32 %v5827_v52, %v1499_v28 }
 0x2c4   : > { %v1678_v2 = vstv %s5903_s4  ;;  %v1656_v44 = vmul.f32 %v1654_v43, %v5934_v7  ;;  %v1434_v51 = vadd.f32 %v8953_v62, %v1408_v11  ;;  %v1460_v13 = vadd.f32 %v1458_v1, %v1428_v16  ;;  %s6294_s4 = sld [smem:[#allocation8 + $0x49]] }
 0x2c5   : > { %v8954_v53 = vstv %s8946_s5  ;;  %v1597_v33 = vmul.f32 %v1596_v38, %v5941_v14  ;;  %v1554_v52 = vmul.f32 %v1552_v31, %v5857_v9  ;;  %v1433_v23 = vadd.f32 %v8955_v58, %v1407_v20  ;;  %s6300_s5 = sld [smem:[#allocation8 + $0x7]] }
 0x2c6   : > { %v1464_v15 = vmul.f32 %v8954_v53, %v5815_v22  ;;  %v8956_v54 = vmov %v8954_v53  ;;  %v1553_v22 = vmul.f32 %v1552_v31, %v5918_v47  ;;  %v8958_v8 = vstv %s8951_s24  ;;  %s6306_s24 = sld [smem:[#allocation8 + $0x73]] }
 0x2c7   : > { %v1463_v21 = vmul.f32 %v8956_v54, %v5863_v63  ;;  %v1504_v60 = vmul.f32 %v8958_v8, %v5792_v42  ;;  %v1459_v48 = vadd.f32 %v1457_v29, %v1427_v30  ;;  %v1658_v38 = vadd.f32 %v1656_v44, %v1626_v55  ;;  %v1646_v63 = vpop.permute.xlu0 %1645 }
 0x2c8   : > { %v1599_v27 = vadd.f32 %v1597_v33, %v1549_v37  ;;  %v1556_v45 = vadd.f32 %v1554_v52, %v1524_v5  ;;  %v1604_v11 = vmul.f32 %v1602_v25, %v5898_v57  ;;  %v1555_v46 = vadd.f32 %v1553_v22, %v1523_v61 }
 0x2c9   : > { %v1603_v31 = vmul.f32 %v1602_v25, %v5941_v14  ;;  %v8960_v28 = vmov %v8958_v8  ;;  %v1564_v34 = vstv %s5927_s16  ;;  %v8961_v16 = vstv %s8957_s9  ;;  %s6298_s16 = sld [smem:[#allocation8 + $0xd]] }
 0x2ca   : > { %v1503_v18 = vmul.f32 %v8960_v28, %v5839_v19  ;;  %v1527_v10 = vmul.f32 %v5728_v0, %v8961_v16  ;;  %v1630_v1 = vmul.f32 %v1628_v56, %v8942_v3  ;;  %v1466_v6 = vadd.f32 %v1464_v15, %v1434_v51  ;;  %v8965_v15 = vld [vmem:[#allocation188_spill] sm:$0xff]  ;;  %s6312_s9 = sld [smem:[#allocation8 + $0x52]] }
 0x2cb   : > { %v1506_v32 = vadd.f32 %v1504_v60, %v1460_v13  ;;  %v1465_v20 = vadd.f32 %v1463_v21, %v1433_v23  ;;  %v1682_v25 = vstv %s5937_s12  ;;  %v1680_v30 = vmul.f32 %v1678_v2, %v1658_v38  ;;  %s6302_s12 = sld [smem:[#allocation8 + $0x2b]] }
 0x2cc   : > { %v1505_v26 = vadd.f32 %v1503_v18, %v1459_v48  ;;  %v1625_v41 = vadd.f32 %v1623_v35, %v1599_v27  ;;  %v6001_v29 = vsel %vm382_vm6, %v1646_v63, 0.0  ;;  %v8963_v37 = vstv %s8959_s6  ;;  %s6318_s6 = sld [smem:[#allocation8 + $0x55]] }
 0x2cd   : > { %v1510_v55 = vmul.f32 %v8963_v37, %v5792_v42  ;;  %v1606_v17 = vadd.f32 %v1604_v11, %v1556_v45  ;;  %v1605_v5 = vadd.f32 %v1603_v31, %v1555_v46  ;;  %v1629_v61 = vmul.f32 %v1628_v56, %v8947_v36 }
 0x2ce   : > { %v8964_v44 = vmov %v8963_v37  ;;  %v1608_v51 = vstv %s5949_s14  ;;  %v1660_v13 = vstv %s5960_s0  ;;  %v1655_v35 = vmul.f32 %v1654_v43, %v6001_v29  ;;  %s6308_s14 = sld [smem:[#allocation8 + $0xa]] }
 0x2cf   : > { %v1509_v62 = vmul.f32 %v8964_v44, %v5839_v19  ;;  %v1512_v53 = vadd.f32 %v1510_v55, %v1466_v6  ;;  %v1530_v42 = vadd.f32 %v8965_v15, %v1506_v32  ;;  %v1560_v33 = vmul.f32 %v1558_v40, %v5857_v9  ;;  %s6310_s0 = sld [smem:[#allocation8 + $0x2e]] }
 0x2d0   : > { %v8966_v56 = vstv %s8962_s17  ;;  %v1529_v58 = vadd.f32 %v1527_v10, %v1505_v26  ;;  %v1684_v23 = vadd.f32 %v1682_v25, %v1680_v30  ;;  %v1657_v54 = vadd.f32 %v1655_v35, %v1625_v41  ;;  %s6322_s17 = sld [smem:[#allocation8 + $0x16]] }
 0x2d1   : > { %v1533_v52 = vmul.f32 %v5728_v0, %v8966_v56  ;;  %v1511_v19 = vadd.f32 %v1509_v62, %v1465_v20  ;;  %v1632_v21 = vadd.f32 %v1630_v1, %v1606_v17  ;;  %v1662_v43 = vmul.f32 %v1660_v13, %v5934_v7 }
 0x2d2   : > { %v1631_v22 = vadd.f32 %v1629_v61, %v1605_v5  ;;  %v1661_v8 = vmul.f32 %v1660_v13, %v6001_v29  ;;  %v1614_v60 = vstv %s5978_s18  ;;  %v1634_v48 = vstv %s5983_s20  ;;  %s6314_s18 = sld [smem:[#allocation8 + $0x76]] }
 0x2d3   : > { %v1640_v38 = vstv %s5995_s13  ;;  %v1679_v0 = vmul.f32 %v1678_v2, %v1657_v54  ;;  %v1536_v27 = vadd.f32 %v5332_v12, %v1512_v53  ;;  %v1562_v45 = vadd.f32 %v1560_v33, %v1530_v42  ;;  %s6316_s20 = sld [smem:[#allocation8 + $0x31]] }
 0x2d4   : > { %v1610_v11 = vmul.f32 %v1608_v51, %v5898_v57  ;;  %v1559_v46 = vmul.f32 %v1558_v40, %v5918_v47  ;;  %v1566_v31 = vmul.f32 %v1564_v34, %v5857_v9  ;;  %v1535_v63 = vadd.f32 %v1533_v52, %v1511_v19  ;;  %s6320_s13 = sld [smem:[#allocation8 + $0x79]] }
 0x2d5   : > { %v6041_v28 = vmax.f32 %v1684_v23, 0.0  ;;  %v1683_v18 = vadd.f32 %v1682_v25, %v1679_v0  ;;  %v1664_v10 = vadd.f32 %v1662_v43, %v1632_v21  ;;  %v1609_v2 = vmul.f32 %v1608_v51, %v5941_v14 }
 0x2d6   : > { %v1561_v16 = vadd.f32 %v1559_v46, %v1529_v58  ;;  %v1663_v12 = vadd.f32 %v1661_v8, %v1631_v22  ;;  %v1565_v1 = vmul.f32 %v1564_v34, %v5918_v47  ;;  %v1688_v6 = vstv %s6012_s8  ;;  %8969 = sst [smem:[#allocation92_spill]] %s6322_s17 }
 0x2d7   : > { %v1636_v40 = vmul.f32 %v1634_v48, %v8942_v3  ;;  %v6047_v32 = vmax.f32 %v1683_v18, 0.0  ;;  %v1568_v20 = vadd.f32 %v1566_v31, %v1536_v27  ;;  %v1612_v9 = vadd.f32 %v1610_v11, %v1562_v45  ;;  %s6324_s8 = sld [smem:[#allocation8 + $0x3a]] }
 0x2d8   : > { %v1616_v26 = vmul.f32 %v1614_v60, %v5898_v57  ;;  %v1666_v30 = vstv %s6024_s1  ;;  %v1567_v25 = vadd.f32 %v1565_v1, %v1535_v63  ;;  %v1615_v41 = vmul.f32 %v1614_v60, %v5941_v14  ;;  %s6326_s1 = sld [smem:[#allocation8 + $0x10]] }
 0x2d9   : > { %v1717_v37 = vrot.slane %v6047_v32, 7  ;;  %v1718_v55 = vrot.slane %v6041_v28, 7  ;;  %v1690_v47 = vmul.f32 %v1688_v6, %v1664_v10  ;;  %v1611_v34 = vadd.f32 %v1609_v2, %v1561_v16  ;;  %s6350_s17 = sld [smem:[#allocation8 + $0x5e]] }
 0x2da   : > { %v1635_v17 = vmul.f32 %v1634_v48, %v8947_v36  ;;  %v1689_v5 = vmul.f32 %v1688_v6, %v1663_v12  ;;  %v1692_v61 = vstv %s6031_s27  ;;  %v1672_v14 = vstv %s6038_s29  ;;  %s6328_s27 = sld [smem:[#allocation8 + $0x34]] }
 0x2db   : > { %v6060_v62 = vsel %vm404_vm0, %v1718_v55, %v1717_v37  ;;  %v6064_v57 = vsel %vm404_vm0, %v1717_v37, %v1718_v55  ;;  %v1642_v51 = vmul.f32 %v1640_v38, %v8942_v3  ;;  %v1641_v13 = vmul.f32 %v1640_v38, %v8947_v36  ;;  %s6334_s29 = sld [smem:[#allocation8 + $0x58]] }
 0x2dc   : > { %1721 = vrot.lane.b32.xlu0 %v6060_v62, %s8968_s21  ;;  %1724 = vrot.lane.b32.xlu1 %v6064_v57, %s8968_s21  ;;  %v1618_v35 = vadd.f32 %v1616_v26, %v1568_v20  ;;  %v1638_v53 = vadd.f32 %v1636_v40, %v1612_v9  ;;  %v1668_v15 = vmul.f32 %v1666_v30, %v5934_v7  ;;  %v1698_v8 = vstv %s6056_s22  ;;  %s8972_s22 = smov 113  }
 0x2dd   : > { %v1617_v42 = vadd.f32 %v1615_v41, %v1567_v25  ;;  %v1694_v33 = vadd.f32 %v1692_v61, %v1690_v47  ;;  %v1637_v56 = vadd.f32 %v1635_v17, %v1611_v34  ;;  %v1667_v3 = vmul.f32 %v1666_v30, %v6001_v29  ;;  %8970 = sst [smem:[#allocation47_spill]] %s6324_s8 }
 0x2de   : > { %v1693_v52 = vadd.f32 %v1692_v61, %v1689_v5  ;;  %v1644_v36 = vadd.f32 %v1642_v51, %v1618_v35  ;;  %v1670_v19 = vadd.f32 %v1668_v15, %v1638_v53  ;;  %v1674_v58 = vmul.f32 %v1672_v14, %v5934_v7  ;;  %s6348_s8 = sld [smem:[#allocation8 + $0x7f]] }
 0x2df   : > { %v1643_v23 = vadd.f32 %v1641_v13, %v1617_v42  ;;  %v6084_v54 = vmax.f32 %v1694_v33, 0.0  ;;  %v1669_v21 = vadd.f32 %v1667_v3, %v1637_v56  ;;  %v1673_v43 = vmul.f32 %v1672_v14, %v6001_v29  ;;  %8979 = sst [smem:[#allocation54_spill]] %s6350_s17 }
 0x2e0   : > { %1825 = vrot.lane.b32.xlu0 %v6047_v32, %s8968_s21  ;;  %1828 = vrot.lane.b32.xlu1 %v6041_v28, %s8968_s21  ;;  %v6087_v22 = vmax.f32 %v1693_v52, 0.0  ;;  %v1927_v60 = vrot.slane %v6047_v32, 1  ;;  %v1702_v7 = vstv %s6073_s3  ;;  %v1928_v48 = vrot.slane %v6041_v28, 1  ;;  %s6340_s3 = sld [smem:[#allocation8 + $0x13]] }
 0x2e1   : > { %v1676_v38 = vadd.f32 %v1674_v58, %v1644_v36  ;;  %v1700_v0 = vmul.f32 %v1698_v8, %v1670_v19  ;;  %v1675_v27 = vadd.f32 %v1673_v43, %v1643_v23  ;;  %v1699_v45 = vmul.f32 %v1698_v8, %v1669_v21  ;;  %8971 = sst [smem:[#allocation48_spill]] %s6334_s29 }
 0x2e2   : > { %v1708_v29 = vstv %s6077_s7  ;;  %v6100_v11 = vsel %vm616_vm1, %v1927_v60, %v1928_v48  ;;  %v6104_v46 = vsel %vm616_vm1, %v1928_v48, %v1927_v60  ;;  %v2035_v31 = vrot.slane %v6087_v22, 7  ;;  %s6342_s7 = sld [smem:[#allocation8 + $0x37]] }
 0x2e3   : > { %v2036_v63 = vrot.slane %v6084_v54, 7  ;;  %v1704_v18 = vadd.f32 %v1702_v7, %v1700_v0  ;;  %v1710_v16 = vmul.f32 %v1708_v29, %v1676_v38  ;;  %v1703_v10 = vadd.f32 %v1702_v7, %v1699_v45  ;;  %s6352_s29 = sld [smem:[#allocation8 + $0x82]] }
 0x2e4   : > { %2143 = vrot.lane.b32.xlu0 %v6087_v22, %s8968_s21  ;;  %2146 = vrot.lane.b32.xlu1 %v6084_v54, %s8968_s21  ;;  %v1709_v2 = vmul.f32 %v1708_v29, %v1675_v27  ;;  %v1712_v12 = vstv %s3373_s2  ;;  %v2245_v41 = vrot.slane %v6087_v22, 1  ;;  %v2246_v37 = vrot.slane %v6084_v54, 1  ;;  %s6344_s2 = sld [smem:[#allocation8 + $0x5b]] }
 0x2e5   : > { %v6114_v1 = vsel %vm404_vm0, %v2036_v63, %v2035_v31  ;;  %v6118_v6 = vsel %vm404_vm0, %v2035_v31, %v2036_v63  ;;  %v6124_v40 = vmax.f32 %v1704_v18, 0.0  ;;  %v1714_v20 = vadd.f32 %v1712_v12, %v1710_v16  ;;  %8978 = sst [smem:[#allocation53_spill]] %s6348_s8 }
 0x2e6   : > { %v6126_v9 = vmax.f32 %v1703_v10, 0.0  ;;  %v1713_v26 = vadd.f32 %v1712_v12, %v1709_v2  ;;  %v6144_v55 = vsel %vm616_vm1, %v2245_v41, %v2246_v37  ;;  %v6148_v47 = vsel %vm616_vm1, %v2246_v37, %v2245_v41  ;;  %8974 = sst [smem:[#allocation50_spill]] %s6340_s3 }
 0x2e7   : > { %v6132_v30 = vmax.f32 %v1714_v20, 0.0  ;;  %v2354_v17 = vrot.slane %v6124_v40, 7  ;;  %v2564_v51 = vrot.slane %v6124_v40, 1  ;;  %s6364_s3 = sld [smem:[#allocation8 + $0x61]] }
 0x2e8   : > { %1931 = vrot.lane.b32.xlu0 %v6100_v11, %s8968_s21  ;;  %1934 = vrot.lane.b32.xlu1 %v6104_v46, %s8968_s21  ;;  %v6134_v25 = vmax.f32 %v1713_v26, 0.0  ;;  %v2353_v34 = vrot.slane %v6126_v9, 7  ;;  %v2563_v14 = vrot.slane %v6126_v9, 1  ;;  %8975 = sst [smem:[#allocation51_spill]] %s6342_s7 }
 0x2e9   : > { %v2672_v15 = vrot.slane %v6132_v30, 7  ;;  %v2882_v3 = vrot.slane %v6132_v30, 1  ;;  %8980 = sst [smem:[#allocation55_spill]] %s6352_s29 }
 0x2ea   : > { %v6158_v5 = vsel %vm404_vm0, %v2354_v17, %v2353_v34  ;;  %v6162_v61 = vsel %vm404_vm0, %v2353_v34, %v2354_v17  ;;  %v6172_v13 = vsel %vm616_vm1, %v2563_v14, %v2564_v51  ;;  %v6176_v35 = vsel %vm616_vm1, %v2564_v51, %v2563_v14  ;;  %8976 = sst [smem:[#allocation52_spill]] %s6344_s2 }
 0x2eb   : > { %v2671_v53 = vrot.slane %v6134_v25, 7  ;;  %v2881_v56 = vrot.slane %v6134_v25, 1  ;;  %s6358_s7 = sld [smem:[#allocation8 + $0x19]] }
 0x2ec   : > { %2039 = vrot.lane.b32.xlu0 %v6114_v1, %s8968_s21  ;;  %2042 = vrot.lane.b32.xlu1 %v6118_v6, %s8968_s21  ;;  %s6362_s2 = sld [smem:[#allocation8 + $0x3d]] }
 0x2ed   : > { %v6186_v42 = vsel %vm404_vm0, %v2672_v15, %v2671_v53  ;;  %v6190_v33 = vsel %vm404_vm0, %v2671_v53, %v2672_v15  ;;  %v6200_v52 = vsel %vm616_vm1, %v2881_v56, %v2882_v3  ;;  %v6204_v36 = vsel %vm616_vm1, %v2882_v3, %v2881_v56  ;;  %8983 = sst [smem:[#allocation58_spill]] %s6364_s3 }
 0x2ee   : > { %s6366_s8 = sld [smem:[#allocation8 + $0x85]] }
 0x2ef   : > { %s6368_s17 = sld [smem:[#allocation8 + $0x1c]] }
 0x2f0   : > { %2461 = vrot.lane.b32.xlu0 %v6126_v9, %s8968_s21  ;;  %2464 = vrot.lane.b32.xlu1 %v6124_v40, %s8968_s21  ;;  %s6372_s29 = sld [smem:[#allocation8 + $0x40]] }
 0x2f1   : > { %8981 = sst [smem:[#allocation56_spill]] %s6358_s7 }
 0x2f2   : > { %8982 = sst [smem:[#allocation57_spill]] %s6362_s2 }
 0x2f3   : > { %s6376_s7 = sld [smem:[#allocation8 + $0x88]] }
 0x2f4   : > { %2779 = vrot.lane.b32.xlu0 %v6134_v25, %s8968_s21  ;;  %2782 = vrot.lane.b32.xlu1 %v6132_v30, %s8968_s21  ;;  %8984 = sst [smem:[#allocation75_spill]] %s6366_s8 }
 0x2f5   : > { %8985 = sst [smem:[#allocation76_spill]] %s6368_s17 }
 0x2f6   : > { %8986 = sst [smem:[#allocation77_spill]] %s6372_s29 }
 0x2f7   : > { %s6382_s8 = sld [smem:[#allocation8 + $0x1f]] }
 0x2f8   : > { %2249 = vrot.lane.b32.xlu0 %v6144_v55, %s8968_s21  ;;  %2252 = vrot.lane.b32.xlu1 %v6148_v47, %s8968_s21  ;;  %s6386_s17 = sld [smem:[#allocation8 + $0x43]] }
 0x2f9   : > { %8988 = sst [smem:[#allocation59_spill]] %s6376_s7 }
 0x2fa   : > { %s6388_s29 = sld [smem:[#allocation8 + $0x67]] }
 0x2fb   : > { %s6396_s7 = sld [smem:[#allocation8 + $0x22]] }
 0x2fc   : > { %2357 = vrot.lane.b32.xlu0 %v6158_v5, %s8968_s21  ;;  %2360 = vrot.lane.b32.xlu1 %v6162_v61, %s8968_s21  ;;  %s6416_s3 = sld [smem:[#allocation8 + $0x4b]] }
 0x2fd   : > { %8989 = sst [smem:[#allocation60_spill]] %s6382_s8 }
 0x2fe   : > { %8990 = sst [smem:[#allocation61_spill]] %s6386_s17 }
 0x2ff   : > { %s6400_s8 = sld [smem:[#allocation8 + $0x46]] }
 0x300   : > { %2567 = vrot.lane.b32.xlu0 %v6172_v13, %s8968_s21  ;;  %2570 = vrot.lane.b32.xlu1 %v6176_v35, %s8968_s21  ;;  %8991 = sst [smem:[#allocation62_spill]] %s6388_s29 }
 0x301   : > { %8993 = sst [smem:[#allocation84_spill]] %s6396_s7 }
 0x302   : > { %s6402_s17 = sld [smem:[#allocation8 + $0x6a]] }
 0x303   : > { %s6410_s29 = sld [smem:[#allocation8 + $0x3]] }
 0x304   : > { %2675 = vrot.lane.b32.xlu0 %v6186_v42, %s8968_s21  ;;  %2678 = vrot.lane.b32.xlu1 %v6190_v33, %s8968_s21  ;;  %s6414_s7 = sld [smem:[#allocation8 + $0x27]] }
 0x305   : > { %8994 = sst [smem:[#allocation85_spill]] %s6400_s8 }
 0x306   : > { %8999 = sst [smem:[#allocation66_spill]] %s6416_s3 }
 0x307   : > { %s6418_s2 = sld [smem:[#allocation8 + $0x6f]] }
 0x308   : > { %2885 = vrot.lane.b32.xlu0 %v6200_v52, %s8968_s21  ;;  %2888 = vrot.lane.b32.xlu1 %v6204_v36, %s8968_s21  ;;  %8995 = sst [smem:[#allocation86_spill]] %s6402_s17 }
 0x309   : > { %8997 = sst [smem:[#allocation64_spill]] %s6410_s29 }
 0x30a   : > { %8998 = sst [smem:[#allocation65_spill]] %s6414_s7 }
 0x30b   : > { %s6420_s8 = sld [smem:[#allocation8 + $0x5]] }
 0x30c   : > { %s6426_s29 = sld [smem:[#allocation8 + $0x4d]] }
 0x30d   : > { %9000 = sst [smem:[#allocation67_spill]] %s6418_s2 }
 0x30e   : > { %s6428_s17 = sld [smem:[#allocation8 + $0x71]] }
 0x30f   : > { %s6434_s2 = sld [smem:[#allocation8 + $0xc]] }
 0x310   : > { %s6440_s3 = sld [smem:[#allocation8 + $0x54]] }
 0x311   : > { %9001 = sst [smem:[#allocation93_spill]] %s6420_s8 }
 0x312   : > { %9003 = sst [smem:[#allocation95_spill]] %s6426_s29 }
 0x313   : > { %s6438_s8 = sld [smem:[#allocation8 + $0x30]] }
 0x314   : > { %9004 = sst [smem:[#allocation96_spill]] %s6428_s17 }
 0x315   : > { %9005 = sst [smem:[#allocation97_spill]] %s6434_s2 }
 0x316   : > { %9007 = sst [smem:[#allocation99_spill]] %s6440_s3 }
 0x317   : > { %s6444_s29 = sld [smem:[#allocation8 + $0xe]] }
 0x318   : > { %s6448_s17 = sld [smem:[#allocation8 + $0x32]] }
 0x319   : > { %9006 = sst [smem:[#allocation98_spill]] %s6438_s8 }
 0x31a   : > { %s6450_s2 = sld [smem:[#allocation8 + $0x56]] }
 0x31b   : > { %s6452_s7 = sld [smem:[#allocation8 + $0x7a]] }
 0x31c   : > { %s6464_s3 = sld [smem:[#allocation8 + $0x5d]] }
 0x31d   : > { %9009 = sst [smem:[#allocation68_spill]] %s6444_s29 }
 0x31e   : > { %9010 = sst [smem:[#allocation69_spill]] %s6448_s17 }
 0x31f   : > { %s6462_s29 = sld [smem:[#allocation8 + $0x39]] }
 0x320   : > { %9011 = sst [smem:[#allocation70_spill]] %s6450_s2 }
 0x321   : > { %9012 = sst [smem:[#allocation101_spill]] %s6452_s7 }
 0x322   : > { %9015 = sst [smem:[#allocation104_spill]] %s6464_s3 }
 0x323   : > { %s6466_s17 = sld [smem:[#allocation8 + $0x81]] }
 0x324   : > { %s6468_s2 = sld [smem:[#allocation8]] }
 0x325   : > { %9014 = sst [smem:[#allocation103_spill]] %s6462_s29 }
 0x326   : > { %s6472_s7 = sld [smem:[#allocation8 + $0x24]] }
 0x327   : > { %s6476_s8 = sld [smem:[#allocation8 + $0x6c]] }
 0x328   : > { %s6488_s3 = sld [smem:[#allocation8 + $0x4a]] }
 0x329   : > { %9016 = sst [smem:[#allocation105_spill]] %s6466_s17 }
 0x32a   : > { %9017 = sst [smem:[#allocation106_spill]] %s6468_s2 }
 0x32b   : > { %s6482_s17 = sld [smem:[#allocation8 + $0x2]] }
 0x32c   : > { %9018 = sst [smem:[#allocation107_spill]] %s6472_s7 }
 0x32d   : > { %9020 = sst [smem:[#allocation115_spill]] %s6476_s8 }
 0x32e   : > { %s6486_s2 = sld [smem:[#allocation8 + $0x26]] }
 0x32f   : > { %9023 = sst [smem:[#allocation124_spill]] %s6488_s3 }
 0x330   : > { %s6492_s8 = sld [smem:[#allocation8 + $0x17]] }
 0x331   : > { %9021 = sst [smem:[#allocation119_spill]] %s6482_s17 }
 0x332   : > { %s6496_s17 = sld [smem:[#allocation8 + $0x3b]] }
 0x333   : > { %s6500_s3 = sld [smem:[#allocation8 + $0x83]] }
 0x334   : > { %9022 = sst [smem:[#allocation122_spill]] %s6486_s2 }
 0x335   : > { %s6498_s2 = sld [smem:[#allocation8 + $0x5f]] }
 0x336   : > { %9025 = sst [smem:[#allocation128_spill]] %s6492_s8 }
 0x337   : > { %s6506_s8 = sld [smem:[#allocation8 + $0x6]] }
 0x338   : > { %9026 = sst [smem:[#allocation133_spill]] %s6496_s17 }
 0x339   : > { %9028 = sst [smem:[#allocation136_spill]] %s6500_s3 }
 0x33a   : > { %s6510_s17 = sld [smem:[#allocation8 + $0x2a]] }
 0x33b   : > { %9027 = sst [smem:[#allocation71_spill]] %s6498_s2 }
 0x33c   : > { %s6515_s2 = sld [smem:[#allocation8 + $0x4e]] }
 0x33d   : > { %9029 = sst [smem:[#allocation72_spill]] %s6506_s8 }
 0x33e   : > { %s6518_s3 = sld [smem:[#allocation8 + $0x72]] }
 0x33f   : > { %s6524_s8 = sld [smem:[#allocation8 + $0x8]] }
 0x340   : > { %9030 = sst [smem:[#allocation79_spill]] %s6510_s17 }
 0x341   : > { %s7090_s7 = sld [smem:[#allocation8 + $0x23]] }
 0x342   : > { %9031 = sst [smem:[#allocation87_spill]] %s6515_s2 }
 0x343   : > { %s9260_s17 = sld [smem:[#allocation67_spill]] }
 0x344   : > { %9032 = sst [smem:[#allocation73_spill]] %s6518_s3 }
 0x345   : > { %9033 = sst [smem:[#allocation88_spill]] %s6524_s8 }
 0x346   : > { %s7048_s3 = sld [smem:[#allocation8 + $0x44]] }
 0x347   : > { %s7144_s2 = sld [smem:[#allocation12 + $0x1]] }
 0x34e   : > { %v1722_v19 = vpop.permute.xlu0 %1721  ;;  %v1725_v58 = vpop.permute.xlu1 %1724 }
 0x34f   : > { %v1723_v12 = vsel %vm407_vm2, %v1722_v19, %v6060_v62  ;;  %v1726_v20 = vsel %vm407_vm2, %v1725_v58, %v6064_v57 }
 0x352   : > { %v1826_v23 = vpop.permute.xlu0 %1825  ;;  %v1829_v21 = vpop.permute.xlu1 %1828 }
 0x353   : > { %v1827_v43 = vsel %vm407_vm2, %v1826_v23, %v6047_v32  ;;  %v1830_v8 = vsel %vm407_vm2, %v1829_v21, %v6041_v28 }
 0x354   : > { %1831 = vrot.lane.b32.xlu0 %v1827_v43, %s8968_s21  ;;  %1833 = vrot.lane.b32.xlu1 %v1830_v8, %s8968_s21 }
 0x356   : > { %v2144_v60 = vpop.permute.xlu0 %2143  ;;  %v2147_v7 = vpop.permute.xlu1 %2146 }
 0x357   : > { %v2145_v48 = vsel %vm407_vm2, %v2144_v60, %v6087_v22  ;;  %v2148_v38 = vsel %vm407_vm2, %v2147_v7, %v6084_v54 }
 0x358   : > { %2149 = vrot.lane.b32.xlu0 %v2145_v48, %s8968_s21  ;;  %2151 = vrot.lane.b32.xlu1 %v2148_v38, %s8968_s21 }
 0x35a   : > { %v1932_v0 = vpop.permute.xlu0 %1931  ;;  %v1935_v27 = vpop.permute.xlu1 %1934 }
 0x35b   : > { %v1933_v17 = vsel %vm407_vm2, %v1932_v0, %v6100_v11  ;;  %v1936_v14 = vsel %vm407_vm2, %v1935_v27, %v6104_v46 }
 0x35e   : > { %v2040_v45 = vpop.permute.xlu0 %2039  ;;  %v2043_v29 = vpop.permute.xlu1 %2042 }
 0x35f   : > { %v2041_v15 = vsel %vm407_vm2, %v2040_v45, %v6114_v1  ;;  %v2044_v56 = vsel %vm407_vm2, %v2043_v29, %v6118_v6 }
 0x362   : > { %v2462_v31 = vpop.permute.xlu0 %2461  ;;  %v2465_v63 = vpop.permute.xlu1 %2464 }
 0x363   : > { %v2463_v18 = vsel %vm407_vm2, %v2462_v31, %v6126_v9  ;;  %v2466_v16 = vsel %vm407_vm2, %v2465_v63, %v6124_v40 }
 0x364   : > { %2467 = vrot.lane.b32.xlu0 %v2463_v18, %s8968_s21  ;;  %2469 = vrot.lane.b32.xlu1 %v2466_v16, %s8968_s21 }
 0x366   : > { %v2780_v10 = vpop.permute.xlu0 %2779  ;;  %v2783_v2 = vpop.permute.xlu1 %2782 }
 0x367   : > { %v2781_v26 = vsel %vm407_vm2, %v2780_v10, %v6134_v25  ;;  %v2784_v41 = vsel %vm407_vm2, %v2783_v2, %v6132_v30 }
 0x368   : > { %1727 = vrot.lane.b32.xlu0 %v1723_v12, %s8968_s21  ;;  %1729 = vrot.lane.b32.xlu1 %v1726_v20, %s8968_s21 }
 0x36a   : > { %v2250_v37 = vpop.permute.xlu0 %2249  ;;  %v2253_v34 = vpop.permute.xlu1 %2252 }
 0x36b   : > { %v2251_v3 = vsel %vm407_vm2, %v2250_v37, %v6144_v55  ;;  %v2254_v19 = vsel %vm407_vm2, %v2253_v34, %v6148_v47 }
 0x36c   : > { %2785 = vrot.lane.b32.xlu0 %v2781_v26, %s8968_s21  ;;  %2787 = vrot.lane.b32.xlu1 %v2784_v41, %s8968_s21 }
 0x36e   : > { %v2358_v51 = vpop.permute.xlu0 %2357  ;;  %v2361_v53 = vpop.permute.xlu1 %2360 }
 0x36f   : > { %v2359_v21 = vsel %vm407_vm2, %v2358_v51, %v6158_v5  ;;  %v2362_v43 = vsel %vm407_vm2, %v2361_v53, %v6162_v61 }
 0x370   : > { %1937 = vrot.lane.b32.xlu0 %v1933_v17, %s8968_s21  ;;  %1939 = vrot.lane.b32.xlu1 %v1936_v14, %s8968_s21 }
 0x372   : > { %v2568_v58 = vpop.permute.xlu0 %2567  ;;  %v2571_v23 = vpop.permute.xlu1 %2570 }
 0x373   : > { %v2569_v7 = vsel %vm407_vm2, %v2568_v58, %v6172_v13  ;;  %v2572_v48 = vsel %vm407_vm2, %v2571_v23, %v6176_v35 }
 0x374   : > { %2045 = vrot.lane.b32.xlu0 %v2041_v15, %s8968_s21  ;;  %2047 = vrot.lane.b32.xlu1 %v2044_v56, %s8968_s21 }
 0x376   : > { %v2676_v8 = vpop.permute.xlu0 %2675  ;;  %v2679_v60 = vpop.permute.xlu1 %2678 }
 0x377   : > { %v2677_v38 = vsel %vm407_vm2, %v2676_v8, %v6186_v42  ;;  %v2680_v0 = vsel %vm407_vm2, %v2679_v60, %v6190_v33 }
 0x378   : > { %2255 = vrot.lane.b32.xlu0 %v2251_v3, %s8968_s21  ;;  %2257 = vrot.lane.b32.xlu1 %v2254_v19, %s8968_s21 }
 0x37a   : > { %v2886_v27 = vpop.permute.xlu0 %2885  ;;  %v2889_v45 = vpop.permute.xlu1 %2888 }
 0x37b   : > { %v2887_v29 = vsel %vm407_vm2, %v2886_v27, %v6200_v52  ;;  %v2890_v31 = vsel %vm407_vm2, %v2889_v45, %v6204_v36 }
 0x37c   : > { %2363 = vrot.lane.b32.xlu0 %v2359_v21, %s8968_s21  ;;  %2365 = vrot.lane.b32.xlu1 %v2362_v43, %s8968_s21 }
 0x380   : > { %2573 = vrot.lane.b32.xlu0 %v2569_v7, %s8968_s21  ;;  %2575 = vrot.lane.b32.xlu1 %v2572_v48, %s8968_s21 }
 0x384   : > { %2681 = vrot.lane.b32.xlu0 %v2677_v38, %s8968_s21  ;;  %2683 = vrot.lane.b32.xlu1 %v2680_v0, %s8968_s21 }
 0x388   : > { %2891 = vrot.lane.b32.xlu0 %v2887_v29, %s8968_s21  ;;  %2893 = vrot.lane.b32.xlu1 %v2890_v31, %s8968_s21  ;;  %s6338_s21 = sld [smem:[#allocation8 + $0x7c]] }
 0x38e   : > { %8973 = sst [smem:[#allocation49_spill]] %s6338_s21 }
 0x38f   : > { %s6374_s21 = sld [smem:[#allocation8 + $0x64]] }
 0x395   : > { %8987 = sst [smem:[#allocation78_spill]] %s6374_s21 }
 0x396   : > { %s6390_s21 = sld [smem:[#allocation8 + $0x8b]] }
 0x39c   : > { %8992 = sst [smem:[#allocation83_spill]] %s6390_s21 }
 0x39d   : > { %s6408_s21 = sld [smem:[#allocation8 + $0x8e]] }
 0x3a3   : > { %8996 = sst [smem:[#allocation63_spill]] %s6408_s21 }
 0x3a4   : > { %s6424_s21 = sld [smem:[#allocation8 + $0x29]] }
 0x3aa   : > { %9002 = sst [smem:[#allocation94_spill]] %s6424_s21 }
 0x3ab   : > { %s6442_s21 = sld [smem:[#allocation8 + $0x78]] }
 0x3b1   : > { %9008 = sst [smem:[#allocation100_spill]] %s6442_s21 }
 0x3b2   : > { %s6458_s21 = sld [smem:[#allocation8 + $0x15]] }
 0x3b8   : > { %9013 = sst [smem:[#allocation102_spill]] %s6458_s21 }
 0x3b9   : > { %s6474_s21 = sld [smem:[#allocation8 + $0x48]] }
 0x3bf   : > { %9019 = sst [smem:[#allocation108_spill]] %s6474_s21 }
 0x3c0   : > { %s6490_s21 = sld [smem:[#allocation8 + $0x6e]] }
 0x3c6   : > { %v1832_v63 = vpop.permute.xlu0 %1831  ;;  %v1834_v18 = vpop.permute.xlu1 %1833  ;;  %9024 = sst [smem:[#allocation126_spill]] %s6490_s21 }
 0x3c7   : > { %v1835_v16 = vsel %vm407_vm2, %v1832_v63, %v6047_v32  ;;  %v1836_v10 = vsel %vm407_vm2, %v1834_v18, %v6041_v28  ;;  %v1872_v18 = vstv %s6282_s28  ;;  %s6540_s28 = sld [smem:[#allocation8 + $0x2c]] }
 0x3c8   : > { %1839 = vrot.lane.b32.xlu0 %v1835_v16, %s8972_s22  ;;  %1841 = vrot.lane.b32.xlu1 %v1836_v10, %s8972_s22  ;;  %s7036_s21 = sld [smem:[#allocation8 + $0x89]] }
 0x3ca   : > { %v2150_v2 = vpop.permute.xlu0 %2149  ;;  %v2152_v12 = vpop.permute.xlu1 %2151 }
 0x3cb   : > { %v2153_v20 = vsel %vm407_vm2, %v2150_v2, %v6087_v22  ;;  %v2154_v26 = vsel %vm407_vm2, %v2152_v12, %v6084_v54  ;;  %v1890_v2 = vstv %s6288_s15  ;;  %v1770_v12 = vstv %s6290_s26  ;;  %s6573_s15 = sld [smem:[#allocation8 + $0x9]] }
 0x3cc   : > { %1895 = vrot.lane.b32.xlu0 %v1835_v16, %s8977_s25  ;;  %1897 = vrot.lane.b32.xlu1 %v1836_v10, %s8977_s25  ;;  %v1878_v16 = vstv %s6284_s11  ;;  %v1884_v10 = vstv %s6286_s19  ;;  %s6548_s11 = sld [smem:[#allocation8 + $0x50]] }
 0x3cd   : > { %9034 = sst [smem:[#allocation74_spill]] %s6540_s28 }
 0x3ce   : > { %s6554_s19 = sld [smem:[#allocation8 + $0x74]] }
 0x3cf   : > { %s6590_s26 = sld [smem:[#allocation8 + $0x2d]] }
 0x3d0   : > { %2157 = vrot.lane.b32.xlu0 %v2153_v20, %s8972_s22  ;;  %2159 = vrot.lane.b32.xlu1 %v2154_v26, %s8972_s22  ;;  %s7084_s28 = sld [smem:[#allocation8 + $0x8d]] }
 0x3d1   : > { %9037 = sst [smem:[#allocation89_spill]] %s6573_s15 }
 0x3d2   : > { %9035 = sst [smem:[#allocation35_spill]] %s6548_s11 }
 0x3d3   : > { %s6994_s15 = sld [smem:[#allocation8 + $0x1b]] }
 0x3d4   : > { %2213 = vrot.lane.b32.xlu0 %v2153_v20, %s8977_s25  ;;  %2215 = vrot.lane.b32.xlu1 %v2154_v26, %s8977_s25  ;;  %v1776_v20 = vstv %s6292_s30  ;;  %v1782_v26 = vstv %s6294_s4  ;;  %9036 = sst [smem:[#allocation111_spill]] %s6554_s19 }
 0x3d5   : > { %9038 = sst [smem:[#allocation90_spill]] %s6590_s26 }
 0x3d6   : > { %v2468_v41 = vpop.permute.xlu0 %2467  ;;  %v2470_v37 = vpop.permute.xlu1 %2469  ;;  %s6604_s30 = sld [smem:[#allocation8 + $0x51]] }
 0x3d7   : > { %v2471_v34 = vsel %vm407_vm2, %v2468_v41, %v6126_v9  ;;  %v2472_v17 = vsel %vm407_vm2, %v2470_v37, %v6124_v40  ;;  %v1788_v41 = vstv %s6296_s23  ;;  %v1767_v37 = vsel %vm377_vm3, %v6060_v62, 0.0  ;;  %s6618_s4 = sld [smem:[#allocation8 + $0x75]] }
 0x3d8   : > { %2475 = vrot.lane.b32.xlu0 %v2471_v34, %s8972_s22  ;;  %2477 = vrot.lane.b32.xlu1 %v2472_v17, %s8972_s22  ;;  %s6628_s23 = sld [smem:[#allocation8 + $0xb]] }
 0x3d9   : > { %s7024_s26 = sld [smem:[#allocation8 + $0x41]] }
 0x3da   : > { %v1728_v14 = vpop.permute.xlu0 %1727  ;;  %v1730_v51 = vpop.permute.xlu1 %1729 }
 0x3db   : > { %v1731_v53 = vsel %vm407_vm2, %v1728_v14, %v6060_v62  ;;  %v1732_v15 = vsel %vm407_vm2, %v1730_v51, %v6064_v57  ;;  %v6538_v14 = vmul.f32 %v1884_v10, %v6041_v28  ;;  %v6543_v51 = vmul.f32 %v1890_v2, %v6041_v28 }
 0x3dc   : > { %1735 = vrot.lane.b32.xlu0 %v1731_v53, %s8972_s22  ;;  %1737 = vrot.lane.b32.xlu1 %v1732_v15, %s8972_s22  ;;  %v1980_v62 = vstv %s6300_s5  ;;  %9039 = sst [smem:[#allocation109_spill]] %s6604_s30 }
 0x3dd   : > { %9040 = sst [smem:[#allocation110_spill]] %s6618_s4 }
 0x3de   : > { %v6404_v56 = vpop.permute.xlu0 %2785  ;;  %v6406_v3 = vpop.permute.xlu1 %2787  ;;  %9041 = sst [smem:[#allocation113_spill]] %s6628_s23 }
 0x3df   : > { %s6646_s5 = sld [smem:[#allocation8 + $0x2f]] }
 0x3e0   : > { %1793 = vrot.lane.b32.xlu0 %v1731_v53, %s8977_s25  ;;  %1795 = vrot.lane.b32.xlu1 %v1732_v15, %s8977_s25  ;;  %v1986_v53 = vstv %s6302_s12  ;;  %v1992_v15 = vstv %s6304_s10  ;;  %s6655_s12 = sld [smem:[#allocation8 + $0x53]] }
 0x3e1   : > { %s6665_s10 = sld [smem:[#allocation8 + $0x77]] }
 0x3e2   : > { %v1938_v19 = vpop.permute.xlu0 %1937  ;;  %v1940_v58 = vpop.permute.xlu1 %1939  ;;  %s7018_s23 = sld [smem:[#allocation8 + $0x1d]] }
 0x3e3   : > { %v1941_v23 = vsel %vm407_vm2, %v1938_v19, %v6100_v11  ;;  %v1942_v21 = vsel %vm407_vm2, %v1940_v58, %v6104_v46  ;;  %v1978_v19 = vsel %vm380_vm4, %v6104_v46, 0.0  ;;  %v1998_v58 = vstv %s6306_s24  ;;  %s6677_s24 = sld [smem:[#allocation8 + $0xf]] }
 0x3e4   : > { %2531 = vrot.lane.b32.xlu0 %v2471_v34, %s8977_s25  ;;  %2533 = vrot.lane.b32.xlu1 %v2472_v17, %s8977_s25  ;;  %v6532_v34 = vmul.f32 %v1872_v18, %v6041_v28  ;;  %v6535_v17 = vmul.f32 %v1878_v16, %v6041_v28  ;;  %v6564_v28 = vsel %vm407_vm2, %v6404_v56, %v6134_v25  ;;  %s7054_s30 = sld [smem:[#allocation8 + $0x68]] }
 0x3e5   : > { %v6571_v46 = vmul.f32 %v1770_v12, %v1767_v37  ;;  %v6584_v56 = vmul.f32 %v1776_v20, %v1767_v37  ;;  %9042 = sst [smem:[#allocation38_spill]] %s6646_s5 }
 0x3e6   : > { %v2046_v43 = vpop.permute.xlu0 %2045  ;;  %v2048_v8 = vpop.permute.xlu1 %2047  ;;  %9046 = sst [smem:[#allocation143_spill]] %s6655_s12 }
 0x3e7   : > { %v2049_v60 = vsel %vm407_vm2, %v2046_v43, %v6114_v1  ;;  %v2050_v7 = vsel %vm407_vm2, %v2048_v8, %v6118_v6  ;;  %v2085_v43 = vsel %vm377_vm3, %v6114_v1, 0.0  ;;  %v6569_v8 = vsel %vm407_vm2, %v6406_v3, %v6132_v30  ;;  %9051 = sst [smem:[#allocation41_spill]] %s6665_s10 }
 0x3e8   : > { %1945 = vrot.lane.b32.xlu0 %v1941_v23, %s8972_s22  ;;  %1947 = vrot.lane.b32.xlu1 %v1942_v21, %s8972_s22  ;;  %v6586_v3 = vmul.f32 %v1782_v26, %v1767_v37  ;;  %s7078_s12 = sld [smem:[#allocation8 + $0x69]] }
 0x3e9   : > { %9055 = sst [smem:[#allocation80_spill]] %s6677_s24 }
 0x3ea   : > { %v2256_v48 = vpop.permute.xlu0 %2255  ;;  %v2258_v38 = vpop.permute.xlu1 %2257  ;;  %s7012_s24 = sld [smem:[#allocation8 + $0x87]] }
 0x3eb   : > { %v2259_v0 = vsel %vm407_vm2, %v2256_v48, %v6144_v55  ;;  %v2260_v27 = vsel %vm407_vm2, %v2258_v38, %v6148_v47  ;;  %v6588_v48 = vmul.f32 %v1788_v41, %v1767_v37  ;;  %v6596_v38 = vmul.f32 %v1776_v20, %v6064_v57  ;;  %s7103_s5 = sld [smem:[#allocation8 + $0x6b]] }
 0x3ec   : > { %2003 = vrot.lane.b32.xlu0 %v1941_v23, %s8977_s25  ;;  %2005 = vrot.lane.b32.xlu1 %v1942_v21, %s8977_s25  ;;  %v2088_v23 = vstv %s6308_s14  ;;  %v2094_v21 = vstv %s6310_s0  ;;  %v6644_v20 = vmul.f32 %v1998_v58, %v6100_v11  ;;  %s9058_s14 = sld [smem:[#allocation48_spill]] }
 0x3ed   : > { %v2106_v37 = vstv %s6314_s18  ;;  %v6661_v4 = vmul.f32 %v2094_v21, %v2085_v43  ;;  %s9059_s0 = sld [smem:[#allocation49_spill]] }
 0x3ee   : > { %v2364_v45 = vpop.permute.xlu0 %2363  ;;  %v2366_v29 = vpop.permute.xlu1 %2365  ;;  %s6705_s18 = sld [smem:[#allocation8 + $0x7b]] }
 0x3ef   : > { %v2367_v31 = vsel %vm407_vm2, %v2364_v45, %v6158_v5  ;;  %v2368_v63 = vsel %vm407_vm2, %v2366_v29, %v6162_v61  ;;  %v6607_v45 = vmul.f32 %v1872_v18, %v6047_v32  ;;  %v6610_v29 = vmul.f32 %v1878_v16, %v6047_v32  ;;  %9049 = vst [vmem:[#allocation150_spill] sm:$0xff] %v6661_v4 }
 0x3f0   : > { %2053 = vrot.lane.b32.xlu0 %v2049_v60, %s8972_s22  ;;  %2055 = vrot.lane.b32.xlu1 %v2050_v7, %s8972_s22  ;;  %v6625_v18 = vmul.f32 %v1980_v62, %v6100_v11  ;;  %v2100_v16 = vstv %s6312_s9  ;;  %s6700_s9 = sld [smem:[#allocation8 + $0x57]] }
 0x3f2   : > { %v2574_v1 = vpop.permute.xlu0 %2573 }
 0x3f4   : > { %2111 = vrot.lane.b32.xlu0 %v2049_v60, %s8977_s25  ;;  %2113 = vrot.lane.b32.xlu1 %v2050_v7, %s8977_s25  ;;  %v6578_v60 = vsel %vm380_vm4, %v6148_v47, 0.0  ;;  %v2576_v7 = vpop.permute.xlu1 %2575  ;;  %v6593_v47 = vmul.f32 %v1770_v12, %v6064_v57  ;;  %9066 = sst [smem:[#allocation39_spill]] %s6705_s18 }
 0x3f5   : > { %v2578_v12 = vsel %vm407_vm2, %v2576_v7, %v6176_v35  ;;  %v6659_v7 = vmul.f32 %v2088_v23, %v2085_v43  ;;  %s6838_s18 = sld [smem:[#allocation8 + $0x5c]] }
 0x3f6   : > { %9064 = sst [smem:[#allocation37_spill]] %s6700_s9 }
 0x3f7   : > { %9048 = vst [vmem:[#allocation149_spill] sm:$0xff] %v6659_v7  ;;  %s6718_s9 = sld [smem:[#allocation8 + $0x11]] }
 0x3f8   : > { %2263 = vrot.lane.b32.xlu0 %v2259_v0, %s8972_s22  ;;  %2265 = vrot.lane.b32.xlu1 %v2260_v27, %s8972_s22  ;;  %v2684_v7 = vpop.permute.xlu1 %2683 }
 0x3fb   : > { %9119 = sst [smem:[#allocation44_spill]] %s6838_s18 }
 0x3fc   : > { %2321 = vrot.lane.b32.xlu0 %v2259_v0, %s8977_s25  ;;  %2323 = vrot.lane.b32.xlu1 %v2260_v27, %s8977_s25  ;;  %v6599_v0 = vmul.f32 %v1782_v26, %v6064_v57  ;;  %v6602_v27 = vmul.f32 %v1788_v41, %v6064_v57  ;;  %v2577_v57 = vsel %vm407_vm2, %v2574_v1, %v6172_v13  ;;  %s6860_s18 = sld [smem:[#allocation8 + $0x1e]] }
 0x3fd   : > { %v6648_v26 = vmul.f32 %v1980_v62, %v1978_v19  ;;  %v6652_v41 = vmul.f32 %v1992_v15, %v1978_v19  ;;  %v6657_v1 = vmul.f32 %v1998_v58, %v1978_v19  ;;  %v6668_v62 = vmul.f32 %v2088_v23, %v6118_v6  ;;  %v2682_v58 = vpop.permute.xlu0 %2681  ;;  %9071 = sst [smem:[#allocation139_spill]] %s6718_s9 }
 0x3fe   : > { %v6681_v23 = vmul.f32 %v2106_v37, %v2085_v43  ;;  %s6755_s9 = sld [smem:[#allocation8 + $0x7d]] }
 0x3ff   : > { %9043 = vst [vmem:[#allocation145_spill] sm:$0xff] %v6648_v26  ;;  %9045 = vst [vmem:[#allocation147_spill] sm:$0xff] %v6652_v41  ;;  %s9236_s19 = sld [smem:[#allocation44_spill]] }
 0x400   : > { %2371 = vrot.lane.b32.xlu0 %v2367_v31, %s8972_s22  ;;  %2373 = vrot.lane.b32.xlu1 %v2368_v63, %s8972_s22  ;;  %9047 = vst [vmem:[#allocation148_spill] sm:$0xff] %v6657_v1  ;;  %9052 = vst [vmem:[#allocation151_spill] sm:$0xff] %v6668_v62 }
 0x401   : > { %9056 = vst [vmem:[#allocation114_spill] sm:$0xff] %v6681_v23  ;;  %v2316_v23 = vstv %s9059_s0  ;;  %s9080_s0 = sld [smem:[#allocation92_spill]] }
 0x402   : > { %9124 = sst [smem:[#allocation49_spill]] %s6860_s18 }
 0x403   : > { %s9146_s18 = sld [smem:[#allocation86_spill]] }
 0x404   : > { %2429 = vrot.lane.b32.xlu0 %v2367_v31, %s8977_s25  ;;  %2431 = vrot.lane.b32.xlu1 %v2368_v63, %s8977_s25  ;;  %v6613_v31 = vmul.f32 %v1884_v10, %v6047_v32  ;;  %v6616_v63 = vmul.f32 %v1890_v2, %v6047_v32  ;;  %v6633_v32 = vsel %vm377_vm3, %v6158_v5, 0.0  ;;  %v6638_v10 = vmul.f32 %v1986_v53, %v6100_v11  ;;  %9083 = sst [smem:[#allocation81_spill]] %s6755_s9 }
 0x405   : > { %v6641_v2 = vmul.f32 %v1992_v15, %v6100_v11  ;;  %v6650_v5 = vmul.f32 %v1986_v53, %v1978_v19  ;;  %v6663_v11 = vmul.f32 %v2100_v16, %v2085_v43  ;;  %v6671_v53 = vmul.f32 %v2094_v21, %v6118_v6  ;;  %s9093_s9 = sld [smem:[#allocation55_spill]] }
 0x406   : > { %v6674_v15 = vmul.f32 %v2100_v16, %v6118_v6  ;;  %v2190_v19 = vstv %s6298_s16  ;;  %v6684_v21 = vmul.f32 %v2106_v37, %v6118_v6  ;;  %v2202_v16 = vstv %s6318_s6  ;;  %s6688_s16 = sld [smem:[#allocation8 + $0x33]] }
 0x407   : > { %9044 = vst [vmem:[#allocation146_spill] sm:$0xff] %v6650_v5  ;;  %9050 = vst [vmem:[#allocation183_spill] sm:$0xff] %v6663_v11  ;;  %v2208_v43 = vstv %s6320_s13  ;;  %v2298_v37 = vstv %s6326_s1  ;;  %s9069_s6 = sld [smem:[#allocation51_spill]] }
 0x408   : > { %2793 = vrot.lane.b32.xlu0 %v6564_v28, %s8972_s22  ;;  %2795 = vrot.lane.b32.xlu1 %v6569_v8, %s8972_s22  ;;  %9053 = vst [vmem:[#allocation152_spill] sm:$0xff] %v6671_v53  ;;  %9054 = vst [vmem:[#allocation112_spill] sm:$0xff] %v6674_v15  ;;  %v2196_v53 = vstv %s6316_s20  ;;  %v6691_v15 = vmul.f32 %v2190_v19, %v6087_v22  ;;  %v6703_v6 = vmul.f32 %v2208_v43, %v6087_v22  ;;  %s9068_s20 = sld [smem:[#allocation50_spill]] }
 0x409   : > { %9057 = vst [vmem:[#allocation116_spill] sm:$0xff] %v6684_v21  ;;  %v6694_v62 = vmul.f32 %v2196_v53, %v6087_v22  ;;  %s9070_s13 = sld [smem:[#allocation52_spill]]  ;;  %v2310_v21 = vstv %s9058_s14 }
 0x40a   : > { %9061 = vst [vmem:[#allocation117_spill] sm:$0xff] %v6691_v15  ;;  %9065 = vst [vmem:[#allocation118_spill] sm:$0xff] %v6703_v6  ;;  %v2304_v15 = vstv %s6328_s27  ;;  %s9072_s1 = sld [smem:[#allocation53_spill]] }
 0x40b   : > { %9062 = vst [vmem:[#allocation153_spill] sm:$0xff] %v6694_v62  ;;  %v2685_v62 = vsel %vm407_vm2, %v2682_v58, %v6186_v42  ;;  %v6731_v58 = vmul.f32 %v2202_v16, %v6084_v54  ;;  %s6736_s27 = sld [smem:[#allocation8 + $0x35]]  ;;  %v6747_v4 = vmul.f32 %v2304_v15, %v6144_v55 }
 0x40c   : > { %2581 = vrot.lane.b32.xlu0 %v2577_v57, %s8972_s22  ;;  %2583 = vrot.lane.b32.xlu1 %v2578_v12, %s8972_s22  ;;  %9060 = sst [smem:[#allocation36_spill]] %s6688_s16 }
 0x40d   : > { %9074 = vst [vmem:[#allocation156_spill] sm:$0xff] %v6731_v58  ;;  %s6741_s14 = sld [smem:[#allocation8 + $0x59]]  ;;  %v2412_v6 = vstv %s9069_s6  ;;  %9079 = vst [vmem:[#allocation179_spill] sm:$0xff] %v6747_v4  ;;  %v6768_v4 = vmul.f32 %v2316_v23, %v6578_v60 }
 0x40e   : > { %s6770_s6 = sld [smem:[#allocation8 + $0x12]] }
 0x40f   : > { %v2418_v11 = vstv %s9070_s13  ;;  %9088 = vst [vmem:[#allocation161_spill] sm:$0xff] %v6768_v4  ;;  %s9090_s13 = sld [smem:[#allocation54_spill]] }
 0x410   : > { %2639 = vrot.lane.b32.xlu0 %v2577_v57, %s8977_s25  ;;  %2641 = vrot.lane.b32.xlu1 %v2578_v12, %s8977_s25  ;;  %v6697_v57 = vmul.f32 %v2202_v16, %v6087_v22  ;;  %v6708_v12 = vmul.f32 %v2190_v19, %v6084_v54  ;;  %v6723_v22 = vsel %vm380_vm4, %v6176_v35, 0.0  ;;  %v6728_v19 = vmul.f32 %v2196_v53, %v6084_v54  ;;  %s9239_s4 = sld [smem:[#allocation49_spill]] }
 0x411   : > { %9076 = sst [smem:[#allocation45_spill]] %s6736_s27  ;;  %v2406_v35 = vstv %s9068_s20  ;;  %v6750_v53 = vmul.f32 %v2310_v21, %v6144_v55  ;;  %v2424_v16 = vstv %s9072_s1 }
 0x412   : > { %9063 = vst [vmem:[#allocation154_spill] sm:$0xff] %v6697_v57  ;;  %9067 = vst [vmem:[#allocation120_spill] sm:$0xff] %v6708_v12  ;;  %v2686_v57 = vsel %vm407_vm2, %v2684_v7, %v6190_v33  ;;  %v6734_v7 = vmul.f32 %v2208_v43, %v6084_v54  ;;  %v6739_v12 = vmul.f32 %v2298_v37, %v6144_v55  ;;  %s9085_s20 = sld [smem:[#allocation47_spill]] }
 0x413   : > { %9073 = vst [vmem:[#allocation155_spill] sm:$0xff] %v6728_v19  ;;  %9078 = sst [smem:[#allocation141_spill]] %s6741_s14  ;;  %9081 = vst [vmem:[#allocation121_spill] sm:$0xff] %v6750_v53  ;;  %v6753_v54 = vmul.f32 %v2316_v23, %v6144_v55  ;;  %v6759_v43 = vmul.f32 %v2298_v37, %v6578_v60  ;;  %v6777_v55 = vmul.f32 %v2406_v35, %v6633_v32 }
 0x414   : > { %2689 = vrot.lane.b32.xlu0 %v2685_v62, %s8972_s22  ;;  %2691 = vrot.lane.b32.xlu1 %v2686_v57, %s8972_s22  ;;  %9075 = vst [vmem:[#allocation157_spill] sm:$0xff] %v6734_v7  ;;  %9077 = vst [vmem:[#allocation158_spill] sm:$0xff] %v6739_v12  ;;  %v6762_v12 = vmul.f32 %v2304_v15, %v6578_v60  ;;  %v6765_v7 = vmul.f32 %v2310_v21, %v6578_v60  ;;  %9089 = sst [smem:[#allocation40_spill]] %s6770_s6  ;;  %v2508_v60 = vstv %s9080_s0 }
 0x415   : > { %9082 = vst [vmem:[#allocation159_spill] sm:$0xff] %v6753_v54  ;;  %9084 = vst [vmem:[#allocation160_spill] sm:$0xff] %v6759_v43  ;;  %s6774_s1 = sld [smem:[#allocation8 + $0x36]]  ;;  %v6780_v15 = vmul.f32 %v2412_v6, %v6633_v32  ;;  %v6783_v21 = vmul.f32 %v2418_v11, %v6633_v32  ;;  %v6792_v23 = vmul.f32 %v2406_v35, %v6162_v61 }
 0x416   : > { %9086 = vst [vmem:[#allocation123_spill] sm:$0xff] %v6762_v12  ;;  %9087 = vst [vmem:[#allocation163_spill] sm:$0xff] %v6765_v7  ;;  %s9096_s14 = sld [smem:[#allocation56_spill]] }
 0x417   : > { %9092 = vst [vmem:[#allocation164_spill] sm:$0xff] %v6777_v55  ;;  %9094 = vst [vmem:[#allocation162_spill] sm:$0xff] %v6780_v15  ;;  %s6786_s6 = sld [smem:[#allocation8 + $0x5a]]  ;;  %v6801_v15 = vmul.f32 %v2418_v11, %v6162_v61  ;;  %v6807_v55 = vmul.f32 %v2508_v60, %v6126_v9 }
 0x418   : > { %2747 = vrot.lane.b32.xlu0 %v2685_v62, %s8977_s25  ;;  %2749 = vrot.lane.b32.xlu1 %v2686_v57, %s8977_s25  ;;  %9095 = vst [vmem:[#allocation187_spill] sm:$0xff] %v6783_v21  ;;  %v6789_v62 = vmul.f32 %v2424_v16, %v6633_v32  ;;  %9099 = vst [vmem:[#allocation125_spill] sm:$0xff] %v6792_v23  ;;  %v6795_v57 = vmul.f32 %v2412_v6, %v6162_v61  ;;  %v2514_v37 = vstv %s9085_s20  ;;  %s6810_s0 = sld [smem:[#allocation8 + $0x14]] }
 0x419   : > { %9102 = vst [vmem:[#allocation165_spill] sm:$0xff] %v6801_v15  ;;  %v6804_v21 = vmul.f32 %v2424_v16, %v6162_v61  ;;  %9104 = vst [vmem:[#allocation166_spill] sm:$0xff] %v6807_v55  ;;  %v2520_v32 = vstv %s9090_s13  ;;  %v6813_v35 = vmul.f32 %v2514_v37, %v6126_v9  ;;  %s9108_s27 = sld [smem:[#allocation58_spill]]  ;;  %v2526_v6 = vstv %s9093_s9  ;;  %v2892_v16 = vpop.permute.xlu0 %2891  ;;  %v2894_v55 = vpop.permute.xlu1 %2893 }
 0x41a   : > { %9098 = vst [vmem:[#allocation189_spill] sm:$0xff] %v6789_v62  ;;  %9100 = vst [vmem:[#allocation127_spill] sm:$0xff] %v6795_v57  ;;  %s9109_s20 = sld [smem:[#allocation75_spill]]  ;;  %v6817_v57 = vmul.f32 %v2508_v60, %v6124_v40  ;;  %v2721_v61 = vsel %vm377_vm3, %v6186_v42, 0.0  ;;  %v6830_v60 = vmul.f32 %v2520_v32, %v6126_v9  ;;  %v6836_v44 = vmul.f32 %v2514_v37, %v6124_v40 }
 0x41b   : > { %9091 = sst [smem:[#allocation42_spill]] %s6774_s1  ;;  %9103 = vst [vmem:[#allocation167_spill] sm:$0xff] %v6804_v21  ;;  %9107 = vst [vmem:[#allocation129_spill] sm:$0xff] %v6813_v35  ;;  %v6841_v42 = vmul.f32 %v2520_v32, %v6124_v40  ;;  %v2895_v37 = vsel %vm407_vm2, %v2892_v16, %v6200_v52  ;;  %v2896_v32 = vsel %vm407_vm2, %v2894_v55, %v6204_v36 }
 0x41c   : > { %s6798_s1 = sld [smem:[#allocation8 + $0x7e]]  ;;  %9110 = vst [vmem:[#allocation168_spill] sm:$0xff] %v6817_v57  ;;  %v2616_v11 = vstv %s9096_s14  ;;  %2849 = vrot.lane.b32.xlu0 %v6564_v28, %s8977_s25  ;;  %2851 = vrot.lane.b32.xlu1 %v6569_v8, %s8977_s25  ;;  %9114 = vst [vmem:[#allocation130_spill] sm:$0xff] %v6830_v60  ;;  %v6833_v57 = vmul.f32 %v2526_v6, %v6126_v9  ;;  %v6849_v60 = vmul.f32 %v2526_v6, %v6124_v40 }
 0x41d   : > { %9097 = sst [smem:[#allocation46_spill]] %s6786_s6  ;;  %9118 = vst [vmem:[#allocation172_spill] sm:$0xff] %v6836_v44  ;;  %9120 = vst [vmem:[#allocation131_spill] sm:$0xff] %v6841_v42  ;;  %v6852_v9 = vmul.f32 %v2616_v11, %v6172_v13  ;;  %v2932_v40 = vsel %vm380_vm4, %v6204_v36, 0.0  ;;  %v6883_v50 = vmul.f32 %v2616_v11, %v6723_v22 }
 0x41e   : > { %9105 = sst [smem:[#allocation43_spill]] %s6810_s0  ;;  %9116 = vst [vmem:[#allocation171_spill] sm:$0xff] %v6833_v57  ;;  %9122 = vst [vmem:[#allocation169_spill] sm:$0xff] %v6849_v60 }
 0x41f   : > { %s9106_s6 = sld [smem:[#allocation57_spill]]  ;;  %v2628_v8 = vstv %s9108_s27  ;;  %9123 = vst [vmem:[#allocation170_spill] sm:$0xff] %v6852_v9  ;;  %9132 = vst [vmem:[#allocation176_spill] sm:$0xff] %v6883_v50 }
 0x420   : > { %s9112_s13 = sld [smem:[#allocation77_spill]]  ;;  %v2634_v35 = vstv %s9109_s20  ;;  %2899 = vrot.lane.b32.xlu0 %v2895_v37, %s8972_s22  ;;  %2901 = vrot.lane.b32.xlu1 %v2896_v32, %s8972_s22  ;;  %v6875_v55 = vmul.f32 %v2628_v8, %v6172_v13  ;;  %v6889_v9 = vmul.f32 %v2628_v8, %v6723_v22 }
 0x421   : > { %s6827_s9 = sld [smem:[#allocation8 + $0x38]]  ;;  %v6878_v16 = vmul.f32 %v2634_v35, %v6172_v13 }
 0x422   : > { %9101 = sst [smem:[#allocation82_spill]] %s6798_s1  ;;  %9128 = vst [vmem:[#allocation173_spill] sm:$0xff] %v6875_v55  ;;  %9134 = vst [vmem:[#allocation180_spill] sm:$0xff] %v6889_v9 }
 0x423   : > { %s9111_s1 = sld [smem:[#allocation76_spill]]  ;;  %9130 = vst [vmem:[#allocation175_spill] sm:$0xff] %v6878_v16 }
 0x424   : > { %s9115_s14 = sld [smem:[#allocation78_spill]]  ;;  %2957 = vrot.lane.b32.xlu0 %v2895_v37, %s8977_s25  ;;  %2959 = vrot.lane.b32.xlu1 %v2896_v32, %s8977_s25 }
 0x425   : > { %s9117_s0 = sld [smem:[#allocation59_spill]]  ;;  %v2622_v28 = vstv %s9106_s6 }
 0x426   : > { %v2730_v21 = vstv %s9112_s13  ;;  %s6869_s27 = sld [smem:[#allocation8 + $0x42]]  ;;  %v6872_v6 = vmul.f32 %v2622_v28, %v6172_v13  ;;  %v6886_v36 = vmul.f32 %v2622_v28, %v6723_v22 }
 0x427   : > { %9113 = sst [smem:[#allocation91_spill]] %s6827_s9  ;;  %v6898_v16 = vmul.f32 %v2730_v21, %v2721_v61 }
 0x428   : > { %s6846_s9 = sld [smem:[#allocation8 + $0x80]]  ;;  %9126 = vst [vmem:[#allocation134_spill] sm:$0xff] %v6872_v6  ;;  %9133 = vst [vmem:[#allocation174_spill] sm:$0xff] %v6886_v36  ;;  %v6892_v6 = vmul.f32 %v2634_v35, %v6723_v22  ;;  %v6910_v35 = vmul.f32 %v2730_v21, %v6190_v33 }
 0x429   : > { %v2724_v57 = vstv %s9111_s1  ;;  %s9127_s6 = sld [smem:[#allocation60_spill]]  ;;  %9140 = vst [vmem:[#allocation177_spill] sm:$0xff] %v6898_v16 }
 0x42a   : > { %v2736_v42 = vstv %s9115_s14  ;;  %s9129_s1 = sld [smem:[#allocation61_spill]]  ;;  %9135 = vst [vmem:[#allocation135_spill] sm:$0xff] %v6892_v6  ;;  %v6896_v13 = vmul.f32 %v2724_v57, %v2721_v61  ;;  %v6907_v22 = vmul.f32 %v2724_v57, %v6190_v33  ;;  %9148 = vst [vmem:[#allocation140_spill] sm:$0xff] %v6910_v35 }
 0x42b   : > { %v2742_v44 = vstv %s9117_s0  ;;  %s6880_s0 = sld [smem:[#allocation8 + $0x66]]  ;;  %v6900_v55 = vmul.f32 %v2736_v42, %v2721_v61 }
 0x42c   : > { %9125 = sst [smem:[#allocation50_spill]] %s6869_s27  ;;  %9139 = vst [vmem:[#allocation137_spill] sm:$0xff] %v6896_v13  ;;  %v6902_v11 = vmul.f32 %v2742_v44, %v2721_v61  ;;  %9147 = vst [vmem:[#allocation138_spill] sm:$0xff] %v6907_v22  ;;  %v6919_v61 = vmul.f32 %v2736_v42, %v6190_v33 }
 0x42d   : > { %s9136_s22 = sld [smem:[#allocation62_spill]]  ;;  %9141 = vst [vmem:[#allocation185_spill] sm:$0xff] %v6900_v55  ;;  %v2946_v55 = vstv %s9146_s18 }
 0x42e   : > { %9121 = sst [smem:[#allocation48_spill]] %s6846_s9  ;;  %9143 = vst [vmem:[#allocation181_spill] sm:$0xff] %v6902_v11  ;;  %9151 = vst [vmem:[#allocation178_spill] sm:$0xff] %v6919_v61  ;;  %v6922_v11 = vmul.f32 %v2742_v44, %v6190_v33 }
 0x42f   : > { %s6894_s20 = sld [smem:[#allocation8 + $0x8a]]  ;;  %v2826_v28 = vstv %s9127_s6 }
 0x430   : > { %s9138_s13 = sld [smem:[#allocation83_spill]]  ;;  %v2832_v8 = vstv %s9129_s1  ;;  %9152 = vst [vmem:[#allocation132_spill] sm:$0xff] %v6922_v11  ;;  %v6929_v21 = vmul.f32 %v2826_v28, %v6134_v25 }
 0x431   : > { %9131 = sst [smem:[#allocation51_spill]] %s6880_s0  ;;  %v6937_v32 = vmul.f32 %v2832_v8, %v6134_v25  ;;  %v6952_v11 = vmul.f32 %v2832_v8, %v6132_v30  ;;  %v6969_v8 = vmul.f32 %v2946_v55, %v6200_v52 }
 0x432   : > { %s9142_s14 = sld [smem:[#allocation84_spill]]  ;;  %9154 = vst [vmem:[#allocation182_spill] sm:$0xff] %v6929_v21  ;;  %v6949_v21 = vmul.f32 %v2826_v28, %v6132_v30 }
 0x433   : > { %s9144_s0 = sld [smem:[#allocation85_spill]]  ;;  %v2838_v57 = vstv %s9136_s22  ;;  %9156 = vst [vmem:[#allocation34_spill] sm:$0xff] %v6937_v32  ;;  %9164 = vst [vmem:[#allocation144_spill] sm:$0xff] %v6952_v11 }
 0x434   : > { %s6904_s27 = sld [smem:[#allocation8 + $0x18]]  ;;  %v6940_v42 = vmul.f32 %v2838_v57, %v6134_v25  ;;  %9162 = vst [vmem:[#allocation184_spill] sm:$0xff] %v6949_v21  ;;  %v6955_v32 = vmul.f32 %v2838_v57, %v6132_v30  ;;  %9175 = vst [vmem:[#allocation194_spill] sm:$0xff] %v6969_v8 }
 0x435   : > { %9137 = sst [smem:[#allocation52_spill]] %s6894_s20 }
 0x436   : > { %s9149_s20 = sld [smem:[#allocation63_spill]]  ;;  %v2844_v22 = vstv %s9138_s13  ;;  %9157 = vst [vmem:[#allocation142_spill] sm:$0xff] %v6940_v42  ;;  %9166 = vst [vmem:[#allocation188_spill] sm:$0xff] %v6955_v32 }
 0x437   : > { %s6916_s9 = sld [smem:[#allocation8 + $0x3c]]  ;;  %v6943_v33 = vmul.f32 %v2844_v22, %v6134_v25  ;;  %v6958_v42 = vmul.f32 %v2844_v22, %v6132_v30 }
 0x438   : > { %v2934_v35 = vstv %s9142_s14  ;;  %s6934_s6 = sld [smem:[#allocation8 + $0x84]] }
 0x439   : > { %v2940_v37 = vstv %s9144_s0  ;;  %9158 = vst [vmem:[#allocation186_spill] sm:$0xff] %v6943_v33  ;;  %s6946_s1 = sld [smem:[#allocation8 + $0x1a]]  ;;  %9167 = vst [vmem:[#allocation33_spill] sm:$0xff] %v6958_v42  ;;  %v6963_v25 = vmul.f32 %v2934_v35, %v6200_v52  ;;  %v6971_v57 = vmul.f32 %v2934_v35, %v2932_v40 }
 0x43a   : > { %9145 = sst [smem:[#allocation53_spill]] %s6904_s27  ;;  %v6966_v28 = vmul.f32 %v2940_v37, %v6200_v52  ;;  %v6978_v22 = vmul.f32 %v2940_v37, %v2932_v40 }
 0x43b   : > { %s6926_s27 = sld [smem:[#allocation8 + $0x60]]  ;;  %9171 = vst [vmem:[#allocation192_spill] sm:$0xff] %v6963_v25  ;;  %9176 = vst [vmem:[#allocation195_spill] sm:$0xff] %v6971_v57  ;;  %v6980_v25 = vmul.f32 %v2946_v55, %v2932_v40  ;;  %v1840_v55 = vpop.permute.xlu0 %1839  ;;  %v9266_v57 = vstv %s9260_s17 }
 0x43c   : > { %v2952_v44 = vstv %s9149_s20  ;;  %s6960_s20 = sld [smem:[#allocation8 + $0x3e]]  ;;  %9173 = vst [vmem:[#allocation193_spill] sm:$0xff] %v6966_v28  ;;  %9182 = vst [vmem:[#allocation197_spill] sm:$0xff] %v6978_v22  ;;  %v1845_v35 = vsel %vm381_vm5, %v1840_v55, 0.0  ;;  %v9274_v33 = vmov %v9266_v57 }
 0x43d   : > { %9150 = sst [smem:[#allocation92_spill]] %s6916_s9  ;;  %v6976_v30 = vmul.f32 %v2952_v44, %v6200_v52  ;;  %9184 = vst [vmem:[#allocation198_spill] sm:$0xff] %v6980_v25  ;;  %v6982_v28 = vmul.f32 %v2952_v44, %v2932_v40  ;;  %v1842_v40 = vpop.permute.xlu1 %1841  ;;  %v7136_v37 = vmul.f32 %v9266_v57, %v1845_v35 }
 0x43e   : > { %9155 = sst [smem:[#allocation54_spill]] %s6934_s6  ;;  %v1846_v8 = vsel %vm381_vm5, %v1842_v40, 0.0 }
 0x43f   : > { %9160 = sst [smem:[#allocation55_spill]] %s6946_s1  ;;  %9180 = vst [vmem:[#allocation196_spill] sm:$0xff] %v6976_v30  ;;  %9185 = vst [vmem:[#allocation199_spill] sm:$0xff] %v6982_v28  ;;  %v1896_v44 = vpop.permute.xlu0 %1895  ;;  %v7156_v57 = vmul.f32 %v9274_v33, %v1846_v8 }
 0x440   : > { %s6973_s9 = sld [smem:[#allocation8 + $0x62]] }
 0x441   : > { %9153 = sst [smem:[#allocation47_spill]] %s6926_s27  ;;  %v1898_v25 = vpop.permute.xlu1 %1897 }
 0x442   : > { %9169 = sst [smem:[#allocation56_spill]] %s6960_s20  ;;  %v9647_v59 = vld [vmem:[#allocation195_spill] sm:$0xff] }
 0x443   : > { %9194 = sst [smem:[#allocation75_spill]] %s6994_s15 }
 0x444   : > { %s7000_s0 = sld [smem:[#allocation8 + $0x3f]] }
 0x445   : > { %s7006_s6 = sld [smem:[#allocation8 + $0x63]]  ;;  %v2160_v61 = vpop.permute.xlu1 %2159 }
 0x446   : > { %9178 = sst [smem:[#allocation57_spill]] %s6973_s9 }
 0x447   : > { %s6988_s9 = sld [smem:[#allocation8 + $0x86]] }
 0x448   : > { %9209 = sst [smem:[#allocation78_spill]] %s7024_s26 }
 0x449   : > { %s7030_s18 = sld [smem:[#allocation8 + $0x65]]  ;;  %v2216_v60 = vpop.permute.xlu1 %2215 }
 0x44a   : > { %9198 = sst [smem:[#allocation76_spill]] %s7000_s0 }
 0x44b   : > { %9202 = sst [smem:[#allocation77_spill]] %s7006_s6 }
 0x44c   : > { %9218 = sst [smem:[#allocation59_spill]] %s7036_s21 }
 0x44d   : > { %9190 = sst [smem:[#allocation58_spill]] %s6988_s9 }
 0x44e   : > { %s7042_s20 = sld [smem:[#allocation8 + $0x20]] }
 0x44f   : > { %9228 = sst [smem:[#allocation61_spill]] %s7048_s3 }
 0x450   : > { %s9229_s10 = sld [smem:[#allocation40_spill]] }
 0x451   : > { %s9230_s8 = sld [smem:[#allocation42_spill]] }
 0x452   : > { %9233 = sst [smem:[#allocation62_spill]] %s7054_s30 }
 0x453   : > { %s9235_s29 = sld [smem:[#allocation91_spill]] }
 0x454   : > { %9223 = sst [smem:[#allocation60_spill]] %s7042_s20 }
 0x455   : > { %s9234_s20 = sld [smem:[#allocation43_spill]] }
 0x456   : > { %s7060_s22 = sld [smem:[#allocation8 + $0x8c]] }
 0x457   : > { %s7066_s14 = sld [smem:[#allocation8 + $0x21]] }
 0x458   : > { %s9242_s30 = sld [smem:[#allocation52_spill]] }
 0x459   : > { %s7072_s16 = sld [smem:[#allocation8 + $0x45]] }
 0x45a   : > { %s9248_s0 = sld [smem:[#allocation55_spill]] }
 0x45b   : > { %9251 = sst [smem:[#allocation85_spill]] %s7078_s12 }
 0x45c   : > { %9238 = sst [smem:[#allocation83_spill]] %s7060_s22 }
 0x45d   : > { %s9252_s11 = sld [smem:[#allocation76_spill]] }
 0x45e   : > { %9253 = sst [smem:[#allocation86_spill]] %s7084_s28 }
 0x45f   : > { %9246 = sst [smem:[#allocation84_spill]] %s7072_s16 }
 0x460   : > { %s7096_s25 = sld [smem:[#allocation8 + $0x47]] }
 0x461   : > { %s9255_s27 = sld [smem:[#allocation64_spill]] }
 0x462   : > { %s9256_s22 = sld [smem:[#allocation65_spill]] }
 0x463   : > { %s9259_s9 = sld [smem:[#allocation66_spill]] }
 0x464   : > { %s7110_s15 = sld [smem:[#allocation8 + $0x8f]] }
 0x465   : > { %s7116_s6 = sld [smem:[#allocation12]] }
 0x466   : > { %s7128_s26 = sld [smem:[#allocation14]] }
 0x467   : > { %v9262_v40 = vstv %s9255_s27  ;;  %s9267_s3 = sld [smem:[#allocation93_spill]] }
 0x468   : > { %v7120_v30 = vmul.f32 %v9262_v40, %v1845_v35  ;;  %v9263_v32 = vstv %s9256_s22  ;;  %s9268_s13 = sld [smem:[#allocation94_spill]]  ;;  %v7140_v28 = vmul.f32 %v9262_v40, %v1846_v8  ;;  %v9271_v55 = vstv %s9256_s22  ;;  %v2158_v40 = vpop.permute.xlu0 %2157 }
 0x469   : > { %v7124_v11 = vmul.f32 %v9263_v32, %v1845_v35  ;;  %v9265_v22 = vstv %s9259_s9  ;;  %s9269_s1 = sld [smem:[#allocation95_spill]]  ;;  %v1901_v32 = vsel %vm382_vm6, %v1896_v44, 0.0  ;;  %v7148_v42 = vmul.f32 %v9271_v55, %v1846_v8 }
 0x46a   : > { %v7132_v52 = vmul.f32 %v9265_v22, %v1845_v35  ;;  %9270 = sst [smem:[#allocation42_spill]] %s7144_s2  ;;  %v9272_v21 = vmov %v9265_v22  ;;  %v1902_v35 = vsel %vm382_vm6, %v1898_v25, 0.0  ;;  %v2163_v44 = vsel %vm381_vm5, %v2158_v40, 0.0 }
 0x46b   : > { %9261 = sst [smem:[#allocation63_spill]] %s7116_s6  ;;  %v7152_v22 = vmul.f32 %v9272_v21, %v1846_v8 }
 0x46c   : > { %9264 = sst [smem:[#allocation40_spill]] %s7128_s26 }
 0x46d   : > { %s9273_s21 = sld [smem:[#allocation96_spill]]  ;;  %v9276_v13 = vstv %s9267_s3 }
 0x46e   : > { %s7160_s27 = sld [smem:[#allocation14 + $0x1]]  ;;  %v7168_v6 = vmul.f32 %v9276_v13, %v1901_v32  ;;  %v9277_v33 = vstv %s9268_s13  ;;  %v7188_v55 = vmul.f32 %v9276_v13, %v1902_v35  ;;  %v2214_v13 = vpop.permute.xlu0 %2213 }
 0x46f   : > { %s9278_s17 = sld [smem:[#allocation97_spill]]  ;;  %v7172_v8 = vmul.f32 %v9277_v33, %v1901_v32  ;;  %v9279_v25 = vstv %s9269_s1  ;;  %v7192_v36 = vmul.f32 %v9277_v33, %v1902_v35  ;;  %v9284_v40 = vstv %s9269_s1 }
 0x470   : > { %s9280_s9 = sld [smem:[#allocation98_spill]]  ;;  %v7176_v9 = vmul.f32 %v9279_v25, %v1901_v32  ;;  %v2164_v25 = vsel %vm381_vm5, %v2160_v61, 0.0  ;;  %v7200_v50 = vmul.f32 %v9284_v40, %v1902_v35 }
 0x471   : > { %s7180_s22 = sld [smem:[#allocation12 + $0x2]] }
 0x472   : > { %s9282_s28 = sld [smem:[#allocation99_spill]] }
 0x473   : > { %v9281_v21 = vstv %s9273_s21  ;;  %s9283_s12 = sld [smem:[#allocation100_spill]] }
 0x474   : > { %9275 = sst [smem:[#allocation43_spill]] %s7160_s27  ;;  %v7184_v16 = vmul.f32 %v9281_v21, %v1901_v32  ;;  %v9285_v32 = vmov %v9281_v21 }
 0x475   : > { %s7196_s16 = sld [smem:[#allocation14 + $0x2]]  ;;  %v7204_v21 = vmul.f32 %v9285_v32, %v1902_v35  ;;  %v9286_v23 = vstv %s9278_s17 }
 0x476   : > { %v7210_v62 = vmul.f32 %v9286_v23, %v2163_v44  ;;  %v9288_v61 = vstv %s9280_s9  ;;  %s9290_s3 = sld [smem:[#allocation68_spill]]  ;;  %v9297_v33 = vmov %v9286_v23  ;;  %v2219_v23 = vsel %vm382_vm6, %v2214_v13, 0.0 }
 0x477   : > { %v7214_v4 = vmul.f32 %v9288_v61, %v2163_v44  ;;  %s9292_s21 = sld [smem:[#allocation69_spill]]  ;;  %v7228_v43 = vmul.f32 %v9297_v33, %v2164_v25  ;;  %v7234_v40 = vmul.f32 %v9288_v61, %v2164_v25  ;;  %v2476_v33 = vpop.permute.xlu0 %2475 }
 0x478   : > { %9287 = vst [vmem:[#allocation200_spill] sm:$0xff] %v7210_v62  ;;  %v9291_v12 = vstv %s9282_s28  ;;  %s9295_s1 = sld [smem:[#allocation70_spill]]  ;;  %v2481_v13 = vsel %vm381_vm5, %v2476_v33, 0.0 }
 0x479   : > { %9289 = vst [vmem:[#allocation201_spill] sm:$0xff] %v7214_v4  ;;  %v7220_v35 = vmul.f32 %v9291_v12, %v2163_v44  ;;  %v9294_v32 = vstv %s9283_s12  ;;  %9298 = vst [vmem:[#allocation204_spill] sm:$0xff] %v7228_v43  ;;  %s9299_s13 = sld [smem:[#allocation101_spill]]  ;;  %v9301_v7 = vmov %v9291_v12 }
 0x47a   : > { %v7224_v15 = vmul.f32 %v9294_v32, %v2163_v44  ;;  %9300 = vst [vmem:[#allocation205_spill] sm:$0xff] %v7234_v40  ;;  %v7238_v54 = vmul.f32 %v9301_v7, %v2164_v25  ;;  %v9303_v12 = vmov %v9294_v32  ;;  %v2220_v44 = vsel %vm382_vm6, %v2216_v60, 0.0  ;;  %v2478_v32 = vpop.permute.xlu1 %2477  ;;  %s9305_s17 = sld [smem:[#allocation102_spill]] }
 0x47b   : > { %9293 = vst [vmem:[#allocation202_spill] sm:$0xff] %v7220_v35  ;;  %v7242_v53 = vmul.f32 %v9303_v12, %v2164_v25  ;;  %s9306_s9 = sld [smem:[#allocation103_spill]] }
 0x47c   : > { %9296 = vst [vmem:[#allocation203_spill] sm:$0xff] %v7224_v15  ;;  %9302 = vst [vmem:[#allocation206_spill] sm:$0xff] %v7238_v54  ;;  %s9307_s28 = sld [smem:[#allocation104_spill]]  ;;  %v9308_v19 = vstv %s9290_s3 }
 0x47d   : > { %9304 = vst [vmem:[#allocation207_spill] sm:$0xff] %v7242_v53  ;;  %s9309_s12 = sld [smem:[#allocation105_spill]]  ;;  %v7252_v25 = vmul.f32 %v9308_v19, %v2219_v23  ;;  %v9311_v12 = vstv %s9292_s21  ;;  %v9317_v58 = vmov %v9308_v19 }
 0x47e   : > { %v7256_v53 = vmul.f32 %v9311_v12, %v2219_v23  ;;  %v9313_v60 = vstv %s9295_s1  ;;  %v7270_v7 = vmul.f32 %v9317_v58, %v2220_v44  ;;  %v9319_v43 = vmov %v9311_v12  ;;  %s9321_s27 = sld [smem:[#allocation106_spill]] }
 0x47f   : > { %9310 = vst [vmem:[#allocation208_spill] sm:$0xff] %v7252_v25  ;;  %v7260_v54 = vmul.f32 %v9313_v60, %v2219_v23  ;;  %v9315_v40 = vstv %s9299_s13  ;;  %v7274_v19 = vmul.f32 %v9319_v43, %v2220_v44  ;;  %v2482_v12 = vsel %vm381_vm5, %v2478_v32, 0.0  ;;  %s9322_s26 = sld [smem:[#allocation107_spill]] }
 0x480   : > { %9312 = vst [vmem:[#allocation209_spill] sm:$0xff] %v7256_v53  ;;  %v7266_v61 = vmul.f32 %v9315_v40, %v2219_v23  ;;  %9318 = vst [vmem:[#allocation212_spill] sm:$0xff] %v7270_v7  ;;  %v9324_v53 = vmov %v9315_v40  ;;  %s9325_s2 = sld [smem:[#allocation108_spill]]  ;;  %v9328_v23 = vstv %s9305_s17  ;;  %v1738_v40 = vpop.permute.xlu1 %1737 }
 0x481   : > { %9314 = vst [vmem:[#allocation210_spill] sm:$0xff] %v7260_v54  ;;  %9320 = vst [vmem:[#allocation213_spill] sm:$0xff] %v7274_v19  ;;  %v7280_v54 = vmul.f32 %v9313_v60, %v2220_v44  ;;  %v7284_v33 = vmul.f32 %v9324_v53, %v2220_v44  ;;  %s9327_s6 = sld [smem:[#allocation115_spill]]  ;;  %v7290_v43 = vmul.f32 %v9328_v23, %v2481_v13  ;;  %v9330_v19 = vstv %s9306_s9  ;;  %v1736_v44 = vpop.permute.xlu0 %1735 }
 0x482   : > { %9316 = vst [vmem:[#allocation211_spill] sm:$0xff] %v7266_v61  ;;  %v7294_v7 = vmul.f32 %v9330_v19, %v2481_v13  ;;  %v9332_v32 = vstv %s9307_s28  ;;  %v9336_v58 = vmov %v9328_v23  ;;  %v9338_v23 = vmov %v9330_v19  ;;  %s9348_s3 = sld [smem:[#allocation119_spill]] }
 0x483   : > { %9323 = vst [vmem:[#allocation214_spill] sm:$0xff] %v7280_v54  ;;  %9326 = vst [vmem:[#allocation215_spill] sm:$0xff] %v7284_v33  ;;  %v7298_v60 = vmul.f32 %v9332_v32, %v2481_v13  ;;  %v9334_v54 = vstv %s9309_s12  ;;  %v7306_v33 = vmul.f32 %v9336_v58, %v2482_v12  ;;  %v1741_v19 = vsel %vm5272_vm7, %v1736_v44, 0.0  ;;  %s9350_s21 = sld [smem:[#allocation122_spill]] }
 0x484   : > { %9329 = vst [vmem:[#allocation216_spill] sm:$0xff] %v7290_v43  ;;  %9331 = vst [vmem:[#allocation217_spill] sm:$0xff] %v7294_v7  ;;  %v7302_v53 = vmul.f32 %v9334_v54, %v2481_v13  ;;  %v7310_v43 = vmul.f32 %v9338_v23, %v2482_v12  ;;  %v1742_v32 = vsel %vm381_vm5, %v1738_v40, 0.0  ;;  %v9349_v1 = vstv %s9307_s28  ;;  %s9353_s1 = sld [smem:[#allocation124_spill]] }
 0x485   : > { %9333 = vst [vmem:[#allocation218_spill] sm:$0xff] %v7298_v60  ;;  %9337 = vst [vmem:[#allocation220_spill] sm:$0xff] %v7306_v33  ;;  %v9340_v60 = vstv %s9321_s27  ;;  %v9341_v61 = vstv %s9322_s26  ;;  %v7334_v40 = vmul.f32 %v9349_v1, %v2482_v12  ;;  %s9355_s13 = sld [smem:[#allocation126_spill]] }
 0x486   : > { %9335 = vst [vmem:[#allocation219_spill] sm:$0xff] %v7302_v53  ;;  %9339 = vst [vmem:[#allocation221_spill] sm:$0xff] %v7310_v43  ;;  %v1745_v7 = vmul.f32 %v9340_v60, %v1741_v19  ;;  %v1751_v54 = vmul.f32 %v9341_v61, %v1741_v19  ;;  %v9342_v13 = vstv %s9325_s2  ;;  %v9344_v35 = vmov %v9340_v60  ;;  %s9364_s2 = sld [smem:[#allocation128_spill]] }
 0x487   : > { %v1757_v53 = vmul.f32 %v9342_v13, %v1741_v19  ;;  %v9343_v25 = vstv %s9327_s6  ;;  %v1746_v58 = vmul.f32 %v9344_v35, %v1742_v32  ;;  %v9345_v33 = vmov %v9341_v61  ;;  %9351 = vst [vmem:[#allocation222_spill] sm:$0xff] %v7334_v40  ;;  %s9365_s26 = sld [smem:[#allocation133_spill]] }
 0x488   : > { %v1763_v15 = vmul.f32 %v9343_v25, %v1741_v19  ;;  %v1752_v4 = vmul.f32 %v9345_v33, %v1742_v32  ;;  %v9346_v23 = vmov %v9342_v13  ;;  %v9347_v62 = vmov %v9343_v25  ;;  %v1794_v33 = vpop.permute.xlu0 %1793  ;;  %v1796_v19 = vpop.permute.xlu1 %1795  ;;  %s9366_s6 = sld [smem:[#allocation71_spill]] }
 0x489   : > { %v1758_v43 = vmul.f32 %v9346_v23, %v1742_v32  ;;  %v1764_v44 = vmul.f32 %v9347_v62, %v1742_v32  ;;  %v9352_v60 = vstv %s9309_s12  ;;  %v1773_v25 = vadd.f32 %v6571_v46, %v1745_v7  ;;  %s9367_s27 = sld [smem:[#allocation136_spill]] }
 0x48a   : > { %v7338_v61 = vmul.f32 %v9352_v60, %v2482_v12  ;;  %v1779_v35 = vadd.f32 %v6584_v56, %v1751_v54  ;;  %v1785_v62 = vadd.f32 %v6586_v3, %v1757_v53  ;;  %v1791_v1 = vadd.f32 %v6588_v48, %v1763_v15  ;;  %s9374_s17 = sld [smem:[#allocation72_spill]] }
 0x48b   : > { %v1774_v32 = vadd.f32 %v6593_v47, %v1746_v58  ;;  %v1780_v12 = vadd.f32 %v6596_v38, %v1752_v4  ;;  %v1786_v13 = vadd.f32 %v6599_v0, %v1758_v43  ;;  %v1792_v46 = vadd.f32 %v6602_v27, %v1764_v44  ;;  %s9376_s9 = sld [smem:[#allocation79_spill]] }
 0x48c   : > { %9354 = vst [vmem:[#allocation223_spill] sm:$0xff] %v7338_v61  ;;  %v1799_v56 = vsel %vm5322_vm8, %v1794_v33, 0.0  ;;  %v1800_v7 = vsel %vm382_vm6, %v1796_v19, 0.0  ;;  %v9356_v54 = vstv %s9348_s3  ;;  %v9357_v60 = vstv %s9350_s21  ;;  %v2532_v33 = vpop.permute.xlu0 %2531  ;;  %v2534_v40 = vpop.permute.xlu1 %2533  ;;  %s9378_s28 = sld [smem:[#allocation87_spill]] }
 0x48d   : > { %v1803_v23 = vmul.f32 %v9356_v54, %v1799_v56  ;;  %v1809_v3 = vmul.f32 %v9357_v60, %v1799_v56  ;;  %v9358_v53 = vstv %s9353_s1  ;;  %v9359_v15 = vstv %s9355_s13  ;;  %s9379_s12 = sld [smem:[#allocation73_spill]] }
 0x48e   : > { %v1815_v48 = vmul.f32 %v9358_v53, %v1799_v56  ;;  %v1821_v47 = vmul.f32 %v9359_v15, %v1799_v56  ;;  %v9360_v58 = vmov %v9356_v54  ;;  %v9361_v38 = vmov %v9357_v60  ;;  %s9386_s3 = sld [smem:[#allocation88_spill]] }
 0x48f   : > { %v1804_v4 = vmul.f32 %v9360_v58, %v1800_v7  ;;  %v1810_v0 = vmul.f32 %v9361_v38, %v1800_v7  ;;  %v9362_v43 = vmov %v9358_v53  ;;  %v9363_v44 = vmov %v9359_v15  ;;  %s9388_s21 = sld [smem:[#allocation74_spill]] }
 0x490   : > { %v1816_v27 = vmul.f32 %v9362_v43, %v1800_v7  ;;  %v1822_v61 = vmul.f32 %v9363_v44, %v1800_v7  ;;  %v1805_v39 = vadd.f32 %v1803_v23, %v1773_v25  ;;  %v1811_v19 = vadd.f32 %v1809_v3, %v1779_v35  ;;  %s9390_s1 = sld [smem:[#allocation35_spill]] }
 0x491   : > { %v1817_v41 = vadd.f32 %v1815_v48, %v1785_v62  ;;  %v1823_v54 = vadd.f32 %v1821_v47, %v1791_v1  ;;  %v1806_v5 = vadd.f32 %v1804_v4, %v1774_v32  ;;  %v1812_v60 = vadd.f32 %v1810_v0, %v1780_v12  ;;  %v1948_v1 = vpop.permute.xlu1 %1947  ;;  %s9391_s13 = sld [smem:[#allocation111_spill]] }
 0x492   : > { %v1818_v26 = vadd.f32 %v1816_v27, %v1786_v13  ;;  %v1824_v53 = vadd.f32 %v1822_v61, %v1792_v46  ;;  %v1851_v56 = vadd.f32 %v7120_v30, %v1805_v39  ;;  %v1857_v15 = vadd.f32 %v7124_v11, %v1811_v19  ;;  %v1946_v30 = vpop.permute.xlu0 %1945 }
 0x493   : > { %v1863_v7 = vadd.f32 %v7132_v52, %v1817_v41  ;;  %v1869_v25 = vadd.f32 %v7136_v37, %v1823_v54  ;;  %v1852_v35 = vadd.f32 %v7140_v28, %v1806_v5  ;;  %v1858_v62 = vadd.f32 %v7148_v42, %v1812_v60 }
 0x494   : > { %v1864_v61 = vadd.f32 %v7152_v22, %v1818_v26  ;;  %v1870_v39 = vadd.f32 %v7156_v57, %v1824_v53  ;;  %v2537_v11 = vsel %vm382_vm6, %v2532_v33, 0.0  ;;  %v2538_v41 = vsel %vm382_vm6, %v2534_v40, 0.0 }
 0x495   : > { %v1875_v52 = vadd.f32 %v6607_v45, %v1851_v56  ;;  %v1881_v5 = vadd.f32 %v6610_v29, %v1857_v15  ;;  %v9368_v28 = vstv %s9364_s2  ;;  %v9369_v42 = vstv %s9365_s26  ;;  %v2006_v43 = vpop.permute.xlu1 %2005  ;;  %s9397_s2 = sld [smem:[#allocation89_spill]] }
 0x496   : > { %v7384_v37 = vmul.f32 %v9368_v28, %v2537_v11  ;;  %v7388_v32 = vmul.f32 %v9369_v42, %v2537_v11  ;;  %v9370_v26 = vstv %s9366_s6  ;;  %v9371_v57 = vstv %s9367_s27  ;;  %v2004_v0 = vpop.permute.xlu0 %2003  ;;  %s9399_s26 = sld [smem:[#allocation90_spill]] }
 0x497   : > { %v7392_v22 = vmul.f32 %v9370_v26, %v2537_v11  ;;  %v7396_v12 = vmul.f32 %v9371_v57, %v2537_v11  ;;  %v9372_v13 = vmov %v9368_v28  ;;  %v9373_v40 = vmov %v9369_v42  ;;  %s9401_s6 = sld [smem:[#allocation109_spill]] }
 0x498   : > { %v7400_v46 = vmul.f32 %v9372_v13, %v2538_v41  ;;  %v7404_v45 = vmul.f32 %v9373_v40, %v2538_v41  ;;  %v9375_v29 = vmov %v9370_v26  ;;  %v9377_v3 = vmov %v9371_v57  ;;  %s9403_s27 = sld [smem:[#allocation110_spill]] }
 0x499   : > { %v7408_v23 = vmul.f32 %v9375_v29, %v2538_v41  ;;  %v7412_v48 = vmul.f32 %v9377_v3, %v2538_v41  ;;  %v1887_v47 = vadd.f32 %v6613_v31, %v1863_v7  ;;  %v1893_v58 = vadd.f32 %v6616_v63, %v1869_v25  ;;  %v2056_v41 = vpop.permute.xlu1 %2055 }
 0x49a   : > { %v1907_v4 = vadd.f32 %v7168_v6, %v1875_v52  ;;  %v1913_v38 = vadd.f32 %v7172_v8, %v1881_v5  ;;  %v1951_v27 = vsel %vm381_vm5, %v1946_v30, 0.0  ;;  %v1876_v44 = vadd.f32 %v6532_v34, %v1852_v35  ;;  %v2054_v11 = vpop.permute.xlu0 %2053 }
 0x49b   : > { %v1882_v33 = vadd.f32 %v6535_v17, %v1858_v62  ;;  %v1888_v19 = vadd.f32 %v6538_v14, %v1864_v61  ;;  %v1919_v54 = vadd.f32 %v7176_v9, %v1887_v47  ;;  %v1925_v31 = vadd.f32 %v7184_v16, %v1893_v58 }
 0x49c   : > { %v9380_v63 = vstv %s9374_s17  ;;  %v9381_v6 = vstv %s9376_s9  ;;  %v9382_v53 = vstv %s9378_s28  ;;  %v9383_v15 = vstv %s9379_s12  ;;  %s9417_s17 = sld [smem:[#allocation113_spill]] }
 0x49d   : > { %v1955_v60 = vmul.f32 %v9380_v63, %v1951_v27  ;;  %v1961_v8 = vmul.f32 %v9381_v6, %v1951_v27  ;;  %v1967_v56 = vmul.f32 %v9382_v53, %v1951_v27  ;;  %v1973_v7 = vmul.f32 %v9383_v15, %v1951_v27  ;;  %s9418_s9 = sld [smem:[#allocation38_spill]] }
 0x49e   : > { %v1894_v34 = vadd.f32 %v6543_v51, %v1870_v39  ;;  %v1908_v17 = vadd.f32 %v7188_v55, %v1876_v44  ;;  %v1914_v16 = vadd.f32 %v7192_v36, %v1882_v33  ;;  %v1920_v25 = vadd.f32 %v7200_v50, %v1888_v19  ;;  %s9419_s28 = sld [smem:[#allocation143_spill]] }
 0x49f   : > { %v1957_v14 = vadd.f32 %v1955_v60, %v1907_v4  ;;  %v1963_v9 = vadd.f32 %v1961_v8, %v1913_v38  ;;  %v1969_v35 = vadd.f32 %v1967_v56, %v1919_v54  ;;  %v1975_v62 = vadd.f32 %v1973_v7, %v1925_v31  ;;  %v9400_v54 = vld [vmem:[#allocation146_spill] sm:$0xff]  ;;  %v2114_v56 = vpop.permute.xlu1 %2113  ;;  %s9421_s12 = sld [smem:[#allocation41_spill]] }
 0x4a0   : > { %v1926_v61 = vadd.f32 %v7204_v21, %v1894_v34  ;;  %v1952_v30 = vsel %vm5363_vm9, %v1948_v1, 0.0  ;;  %v9384_v52 = vmov %v9380_v63  ;;  %v9385_v51 = vmov %v9381_v6  ;;  %v9402_v63 = vld [vmem:[#allocation147_spill] sm:$0xff]  ;;  %v9404_v6 = vld [vmem:[#allocation148_spill] sm:$0xff] }
 0x4a1   : > { %v1956_v5 = vmul.f32 %v9384_v52, %v1952_v30  ;;  %v1962_v55 = vmul.f32 %v9385_v51, %v1952_v30  ;;  %v9387_v39 = vmov %v9382_v53  ;;  %v9389_v36 = vmov %v9383_v15  ;;  %v2112_v53 = vpop.permute.xlu0 %2111 }
 0x4a2   : > { %v1968_v28 = vmul.f32 %v9387_v39, %v1952_v30  ;;  %v1974_v50 = vmul.f32 %v9389_v36, %v1952_v30  ;;  %v1983_v42 = vadd.f32 %v6625_v18, %v1957_v14  ;;  %v1989_v21 = vadd.f32 %v6638_v10, %v1963_v9 }
 0x4a3   : > { %v1995_v1 = vadd.f32 %v6641_v2, %v1969_v35  ;;  %v2001_v26 = vadd.f32 %v6644_v20, %v1975_v62  ;;  %v1958_v57 = vadd.f32 %v1956_v5, %v1908_v17  ;;  %v1964_v13 = vadd.f32 %v1962_v55, %v1914_v16 }
 0x4a4   : > { %v1970_v40 = vadd.f32 %v1968_v28, %v1920_v25  ;;  %v1976_v29 = vadd.f32 %v1974_v50, %v1926_v61  ;;  %v2009_v3 = vsel %vm382_vm6, %v2004_v0, 0.0  ;;  %v2010_v58 = vsel %vm5386_vm10, %v2006_v43, 0.0  ;;  %v9398_v43 = vld [vmem:[#allocation145_spill] sm:$0xff] }
 0x4a5   : > { %v2059_v4 = vsel %vm5272_vm7, %v2054_v11, 0.0  ;;  %v2060_v18 = vsel %vm381_vm5, %v2056_v41, 0.0  ;;  %v9393_v10 = vstv %s9386_s3  ;;  %v9394_v20 = vstv %s9388_s21  ;;  %s9442_s3 = sld [smem:[#allocation80_spill]] }
 0x4a6   : > { %v2013_v2 = vmul.f32 %v9393_v10, %v2009_v3  ;;  %v2019_v38 = vmul.f32 %v9394_v20, %v2009_v3  ;;  %v9395_v27 = vstv %s9390_s1  ;;  %v9396_v0 = vstv %s9391_s13  ;;  %s9444_s21 = sld [smem:[#allocation36_spill]] }
 0x4a7   : > { %v2025_v44 = vmul.f32 %v9395_v27, %v2009_v3  ;;  %v2031_v33 = vmul.f32 %v9396_v0, %v2009_v3  ;;  %v1984_v19 = vadd.f32 %v9398_v43, %v1958_v57  ;;  %v1990_v31 = vadd.f32 %v9400_v54, %v1964_v13  ;;  %s9446_s1 = sld [smem:[#allocation37_spill]] }
 0x4a8   : > { %v1996_v60 = vadd.f32 %v9402_v63, %v1970_v40  ;;  %v2002_v8 = vadd.f32 %v9404_v6, %v1976_v29  ;;  %v2015_v15 = vadd.f32 %v2013_v2, %v1983_v42  ;;  %v2021_v7 = vadd.f32 %v2019_v38, %v1989_v21  ;;  %s9448_s13 = sld [smem:[#allocation39_spill]] }
 0x4a9   : > { %v2027_v34 = vadd.f32 %v2025_v44, %v1995_v1  ;;  %v2033_v17 = vadd.f32 %v2031_v33, %v2001_v26  ;;  %v9405_v14 = vmov %v9393_v10  ;;  %v9406_v16 = vmov %v9394_v20  ;;  %v9420_v44 = vld [vmem:[#allocation149_spill] sm:$0xff]  ;;  %v9422_v33 = vld [vmem:[#allocation150_spill] sm:$0xff] }
 0x4aa   : > { %v2014_v9 = vmul.f32 %v9405_v14, %v2010_v58  ;;  %v2020_v25 = vmul.f32 %v9406_v16, %v2010_v58  ;;  %v9407_v35 = vmov %v9395_v27  ;;  %v9408_v61 = vmov %v9396_v0  ;;  %v2264_v27 = vpop.permute.xlu0 %2263 }
 0x4ab   : > { %v2026_v62 = vmul.f32 %v9407_v35, %v2010_v58  ;;  %v2032_v30 = vmul.f32 %v9408_v61, %v2010_v58  ;;  %v9409_v11 = vstv %s9397_s2  ;;  %v9410_v52 = vstv %s9399_s26  ;;  %s9472_s2 = sld [smem:[#allocation139_spill]] }
 0x4ac   : > { %v2063_v41 = vmul.f32 %v9409_v11, %v2059_v4  ;;  %v2069_v5 = vmul.f32 %v9410_v52, %v2059_v4  ;;  %v9411_v51 = vstv %s9401_s6  ;;  %v9412_v39 = vstv %s9403_s27  ;;  %s9474_s26 = sld [smem:[#allocation45_spill]] }
 0x4ad   : > { %v2075_v55 = vmul.f32 %v9411_v51, %v2059_v4  ;;  %v2081_v28 = vmul.f32 %v9412_v39, %v2059_v4  ;;  %v2016_v36 = vadd.f32 %v2014_v9, %v1984_v19  ;;  %v2022_v50 = vadd.f32 %v2020_v25, %v1990_v31  ;;  %v2266_v4 = vpop.permute.xlu1 %2265  ;;  %v9423_v19 = vld [vmem:[#allocation183_spill] sm:$0xff]  ;;  %v9424_v31 = vld [vmem:[#allocation114_spill] sm:$0xff]  ;;  %s9476_s6 = sld [smem:[#allocation141_spill]] }
 0x4ae   : > { %v2028_v42 = vadd.f32 %v2026_v62, %v1996_v60  ;;  %v2034_v21 = vadd.f32 %v2032_v30, %v2002_v8  ;;  %v2065_v1 = vadd.f32 %v2063_v41, %v2015_v15  ;;  %v2071_v26 = vadd.f32 %v2069_v5, %v2021_v7  ;;  %v9432_v5 = vld [vmem:[#allocation112_spill] sm:$0xff]  ;;  %s9478_s27 = sld [smem:[#allocation81_spill]] }
 0x4af   : > { %v2077_v57 = vadd.f32 %v2075_v55, %v2027_v34  ;;  %v2083_v13 = vadd.f32 %v2081_v28, %v2033_v17  ;;  %v9413_v40 = vmov %v9409_v11  ;;  %v9414_v3 = vmov %v9410_v52  ;;  %v9430_v11 = vld [vmem:[#allocation151_spill] sm:$0xff]  ;;  %v9433_v55 = vld [vmem:[#allocation116_spill] sm:$0xff] }
 0x4b0   : > { %v2064_v29 = vmul.f32 %v9413_v40, %v2060_v18  ;;  %v2070_v58 = vmul.f32 %v9414_v3, %v2060_v18  ;;  %v9415_v10 = vmov %v9411_v51  ;;  %v9416_v20 = vmov %v9412_v39 }
 0x4b1   : > { %v2076_v2 = vmul.f32 %v9415_v10, %v2060_v18  ;;  %v2082_v38 = vmul.f32 %v9416_v20, %v2060_v18  ;;  %v2091_v0 = vadd.f32 %v9420_v44, %v2065_v1  ;;  %v2097_v43 = vadd.f32 %v9422_v33, %v2071_v26 }
 0x4b2   : > { %v2103_v54 = vadd.f32 %v9423_v19, %v2077_v57  ;;  %v2109_v63 = vadd.f32 %v9424_v31, %v2083_v13  ;;  %v2066_v60 = vadd.f32 %v2064_v29, %v2016_v36  ;;  %v2072_v6 = vadd.f32 %v2070_v58, %v2022_v50  ;;  %v9438_v58 = vld [vmem:[#allocation200_spill] sm:$0xff] }
 0x4b3   : > { %v2078_v8 = vadd.f32 %v2076_v2, %v2028_v42  ;;  %v2084_v15 = vadd.f32 %v2082_v38, %v2034_v21  ;;  %v2117_v18 = vsel %vm5322_vm8, %v2112_v53, 0.0  ;;  %v2118_v34 = vsel %vm382_vm6, %v2114_v56, 0.0  ;;  %v9431_v56 = vld [vmem:[#allocation152_spill] sm:$0xff]  ;;  %v9439_v2 = vld [vmem:[#allocation201_spill] sm:$0xff]  ;;  %v9440_v38 = vld [vmem:[#allocation202_spill] sm:$0xff] }
 0x4b4   : > { %v2269_v17 = vsel %vm381_vm5, %v2264_v27, 0.0  ;;  %v2270_v14 = vsel %vm5363_vm9, %v2266_v4, 0.0  ;;  %v9426_v9 = vstv %s9417_s17  ;;  %v9427_v25 = vstv %s9418_s9  ;;  %v9441_v4 = vld [vmem:[#allocation203_spill] sm:$0xff]  ;;  %s9488_s17 = sld [smem:[#allocation46_spill]] }
 0x4b5   : > { %v2121_v16 = vmul.f32 %v9426_v9, %v2117_v18  ;;  %v2127_v35 = vmul.f32 %v9427_v25, %v2117_v18  ;;  %v9428_v62 = vstv %s9419_s28  ;;  %v9429_v53 = vstv %s9421_s12  ;;  %s9490_s9 = sld [smem:[#allocation82_spill]] }
 0x4b6   : > { %v2133_v61 = vmul.f32 %v9428_v62, %v2117_v18  ;;  %v2139_v30 = vmul.f32 %v9429_v53, %v2117_v18  ;;  %v2092_v41 = vadd.f32 %v9430_v11, %v2066_v60  ;;  %v2098_v52 = vadd.f32 %v9431_v56, %v2072_v6  ;;  %v9447_v6 = vld [vmem:[#allocation154_spill] sm:$0xff]  ;;  %s9505_s28 = sld [smem:[#allocation48_spill]] }
 0x4b7   : > { %v2104_v51 = vadd.f32 %v9432_v5, %v2078_v8  ;;  %v2110_v39 = vadd.f32 %v9433_v55, %v2084_v15  ;;  %v2123_v28 = vadd.f32 %v2121_v16, %v2091_v0  ;;  %v2129_v36 = vadd.f32 %v2127_v35, %v2097_v43  ;;  %v9449_v15 = vld [vmem:[#allocation118_spill] sm:$0xff]  ;;  %v9451_v35 = vld [vmem:[#allocation205_spill] sm:$0xff]  ;;  %s9543_s12 = sld [smem:[#allocation54_spill]] }
 0x4b8   : > { %v2135_v50 = vadd.f32 %v2133_v61, %v2103_v54  ;;  %v2141_v42 = vadd.f32 %v2139_v30, %v2109_v63  ;;  %v9434_v21 = vmov %v9426_v9  ;;  %v9435_v26 = vmov %v9427_v25  ;;  %v9443_v54 = vld [vmem:[#allocation117_spill] sm:$0xff]  ;;  %v9445_v63 = vld [vmem:[#allocation153_spill] sm:$0xff]  ;;  %v2324_v9 = vpop.permute.xlu1 %2323  ;;  %v9450_v16 = vld [vmem:[#allocation204_spill] sm:$0xff] }
 0x4b9   : > { %v2122_v1 = vmul.f32 %v9434_v21, %v2118_v34  ;;  %v2128_v57 = vmul.f32 %v9435_v26, %v2118_v34  ;;  %v9436_v13 = vmov %v9428_v62  ;;  %v9437_v29 = vmov %v9429_v53  ;;  %v9452_v61 = vld [vmem:[#allocation206_spill] sm:$0xff]  ;;  %v9453_v30 = vld [vmem:[#allocation207_spill] sm:$0xff] }
 0x4ba   : > { %v2134_v40 = vmul.f32 %v9436_v13, %v2118_v34  ;;  %v2140_v3 = vmul.f32 %v9437_v29, %v2118_v34  ;;  %v2169_v10 = vadd.f32 %v9438_v58, %v2123_v28  ;;  %v2175_v20 = vadd.f32 %v9439_v2, %v2129_v36  ;;  %v2322_v34 = vpop.permute.xlu0 %2321 }
 0x4bb   : > { %v2181_v27 = vadd.f32 %v9440_v38, %v2135_v50  ;;  %v2187_v44 = vadd.f32 %v9441_v4, %v2141_v42  ;;  %v2124_v0 = vadd.f32 %v2122_v1, %v2092_v41  ;;  %v2130_v33 = vadd.f32 %v2128_v57, %v2098_v52  ;;  %v9454_v41 = vld [vmem:[#allocation208_spill] sm:$0xff]  ;;  %v9455_v52 = vld [vmem:[#allocation209_spill] sm:$0xff] }
 0x4bc   : > { %v2136_v43 = vadd.f32 %v2134_v40, %v2104_v51  ;;  %v2142_v19 = vadd.f32 %v2140_v3, %v2110_v39  ;;  %v2193_v31 = vadd.f32 %v9443_v54, %v2169_v10  ;;  %v2199_v60 = vadd.f32 %v9445_v63, %v2175_v20  ;;  %v9456_v51 = vld [vmem:[#allocation210_spill] sm:$0xff]  ;;  %v9457_v39 = vld [vmem:[#allocation211_spill] sm:$0xff]  ;;  %v9462_v40 = vld [vmem:[#allocation120_spill] sm:$0xff] }
 0x4bd   : > { %v2205_v8 = vadd.f32 %v9447_v6, %v2181_v27  ;;  %v2211_v18 = vadd.f32 %v9449_v15, %v2187_v44  ;;  %v2170_v25 = vadd.f32 %v9450_v16, %v2124_v0  ;;  %v2176_v62 = vadd.f32 %v9451_v35, %v2130_v33  ;;  %v9463_v3 = vld [vmem:[#allocation155_spill] sm:$0xff]  ;;  %v9464_v10 = vld [vmem:[#allocation156_spill] sm:$0xff]  ;;  %v9465_v20 = vld [vmem:[#allocation157_spill] sm:$0xff] }
 0x4be   : > { %v2182_v53 = vadd.f32 %v9452_v61, %v2136_v43  ;;  %v2188_v11 = vadd.f32 %v9453_v30, %v2142_v19  ;;  %v2225_v56 = vadd.f32 %v9454_v41, %v2193_v31  ;;  %v2231_v5 = vadd.f32 %v9455_v52, %v2199_v60  ;;  %v9466_v33 = vld [vmem:[#allocation212_spill] sm:$0xff]  ;;  %v9467_v19 = vld [vmem:[#allocation213_spill] sm:$0xff]  ;;  %v9469_v63 = vld [vmem:[#allocation215_spill] sm:$0xff]  ;;  %v2372_v6 = vpop.permute.xlu0 %2371 }
 0x4bf   : > { %v2237_v55 = vadd.f32 %v9456_v51, %v2205_v8  ;;  %v2243_v28 = vadd.f32 %v9457_v39, %v2211_v18  ;;  %v9458_v36 = vstv %s9442_s3  ;;  %v9459_v42 = vstv %s9444_s21  ;;  %v2374_v8 = vpop.permute.xlu1 %2373  ;;  %v9477_v30 = vld [vmem:[#allocation158_spill] sm:$0xff]  ;;  %v9479_v41 = vld [vmem:[#allocation179_spill] sm:$0xff]  ;;  %s9558_s3 = sld [smem:[#allocation58_spill]] }
 0x4c0   : > { %v2273_v50 = vmul.f32 %v9458_v36, %v2269_v17  ;;  %v2279_v21 = vmul.f32 %v9459_v42, %v2269_v17  ;;  %v9460_v1 = vstv %s9446_s1  ;;  %v9461_v57 = vstv %s9448_s13  ;;  %v9480_v52 = vld [vmem:[#allocation121_spill] sm:$0xff]  ;;  %v9481_v51 = vld [vmem:[#allocation159_spill] sm:$0xff]  ;;  %s9574_s21 = sld [smem:[#allocation75_spill]] }
 0x4c1   : > { %v2285_v26 = vmul.f32 %v9460_v1, %v2269_v17  ;;  %v2291_v13 = vmul.f32 %v9461_v57, %v2269_v17  ;;  %v2194_v29 = vadd.f32 %v9462_v40, %v2170_v25  ;;  %v2200_v58 = vadd.f32 %v9463_v3, %v2176_v62  ;;  %v9468_v17 = vld [vmem:[#allocation214_spill] sm:$0xff]  ;;  %s9575_s1 = sld [smem:[#allocation77_spill]] }
 0x4c2   : > { %v2206_v2 = vadd.f32 %v9464_v10, %v2182_v53  ;;  %v2212_v38 = vadd.f32 %v9465_v20, %v2188_v11  ;;  %v2275_v27 = vadd.f32 %v2273_v50, %v2225_v56  ;;  %v2281_v4 = vadd.f32 %v2279_v21, %v2231_v5  ;;  %s9589_s13 = sld [smem:[#allocation59_spill]] }
 0x4c3   : > { %v2287_v44 = vadd.f32 %v2285_v26, %v2237_v55  ;;  %v2293_v0 = vadd.f32 %v2291_v13, %v2243_v28  ;;  %v2226_v43 = vadd.f32 %v9466_v33, %v2194_v29  ;;  %v2232_v54 = vadd.f32 %v9467_v19, %v2200_v58  ;;  %v2432_v33 = vpop.permute.xlu1 %2431 }
 0x4c4   : > { %v2238_v31 = vadd.f32 %v9468_v17, %v2206_v2  ;;  %v2244_v60 = vadd.f32 %v9469_v63, %v2212_v38  ;;  %v9470_v15 = vmov %v9458_v36  ;;  %v9471_v16 = vmov %v9459_v42  ;;  %v9487_v2 = vld [vmem:[#allocation123_spill] sm:$0xff] }
 0x4c5   : > { %v2274_v18 = vmul.f32 %v9470_v15, %v2270_v14  ;;  %v2280_v25 = vmul.f32 %v9471_v16, %v2270_v14  ;;  %v9473_v35 = vmov %v9460_v1  ;;  %v9475_v61 = vmov %v9461_v57  ;;  %v9489_v38 = vld [vmem:[#allocation163_spill] sm:$0xff] }
 0x4c6   : > { %v2286_v62 = vmul.f32 %v9473_v35, %v2270_v14  ;;  %v2292_v53 = vmul.f32 %v9475_v61, %v2270_v14  ;;  %v2301_v11 = vadd.f32 %v9477_v30, %v2275_v27  ;;  %v2307_v56 = vadd.f32 %v9479_v41, %v2281_v4  ;;  %v9491_v4 = vld [vmem:[#allocation161_spill] sm:$0xff] }
 0x4c7   : > { %v2313_v5 = vadd.f32 %v9480_v52, %v2287_v44  ;;  %v2319_v55 = vadd.f32 %v9481_v51, %v2293_v0  ;;  %v2276_v39 = vadd.f32 %v2274_v18, %v2226_v43  ;;  %v2282_v28 = vadd.f32 %v2280_v25, %v2232_v54  ;;  %v2430_v0 = vpop.permute.xlu0 %2429 }
 0x4c8   : > { %v2288_v36 = vadd.f32 %v2286_v62, %v2238_v31  ;;  %v2294_v50 = vadd.f32 %v2292_v53, %v2244_v60  ;;  %v2327_v42 = vsel %vm382_vm6, %v2322_v34, 0.0  ;;  %v2328_v21 = vsel %vm5386_vm10, %v2324_v9, 0.0  ;;  %v9486_v9 = vld [vmem:[#allocation160_spill] sm:$0xff] }
 0x4c9   : > { %v2377_v14 = vsel %vm5272_vm7, %v2372_v6, 0.0  ;;  %v2378_v1 = vsel %vm381_vm5, %v2374_v8, 0.0  ;;  %v9482_v26 = vstv %s9472_s2  ;;  %v9483_v13 = vstv %s9474_s26  ;;  %s9619_s2 = sld [smem:[#allocation84_spill]] }
 0x4ca   : > { %v2331_v57 = vmul.f32 %v9482_v26, %v2327_v42  ;;  %v2337_v40 = vmul.f32 %v9483_v13, %v2327_v42  ;;  %v9484_v29 = vstv %s9476_s6  ;;  %v9485_v34 = vstv %s9478_s27  ;;  %s9621_s26 = sld [smem:[#allocation85_spill]] }
 0x4cb   : > { %v2343_v3 = vmul.f32 %v9484_v29, %v2327_v42  ;;  %v2349_v58 = vmul.f32 %v9485_v34, %v2327_v42  ;;  %v2302_v10 = vadd.f32 %v9486_v9, %v2276_v39  ;;  %v2308_v20 = vadd.f32 %v9487_v2, %v2282_v28  ;;  %v9506_v9 = vld [vmem:[#allocation162_spill] sm:$0xff]  ;;  %v9507_v2 = vld [vmem:[#allocation187_spill] sm:$0xff]  ;;  %s9623_s6 = sld [smem:[#allocation86_spill]] }
 0x4cc   : > { %v2314_v27 = vadd.f32 %v9489_v38, %v2288_v36  ;;  %v2320_v44 = vadd.f32 %v9491_v4, %v2294_v50  ;;  %v2333_v43 = vadd.f32 %v2331_v57, %v2301_v11  ;;  %v2339_v19 = vadd.f32 %v2337_v40, %v2307_v56  ;;  %v9508_v38 = vld [vmem:[#allocation189_spill] sm:$0xff]  ;;  %s7832_s27 = sld [smem:[#allocation12 + $0x3]] }
 0x4cd   : > { %v2345_v54 = vadd.f32 %v2343_v3, %v2313_v5  ;;  %v2351_v17 = vadd.f32 %v2349_v58, %v2319_v55  ;;  %v9492_v31 = vmov %v9482_v26  ;;  %v9493_v60 = vmov %v9483_v13  ;;  %v2794_v3 = vpop.permute.xlu0 %2793 }
 0x4ce   : > { %v2332_v63 = vmul.f32 %v9492_v31, %v2328_v21  ;;  %v2338_v6 = vmul.f32 %v9493_v60, %v2328_v21  ;;  %v9494_v8 = vmov %v9484_v29  ;;  %v9495_v18 = vmov %v9485_v34  ;;  %v9504_v34 = vld [vmem:[#allocation164_spill] sm:$0xff] }
 0x4cf   : > { %v2344_v15 = vmul.f32 %v9494_v8, %v2328_v21  ;;  %v2350_v16 = vmul.f32 %v9495_v18, %v2328_v21  ;;  %v9496_v25 = vstv %s9229_s10  ;;  %v9497_v62 = vstv %s9230_s8  ;;  %s9517_s8 = sld [smem:[#allocation50_spill]] }
 0x4d0   : > { %v2381_v35 = vmul.f32 %v9496_v25, %v2377_v14  ;;  %v2387_v61 = vmul.f32 %v9497_v62, %v2377_v14  ;;  %v9498_v53 = vstv %s9488_s17  ;;  %v9499_v11 = vstv %s9490_s9  ;;  %s9518_s10 = sld [smem:[#allocation51_spill]] }
 0x4d1   : > { %v2393_v30 = vmul.f32 %v9498_v53, %v2377_v14  ;;  %v2399_v41 = vmul.f32 %v9499_v11, %v2377_v14  ;;  %v2334_v56 = vadd.f32 %v2332_v63, %v2302_v10  ;;  %v2340_v52 = vadd.f32 %v2338_v6, %v2308_v20  ;;  %v2796_v14 = vpop.permute.xlu1 %2795  ;;  %s7834_s17 = sld [smem:[#allocation14 + $0x3]] }
 0x4d2   : > { %v2346_v5 = vadd.f32 %v2344_v15, %v2314_v27  ;;  %v2352_v51 = vadd.f32 %v2350_v16, %v2320_v44  ;;  %v2383_v55 = vadd.f32 %v2381_v35, %v2333_v43  ;;  %v2389_v39 = vadd.f32 %v2387_v61, %v2339_v19  ;;  %v9514_v35 = vld [vmem:[#allocation127_spill] sm:$0xff]  ;;  %s9646_s9 = sld [smem:[#allocation42_spill]] }
 0x4d3   : > { %v2395_v28 = vadd.f32 %v2393_v30, %v2345_v54  ;;  %v2401_v36 = vadd.f32 %v2399_v41, %v2351_v17  ;;  %v9500_v50 = vmov %v9496_v25  ;;  %v9501_v21 = vmov %v9497_v62  ;;  %v9513_v25 = vld [vmem:[#allocation125_spill] sm:$0xff]  ;;  %v9515_v61 = vld [vmem:[#allocation165_spill] sm:$0xff]  ;;  %v9516_v30 = vld [vmem:[#allocation167_spill] sm:$0xff] }
 0x4d4   : > { %v2382_v42 = vmul.f32 %v9500_v50, %v2378_v1  ;;  %v2388_v26 = vmul.f32 %v9501_v21, %v2378_v1  ;;  %v9502_v57 = vmov %v9498_v53  ;;  %v9503_v40 = vmov %v9499_v11 }
 0x4d5   : > { %v2394_v13 = vmul.f32 %v9502_v57, %v2378_v1  ;;  %v2400_v29 = vmul.f32 %v9503_v40, %v2378_v1  ;;  %v2409_v58 = vadd.f32 %v9504_v34, %v2383_v55  ;;  %v2415_v10 = vadd.f32 %v9506_v9, %v2389_v39  ;;  %v2584_v55 = vpop.permute.xlu1 %2583 }
 0x4d6   : > { %v2421_v20 = vadd.f32 %v9507_v2, %v2395_v28  ;;  %v2427_v27 = vadd.f32 %v9508_v38, %v2401_v36  ;;  %v2384_v4 = vadd.f32 %v2382_v42, %v2334_v56  ;;  %v2390_v44 = vadd.f32 %v2388_v26, %v2340_v52 }
 0x4d7   : > { %v2396_v43 = vadd.f32 %v2394_v13, %v2346_v5  ;;  %v2402_v19 = vadd.f32 %v2400_v29, %v2352_v51  ;;  %v2435_v1 = vsel %vm5322_vm8, %v2430_v0, 0.0  ;;  %v2436_v54 = vsel %vm382_vm6, %v2432_v33, 0.0  ;;  %v2582_v51 = vpop.permute.xlu0 %2581  ;;  %v9523_v13 = vld [vmem:[#allocation216_spill] sm:$0xff]  ;;  %v9524_v29 = vld [vmem:[#allocation217_spill] sm:$0xff] }
 0x4d8   : > { %v2799_v17 = vsel %vm381_vm5, %v2794_v3, 0.0  ;;  %v2800_v31 = vsel %vm381_vm5, %v2796_v14, 0.0  ;;  %v9509_v63 = vstv %s9234_s20  ;;  %v9510_v6 = vstv %s9235_s29  ;;  %v9525_v14 = vld [vmem:[#allocation218_spill] sm:$0xff]  ;;  %s9539_s29 = sld [smem:[#allocation53_spill]] }
 0x4d9   : > { %v2439_v60 = vmul.f32 %v9509_v63, %v2435_v1  ;;  %v2445_v8 = vmul.f32 %v9510_v6, %v2435_v1  ;;  %v9511_v15 = vstv %s9236_s19  ;;  %v9512_v0 = vstv %s9505_s28  ;;  %s9540_s19 = sld [smem:[#allocation92_spill]] }
 0x4da   : > { %v2451_v18 = vmul.f32 %v9511_v15, %v2435_v1  ;;  %v2457_v16 = vmul.f32 %v9512_v0, %v2435_v1  ;;  %v2410_v33 = vadd.f32 %v9513_v25, %v2384_v4  ;;  %v2416_v62 = vadd.f32 %v9514_v35, %v2390_v44  ;;  %s9541_s20 = sld [smem:[#allocation47_spill]] }
 0x4db   : > { %v2422_v53 = vadd.f32 %v9515_v61, %v2396_v43  ;;  %v2428_v11 = vadd.f32 %v9516_v30, %v2402_v19  ;;  %v2441_v41 = vadd.f32 %v2439_v60, %v2409_v58  ;;  %v2447_v56 = vadd.f32 %v2445_v8, %v2415_v10  ;;  %v9526_v58 = vld [vmem:[#allocation219_spill] sm:$0xff]  ;;  %v9531_v60 = vld [vmem:[#allocation220_spill] sm:$0xff]  ;;  %v9532_v8 = vld [vmem:[#allocation221_spill] sm:$0xff]  ;;  %s9651_s28 = sld [smem:[#allocation40_spill]] }
 0x4dc   : > { %v2453_v52 = vadd.f32 %v2451_v18, %v2421_v20  ;;  %v2459_v5 = vadd.f32 %v2457_v16, %v2427_v27  ;;  %v9519_v39 = vmov %v9509_v63  ;;  %v9520_v36 = vmov %v9510_v6  ;;  %v9533_v18 = vld [vmem:[#allocation222_spill] sm:$0xff]  ;;  %v9534_v16 = vld [vmem:[#allocation223_spill] sm:$0xff] }
 0x4dd   : > { %v2440_v28 = vmul.f32 %v9519_v39, %v2436_v54  ;;  %v2446_v50 = vmul.f32 %v9520_v36, %v2436_v54  ;;  %v9521_v42 = vmov %v9511_v15  ;;  %v9522_v26 = vmov %v9512_v0  ;;  %v9544_v39 = vld [vmem:[#allocation129_spill] sm:$0xff]  ;;  %v9545_v36 = vld [vmem:[#allocation130_spill] sm:$0xff] }
 0x4de   : > { %v2452_v21 = vmul.f32 %v9521_v42, %v2436_v54  ;;  %v2458_v57 = vmul.f32 %v9522_v26, %v2436_v54  ;;  %v2487_v40 = vadd.f32 %v9523_v13, %v2441_v41  ;;  %v2493_v3 = vadd.f32 %v9524_v29, %v2447_v56  ;;  %v2640_v41 = vpop.permute.xlu0 %2639  ;;  %v2642_v56 = vpop.permute.xlu1 %2641  ;;  %v9546_v42 = vld [vmem:[#allocation171_spill] sm:$0xff] }
 0x4df   : > { %v2499_v34 = vadd.f32 %v9525_v14, %v2453_v52  ;;  %v2505_v9 = vadd.f32 %v9526_v58, %v2459_v5  ;;  %v2442_v10 = vadd.f32 %v2440_v28, %v2410_v33  ;;  %v2448_v2 = vadd.f32 %v2446_v50, %v2416_v62  ;;  %v9542_v52 = vld [vmem:[#allocation166_spill] sm:$0xff]  ;;  %v9549_v14 = vld [vmem:[#allocation131_spill] sm:$0xff] }
 0x4e0   : > { %v2454_v20 = vadd.f32 %v2452_v21, %v2422_v53  ;;  %v2460_v38 = vadd.f32 %v2458_v57, %v2428_v11  ;;  %v9527_v27 = vstv %s9239_s4  ;;  %v9528_v44 = vstv %s9517_s8  ;;  %v9547_v57 = vld [vmem:[#allocation168_spill] sm:$0xff]  ;;  %s9556_s4 = sld [smem:[#allocation57_spill]] }
 0x4e1   : > { %v7654_v4 = vmul.f32 %v9527_v27, %v2799_v17  ;;  %v7658_v43 = vmul.f32 %v9528_v44, %v2799_v17  ;;  %v9529_v19 = vstv %s9518_s10  ;;  %v9530_v54 = vstv %s9242_s30  ;;  %s9555_s30 = sld [smem:[#allocation56_spill]] }
 0x4e2   : > { %v7662_v1 = vmul.f32 %v9529_v19, %v2799_v17  ;;  %v7666_v63 = vmul.f32 %v9530_v54, %v2799_v17  ;;  %v2488_v6 = vadd.f32 %v9531_v60, %v2442_v10  ;;  %v2494_v15 = vadd.f32 %v9532_v8, %v2448_v2  ;;  %s9652_s8 = sld [smem:[#allocation43_spill]] }
 0x4e3   : > { %v2500_v0 = vadd.f32 %v9533_v18, %v2454_v20  ;;  %v2506_v25 = vadd.f32 %v9534_v16, %v2460_v38  ;;  %v9535_v33 = vmov %v9527_v27  ;;  %v9536_v62 = vmov %v9528_v44  ;;  %v2690_v18 = vpop.permute.xlu0 %2689  ;;  %s9659_s10 = sld [smem:[#allocation32_spill]] }
 0x4e4   : > { %v7674_v35 = vmul.f32 %v9535_v33, %v2800_v31  ;;  %v7678_v61 = vmul.f32 %v9536_v62, %v2800_v31  ;;  %v9537_v53 = vmov %v9529_v19  ;;  %v9538_v11 = vmov %v9530_v54  ;;  %v9554_v54 = vld [vmem:[#allocation169_spill] sm:$0xff] }
 0x4e5   : > { %v7682_v30 = vmul.f32 %v9537_v53, %v2800_v31  ;;  %v7686_v17 = vmul.f32 %v9538_v11, %v2800_v31  ;;  %v2511_v5 = vadd.f32 %v9542_v52, %v2487_v40  ;;  %v2517_v28 = vadd.f32 %v9544_v39, %v2493_v3  ;;  %v9548_v31 = vld [vmem:[#allocation172_spill] sm:$0xff]  ;;  %v9562_v39 = vld [vmem:[#allocation170_spill] sm:$0xff] }
 0x4e6   : > { %v2523_v50 = vadd.f32 %v9545_v36, %v2499_v34  ;;  %v2529_v21 = vadd.f32 %v9546_v42, %v2505_v9  ;;  %v2587_v26 = vsel %vm381_vm5, %v2582_v51, 0.0  ;;  %v2512_v13 = vadd.f32 %v9547_v57, %v2488_v6 }
 0x4e7   : > { %v2518_v29 = vadd.f32 %v9548_v31, %v2494_v15  ;;  %v2524_v58 = vadd.f32 %v9549_v14, %v2500_v0  ;;  %v2543_v10 = vadd.f32 %v7384_v37, %v2511_v5  ;;  %v2549_v2 = vadd.f32 %v7388_v32, %v2517_v28  ;;  %v2692_v0 = vpop.permute.xlu1 %2691 }
 0x4e8   : > { %v2555_v40 = vadd.f32 %v7392_v22, %v2523_v50  ;;  %v2561_v3 = vadd.f32 %v7396_v12, %v2529_v21  ;;  %v9550_v34 = vstv %s9539_s29  ;;  %v9551_v9 = vstv %s9540_s19  ;;  %v9564_v50 = vld [vmem:[#allocation173_spill] sm:$0xff] }
 0x4e9   : > { %v2591_v20 = vmul.f32 %v9550_v34, %v2587_v26  ;;  %v2597_v38 = vmul.f32 %v9551_v9, %v2587_v26  ;;  %v9552_v27 = vstv %s9541_s20  ;;  %v9553_v44 = vstv %s9543_s12  ;;  %s9674_s12 = sld [smem:[#allocation231_spill]] }
 0x4ea   : > { %v2603_v51 = vmul.f32 %v9552_v27, %v2587_v26  ;;  %v2609_v19 = vmul.f32 %v9553_v44, %v2587_v26  ;;  %v2530_v60 = vadd.f32 %v9554_v54, %v2506_v25  ;;  %v2544_v37 = vadd.f32 %v7400_v46, %v2512_v13  ;;  %v2748_v54 = vpop.permute.xlu0 %2747 }
 0x4eb   : > { %v2550_v32 = vadd.f32 %v7404_v45, %v2518_v29  ;;  %v2556_v22 = vadd.f32 %v7408_v23, %v2524_v58  ;;  %v2593_v12 = vadd.f32 %v2591_v20, %v2543_v10  ;;  %v2599_v6 = vadd.f32 %v2597_v38, %v2549_v2 }
 0x4ec   : > { %v2605_v8 = vadd.f32 %v2603_v51, %v2555_v40  ;;  %v2611_v15 = vadd.f32 %v2609_v19, %v2561_v3  ;;  %v2562_v16 = vadd.f32 %v7412_v48, %v2530_v60  ;;  %v2588_v25 = vsel %vm5363_vm9, %v2584_v55, 0.0  ;;  %v9563_v55 = vld [vmem:[#allocation134_spill] sm:$0xff]  ;;  %v2750_v60 = vpop.permute.xlu1 %2749 }
 0x4ed   : > { %v2645_v46 = vsel %vm382_vm6, %v2640_v41, 0.0  ;;  %v2646_v45 = vsel %vm5386_vm10, %v2642_v56, 0.0  ;;  %v9557_v23 = vmov %v9550_v34  ;;  %v9559_v62 = vmov %v9551_v9  ;;  %v9565_v41 = vld [vmem:[#allocation175_spill] sm:$0xff]  ;;  %v9570_v34 = vld [vmem:[#allocation176_spill] sm:$0xff]  ;;  %v9571_v9 = vld [vmem:[#allocation174_spill] sm:$0xff] }
 0x4ee   : > { %v2592_v33 = vmul.f32 %v9557_v23, %v2588_v25  ;;  %v2598_v53 = vmul.f32 %v9559_v62, %v2588_v25  ;;  %v9560_v11 = vmov %v9552_v27  ;;  %v9561_v48 = vmov %v9553_v44  ;;  %v9572_v27 = vld [vmem:[#allocation180_spill] sm:$0xff]  ;;  %v9573_v44 = vld [vmem:[#allocation135_spill] sm:$0xff] }
 0x4ef   : > { %v2604_v52 = vmul.f32 %v9560_v11, %v2588_v25  ;;  %v2610_v5 = vmul.f32 %v9561_v48, %v2588_v25  ;;  %v2619_v28 = vadd.f32 %v9562_v39, %v2593_v12  ;;  %v2625_v36 = vadd.f32 %v9563_v55, %v2599_v6 }
 0x4f0   : > { %v2631_v42 = vadd.f32 %v9564_v50, %v2605_v8  ;;  %v2637_v21 = vadd.f32 %v9565_v41, %v2611_v15  ;;  %v2594_v26 = vadd.f32 %v2592_v33, %v2544_v37  ;;  %v2600_v57 = vadd.f32 %v2598_v53, %v2550_v32 }
 0x4f1   : > { %v2606_v56 = vadd.f32 %v2604_v52, %v2556_v22  ;;  %v2612_v13 = vadd.f32 %v2610_v5, %v2562_v16  ;;  %v9566_v31 = vstv %s9248_s0  ;;  %v9567_v14 = vstv %s9555_s30  ;;  %s9588_s0 = sld [smem:[#allocation78_spill]] }
 0x4f2   : > { %v2649_v29 = vmul.f32 %v9566_v31, %v2645_v46  ;;  %v2655_v58 = vmul.f32 %v9567_v14, %v2645_v46  ;;  %v9568_v10 = vstv %s9556_s4  ;;  %v9569_v40 = vstv %s9558_s3 }
 0x4f3   : > { %v2661_v2 = vmul.f32 %v9568_v10, %v2645_v46  ;;  %v2667_v3 = vmul.f32 %v9569_v40, %v2645_v46  ;;  %v2620_v20 = vadd.f32 %v9570_v34, %v2594_v26  ;;  %v2626_v38 = vadd.f32 %v9571_v9, %v2600_v57 }
 0x4f4   : > { %v2632_v51 = vadd.f32 %v9572_v27, %v2606_v56  ;;  %v2638_v19 = vadd.f32 %v9573_v44, %v2612_v13  ;;  %v2651_v37 = vadd.f32 %v2649_v29, %v2619_v28  ;;  %v2657_v32 = vadd.f32 %v2655_v58, %v2625_v36 }
 0x4f5   : > { %v2663_v22 = vadd.f32 %v2661_v2, %v2631_v42  ;;  %v2669_v12 = vadd.f32 %v2667_v3, %v2637_v21  ;;  %v9576_v6 = vmov %v9566_v31  ;;  %v9577_v15 = vmov %v9567_v14 }
 0x4f6   : > { %v2650_v8 = vmul.f32 %v9576_v6, %v2646_v45  ;;  %v2656_v16 = vmul.f32 %v9577_v15, %v2646_v45  ;;  %v9578_v25 = vmov %v9568_v10  ;;  %v9579_v23 = vmov %v9569_v40 }
 0x4f7   : > { %v2662_v46 = vmul.f32 %v9578_v25, %v2646_v45  ;;  %v2668_v33 = vmul.f32 %v9579_v23, %v2646_v45  ;;  %v2695_v62 = vsel %vm5272_vm7, %v2690_v18, 0.0  ;;  %v2696_v53 = vsel %vm381_vm5, %v2692_v0, 0.0 }
 0x4f8   : > { %v2753_v11 = vsel %vm5322_vm8, %v2748_v54, 0.0  ;;  %v2754_v52 = vsel %vm382_vm6, %v2750_v60, 0.0  ;;  %v2652_v48 = vadd.f32 %v2650_v8, %v2620_v20  ;;  %v2658_v5 = vadd.f32 %v2656_v16, %v2626_v38  ;;  %v9590_v20 = vld [vmem:[#allocation137_spill] sm:$0xff]  ;;  %v9591_v38 = vld [vmem:[#allocation177_spill] sm:$0xff]  ;;  %v2850_v60 = vpop.permute.xlu0 %2849 }
 0x4f9   : > { %v2664_v39 = vadd.f32 %v2662_v46, %v2632_v51  ;;  %v2670_v28 = vadd.f32 %v2668_v33, %v2638_v19  ;;  %v9580_v55 = vstv %s9574_s21  ;;  %v9581_v45 = vstv %s9252_s11  ;;  %v9592_v51 = vld [vmem:[#allocation185_spill] sm:$0xff]  ;;  %v9599_v33 = vld [vmem:[#allocation140_spill] sm:$0xff]  ;;  %s9606_s11 = sld [smem:[#allocation60_spill]]  ;;  %s3870_s21 = smov [#allocation15]  }
 0x4fa   : > { %v2699_v36 = vmul.f32 %v9580_v55, %v2695_v62  ;;  %v2705_v50 = vmul.f32 %v9581_v45, %v2695_v62  ;;  %v9582_v24 = vstv %s9575_s1  ;;  %v9583_v18 = vstv %s7012_s24  ;;  %v9593_v19 = vld [vmem:[#allocation181_spill] sm:$0xff]  ;;  %s9608_s24 = sld [smem:[#allocation62_spill]]  ;;  %s3780_s1 = sshll.u32 %s3870_s21, 4  ;;  %s3781_s1 = int_to_ptr.vmem [resolvable:$false] %s3780_s1 }
 0x4fb   : > { %v2711_v42 = vmul.f32 %v9582_v24, %v2695_v62  ;;  %v2717_v41 = vmul.f32 %v9583_v18, %v2695_v62  ;;  %v9584_v21 = vmov %v9580_v55  ;;  %v9585_v26 = vmov %v9581_v45  ;;  %v9598_v46 = vld [vmem:[#allocation138_spill] sm:$0xff] }
 0x4fc   : > { %v2700_v0 = vmul.f32 %v9584_v21, %v2696_v53  ;;  %v2706_v7 = vmul.f32 %v9585_v26, %v2696_v53  ;;  %v9586_v57 = vmov %v9582_v24  ;;  %v9587_v13 = vmov %v9583_v18 }
 0x4fd   : > { %v2712_v56 = vmul.f32 %v9586_v57, %v2696_v53  ;;  %v2718_v31 = vmul.f32 %v9587_v13, %v2696_v53  ;;  %v2701_v29 = vadd.f32 %v2699_v36, %v2651_v37  ;;  %v2707_v14 = vadd.f32 %v2705_v50, %v2657_v32  ;;  %v2852_v37 = vpop.permute.xlu1 %2851  ;;  %v9600_v53 = vld [vmem:[#allocation178_spill] sm:$0xff] }
 0x4fe   : > { %v2713_v58 = vadd.f32 %v2711_v42, %v2663_v22  ;;  %v2719_v10 = vadd.f32 %v2717_v41, %v2669_v12  ;;  %v2702_v2 = vadd.f32 %v2700_v0, %v2652_v48  ;;  %v2708_v40 = vadd.f32 %v2706_v7, %v2658_v5  ;;  %v9601_v5 = vld [vmem:[#allocation132_spill] sm:$0xff] }
 0x4ff   : > { %v2714_v3 = vadd.f32 %v2712_v56, %v2664_v39  ;;  %v2720_v34 = vadd.f32 %v2718_v31, %v2670_v28  ;;  %v2727_v9 = vadd.f32 %v9590_v20, %v2701_v29  ;;  %v2733_v27 = vadd.f32 %v9591_v38, %v2707_v14 }
 0x500   : > { %v2739_v44 = vadd.f32 %v9592_v51, %v2713_v58  ;;  %v2745_v54 = vadd.f32 %v9593_v19, %v2719_v10  ;;  %v9594_v32 = vstv %s7018_s23  ;;  %v9595_v12 = vstv %s9588_s0  ;;  %s9607_s23 = sld [smem:[#allocation61_spill]]  ;;  %v2900_v58 = vpop.permute.xlu0 %2899  ;;  %s3782_s0 = scalar_lea.vmem %s3781_s1, 2048 }
 0x501   : > { %v2757_v22 = vmul.f32 %v9594_v32, %v2753_v11  ;;  %v2763_v6 = vmul.f32 %v9595_v12, %v2753_v11  ;;  %v9596_v8 = vstv %s7030_s18  ;;  %v9597_v16 = vstv %s9589_s13  ;;  %v2902_v10 = vpop.permute.xlu1 %2901  ;;  %s9610_s18 = sld [smem:[#allocation83_spill]] }
 0x502   : > { %v2769_v15 = vmul.f32 %v9596_v8, %v2753_v11  ;;  %v2775_v25 = vmul.f32 %v9597_v16, %v2753_v11  ;;  %v2728_v23 = vadd.f32 %v9598_v46, %v2702_v2  ;;  %v2734_v62 = vadd.f32 %v9599_v33, %v2708_v40  ;;  %v9609_v2 = vld [vmem:[#allocation182_spill] sm:$0xff]  ;;  %v9611_v40 = vld [vmem:[#allocation34_spill] sm:$0xff] }
 0x503   : > { %v2740_v48 = vadd.f32 %v9600_v53, %v2714_v3  ;;  %v2746_v39 = vadd.f32 %v9601_v5, %v2720_v34  ;;  %v2759_v28 = vadd.f32 %v2757_v22, %v2727_v9  ;;  %v2765_v55 = vadd.f32 %v2763_v6, %v2733_v27  ;;  %v9612_v3 = vld [vmem:[#allocation142_spill] sm:$0xff]  ;;  %v9613_v34 = vld [vmem:[#allocation186_spill] sm:$0xff]  ;;  %v9620_v6 = vld [vmem:[#allocation144_spill] sm:$0xff] }
 0x504   : > { %v2771_v36 = vadd.f32 %v2769_v15, %v2739_v44  ;;  %v2777_v45 = vadd.f32 %v2775_v25, %v2745_v54  ;;  %v9602_v50 = vmov %v9594_v32  ;;  %v9603_v42 = vmov %v9595_v12 }
 0x505   : > { %v2758_v24 = vmul.f32 %v9602_v50, %v2754_v52  ;;  %v2764_v18 = vmul.f32 %v9603_v42, %v2754_v52  ;;  %v9604_v41 = vmov %v9596_v8  ;;  %v9605_v0 = vmov %v9597_v16  ;;  %v9622_v8 = vld [vmem:[#allocation188_spill] sm:$0xff]  ;;  %v9624_v16 = vld [vmem:[#allocation33_spill] sm:$0xff] }
 0x506   : > { %v2770_v21 = vmul.f32 %v9604_v41, %v2754_v52  ;;  %v2776_v11 = vmul.f32 %v9605_v0, %v2754_v52  ;;  %v2805_v26 = vadd.f32 %v7654_v4, %v2759_v28  ;;  %v2811_v7 = vadd.f32 %v7658_v43, %v2765_v55 }
 0x507   : > { %v2817_v57 = vadd.f32 %v7662_v1, %v2771_v36  ;;  %v2823_v56 = vadd.f32 %v7666_v63, %v2777_v45  ;;  %v2760_v13 = vadd.f32 %v2758_v24, %v2728_v23  ;;  %v2766_v31 = vadd.f32 %v2764_v18, %v2734_v62 }
 0x508   : > { %v2772_v29 = vadd.f32 %v2770_v21, %v2740_v48  ;;  %v2778_v14 = vadd.f32 %v2776_v11, %v2746_v39  ;;  %v2829_v52 = vadd.f32 %v9609_v2, %v2805_v26  ;;  %v2835_v4 = vadd.f32 %v9611_v40, %v2811_v7 }
 0x509   : > { %v2841_v43 = vadd.f32 %v9612_v3, %v2817_v57  ;;  %v2847_v1 = vadd.f32 %v9613_v34, %v2823_v56  ;;  %v2806_v63 = vadd.f32 %v7674_v35, %v2760_v13  ;;  %v2812_v20 = vadd.f32 %v7678_v61, %v2766_v31  ;;  %v2958_v34 = vpop.permute.xlu0 %2957 }
 0x50a   : > { %v2818_v9 = vadd.f32 %v7682_v30, %v2772_v29  ;;  %v2824_v38 = vadd.f32 %v7686_v17, %v2778_v14  ;;  %v2855_v27 = vsel %vm382_vm6, %v2850_v60, 0.0  ;;  %v2856_v51 = vsel %vm382_vm6, %v2852_v37, 0.0  ;;  %v9618_v37 = vld [vmem:[#allocation184_spill] sm:$0xff] }
 0x50b   : > { %v2905_v44 = vsel %vm381_vm5, %v2900_v58, 0.0  ;;  %v2906_v19 = vsel %vm5363_vm9, %v2902_v10, 0.0  ;;  %v9614_v35 = vstv %s9606_s11  ;;  %v9615_v54 = vstv %s9607_s23 }
 0x50c   : > { %v2859_v61 = vmul.f32 %v9614_v35, %v2855_v27  ;;  %v2865_v30 = vmul.f32 %v9615_v54, %v2855_v27  ;;  %v9616_v17 = vstv %s9608_s24  ;;  %v9617_v60 = vstv %s9610_s18 }
 0x50d   : > { %v2871_v32 = vmul.f32 %v9616_v17, %v2855_v27  ;;  %v2877_v22 = vmul.f32 %v9617_v60, %v2855_v27  ;;  %v2830_v12 = vadd.f32 %v9618_v37, %v2806_v63  ;;  %v2836_v49 = vadd.f32 %v9620_v6, %v2812_v20  ;;  %v9637_v63 = vld [vmem:[#allocation192_spill] sm:$0xff]  ;;  %v9639_v27 = vld [vmem:[#allocation194_spill] sm:$0xff] }
 0x50e   : > { %v2842_v15 = vadd.f32 %v9622_v8, %v2818_v9  ;;  %v2848_v25 = vadd.f32 %v9624_v16, %v2824_v38  ;;  %v2861_v46 = vadd.f32 %v2859_v61, %v2829_v52  ;;  %v2867_v23 = vadd.f32 %v2865_v30, %v2835_v4  ;;  %v9638_v9 = vld [vmem:[#allocation193_spill] sm:$0xff] }
 0x50f   : > { %v2873_v33 = vadd.f32 %v2871_v32, %v2841_v43  ;;  %v2879_v62 = vadd.f32 %v2877_v22, %v2847_v1  ;;  %v9625_v53 = vmov %v9614_v35  ;;  %v9626_v5 = vmov %v9615_v54  ;;  %v2960_v1 = vpop.permute.xlu1 %2959 }
 0x510   : > { %v2860_v48 = vmul.f32 %v9625_v53, %v2856_v51  ;;  %v2866_v39 = vmul.f32 %v9626_v5, %v2856_v51  ;;  %v9627_v28 = vmov %v9616_v17  ;;  %v9628_v36 = vmov %v9617_v60  ;;  %v9650_v53 = vld [vmem:[#allocation199_spill] sm:$0xff] }
 0x511   : > { %v2872_v55 = vmul.f32 %v9627_v28, %v2856_v51  ;;  %v2878_v45 = vmul.f32 %v9628_v36, %v2856_v51  ;;  %v9629_v50 = vstv %s7066_s14  ;;  %v9630_v42 = vstv %s9619_s2  ;;  %s9644_s14 = sld [smem:[#allocation63_spill]] }
 0x512   : > { %v2909_v24 = vmul.f32 %v9629_v50, %v2905_v44  ;;  %v2915_v18 = vmul.f32 %v9630_v42, %v2905_v44  ;;  %v9631_v41 = vstv %s9621_s26  ;;  %v9632_v0 = vstv %s9623_s6 }
 0x513   : > { %v2921_v21 = vmul.f32 %v9631_v41, %v2905_v44  ;;  %v2927_v11 = vmul.f32 %v9632_v0, %v2905_v44  ;;  %v2862_v26 = vadd.f32 %v2860_v48, %v2830_v12  ;;  %v2868_v7 = vadd.f32 %v2866_v39, %v2836_v49  ;;  %v9640_v44 = vld [vmem:[#allocation196_spill] sm:$0xff] }
 0x514   : > { %v2874_v57 = vadd.f32 %v2872_v55, %v2842_v15  ;;  %v2880_v56 = vadd.f32 %v2878_v45, %v2848_v25  ;;  %v2911_v13 = vadd.f32 %v2909_v24, %v2861_v46  ;;  %v2917_v31 = vadd.f32 %v2915_v18, %v2867_v23  ;;  %v9648_v23 = vld [vmem:[#allocation197_spill] sm:$0xff] }
 0x515   : > { %v2923_v29 = vadd.f32 %v2921_v21, %v2873_v33  ;;  %v2929_v14 = vadd.f32 %v2927_v11, %v2879_v62  ;;  %v9633_v58 = vmov %v9629_v50  ;;  %v9634_v2 = vmov %v9630_v42  ;;  %v9649_v33 = vld [vmem:[#allocation198_spill] sm:$0xff] }
 0x516   : > { %v2910_v10 = vmul.f32 %v9633_v58, %v2906_v19  ;;  %v2916_v52 = vmul.f32 %v9634_v2, %v2906_v19  ;;  %v9635_v40 = vmov %v9631_v41  ;;  %v9636_v3 = vmov %v9632_v0 }
 0x517   : > { %v2922_v4 = vmul.f32 %v9635_v40, %v2906_v19  ;;  %v2928_v43 = vmul.f32 %v9636_v3, %v2906_v19  ;;  %v2937_v20 = vadd.f32 %v9637_v63, %v2911_v13  ;;  %v2943_v38 = vadd.f32 %v9638_v9, %v2917_v31 }
 0x518   : > { %v2949_v51 = vadd.f32 %v9639_v27, %v2923_v29  ;;  %v2955_v35 = vadd.f32 %v9640_v44, %v2929_v14  ;;  %v2912_v61 = vadd.f32 %v2910_v10, %v2862_v26  ;;  %v2918_v54 = vadd.f32 %v2916_v52, %v2868_v7 }
 0x519   : > { %v2924_v30 = vadd.f32 %v2922_v4, %v2874_v57  ;;  %v2930_v17 = vadd.f32 %v2928_v43, %v2880_v56  ;;  %v3035_v32 = vstv %s7832_s27  ;;  %v3039_v60 = vstv %s7834_s17 }
 0x51a   : > { %v2963_v19 = vsel %vm382_vm6, %v2958_v34, 0.0  ;;  %v2964_v22 = vsel %vm5386_vm10, %v2960_v1, 0.0  ;;  %v9641_v37 = vstv %s7090_s7  ;;  %v9642_v6 = vstv %s7096_s25  ;;  %s9666_s7 = sld [smem:[#allocation26_spill]] }
 0x51b   : > { %v2967_v12 = vmul.f32 %v9641_v37, %v2963_v19  ;;  %v2973_v49 = vmul.f32 %v9642_v6, %v2963_v19  ;;  %v9643_v8 = vstv %s7103_s5  ;;  %v9645_v16 = vstv %s7110_s15  ;;  %s9668_s15 = sld [smem:[#allocation31_spill]] }
 0x51c   : > { %v2979_v15 = vmul.f32 %v9643_v8, %v2963_v19  ;;  %v2985_v25 = vmul.f32 %v9645_v16, %v2963_v19  ;;  %v2938_v46 = vadd.f32 %v9647_v59, %v2912_v61  ;;  %v2944_v47 = vadd.f32 %v9648_v23, %v2918_v54  ;;  %v3656_v54 = vld [vmem:[%s9659_s10 + $0x20] sm:$0xff] }
 0x51d   : > { %v2950_v62 = vadd.f32 %v9649_v33, %v2924_v30  ;;  %v2956_v48 = vadd.f32 %v9650_v53, %v2930_v17  ;;  %v2969_v5 = vadd.f32 %v2967_v12, %v2937_v20  ;;  %v2975_v39 = vadd.f32 %v2973_v49, %v2943_v38  ;;  %v3657_v17 = vld [vmem:[%s9659_s10 + $0x30] sm:$0xff] }
 0x51e   : > { %v2981_v28 = vadd.f32 %v2979_v15, %v2949_v51  ;;  %v2987_v55 = vadd.f32 %v2985_v25, %v2955_v35  ;;  %v9653_v36 = vmov %v9641_v37  ;;  %v9654_v50 = vmov %v9642_v6  ;;  %v3654_v51 = vld [vmem:[%s9659_s10] sm:$0xff]  ;;  %v3655_v35 = vld [vmem:[%s9659_s10 + $0x10] sm:$0xff] }
 0x51f   : > { %v2968_v45 = vmul.f32 %v9653_v36, %v2964_v22  ;;  %v2974_v24 = vmul.f32 %v9654_v50, %v2964_v22  ;;  %v9655_v42 = vmov %v9643_v8  ;;  %v9656_v41 = vmov %v9645_v16 }
 0x520   : > { %v2980_v18 = vmul.f32 %v9655_v42, %v2964_v22  ;;  %v2986_v21 = vmul.f32 %v9656_v41, %v2964_v22  ;;  %v9657_v0 = vstv %s9644_s14  ;;  %v9658_v26 = vstv %s9646_s9  ;;  %s3535_s5 = sshll.u32 %s9666_s7, 10 }
 0x521   : > { %v2991_v11 = vmul.f32 %v9657_v0, %v2969_v5  ;;  %v3006_v7 = vmul.f32 %v9658_v26, %v2975_v39  ;;  %v9660_v57 = vstv %s7180_s22  ;;  %v3036_v13 = vmul.f32 %v3035_v32, %v2987_v55  ;;  %s9672_s25 = sshll.u32 %s9668_s15, 6  ;;  %s7932_s30 = scalar_lea.hbm %s9674_s12, %s3535_s5 }
 0x522   : > { %v3021_v56 = vmul.f32 %v9660_v57, %v2981_v28  ;;  %v2970_v31 = vadd.f32 %v2968_v45, %v2938_v46  ;;  %v2976_v29 = vadd.f32 %v2974_v24, %v2944_v47  ;;  %v2982_v14 = vadd.f32 %v2980_v18, %v2950_v62  ;;  %s371_s22 = scalar_lea.vmem [#allocation15], %s9672_s25  ;;  %v3658_v46 = vld [vmem:[%s9659_s10 + $0x8] sm:$0xff]  ;;  %v3659_v47 = vld [vmem:[%s9659_s10 + $0x18] sm:$0xff]  ;;  %s3050_s4 = scalar_lea.sflag [#allocation4], %s9668_s15 }
 0x523   : > { %v2988_v58 = vadd.f32 %v2986_v21, %v2956_v48  ;;  %v9661_v10 = vstv %s9651_s28  ;;  %v9662_v52 = vstv %s9652_s8  ;;  %v9663_v4 = vstv %s7196_s16  ;;  %s3063_s29 = sshll.u32 %s371_s22, 4  ;;  %v3660_v62 = vld [vmem:[%s9659_s10 + $0x28] sm:$0xff]  ;;  %s9673_s16 = sld [smem:[#allocation29_spill]]  ;;  %s7934_s29 = int_to_ptr.vmem [resolvable:$true] %s3063_s29 }
 0x524   : > { %v2995_v2 = vadd.f32 %v9661_v10, %v2991_v11  ;;  %v3010_v40 = vadd.f32 %v9662_v52, %v3006_v7  ;;  %v3025_v3 = vadd.f32 %v9663_v4, %v3021_v56  ;;  %v3040_v43 = vadd.f32 %v3039_v60, %v3036_v13  ;;  %v3661_v48 = vld [vmem:[%s9659_s10 + $0x38] sm:$0xff]  ;;  %s3776_s3 = scalar_lea.vmem %s7934_s29, 1024  ;;  %p3783_p8 = scmp.lt.s32.totalorder %s7934_s29, %s3781_s1 }
 0x525   : > { %v9664_v34 = vmov %v9657_v0  ;;  %v9665_v63 = vmov %v9658_v26  ;;  %v9667_v9 = vmov %v9660_v57  ;;  %v3037_v27 = vmul.f32 %v3035_v32, %v2988_v58  ;;  %p3777_p4 = scmp.ne.s32.totalorder %s7934_s29, %s3776_s3  ;;  %p3784_p6 = scmp.lt.s32.totalorder %s3782_s0, %s3776_s3 }
 0x526   : > { %v2992_v1 = vmul.f32 %v9664_v34, %v2970_v31  ;;  %v3007_v20 = vmul.f32 %v9665_v63, %v2976_v29  ;;  %v3022_v38 = vmul.f32 %v9667_v9, %v2982_v14  ;;  %v2997_v44 = vadd.f32 %v3654_v51, %v2995_v2 }
 0x527   : > { %v3012_v61 = vadd.f32 %v3655_v35, %v3010_v40  ;;  %v3027_v30 = vadd.f32 %v3656_v54, %v3025_v3  ;;  %v3042_v19 = vadd.f32 %v3657_v17, %v3040_v43  ;;  %v9669_v22 = vmov %v9661_v10  ;;  %p3785_p12 = por %p3784_p6, %p3783_p8 }
 0x528   : > { %v2996_v37 = vadd.f32 %v9669_v22, %v2992_v1  ;;  %v9670_v12 = vmov %v9662_v52  ;;  %v9671_v49 = vmov %v9663_v4  ;;  %v3041_v15 = vadd.f32 %v3039_v60, %v3037_v27 }
 0x529   : > { %v3011_v6 = vadd.f32 %v9670_v12, %v3007_v20  ;;  %v3026_v8 = vadd.f32 %v9671_v49, %v3022_v38  ;;  %v2999_v32 = vmax.f32 %v2997_v44, 0.0  ;;  %v3014_v16 = vmax.f32 %v3012_v61, 0.0  ;;  %p9675_p11 = scmp.ne.s32.totalorder %s9673_s16, 0 }
 0x52a   : > { %v3029_v25 = vmax.f32 %v3027_v30, 0.0  ;;  %v3044_v59 = vmax.f32 %v3042_v19, 0.0  ;;  %v2998_v23 = vadd.f32 %v3658_v46, %v2996_v37  ;;  %v3043_v5 = vadd.f32 %v3661_v48, %v3041_v15 }
 0x52b   : > { %v3013_v33 = vadd.f32 %v3659_v47, %v3011_v6  ;;  %v3028_v53 = vadd.f32 %v3660_v62, %v3026_v8  ;;  %3002 = vst.msk [vmem:[%s371_s22] sm:$0xff] %vm3001_vm11, %v2999_v32  ;;  %3519 = vst.msk [vmem:[%s371_s22 + $0x10] sm:$0xff] %vm3001_vm11, %v3014_v16  ;;  %p3778_p2 = pnand %p3777_p4, %p9675_p11 }
 0x52c   : > { %3523 = vst.msk [vmem:[%s371_s22 + $0x20] sm:$0xff] %vm3001_vm11, %v3029_v25  ;;  %3527 = vst.msk [vmem:[%s371_s22 + $0x30] sm:$0xff] %vm3001_vm11, %v3044_v59  ;;  %v3000_v60 = vmax.f32 %v2998_v23, 0.0  ;;  %v3045_v55 = vmax.f32 %v3043_v5, 0.0 }
 0x52d   : > { %v3015_v39 = vmax.f32 %v3013_v33, 0.0  ;;  %v3030_v28 = vmax.f32 %v3028_v53, 0.0  ;;  %p3779_p5 = pneg %p3778_p2 }
 0x52e   : > { %3003 = vst.msk [vmem:[%s371_s22 + $0x8] sm:$0xff] %vm3001_vm11, %v3000_v60  ;;  %3528 = vst.msk [vmem:[%s371_s22 + $0x38] sm:$0xff] %vm3001_vm11, %v3045_v55 }
 0x52f   : > { %3520 = vst.msk [vmem:[%s371_s22 + $0x18] sm:$0xff] %vm3001_vm11, %v3015_v39  ;;  %3524 = vst.msk [vmem:[%s371_s22 + $0x28] sm:$0xff] %vm3001_vm11, %v3030_v28  ;;  %p3786_p13 = pnand %p3785_p12, %p3779_p5 }
 0x531   : > { %3789 = shalt.err (!%p3786_p13)
}
 0x532   : > { %s3790_s13 = scalar_lea.hbm %s7932_s30, 1024  ;;  %s3794_s24 = scalar_lea.hbm %s9674_s12, 2048 }
 0x533   : > { %p3791_p0 = scmp.ne.s32.totalorder %s7932_s30, %s3790_s13  ;;  %p3795_p10 = scmp.lt.s32.totalorder %s7932_s30, %s9674_s12 }
 0x534   : > { %p3796_p1 = scmp.lt.s32.totalorder %s3794_s24, %s3790_s13 }
 0x535   : > { %p3792_p7 = pnand %p3791_p0, %p9675_p11 }
 0x536   : > { %p3797_p3 = por %p3796_p1, %p3795_p10 }
 0x537   : > { %p3793_p9 = pneg %p3792_p7 }
 0x539   : > { %p3798_p4 = pnand %p3797_p3, %p3793_p9 }
 0x53b   : > { %3801 = shalt.err (!%p3798_p4)
}
 0x53c   : > { %s3871_s26 = smov 128   ;;  %s3872_s6 = smov 8  }
 0x53d   : > { %3562 = dma.vmem_to_hbm [thread:$0]  (%p9675_p11), %s7934_s29, 1024, %s7932_s30, %s3050_s4, %s3871_s26, %s3871_s26, %s3872_s6  }
 0x53e PF: > { %s9676_s27 = sld [smem:[#allocation22_spill]] }
 0x53f   : > { %s9677_s17 = sld [smem:[#allocation30_spill]] }
 0x540   : > { %s9678_s14 = sld [smem:[#allocation25_spill]] }
 0x544   : > { %s3078_s9 = sand.u32 1, %s9676_s27  }
 0x545   : > { %p9679_p2 = scmp.ne.s32.totalorder %s9677_s17, 0  ;;  %s3079_s28 = scalar_lea.sflag [#allocation4], %s3078_s9 }
 0x546   : > { %p9680_p5 = scmp.ge.s32.totalorder %s9678_s14, 2 }
 0x548   : > { %p3588_p8 = pnand %p9680_p5, %p9679_p2 }
 0x54a   : > { %p3589_p6 = pneg %p3588_p8 }
 0x54c   : > { %3839 = dma.done.wait (%p3589_p6), %s3079_s28, 1024  }
 0x54d   : > { %3841 = vsyncadd (%p3589_p6), %s3079_s28, 4294966272  ;;  %s9681_s27 = sld [smem:[#allocation27_spill]] }
 0x54e   : > { %s9682_s24 = sld [smem:[#allocation23_spill]] }
 0x54f   : > { %s9683_s25 = sld [smem:[#allocation24_spill]] }
 0x550   : > { %s9684_s26 = sld [smem:[#allocation28_spill]] }
 0x553   : > { %p24_p12 = scmp.ge.s32.totalorder %s9681_s27, 4  }
 0x555   :  { %26 = sbr.rel (!%p24_p12) target bundleno = 18 (0x12), region = 125 }
 0x55a   :  { %3084 = vsyncpa [#allocation3], 1 }
 0x55b   :  { %3086 = vsyncpa [#allocation3 + $0x1], 1 }
 0x55c   :  { %3087 = vsyncpa [#allocation4], 1 }
 0x55d   :  { %3089 = vsyncpa [#allocation4 + $0x1], 1 }
 0x55e   :  { %3090 = vsyncpa [#allocation5], 1 }
 0x55f   :  { %3092 = vsyncpa [#allocation5 + $0x1], 1 }
 0x560   :  { %3093 = vsyncpa [#allocation6], 1 }
 0x561   :  { %3095 = vsyncpa [#allocation6 + $0x1], 1 }
 0x562   :  { %3096 = vsyncpa [#allocation10], 1 }
 0x563   :  { %3097 = vsyncpa [#allocation13], 1 }

</bundles_post_ra>
